<compile_context>
chip_gen: v5e
topology: v5e:2x2
jax: 0.10.0
libtpu: 0.0.40
codegen_flags: <defaults>
</compile_context>

<pallas_src>
import jax
import jax.numpy as jnp
import numpy as np
from jax.experimental import pallas as pl
from jax.experimental.pallas import tpu as pltpu

EPS = 1e-5  # InstanceNorm3d default eps


# --------------------------------------------------------------------------
# Fused kernel (one grid step = one batch sample).
# --------------------------------------------------------------------------
def _make_kernel(C, Cr, Sp, Sp_ext, S, pad_left, tap_offsets):
    inv_S = 1.0 / float(S)

    def kernel(x_ref, w1_ref, b1_ref, w2_ref, b2_ref,
               sw1_ref, sb1_ref, sw2_ref, sb2_ref, mask_ref,
               o_ref, p_scr, a_scr):
        # x_ref   : (1, C, Sp_ext) f32  zero-extended padded-flat input sample
        # w*_ref  : (C, 27*C)      bf16 conv weights as matmul operands
        # b*_ref  : (C, 1)         f32
        # sw1_ref : (C, Cr) f32, sb1_ref: (1, Cr) f32  (SE 1x1 conv #1)
        # sw2_ref : (C, Cr) f32, sb2_ref: (C, 1) f32   (SE 1x1 conv #2)
        # mask_ref: (1, Sp) f32   1.0 at valid interior spatial positions, 0.0 at padding
        # o_ref   : (1, C, Sp) f32
        # p_scr   : (27*C, Sp) bf16  im2col patch matrix (VMEM resident)
        # a_scr   : (C, Sp_ext) f32  zero-extended conv1 activation (VMEM resident)
        x = x_ref[0]                       # (C, Sp_ext)
        mask = mask_ref[...]               # (1, Sp)

        def conv_in_relu(src, w_ref, b_ref):
            # src: (C, Sp_ext) with zero halos.  Build P with 27 static shifted slices,
            # one MXU matmul (K = 27*C), then fused single-pass InstanceNorm + ReLU.
            for t, off in enumerate(tap_offsets):
                p_scr[t * C:(t + 1) * C, :] = src[:, off:off + Sp].astype(jnp.bfloat16)
            y = jnp.dot(w_ref[...], p_scr[...],
                        preferred_element_type=jnp.float32)       # (C, Sp) f32
            y = (y + b_ref[...]) * mask                           # zero non-valid columns
            s1 = jnp.sum(y, axis=1, keepdims=True)                # (C, 1)
            s2 = jnp.sum(y * y, axis=1, keepdims=True)            # (C, 1)
            mean = s1 * inv_S
            var = s2 * inv_S - mean * mean                        # biased variance
            yn = (y - mean) * jax.lax.rsqrt(var + EPS)
            return jnp.maximum(yn, 0.0) * mask                    # (C, Sp)

        # ---- conv1 + InstanceNorm + ReLU ----
        a1 = conv_in_relu(x, w1_ref, b1_ref)

        # ---- re-embed a1 into the zero-extended layout (stays in VMEM) ----
        a_scr[...] = jnp.zeros((C, Sp_ext), jnp.float32)
        a_scr[:, pad_left:pad_left + Sp] = a1
        a1e = a_scr[...]

        # ---- conv2 + InstanceNorm + ReLU ----
        a2 = conv_in_relu(a1e, w2_ref, b2_ref)

        # ---- SE block: global avg pool -> 1x1 conv -> ReLU -> 1x1 conv -> sigmoid ----
        pooled = jnp.sum(a2, axis=1, keepdims=True) * inv_S                        # (C, 1)
        h = jnp.sum(pooled * sw1_ref[...], axis=0, keepdims=True) + sb1_ref[...]   # (1, Cr)
        h = jnp.maximum(h, 0.0)
        logits = jnp.sum(sw2_ref[...] * h, axis=1, keepdims=True) + sb2_ref[...]   # (C, 1)
        gate = 1.0 / (1.0 + jnp.exp(-logits))                                      # sigmoid

        # ---- channel scale + residual + final ReLU ----
        x_res = x[:, pad_left:pad_left + Sp]                                       # (C, Sp)
        o_ref[0] = jnp.maximum(a2 * gate + x_res, 0.0)

    return kernel


# --------------------------------------------------------------------------
# Wrapper: layout plumbing (XLA glue) + single fused pallas_call.
# --------------------------------------------------------------------------
def residual_block_forward(x_ncdhw, w1, b1, w2, b2, se_w1, se_b1, se_w2, se_b2):
    """Pallas forward of Residual_Block. x is NCDHW float32; returns NCDHW float32."""
    N, C, D, H, W = x_ncdhw.shape
    Cr = se_w1.shape[0]
    Dp, Hp, Wp = D + 2, H + 2, W + 2
    S = D * H * W
    Sp = Dp * Hp * Wp
    halo = Hp * Wp + Wp + 1                           # max |flat shift| of a 3x3x3 tap
    pad_left = ((halo + 127) // 128) * 128            # lane-tile aligned margin
    pad_right = pad_left
    Sp_ext = Sp + pad_left + pad_right

    # Channel-major, padded, flattened-spatial, zero-extended layout: (N, C, Sp_ext).
    x_pad = jnp.pad(x_ncdhw, ((0, 0), (0, 0), (1, 1), (1, 1), (1, 1)))
    x_ext = jnp.pad(x_pad.reshape(N, C, Sp),
                    ((0, 0), (0, 0), (pad_left, pad_right))).astype(jnp.float32)

    # Conv weights (Cout, Cin, kd, kh, kw) -> (Cout, 27*Cin), tap-major / channel-minor,
    # cast to bf16 for the MXU.
    w1_mat = jnp.transpose(w1, (0, 2, 3, 4, 1)).reshape(C, 27 * C).astype(jnp.bfloat16)
    w2_mat = jnp.transpose(w2, (0, 2, 3, 4, 1)).reshape(C, 27 * C).astype(jnp.bfloat16)
    b1_col = b1.reshape(C, 1).astype(jnp.float32)
    b2_col = b2.reshape(C, 1).astype(jnp.float32)
    sw1 = se_w1.reshape(Cr, C).T.astype(jnp.float32)          # (C, Cr)
    sb1 = se_b1.reshape(1, Cr).astype(jnp.float32)
    sw2 = se_w2.reshape(C, Cr).astype(jnp.float32)            # (C, Cr)
    sb2 = se_b2.reshape(C, 1).astype(jnp.float32)

    # Validity mask over the padded flat spatial axis (1 at interior positions).
    mask = jnp.pad(jnp.ones((D, H, W), jnp.float32),
                   ((1, 1), (1, 1), (1, 1))).reshape(1, Sp)

    # Static flat-index offsets of the 27 taps (same ordering as the weight reshape).
    tap_offsets = tuple(
        pad_left + (kd - 1) * Hp * Wp + (kh - 1) * Wp + (kw - 1)
        for kd in range(3) for kh in range(3) for kw in range(3))

    kernel = _make_kernel(C, Cr, Sp, Sp_ext, S, pad_left, tap_offsets)

    out_flat = pl.pallas_call(
        kernel,
        out_shape=jax.ShapeDtypeStruct((N, C, Sp), jnp.float32),
        grid=(N,),
        in_specs=[
            pl.BlockSpec((1, C, Sp_ext), lambda n: (n, 0, 0)),   # x (zero-extended)
            pl.BlockSpec((C, 27 * C), lambda n: (0, 0)),         # w1
            pl.BlockSpec((C, 1), lambda n: (0, 0)),              # b1
            pl.BlockSpec((C, 27 * C), lambda n: (0, 0)),         # w2
            pl.BlockSpec((C, 1), lambda n: (0, 0)),              # b2
            pl.BlockSpec((C, Cr), lambda n: (0, 0)),             # se w1
            pl.BlockSpec((1, Cr), lambda n: (0, 0)),             # se b1
            pl.BlockSpec((C, Cr), lambda n: (0, 0)),             # se w2
            pl.BlockSpec((C, 1), lambda n: (0, 0)),              # se b2
            pl.BlockSpec((1, Sp), lambda n: (0, 0)),             # validity mask
        ],
        out_specs=pl.BlockSpec((1, C, Sp), lambda n: (n, 0, 0)),
        scratch_shapes=[
            pltpu.VMEM((27 * C, Sp), jnp.bfloat16),              # patch matrix P
            pltpu.VMEM((C, Sp_ext), jnp.float32),                # zero-extended conv1 act
        ],
        compiler_params=pltpu.CompilerParams(
            dimension_semantics=("parallel",),                   # batch axis -> both TCs (v7x)
            vmem_limit_bytes=32 * 1024 * 1024,
        ),
    )(x_ext, w1_mat, b1_col, w2_mat, b2_col, sw1, sb1, sw2, sb2, mask)

    out = out_flat.reshape(N, C, Dp, Hp, Wp)[:, :, 1:1 + D, 1:1 + H, 1:1 + W]
    return out


# --------------------------------------------------------------------------
# Pure-JAX reference (mirrors the PyTorch forward) for a sanity check.
# --------------------------------------------------------------------------
def _reference(x, w1, b1, w2, b2, se_w1, se_b1, se_w2, se_b2):
    def conv(t, w, b):
        y = jax.lax.conv_general_dilated(
            t, w, window_strides=(1, 1, 1), padding=((1, 1),) * 3,
            dimension_numbers=("NCDHW", "OIDHW", "NCDHW"),
            precision=jax.lax.Precision.HIGHEST)
        return y + b.reshape(1, -1, 1, 1, 1)

    def inorm(t):
        m = t.mean(axis=(2, 3, 4), keepdims=True)
        v = ((t - m) ** 2).mean(axis=(2, 3, 4), keepdims=True)
        return (t - m) / jnp.sqrt(v + EPS)

    o = jax.nn.relu(inorm(conv(x, w1, b1)))
    o = jax.nn.relu(inorm(conv(o, w2, b2)))
    Cr = se_w1.shape[0]
    se = o.mean(axis=(2, 3, 4))                                            # (N, C)
    se = jax.nn.relu(se @ se_w1.reshape(Cr, -1).T + se_b1)                 # (N, Cr)
    se = jax.nn.sigmoid(se @ se_w2.reshape(se_w2.shape[0], Cr).T + se_b2)  # (N, C)
    o = o * se[:, :, None, None, None]
    return jax.nn.relu(o + x)


if __name__ == "__main__":
    key = jax.random.PRNGKey(0)
    N, C, D, H, W = 2, 16, 8, 8, 8          # channel=16 so channel // 16 = 1 (as in the module)
    Cr = max(C // 16, 1)
    ks = jax.random.split(key, 7)

    x = jax.random.normal(ks[0], (N, C, D, H, W), jnp.float32)

    fan_in = C * 27
    w1 = jax.random.normal(ks[1], (C, C, 3, 3, 3), jnp.float32) / np.sqrt(fan_in)
    b1 = 0.01 * jax.random.normal(ks[2], (C,), jnp.float32)
    w2 = jax.random.normal(ks[3], (C, C, 3, 3, 3), jnp.float32) / np.sqrt(fan_in)
    b2 = 0.01 * jax.random.normal(ks[4], (C,), jnp.float32)
    se_w1 = jax.random.normal(ks[5], (Cr, C, 1, 1, 1), jnp.float32) / np.sqrt(C)
    se_b1 = jnp.zeros((Cr,), jnp.float32)
    se_w2 = jax.random.normal(ks[6], (C, Cr, 1, 1, 1), jnp.float32) / np.sqrt(Cr)
    se_b2 = jnp.zeros((C,), jnp.float32)

    out = residual_block_forward(x, w1, b1, w2, b2, se_w1, se_b1, se_w2, se_b2)
    out = jax.block_until_ready(out)

    ref = jax.block_until_ready(_reference(x, w1, b1, w2, b2, se_w1, se_b1, se_w2, se_b2))
    np.testing.assert_allclose(np.asarray(out), np.asarray(ref), atol=3e-2, rtol=3e-2)
    assert out.shape == (N, C, D, H, W) and out.dtype == jnp.float32

    print("KERNEL_OK")
</pallas_src>

<mosaic_0001>
module attributes {stable_mosaic.version = 11 : i64} {
  func.func @kernel(%arg0: i32, %arg1: memref<1x16x1256xf32, #tpu.memory_space<vmem>>, %arg2: memref<16x432xbf16, #tpu.memory_space<vmem>>, %arg3: memref<16x1xf32, #tpu.memory_space<vmem>>, %arg4: memref<16x432xbf16, #tpu.memory_space<vmem>>, %arg5: memref<16x1xf32, #tpu.memory_space<vmem>>, %arg6: memref<16x1xf32, #tpu.memory_space<vmem>>, %arg7: memref<1x1xf32, #tpu.memory_space<vmem>>, %arg8: memref<16x1xf32, #tpu.memory_space<vmem>>, %arg9: memref<16x1xf32, #tpu.memory_space<vmem>>, %arg10: memref<1x1000xf32, #tpu.memory_space<vmem>>, %arg11: memref<1x16x1000xf32, #tpu.memory_space<vmem>>, %arg12: memref<432x1000xbf16, #tpu.memory_space<vmem>>, %arg13: memref<16x1256xf32, #tpu.memory_space<vmem>>) attributes {dimension_semantics = [#tpu.dimension_semantics<parallel>], iteration_bounds = array<i64: 2>, scalar_prefetch = 0 : i64, scratch_operands = 2 : i64, tpu.core_type = #tpu.core_type<tc>, window_params = [{transform_indices = @transform_0, window_bounds = array<i64: 1, 16, 1256>}, {pipeline_mode = #tpu.pipeline_mode<synchronous>, transform_indices = @transform_1, window_bounds = array<i64: 16, 432>}, {pipeline_mode = #tpu.pipeline_mode<synchronous>, transform_indices = @transform_2, window_bounds = array<i64: 16, 1>}, {pipeline_mode = #tpu.pipeline_mode<synchronous>, transform_indices = @transform_3, window_bounds = array<i64: 16, 432>}, {pipeline_mode = #tpu.pipeline_mode<synchronous>, transform_indices = @transform_4, window_bounds = array<i64: 16, 1>}, {pipeline_mode = #tpu.pipeline_mode<synchronous>, transform_indices = @transform_5, window_bounds = array<i64: 16, 1>}, {pipeline_mode = #tpu.pipeline_mode<synchronous>, transform_indices = @transform_6, window_bounds = array<i64: 1, 1>}, {pipeline_mode = #tpu.pipeline_mode<synchronous>, transform_indices = @transform_7, window_bounds = array<i64: 16, 1>}, {pipeline_mode = #tpu.pipeline_mode<synchronous>, transform_indices = @transform_8, window_bounds = array<i64: 16, 1>}, {pipeline_mode = #tpu.pipeline_mode<synchronous>, transform_indices = @transform_9, window_bounds = array<i64: 1, 1000>}, {transform_indices = @transform_10, window_bounds = array<i64: 1, 16, 1000>}]} {
    %c0 = arith.constant 0 : index
    %c0_0 = arith.constant 0 : index
    %c0_1 = arith.constant 0 : index
    %0 = vector.load %arg1[%c0, %c0_0, %c0_1] : memref<1x16x1256xf32, #tpu.memory_space<vmem>>, vector<1x16x1256xf32>
    %1 = vector.shape_cast %0 : vector<1x16x1256xf32> to vector<16x1256xf32>
    %c0_2 = arith.constant 0 : index
    %c0_3 = arith.constant 0 : index
    %2 = vector.load %arg10[%c0_2, %c0_3] : memref<1x1000xf32, #tpu.memory_space<vmem>>, vector<1x1000xf32>
    %3 = vector.extract_strided_slice %1 {offsets = [0, 17], sizes = [16, 1000], strides = [1, 1]} : vector<16x1256xf32> to vector<16x1000xf32>
    %4 = arith.truncf %3 : vector<16x1000xf32> to vector<16x1000xbf16>
    %c0_4 = arith.constant 0 : index
    %c0_5 = arith.constant 0 : index
    %5 = vector.load %arg12[%c0_4, %c0_5] : memref<432x1000xbf16, #tpu.memory_space<vmem>>, vector<16x1000xbf16>
    tpu.vector_store %arg12[%c0_4, %c0_5], %4 {strides = array<i32>} : memref<432x1000xbf16, #tpu.memory_space<vmem>>, vector<16x1000xbf16>,
    %6 = vector.extract_strided_slice %1 {offsets = [0, 18], sizes = [16, 1000], strides = [1, 1]} : vector<16x1256xf32> to vector<16x1000xf32>
    %7 = arith.truncf %6 : vector<16x1000xf32> to vector<16x1000xbf16>
    %c16 = arith.constant 16 : index
    %c0_6 = arith.constant 0 : index
    %8 = vector.load %arg12[%c16, %c0_6] : memref<432x1000xbf16, #tpu.memory_space<vmem>>, vector<16x1000xbf16>
    tpu.vector_store %arg12[%c16, %c0_6], %7 {strides = array<i32>} : memref<432x1000xbf16, #tpu.memory_space<vmem>>, vector<16x1000xbf16>,
    %9 = vector.extract_strided_slice %1 {offsets = [0, 19], sizes = [16, 1000], strides = [1, 1]} : vector<16x1256xf32> to vector<16x1000xf32>
    %10 = arith.truncf %9 : vector<16x1000xf32> to vector<16x1000xbf16>
    %c32 = arith.constant 32 : index
    %c0_7 = arith.constant 0 : index
    %11 = vector.load %arg12[%c32, %c0_7] : memref<432x1000xbf16, #tpu.memory_space<vmem>>, vector<16x1000xbf16>
    tpu.vector_store %arg12[%c32, %c0_7], %10 {strides = array<i32>} : memref<432x1000xbf16, #tpu.memory_space<vmem>>, vector<16x1000xbf16>,
    %12 = vector.extract_strided_slice %1 {offsets = [0, 27], sizes = [16, 1000], strides = [1, 1]} : vector<16x1256xf32> to vector<16x1000xf32>
    %13 = arith.truncf %12 : vector<16x1000xf32> to vector<16x1000xbf16>
    %c48 = arith.constant 48 : index
    %c0_8 = arith.constant 0 : index
    %14 = vector.load %arg12[%c48, %c0_8] : memref<432x1000xbf16, #tpu.memory_space<vmem>>, vector<16x1000xbf16>
    tpu.vector_store %arg12[%c48, %c0_8], %13 {strides = array<i32>} : memref<432x1000xbf16, #tpu.memory_space<vmem>>, vector<16x1000xbf16>,
    %15 = vector.extract_strided_slice %1 {offsets = [0, 28], sizes = [16, 1000], strides = [1, 1]} : vector<16x1256xf32> to vector<16x1000xf32>
    %16 = arith.truncf %15 : vector<16x1000xf32> to vector<16x1000xbf16>
    %c64 = arith.constant 64 : index
    %c0_9 = arith.constant 0 : index
    %17 = vector.load %arg12[%c64, %c0_9] : memref<432x1000xbf16, #tpu.memory_space<vmem>>, vector<16x1000xbf16>
    tpu.vector_store %arg12[%c64, %c0_9], %16 {strides = array<i32>} : memref<432x1000xbf16, #tpu.memory_space<vmem>>, vector<16x1000xbf16>,
    %18 = vector.extract_strided_slice %1 {offsets = [0, 29], sizes = [16, 1000], strides = [1, 1]} : vector<16x1256xf32> to vector<16x1000xf32>
    %19 = arith.truncf %18 : vector<16x1000xf32> to vector<16x1000xbf16>
    %c80 = arith.constant 80 : index
    %c0_10 = arith.constant 0 : index
    %20 = vector.load %arg12[%c80, %c0_10] : memref<432x1000xbf16, #tpu.memory_space<vmem>>, vector<16x1000xbf16>
    tpu.vector_store %arg12[%c80, %c0_10], %19 {strides = array<i32>} : memref<432x1000xbf16, #tpu.memory_space<vmem>>, vector<16x1000xbf16>,
    %21 = vector.extract_strided_slice %1 {offsets = [0, 37], sizes = [16, 1000], strides = [1, 1]} : vector<16x1256xf32> to vector<16x1000xf32>
    %22 = arith.truncf %21 : vector<16x1000xf32> to vector<16x1000xbf16>
    %c96 = arith.constant 96 : index
    %c0_11 = arith.constant 0 : index
    %23 = vector.load %arg12[%c96, %c0_11] : memref<432x1000xbf16, #tpu.memory_space<vmem>>, vector<16x1000xbf16>
    tpu.vector_store %arg12[%c96, %c0_11], %22 {strides = array<i32>} : memref<432x1000xbf16, #tpu.memory_space<vmem>>, vector<16x1000xbf16>,
    %24 = vector.extract_strided_slice %1 {offsets = [0, 38], sizes = [16, 1000], strides = [1, 1]} : vector<16x1256xf32> to vector<16x1000xf32>
    %25 = arith.truncf %24 : vector<16x1000xf32> to vector<16x1000xbf16>
    %c112 = arith.constant 112 : index
    %c0_12 = arith.constant 0 : index
    %26 = vector.load %arg12[%c112, %c0_12] : memref<432x1000xbf16, #tpu.memory_space<vmem>>, vector<16x1000xbf16>
    tpu.vector_store %arg12[%c112, %c0_12], %25 {strides = array<i32>} : memref<432x1000xbf16, #tpu.memory_space<vmem>>, vector<16x1000xbf16>,
    %27 = vector.extract_strided_slice %1 {offsets = [0, 39], sizes = [16, 1000], strides = [1, 1]} : vector<16x1256xf32> to vector<16x1000xf32>
    %28 = arith.truncf %27 : vector<16x1000xf32> to vector<16x1000xbf16>
    %c128 = arith.constant 128 : index
    %c0_13 = arith.constant 0 : index
    %29 = vector.load %arg12[%c128, %c0_13] : memref<432x1000xbf16, #tpu.memory_space<vmem>>, vector<16x1000xbf16>
    tpu.vector_store %arg12[%c128, %c0_13], %28 {strides = array<i32>} : memref<432x1000xbf16, #tpu.memory_space<vmem>>, vector<16x1000xbf16>,
    %30 = vector.extract_strided_slice %1 {offsets = [0, 117], sizes = [16, 1000], strides = [1, 1]} : vector<16x1256xf32> to vector<16x1000xf32>
    %31 = arith.truncf %30 : vector<16x1000xf32> to vector<16x1000xbf16>
    %c144 = arith.constant 144 : index
    %c0_14 = arith.constant 0 : index
    %32 = vector.load %arg12[%c144, %c0_14] : memref<432x1000xbf16, #tpu.memory_space<vmem>>, vector<16x1000xbf16>
    tpu.vector_store %arg12[%c144, %c0_14], %31 {strides = array<i32>} : memref<432x1000xbf16, #tpu.memory_space<vmem>>, vector<16x1000xbf16>,
    %33 = vector.extract_strided_slice %1 {offsets = [0, 118], sizes = [16, 1000], strides = [1, 1]} : vector<16x1256xf32> to vector<16x1000xf32>
    %34 = arith.truncf %33 : vector<16x1000xf32> to vector<16x1000xbf16>
    %c160 = arith.constant 160 : index
    %c0_15 = arith.constant 0 : index
    %35 = vector.load %arg12[%c160, %c0_15] : memref<432x1000xbf16, #tpu.memory_space<vmem>>, vector<16x1000xbf16>
    tpu.vector_store %arg12[%c160, %c0_15], %34 {strides = array<i32>} : memref<432x1000xbf16, #tpu.memory_space<vmem>>, vector<16x1000xbf16>,
    %36 = vector.extract_strided_slice %1 {offsets = [0, 119], sizes = [16, 1000], strides = [1, 1]} : vector<16x1256xf32> to vector<16x1000xf32>
    %37 = arith.truncf %36 : vector<16x1000xf32> to vector<16x1000xbf16>
    %c176 = arith.constant 176 : index
    %c0_16 = arith.constant 0 : index
    %38 = vector.load %arg12[%c176, %c0_16] : memref<432x1000xbf16, #tpu.memory_space<vmem>>, vector<16x1000xbf16>
    tpu.vector_store %arg12[%c176, %c0_16], %37 {strides = array<i32>} : memref<432x1000xbf16, #tpu.memory_space<vmem>>, vector<16x1000xbf16>,
    %39 = vector.extract_strided_slice %1 {offsets = [0, 127], sizes = [16, 1000], strides = [1, 1]} : vector<16x1256xf32> to vector<16x1000xf32>
    %40 = arith.truncf %39 : vector<16x1000xf32> to vector<16x1000xbf16>
    %c192 = arith.constant 192 : index
    %c0_17 = arith.constant 0 : index
    %41 = vector.load %arg12[%c192, %c0_17] : memref<432x1000xbf16, #tpu.memory_space<vmem>>, vector<16x1000xbf16>
    tpu.vector_store %arg12[%c192, %c0_17], %40 {strides = array<i32>} : memref<432x1000xbf16, #tpu.memory_space<vmem>>, vector<16x1000xbf16>,
    %42 = vector.extract_strided_slice %1 {offsets = [0, 128], sizes = [16, 1000], strides = [1, 1]} : vector<16x1256xf32> to vector<16x1000xf32>
    %43 = arith.truncf %42 : vector<16x1000xf32> to vector<16x1000xbf16>
    %c208 = arith.constant 208 : index
    %c0_18 = arith.constant 0 : index
    %44 = vector.load %arg12[%c208, %c0_18] : memref<432x1000xbf16, #tpu.memory_space<vmem>>, vector<16x1000xbf16>
    tpu.vector_store %arg12[%c208, %c0_18], %43 {strides = array<i32>} : memref<432x1000xbf16, #tpu.memory_space<vmem>>, vector<16x1000xbf16>,
    %45 = vector.extract_strided_slice %1 {offsets = [0, 129], sizes = [16, 1000], strides = [1, 1]} : vector<16x1256xf32> to vector<16x1000xf32>
    %46 = arith.truncf %45 : vector<16x1000xf32> to vector<16x1000xbf16>
    %c224 = arith.constant 224 : index
    %c0_19 = arith.constant 0 : index
    %47 = vector.load %arg12[%c224, %c0_19] : memref<432x1000xbf16, #tpu.memory_space<vmem>>, vector<16x1000xbf16>
    tpu.vector_store %arg12[%c224, %c0_19], %46 {strides = array<i32>} : memref<432x1000xbf16, #tpu.memory_space<vmem>>, vector<16x1000xbf16>,
    %48 = vector.extract_strided_slice %1 {offsets = [0, 137], sizes = [16, 1000], strides = [1, 1]} : vector<16x1256xf32> to vector<16x1000xf32>
    %49 = arith.truncf %48 : vector<16x1000xf32> to vector<16x1000xbf16>
    %c240 = arith.constant 240 : index
    %c0_20 = arith.constant 0 : index
    %50 = vector.load %arg12[%c240, %c0_20] : memref<432x1000xbf16, #tpu.memory_space<vmem>>, vector<16x1000xbf16>
    tpu.vector_store %arg12[%c240, %c0_20], %49 {strides = array<i32>} : memref<432x1000xbf16, #tpu.memory_space<vmem>>, vector<16x1000xbf16>,
    %51 = vector.extract_strided_slice %1 {offsets = [0, 138], sizes = [16, 1000], strides = [1, 1]} : vector<16x1256xf32> to vector<16x1000xf32>
    %52 = arith.truncf %51 : vector<16x1000xf32> to vector<16x1000xbf16>
    %c256 = arith.constant 256 : index
    %c0_21 = arith.constant 0 : index
    %53 = vector.load %arg12[%c256, %c0_21] : memref<432x1000xbf16, #tpu.memory_space<vmem>>, vector<16x1000xbf16>
    tpu.vector_store %arg12[%c256, %c0_21], %52 {strides = array<i32>} : memref<432x1000xbf16, #tpu.memory_space<vmem>>, vector<16x1000xbf16>,
    %54 = vector.extract_strided_slice %1 {offsets = [0, 139], sizes = [16, 1000], strides = [1, 1]} : vector<16x1256xf32> to vector<16x1000xf32>
    %55 = arith.truncf %54 : vector<16x1000xf32> to vector<16x1000xbf16>
    %c272 = arith.constant 272 : index
    %c0_22 = arith.constant 0 : index
    %56 = vector.load %arg12[%c272, %c0_22] : memref<432x1000xbf16, #tpu.memory_space<vmem>>, vector<16x1000xbf16>
    tpu.vector_store %arg12[%c272, %c0_22], %55 {strides = array<i32>} : memref<432x1000xbf16, #tpu.memory_space<vmem>>, vector<16x1000xbf16>,
    %57 = vector.extract_strided_slice %1 {offsets = [0, 217], sizes = [16, 1000], strides = [1, 1]} : vector<16x1256xf32> to vector<16x1000xf32>
    %58 = arith.truncf %57 : vector<16x1000xf32> to vector<16x1000xbf16>
    %c288 = arith.constant 288 : index
    %c0_23 = arith.constant 0 : index
    %59 = vector.load %arg12[%c288, %c0_23] : memref<432x1000xbf16, #tpu.memory_space<vmem>>, vector<16x1000xbf16>
    tpu.vector_store %arg12[%c288, %c0_23], %58 {strides = array<i32>} : memref<432x1000xbf16, #tpu.memory_space<vmem>>, vector<16x1000xbf16>,
    %60 = vector.extract_strided_slice %1 {offsets = [0, 218], sizes = [16, 1000], strides = [1, 1]} : vector<16x1256xf32> to vector<16x1000xf32>
    %61 = arith.truncf %60 : vector<16x1000xf32> to vector<16x1000xbf16>
    %c304 = arith.constant 304 : index
    %c0_24 = arith.constant 0 : index
    %62 = vector.load %arg12[%c304, %c0_24] : memref<432x1000xbf16, #tpu.memory_space<vmem>>, vector<16x1000xbf16>
    tpu.vector_store %arg12[%c304, %c0_24], %61 {strides = array<i32>} : memref<432x1000xbf16, #tpu.memory_space<vmem>>, vector<16x1000xbf16>,
    %63 = vector.extract_strided_slice %1 {offsets = [0, 219], sizes = [16, 1000], strides = [1, 1]} : vector<16x1256xf32> to vector<16x1000xf32>
    %64 = arith.truncf %63 : vector<16x1000xf32> to vector<16x1000xbf16>
    %c320 = arith.constant 320 : index
    %c0_25 = arith.constant 0 : index
    %65 = vector.load %arg12[%c320, %c0_25] : memref<432x1000xbf16, #tpu.memory_space<vmem>>, vector<16x1000xbf16>
    tpu.vector_store %arg12[%c320, %c0_25], %64 {strides = array<i32>} : memref<432x1000xbf16, #tpu.memory_space<vmem>>, vector<16x1000xbf16>,
    %66 = vector.extract_strided_slice %1 {offsets = [0, 227], sizes = [16, 1000], strides = [1, 1]} : vector<16x1256xf32> to vector<16x1000xf32>
    %67 = arith.truncf %66 : vector<16x1000xf32> to vector<16x1000xbf16>
    %c336 = arith.constant 336 : index
    %c0_26 = arith.constant 0 : index
    %68 = vector.load %arg12[%c336, %c0_26] : memref<432x1000xbf16, #tpu.memory_space<vmem>>, vector<16x1000xbf16>
    tpu.vector_store %arg12[%c336, %c0_26], %67 {strides = array<i32>} : memref<432x1000xbf16, #tpu.memory_space<vmem>>, vector<16x1000xbf16>,
    %69 = vector.extract_strided_slice %1 {offsets = [0, 228], sizes = [16, 1000], strides = [1, 1]} : vector<16x1256xf32> to vector<16x1000xf32>
    %70 = arith.truncf %69 : vector<16x1000xf32> to vector<16x1000xbf16>
    %c352 = arith.constant 352 : index
    %c0_27 = arith.constant 0 : index
    %71 = vector.load %arg12[%c352, %c0_27] : memref<432x1000xbf16, #tpu.memory_space<vmem>>, vector<16x1000xbf16>
    tpu.vector_store %arg12[%c352, %c0_27], %70 {strides = array<i32>} : memref<432x1000xbf16, #tpu.memory_space<vmem>>, vector<16x1000xbf16>,
    %72 = vector.extract_strided_slice %1 {offsets = [0, 229], sizes = [16, 1000], strides = [1, 1]} : vector<16x1256xf32> to vector<16x1000xf32>
    %73 = arith.truncf %72 : vector<16x1000xf32> to vector<16x1000xbf16>
    %c368 = arith.constant 368 : index
    %c0_28 = arith.constant 0 : index
    %74 = vector.load %arg12[%c368, %c0_28] : memref<432x1000xbf16, #tpu.memory_space<vmem>>, vector<16x1000xbf16>
    tpu.vector_store %arg12[%c368, %c0_28], %73 {strides = array<i32>} : memref<432x1000xbf16, #tpu.memory_space<vmem>>, vector<16x1000xbf16>,
    %75 = vector.extract_strided_slice %1 {offsets = [0, 237], sizes = [16, 1000], strides = [1, 1]} : vector<16x1256xf32> to vector<16x1000xf32>
    %76 = arith.truncf %75 : vector<16x1000xf32> to vector<16x1000xbf16>
    %c384 = arith.constant 384 : index
    %c0_29 = arith.constant 0 : index
    %77 = vector.load %arg12[%c384, %c0_29] : memref<432x1000xbf16, #tpu.memory_space<vmem>>, vector<16x1000xbf16>
    tpu.vector_store %arg12[%c384, %c0_29], %76 {strides = array<i32>} : memref<432x1000xbf16, #tpu.memory_space<vmem>>, vector<16x1000xbf16>,
    %78 = vector.extract_strided_slice %1 {offsets = [0, 238], sizes = [16, 1000], strides = [1, 1]} : vector<16x1256xf32> to vector<16x1000xf32>
    %79 = arith.truncf %78 : vector<16x1000xf32> to vector<16x1000xbf16>
    %c400 = arith.constant 400 : index
    %c0_30 = arith.constant 0 : index
    %80 = vector.load %arg12[%c400, %c0_30] : memref<432x1000xbf16, #tpu.memory_space<vmem>>, vector<16x1000xbf16>
    tpu.vector_store %arg12[%c400, %c0_30], %79 {strides = array<i32>} : memref<432x1000xbf16, #tpu.memory_space<vmem>>, vector<16x1000xbf16>,
    %81 = vector.extract_strided_slice %1 {offsets = [0, 239], sizes = [16, 1000], strides = [1, 1]} : vector<16x1256xf32> to vector<16x1000xf32>
    %82 = arith.truncf %81 : vector<16x1000xf32> to vector<16x1000xbf16>
    %c416 = arith.constant 416 : index
    %c0_31 = arith.constant 0 : index
    %83 = vector.load %arg12[%c416, %c0_31] : memref<432x1000xbf16, #tpu.memory_space<vmem>>, vector<16x1000xbf16>
    tpu.vector_store %arg12[%c416, %c0_31], %82 {strides = array<i32>} : memref<432x1000xbf16, #tpu.memory_space<vmem>>, vector<16x1000xbf16>,
    %c0_32 = arith.constant 0 : index
    %c0_33 = arith.constant 0 : index
    %84 = vector.load %arg2[%c0_32, %c0_33] : memref<16x432xbf16, #tpu.memory_space<vmem>>, vector<16x432xbf16>
    %c0_34 = arith.constant 0 : index
    %c0_35 = arith.constant 0 : index
    %85 = vector.load %arg12[%c0_34, %c0_35] : memref<432x1000xbf16, #tpu.memory_space<vmem>>, vector<432x1000xbf16>
    %cst = arith.constant dense<0.000000e+00> : vector<16x1000xf32>
    %86 = tpu.matmul %84, %85, %cst {dimension_numbers = #tpu.dot_dimension_numbers<[1], [0], [0], [1], [0, 0, 1, 1], [], []>} : vector<16x432xbf16>, vector<432x1000xbf16>, vector<16x1000xf32> -> vector<16x1000xf32>
    %c0_36 = arith.constant 0 : index
    %c0_37 = arith.constant 0 : index
    %87 = vector.load %arg3[%c0_36, %c0_37] : memref<16x1xf32, #tpu.memory_space<vmem>>, vector<16x1xf32>
    %88 = vector.broadcast %87 : vector<16x1xf32> to vector<16x1000xf32>
    %89 = arith.addf %86, %88 : vector<16x1000xf32>
    %90 = vector.broadcast %2 : vector<1x1000xf32> to vector<16x1000xf32>
    %91 = arith.mulf %89, %90 : vector<16x1000xf32>
    %cst_38 = arith.constant dense<0.000000e+00> : vector<16xf32>
    %92 = vector.multi_reduction <add>, %91, %cst_38 [1] : vector<16x1000xf32> to vector<16xf32>
    %93 = vector.shape_cast %92 : vector<16xf32> to vector<16x1xf32>
    %94 = arith.mulf %91, %91 : vector<16x1000xf32>
    %cst_39 = arith.constant dense<0.000000e+00> : vector<16xf32>
    %95 = vector.multi_reduction <add>, %94, %cst_39 [1] : vector<16x1000xf32> to vector<16xf32>
    %96 = vector.shape_cast %95 : vector<16xf32> to vector<16x1xf32>
    %cst_40 = arith.constant 0.001953125 : f32
    %97 = vector.broadcast %cst_40 : f32 to vector<16x1xf32>
    %98 = arith.mulf %93, %97 : vector<16x1xf32>
    %cst_41 = arith.constant 0.001953125 : f32
    %99 = vector.broadcast %cst_41 : f32 to vector<16x1xf32>
    %100 = arith.mulf %96, %99 : vector<16x1xf32>
    %101 = arith.mulf %98, %98 : vector<16x1xf32>
    %102 = arith.subf %100, %101 : vector<16x1xf32>
    %103 = vector.broadcast %98 : vector<16x1xf32> to vector<16x1000xf32>
    %104 = arith.subf %91, %103 : vector<16x1000xf32>
    %cst_42 = arith.constant 9.99999974E-6 : f32
    %105 = vector.broadcast %cst_42 : f32 to vector<16x1xf32>
    %106 = arith.addf %102, %105 : vector<16x1xf32>
    %107 = math.rsqrt %106 : vector<16x1xf32>
    %108 = vector.broadcast %107 : vector<16x1xf32> to vector<16x1000xf32>
    %109 = arith.mulf %104, %108 : vector<16x1000xf32>
    %cst_43 = arith.constant 0.000000e+00 : f32
    %110 = vector.broadcast %cst_43 : f32 to vector<16x1000xf32>
    %111 = arith.maximumf %109, %110 : vector<16x1000xf32>
    %112 = vector.broadcast %2 : vector<1x1000xf32> to vector<16x1000xf32>
    %113 = arith.mulf %111, %112 : vector<16x1000xf32>
    %cst_44 = arith.constant 0.000000e+00 : f32
    %114 = vector.broadcast %cst_44 : f32 to vector<16x1256xf32>
    %c0_45 = arith.constant 0 : index
    %c0_46 = arith.constant 0 : index
    %115 = vector.load %arg13[%c0_45, %c0_46] : memref<16x1256xf32, #tpu.memory_space<vmem>>, vector<16x1256xf32>
    tpu.vector_store %arg13[%c0_45, %c0_46], %114 {strides = array<i32>} : memref<16x1256xf32, #tpu.memory_space<vmem>>, vector<16x1256xf32>,
    %c0_47 = arith.constant 0 : index
    %c128_48 = arith.constant 128 : index
    %116 = vector.load %arg13[%c0_47, %c128_48] : memref<16x1256xf32, #tpu.memory_space<vmem>>, vector<16x1000xf32>
    tpu.vector_store %arg13[%c0_47, %c128_48], %113 {strides = array<i32>} : memref<16x1256xf32, #tpu.memory_space<vmem>>, vector<16x1000xf32>,
    %c0_49 = arith.constant 0 : index
    %c0_50 = arith.constant 0 : index
    %117 = vector.load %arg13[%c0_49, %c0_50] : memref<16x1256xf32, #tpu.memory_space<vmem>>, vector<16x1256xf32>
    %118 = vector.extract_strided_slice %117 {offsets = [0, 17], sizes = [16, 1000], strides = [1, 1]} : vector<16x1256xf32> to vector<16x1000xf32>
    %119 = arith.truncf %118 : vector<16x1000xf32> to vector<16x1000xbf16>
    %c0_51 = arith.constant 0 : index
    %c0_52 = arith.constant 0 : index
    %120 = vector.load %arg12[%c0_51, %c0_52] : memref<432x1000xbf16, #tpu.memory_space<vmem>>, vector<16x1000xbf16>
    tpu.vector_store %arg12[%c0_51, %c0_52], %119 {strides = array<i32>} : memref<432x1000xbf16, #tpu.memory_space<vmem>>, vector<16x1000xbf16>,
    %121 = vector.extract_strided_slice %117 {offsets = [0, 18], sizes = [16, 1000], strides = [1, 1]} : vector<16x1256xf32> to vector<16x1000xf32>
    %122 = arith.truncf %121 : vector<16x1000xf32> to vector<16x1000xbf16>
    %c16_53 = arith.constant 16 : index
    %c0_54 = arith.constant 0 : index
    %123 = vector.load %arg12[%c16_53, %c0_54] : memref<432x1000xbf16, #tpu.memory_space<vmem>>, vector<16x1000xbf16>
    tpu.vector_store %arg12[%c16_53, %c0_54], %122 {strides = array<i32>} : memref<432x1000xbf16, #tpu.memory_space<vmem>>, vector<16x1000xbf16>,
    %124 = vector.extract_strided_slice %117 {offsets = [0, 19], sizes = [16, 1000], strides = [1, 1]} : vector<16x1256xf32> to vector<16x1000xf32>
    %125 = arith.truncf %124 : vector<16x1000xf32> to vector<16x1000xbf16>
    %c32_55 = arith.constant 32 : index
    %c0_56 = arith.constant 0 : index
    %126 = vector.load %arg12[%c32_55, %c0_56] : memref<432x1000xbf16, #tpu.memory_space<vmem>>, vector<16x1000xbf16>
    tpu.vector_store %arg12[%c32_55, %c0_56], %125 {strides = array<i32>} : memref<432x1000xbf16, #tpu.memory_space<vmem>>, vector<16x1000xbf16>,
    %127 = vector.extract_strided_slice %117 {offsets = [0, 27], sizes = [16, 1000], strides = [1, 1]} : vector<16x1256xf32> to vector<16x1000xf32>
    %128 = arith.truncf %127 : vector<16x1000xf32> to vector<16x1000xbf16>
    %c48_57 = arith.constant 48 : index
    %c0_58 = arith.constant 0 : index
    %129 = vector.load %arg12[%c48_57, %c0_58] : memref<432x1000xbf16, #tpu.memory_space<vmem>>, vector<16x1000xbf16>
    tpu.vector_store %arg12[%c48_57, %c0_58], %128 {strides = array<i32>} : memref<432x1000xbf16, #tpu.memory_space<vmem>>, vector<16x1000xbf16>,
    %130 = vector.extract_strided_slice %117 {offsets = [0, 28], sizes = [16, 1000], strides = [1, 1]} : vector<16x1256xf32> to vector<16x1000xf32>
    %131 = arith.truncf %130 : vector<16x1000xf32> to vector<16x1000xbf16>
    %c64_59 = arith.constant 64 : index
    %c0_60 = arith.constant 0 : index
    %132 = vector.load %arg12[%c64_59, %c0_60] : memref<432x1000xbf16, #tpu.memory_space<vmem>>, vector<16x1000xbf16>
    tpu.vector_store %arg12[%c64_59, %c0_60], %131 {strides = array<i32>} : memref<432x1000xbf16, #tpu.memory_space<vmem>>, vector<16x1000xbf16>,
    %133 = vector.extract_strided_slice %117 {offsets = [0, 29], sizes = [16, 1000], strides = [1, 1]} : vector<16x1256xf32> to vector<16x1000xf32>
    %134 = arith.truncf %133 : vector<16x1000xf32> to vector<16x1000xbf16>
    %c80_61 = arith.constant 80 : index
    %c0_62 = arith.constant 0 : index
    %135 = vector.load %arg12[%c80_61, %c0_62] : memref<432x1000xbf16, #tpu.memory_space<vmem>>, vector<16x1000xbf16>
    tpu.vector_store %arg12[%c80_61, %c0_62], %134 {strides = array<i32>} : memref<432x1000xbf16, #tpu.memory_space<vmem>>, vector<16x1000xbf16>,
    %136 = vector.extract_strided_slice %117 {offsets = [0, 37], sizes = [16, 1000], strides = [1, 1]} : vector<16x1256xf32> to vector<16x1000xf32>
    %137 = arith.truncf %136 : vector<16x1000xf32> to vector<16x1000xbf16>
    %c96_63 = arith.constant 96 : index
    %c0_64 = arith.constant 0 : index
    %138 = vector.load %arg12[%c96_63, %c0_64] : memref<432x1000xbf16, #tpu.memory_space<vmem>>, vector<16x1000xbf16>
    tpu.vector_store %arg12[%c96_63, %c0_64], %137 {strides = array<i32>} : memref<432x1000xbf16, #tpu.memory_space<vmem>>, vector<16x1000xbf16>,
    %139 = vector.extract_strided_slice %117 {offsets = [0, 38], sizes = [16, 1000], strides = [1, 1]} : vector<16x1256xf32> to vector<16x1000xf32>
    %140 = arith.truncf %139 : vector<16x1000xf32> to vector<16x1000xbf16>
    %c112_65 = arith.constant 112 : index
    %c0_66 = arith.constant 0 : index
    %141 = vector.load %arg12[%c112_65, %c0_66] : memref<432x1000xbf16, #tpu.memory_space<vmem>>, vector<16x1000xbf16>
    tpu.vector_store %arg12[%c112_65, %c0_66], %140 {strides = array<i32>} : memref<432x1000xbf16, #tpu.memory_space<vmem>>, vector<16x1000xbf16>,
    %142 = vector.extract_strided_slice %117 {offsets = [0, 39], sizes = [16, 1000], strides = [1, 1]} : vector<16x1256xf32> to vector<16x1000xf32>
    %143 = arith.truncf %142 : vector<16x1000xf32> to vector<16x1000xbf16>
    %c128_67 = arith.constant 128 : index
    %c0_68 = arith.constant 0 : index
    %144 = vector.load %arg12[%c128_67, %c0_68] : memref<432x1000xbf16, #tpu.memory_space<vmem>>, vector<16x1000xbf16>
    tpu.vector_store %arg12[%c128_67, %c0_68], %143 {strides = array<i32>} : memref<432x1000xbf16, #tpu.memory_space<vmem>>, vector<16x1000xbf16>,
    %145 = vector.extract_strided_slice %117 {offsets = [0, 117], sizes = [16, 1000], strides = [1, 1]} : vector<16x1256xf32> to vector<16x1000xf32>
    %146 = arith.truncf %145 : vector<16x1000xf32> to vector<16x1000xbf16>
    %c144_69 = arith.constant 144 : index
    %c0_70 = arith.constant 0 : index
    %147 = vector.load %arg12[%c144_69, %c0_70] : memref<432x1000xbf16, #tpu.memory_space<vmem>>, vector<16x1000xbf16>
    tpu.vector_store %arg12[%c144_69, %c0_70], %146 {strides = array<i32>} : memref<432x1000xbf16, #tpu.memory_space<vmem>>, vector<16x1000xbf16>,
    %148 = vector.extract_strided_slice %117 {offsets = [0, 118], sizes = [16, 1000], strides = [1, 1]} : vector<16x1256xf32> to vector<16x1000xf32>
    %149 = arith.truncf %148 : vector<16x1000xf32> to vector<16x1000xbf16>
    %c160_71 = arith.constant 160 : index
    %c0_72 = arith.constant 0 : index
    %150 = vector.load %arg12[%c160_71, %c0_72] : memref<432x1000xbf16, #tpu.memory_space<vmem>>, vector<16x1000xbf16>
    tpu.vector_store %arg12[%c160_71, %c0_72], %149 {strides = array<i32>} : memref<432x1000xbf16, #tpu.memory_space<vmem>>, vector<16x1000xbf16>,
    %151 = vector.extract_strided_slice %117 {offsets = [0, 119], sizes = [16, 1000], strides = [1, 1]} : vector<16x1256xf32> to vector<16x1000xf32>
    %152 = arith.truncf %151 : vector<16x1000xf32> to vector<16x1000xbf16>
    %c176_73 = arith.constant 176 : index
    %c0_74 = arith.constant 0 : index
    %153 = vector.load %arg12[%c176_73, %c0_74] : memref<432x1000xbf16, #tpu.memory_space<vmem>>, vector<16x1000xbf16>
    tpu.vector_store %arg12[%c176_73, %c0_74], %152 {strides = array<i32>} : memref<432x1000xbf16, #tpu.memory_space<vmem>>, vector<16x1000xbf16>,
    %154 = vector.extract_strided_slice %117 {offsets = [0, 127], sizes = [16, 1000], strides = [1, 1]} : vector<16x1256xf32> to vector<16x1000xf32>
    %155 = arith.truncf %154 : vector<16x1000xf32> to vector<16x1000xbf16>
    %c192_75 = arith.constant 192 : index
    %c0_76 = arith.constant 0 : index
    %156 = vector.load %arg12[%c192_75, %c0_76] : memref<432x1000xbf16, #tpu.memory_space<vmem>>, vector<16x1000xbf16>
    tpu.vector_store %arg12[%c192_75, %c0_76], %155 {strides = array<i32>} : memref<432x1000xbf16, #tpu.memory_space<vmem>>, vector<16x1000xbf16>,
    %157 = vector.extract_strided_slice %117 {offsets = [0, 128], sizes = [16, 1000], strides = [1, 1]} : vector<16x1256xf32> to vector<16x1000xf32>
    %158 = arith.truncf %157 : vector<16x1000xf32> to vector<16x1000xbf16>
    %c208_77 = arith.constant 208 : index
    %c0_78 = arith.constant 0 : index
    %159 = vector.load %arg12[%c208_77, %c0_78] : memref<432x1000xbf16, #tpu.memory_space<vmem>>, vector<16x1000xbf16>
    tpu.vector_store %arg12[%c208_77, %c0_78], %158 {strides = array<i32>} : memref<432x1000xbf16, #tpu.memory_space<vmem>>, vector<16x1000xbf16>,
    %160 = vector.extract_strided_slice %117 {offsets = [0, 129], sizes = [16, 1000], strides = [1, 1]} : vector<16x1256xf32> to vector<16x1000xf32>
    %161 = arith.truncf %160 : vector<16x1000xf32> to vector<16x1000xbf16>
    %c224_79 = arith.constant 224 : index
    %c0_80 = arith.constant 0 : index
    %162 = vector.load %arg12[%c224_79, %c0_80] : memref<432x1000xbf16, #tpu.memory_space<vmem>>, vector<16x1000xbf16>
    tpu.vector_store %arg12[%c224_79, %c0_80], %161 {strides = array<i32>} : memref<432x1000xbf16, #tpu.memory_space<vmem>>, vector<16x1000xbf16>,
    %163 = vector.extract_strided_slice %117 {offsets = [0, 137], sizes = [16, 1000], strides = [1, 1]} : vector<16x1256xf32> to vector<16x1000xf32>
    %164 = arith.truncf %163 : vector<16x1000xf32> to vector<16x1000xbf16>
    %c240_81 = arith.constant 240 : index
    %c0_82 = arith.constant 0 : index
    %165 = vector.load %arg12[%c240_81, %c0_82] : memref<432x1000xbf16, #tpu.memory_space<vmem>>, vector<16x1000xbf16>
    tpu.vector_store %arg12[%c240_81, %c0_82], %164 {strides = array<i32>} : memref<432x1000xbf16, #tpu.memory_space<vmem>>, vector<16x1000xbf16>,
    %166 = vector.extract_strided_slice %117 {offsets = [0, 138], sizes = [16, 1000], strides = [1, 1]} : vector<16x1256xf32> to vector<16x1000xf32>
    %167 = arith.truncf %166 : vector<16x1000xf32> to vector<16x1000xbf16>
    %c256_83 = arith.constant 256 : index
    %c0_84 = arith.constant 0 : index
    %168 = vector.load %arg12[%c256_83, %c0_84] : memref<432x1000xbf16, #tpu.memory_space<vmem>>, vector<16x1000xbf16>
    tpu.vector_store %arg12[%c256_83, %c0_84], %167 {strides = array<i32>} : memref<432x1000xbf16, #tpu.memory_space<vmem>>, vector<16x1000xbf16>,
    %169 = vector.extract_strided_slice %117 {offsets = [0, 139], sizes = [16, 1000], strides = [1, 1]} : vector<16x1256xf32> to vector<16x1000xf32>
    %170 = arith.truncf %169 : vector<16x1000xf32> to vector<16x1000xbf16>
    %c272_85 = arith.constant 272 : index
    %c0_86 = arith.constant 0 : index
    %171 = vector.load %arg12[%c272_85, %c0_86] : memref<432x1000xbf16, #tpu.memory_space<vmem>>, vector<16x1000xbf16>
    tpu.vector_store %arg12[%c272_85, %c0_86], %170 {strides = array<i32>} : memref<432x1000xbf16, #tpu.memory_space<vmem>>, vector<16x1000xbf16>,
    %172 = vector.extract_strided_slice %117 {offsets = [0, 217], sizes = [16, 1000], strides = [1, 1]} : vector<16x1256xf32> to vector<16x1000xf32>
    %173 = arith.truncf %172 : vector<16x1000xf32> to vector<16x1000xbf16>
    %c288_87 = arith.constant 288 : index
    %c0_88 = arith.constant 0 : index
    %174 = vector.load %arg12[%c288_87, %c0_88] : memref<432x1000xbf16, #tpu.memory_space<vmem>>, vector<16x1000xbf16>
    tpu.vector_store %arg12[%c288_87, %c0_88], %173 {strides = array<i32>} : memref<432x1000xbf16, #tpu.memory_space<vmem>>, vector<16x1000xbf16>,
    %175 = vector.extract_strided_slice %117 {offsets = [0, 218], sizes = [16, 1000], strides = [1, 1]} : vector<16x1256xf32> to vector<16x1000xf32>
    %176 = arith.truncf %175 : vector<16x1000xf32> to vector<16x1000xbf16>
    %c304_89 = arith.constant 304 : index
    %c0_90 = arith.constant 0 : index
    %177 = vector.load %arg12[%c304_89, %c0_90] : memref<432x1000xbf16, #tpu.memory_space<vmem>>, vector<16x1000xbf16>
    tpu.vector_store %arg12[%c304_89, %c0_90], %176 {strides = array<i32>} : memref<432x1000xbf16, #tpu.memory_space<vmem>>, vector<16x1000xbf16>,
    %178 = vector.extract_strided_slice %117 {offsets = [0, 219], sizes = [16, 1000], strides = [1, 1]} : vector<16x1256xf32> to vector<16x1000xf32>
    %179 = arith.truncf %178 : vector<16x1000xf32> to vector<16x1000xbf16>
    %c320_91 = arith.constant 320 : index
    %c0_92 = arith.constant 0 : index
    %180 = vector.load %arg12[%c320_91, %c0_92] : memref<432x1000xbf16, #tpu.memory_space<vmem>>, vector<16x1000xbf16>
    tpu.vector_store %arg12[%c320_91, %c0_92], %179 {strides = array<i32>} : memref<432x1000xbf16, #tpu.memory_space<vmem>>, vector<16x1000xbf16>,
    %181 = vector.extract_strided_slice %117 {offsets = [0, 227], sizes = [16, 1000], strides = [1, 1]} : vector<16x1256xf32> to vector<16x1000xf32>
    %182 = arith.truncf %181 : vector<16x1000xf32> to vector<16x1000xbf16>
    %c336_93 = arith.constant 336 : index
    %c0_94 = arith.constant 0 : index
    %183 = vector.load %arg12[%c336_93, %c0_94] : memref<432x1000xbf16, #tpu.memory_space<vmem>>, vector<16x1000xbf16>
    tpu.vector_store %arg12[%c336_93, %c0_94], %182 {strides = array<i32>} : memref<432x1000xbf16, #tpu.memory_space<vmem>>, vector<16x1000xbf16>,
    %184 = vector.extract_strided_slice %117 {offsets = [0, 228], sizes = [16, 1000], strides = [1, 1]} : vector<16x1256xf32> to vector<16x1000xf32>
    %185 = arith.truncf %184 : vector<16x1000xf32> to vector<16x1000xbf16>
    %c352_95 = arith.constant 352 : index
    %c0_96 = arith.constant 0 : index
    %186 = vector.load %arg12[%c352_95, %c0_96] : memref<432x1000xbf16, #tpu.memory_space<vmem>>, vector<16x1000xbf16>
    tpu.vector_store %arg12[%c352_95, %c0_96], %185 {strides = array<i32>} : memref<432x1000xbf16, #tpu.memory_space<vmem>>, vector<16x1000xbf16>,
    %187 = vector.extract_strided_slice %117 {offsets = [0, 229], sizes = [16, 1000], strides = [1, 1]} : vector<16x1256xf32> to vector<16x1000xf32>
    %188 = arith.truncf %187 : vector<16x1000xf32> to vector<16x1000xbf16>
    %c368_97 = arith.constant 368 : index
    %c0_98 = arith.constant 0 : index
    %189 = vector.load %arg12[%c368_97, %c0_98] : memref<432x1000xbf16, #tpu.memory_space<vmem>>, vector<16x1000xbf16>
    tpu.vector_store %arg12[%c368_97, %c0_98], %188 {strides = array<i32>} : memref<432x1000xbf16, #tpu.memory_space<vmem>>, vector<16x1000xbf16>,
    %190 = vector.extract_strided_slice %117 {offsets = [0, 237], sizes = [16, 1000], strides = [1, 1]} : vector<16x1256xf32> to vector<16x1000xf32>
    %191 = arith.truncf %190 : vector<16x1000xf32> to vector<16x1000xbf16>
    %c384_99 = arith.constant 384 : index
    %c0_100 = arith.constant 0 : index
    %192 = vector.load %arg12[%c384_99, %c0_100] : memref<432x1000xbf16, #tpu.memory_space<vmem>>, vector<16x1000xbf16>
    tpu.vector_store %arg12[%c384_99, %c0_100], %191 {strides = array<i32>} : memref<432x1000xbf16, #tpu.memory_space<vmem>>, vector<16x1000xbf16>,
    %193 = vector.extract_strided_slice %117 {offsets = [0, 238], sizes = [16, 1000], strides = [1, 1]} : vector<16x1256xf32> to vector<16x1000xf32>
    %194 = arith.truncf %193 : vector<16x1000xf32> to vector<16x1000xbf16>
    %c400_101 = arith.constant 400 : index
    %c0_102 = arith.constant 0 : index
    %195 = vector.load %arg12[%c400_101, %c0_102] : memref<432x1000xbf16, #tpu.memory_space<vmem>>, vector<16x1000xbf16>
    tpu.vector_store %arg12[%c400_101, %c0_102], %194 {strides = array<i32>} : memref<432x1000xbf16, #tpu.memory_space<vmem>>, vector<16x1000xbf16>,
    %196 = vector.extract_strided_slice %117 {offsets = [0, 239], sizes = [16, 1000], strides = [1, 1]} : vector<16x1256xf32> to vector<16x1000xf32>
    %197 = arith.truncf %196 : vector<16x1000xf32> to vector<16x1000xbf16>
    %c416_103 = arith.constant 416 : index
    %c0_104 = arith.constant 0 : index
    %198 = vector.load %arg12[%c416_103, %c0_104] : memref<432x1000xbf16, #tpu.memory_space<vmem>>, vector<16x1000xbf16>
    tpu.vector_store %arg12[%c416_103, %c0_104], %197 {strides = array<i32>} : memref<432x1000xbf16, #tpu.memory_space<vmem>>, vector<16x1000xbf16>,
    %c0_105 = arith.constant 0 : index
    %c0_106 = arith.constant 0 : index
    %199 = vector.load %arg4[%c0_105, %c0_106] : memref<16x432xbf16, #tpu.memory_space<vmem>>, vector<16x432xbf16>
    %c0_107 = arith.constant 0 : index
    %c0_108 = arith.constant 0 : index
    %200 = vector.load %arg12[%c0_107, %c0_108] : memref<432x1000xbf16, #tpu.memory_space<vmem>>, vector<432x1000xbf16>
    %cst_109 = arith.constant dense<0.000000e+00> : vector<16x1000xf32>
    %201 = tpu.matmul %199, %200, %cst_109 {dimension_numbers = #tpu.dot_dimension_numbers<[1], [0], [0], [1], [0, 0, 1, 1], [], []>} : vector<16x432xbf16>, vector<432x1000xbf16>, vector<16x1000xf32> -> vector<16x1000xf32>
    %c0_110 = arith.constant 0 : index
    %c0_111 = arith.constant 0 : index
    %202 = vector.load %arg5[%c0_110, %c0_111] : memref<16x1xf32, #tpu.memory_space<vmem>>, vector<16x1xf32>
    %203 = vector.broadcast %202 : vector<16x1xf32> to vector<16x1000xf32>
    %204 = arith.addf %201, %203 : vector<16x1000xf32>
    %205 = vector.broadcast %2 : vector<1x1000xf32> to vector<16x1000xf32>
    %206 = arith.mulf %204, %205 : vector<16x1000xf32>
    %cst_112 = arith.constant dense<0.000000e+00> : vector<16xf32>
    %207 = vector.multi_reduction <add>, %206, %cst_112 [1] : vector<16x1000xf32> to vector<16xf32>
    %208 = vector.shape_cast %207 : vector<16xf32> to vector<16x1xf32>
    %209 = arith.mulf %206, %206 : vector<16x1000xf32>
    %cst_113 = arith.constant dense<0.000000e+00> : vector<16xf32>
    %210 = vector.multi_reduction <add>, %209, %cst_113 [1] : vector<16x1000xf32> to vector<16xf32>
    %211 = vector.shape_cast %210 : vector<16xf32> to vector<16x1xf32>
    %cst_114 = arith.constant 0.001953125 : f32
    %212 = vector.broadcast %cst_114 : f32 to vector<16x1xf32>
    %213 = arith.mulf %208, %212 : vector<16x1xf32>
    %cst_115 = arith.constant 0.001953125 : f32
    %214 = vector.broadcast %cst_115 : f32 to vector<16x1xf32>
    %215 = arith.mulf %211, %214 : vector<16x1xf32>
    %216 = arith.mulf %213, %213 : vector<16x1xf32>
    %217 = arith.subf %215, %216 : vector<16x1xf32>
    %218 = vector.broadcast %213 : vector<16x1xf32> to vector<16x1000xf32>
    %219 = arith.subf %206, %218 : vector<16x1000xf32>
    %cst_116 = arith.constant 9.99999974E-6 : f32
    %220 = vector.broadcast %cst_116 : f32 to vector<16x1xf32>
    %221 = arith.addf %217, %220 : vector<16x1xf32>
    %222 = math.rsqrt %221 : vector<16x1xf32>
    %223 = vector.broadcast %222 : vector<16x1xf32> to vector<16x1000xf32>
    %224 = arith.mulf %219, %223 : vector<16x1000xf32>
    %cst_117 = arith.constant 0.000000e+00 : f32
    %225 = vector.broadcast %cst_117 : f32 to vector<16x1000xf32>
    %226 = arith.maximumf %224, %225 : vector<16x1000xf32>
    %227 = vector.broadcast %2 : vector<1x1000xf32> to vector<16x1000xf32>
    %228 = arith.mulf %226, %227 : vector<16x1000xf32>
    %cst_118 = arith.constant dense<0.000000e+00> : vector<16xf32>
    %229 = vector.multi_reduction <add>, %228, %cst_118 [1] : vector<16x1000xf32> to vector<16xf32>
    %230 = vector.shape_cast %229 : vector<16xf32> to vector<16x1xf32>
    %cst_119 = arith.constant 0.001953125 : f32
    %231 = vector.broadcast %cst_119 : f32 to vector<16x1xf32>
    %232 = arith.mulf %230, %231 : vector<16x1xf32>
    %c0_120 = arith.constant 0 : index
    %c0_121 = arith.constant 0 : index
    %233 = vector.load %arg6[%c0_120, %c0_121] : memref<16x1xf32, #tpu.memory_space<vmem>>, vector<16x1xf32>
    %234 = arith.mulf %232, %233 : vector<16x1xf32>
    %cst_122 = arith.constant dense<0.000000e+00> : vector<1xf32>
    %235 = vector.multi_reduction <add>, %234, %cst_122 [0] : vector<16x1xf32> to vector<1xf32>
    %236 = vector.shape_cast %235 : vector<1xf32> to vector<1x1xf32>
    %c0_123 = arith.constant 0 : index
    %c0_124 = arith.constant 0 : index
    %237 = vector.load %arg7[%c0_123, %c0_124] : memref<1x1xf32, #tpu.memory_space<vmem>>, vector<1x1xf32>
    %238 = arith.addf %236, %237 : vector<1x1xf32>
    %cst_125 = arith.constant 0.000000e+00 : f32
    %239 = vector.broadcast %cst_125 : f32 to vector<1x1xf32>
    %240 = arith.maximumf %238, %239 : vector<1x1xf32>
    %c0_126 = arith.constant 0 : index
    %c0_127 = arith.constant 0 : index
    %241 = vector.load %arg8[%c0_126, %c0_127] : memref<16x1xf32, #tpu.memory_space<vmem>>, vector<16x1xf32>
    %242 = vector.broadcast %240 : vector<1x1xf32> to vector<16x1xf32>
    %243 = arith.mulf %241, %242 : vector<16x1xf32>
    %cst_128 = arith.constant dense<0.000000e+00> : vector<16xf32>
    %244 = vector.multi_reduction <add>, %243, %cst_128 [1] : vector<16x1xf32> to vector<16xf32>
    %245 = vector.shape_cast %244 : vector<16xf32> to vector<16x1xf32>
    %c0_129 = arith.constant 0 : index
    %c0_130 = arith.constant 0 : index
    %246 = vector.load %arg9[%c0_129, %c0_130] : memref<16x1xf32, #tpu.memory_space<vmem>>, vector<16x1xf32>
    %247 = arith.addf %245, %246 : vector<16x1xf32>
    %cst_131 = arith.constant 0.000000e+00 : f32
    %248 = vector.broadcast %cst_131 : f32 to vector<16x1xf32>
    %249 = arith.subf %248, %247 : vector<16x1xf32>
    %250 = math.exp %249 : vector<16x1xf32>
    %cst_132 = arith.constant 1.000000e+00 : f32
    %251 = vector.broadcast %cst_132 : f32 to vector<16x1xf32>
    %252 = arith.addf %251, %250 : vector<16x1xf32>
    %cst_133 = arith.constant 1.000000e+00 : f32
    %253 = vector.broadcast %cst_133 : f32 to vector<16x1xf32>
    %254 = arith.divf %253, %252 : vector<16x1xf32>
    %255 = vector.extract_strided_slice %1 {offsets = [0, 128], sizes = [16, 1000], strides = [1, 1]} : vector<16x1256xf32> to vector<16x1000xf32>
    %256 = vector.broadcast %254 : vector<16x1xf32> to vector<16x1000xf32>
    %257 = arith.mulf %228, %256 : vector<16x1000xf32>
    %258 = arith.addf %257, %255 : vector<16x1000xf32>
    %cst_134 = arith.constant 0.000000e+00 : f32
    %259 = vector.broadcast %cst_134 : f32 to vector<16x1000xf32>
    %260 = arith.maximumf %258, %259 : vector<16x1000xf32>
    %c0_135 = arith.constant 0 : index
    %c0_136 = arith.constant 0 : index
    %c0_137 = arith.constant 0 : index
    %261 = vector.load %arg11[%c0_135, %c0_136, %c0_137] : memref<1x16x1000xf32, #tpu.memory_space<vmem>>, vector<1x16x1000xf32>
    %262 = vector.shape_cast %261 : vector<1x16x1000xf32> to vector<16x1000xf32>
    %263 = vector.shape_cast %260 : vector<16x1000xf32> to vector<1x16x1000xf32>
    tpu.vector_store %arg11[%c0_135, %c0_136, %c0_137], %263 {strides = array<i32>} : memref<1x16x1000xf32, #tpu.memory_space<vmem>>, vector<1x16x1000xf32>,
    return
  }
  func.func @transform_0(%arg0: i32) -> (i32, i32, i32) {
    %c0_i32 = arith.constant 0 : i32
    %c0_i32_0 = arith.constant 0 : i32
    %c0_i32_1 = arith.constant 0 : i32
    return %arg0, %c0_i32, %c0_i32_0 : i32, i32, i32
  }
  func.func @transform_1(%arg0: i32) -> (i32, i32) {
    %c0_i32 = arith.constant 0 : i32
    %c0_i32_0 = arith.constant 0 : i32
    %c0_i32_1 = arith.constant 0 : i32
    return %c0_i32, %c0_i32_0 : i32, i32
  }
  func.func @transform_2(%arg0: i32) -> (i32, i32) {
    %c0_i32 = arith.constant 0 : i32
    %c0_i32_0 = arith.constant 0 : i32
    %c0_i32_1 = arith.constant 0 : i32
    return %c0_i32, %c0_i32_0 : i32, i32
  }
  func.func @transform_3(%arg0: i32) -> (i32, i32) {
    %c0_i32 = arith.constant 0 : i32
    %c0_i32_0 = arith.constant 0 : i32
    %c0_i32_1 = arith.constant 0 : i32
    return %c0_i32, %c0_i32_0 : i32, i32
  }
  func.func @transform_4(%arg0: i32) -> (i32, i32) {
    %c0_i32 = arith.constant 0 : i32
    %c0_i32_0 = arith.constant 0 : i32
    %c0_i32_1 = arith.constant 0 : i32
    return %c0_i32, %c0_i32_0 : i32, i32
  }
  func.func @transform_5(%arg0: i32) -> (i32, i32) {
    %c0_i32 = arith.constant 0 : i32
    %c0_i32_0 = arith.constant 0 : i32
    %c0_i32_1 = arith.constant 0 : i32
    return %c0_i32, %c0_i32_0 : i32, i32
  }
  func.func @transform_6(%arg0: i32) -> (i32, i32) {
    %c0_i32 = arith.constant 0 : i32
    %c0_i32_0 = arith.constant 0 : i32
    %c0_i32_1 = arith.constant 0 : i32
    return %c0_i32, %c0_i32_0 : i32, i32
  }
  func.func @transform_7(%arg0: i32) -> (i32, i32) {
    %c0_i32 = arith.constant 0 : i32
    %c0_i32_0 = arith.constant 0 : i32
    %c0_i32_1 = arith.constant 0 : i32
    return %c0_i32, %c0_i32_0 : i32, i32
  }
  func.func @transform_8(%arg0: i32) -> (i32, i32) {
    %c0_i32 = arith.constant 0 : i32
    %c0_i32_0 = arith.constant 0 : i32
    %c0_i32_1 = arith.constant 0 : i32
    return %c0_i32, %c0_i32_0 : i32, i32
  }
  func.func @transform_9(%arg0: i32) -> (i32, i32) {
    %c0_i32 = arith.constant 0 : i32
    %c0_i32_0 = arith.constant 0 : i32
    %c0_i32_1 = arith.constant 0 : i32
    return %c0_i32, %c0_i32_0 : i32, i32
  }
  func.func @transform_10(%arg0: i32) -> (i32, i32, i32) {
    %c0_i32 = arith.constant 0 : i32
    %c0_i32_0 = arith.constant 0 : i32
    %c0_i32_1 = arith.constant 0 : i32
    return %arg0, %c0_i32, %c0_i32_0 : i32, i32, i32
  }
}

</mosaic_0001>

<bundles_post_ra>
// kernel: tpu_custom_call.1
= control target key start
LH: loop header
LB: loop body
LE: loop exit
PB: predicated region body
PF: predicated region fallthrough
CT: control target
= control target key end

     0   :  { %s14768_s0 = inlined_call_operand.hbm [shape: f32[2,16,1256], index: 0, kind: input, shape index: {}]   ;;  %s14769_s1 = inlined_call_operand.vmem [shape: bf16[16,432], index: 1, kind: input, shape index: {}]   ;;  %s14770_s2 = inlined_call_operand.vmem [shape: f32[16,1], index: 2, kind: input, shape index: {}]   ;;  %s14771_s3 = inlined_call_operand.vmem [shape: bf16[16,432], index: 3, kind: input, shape index: {}]   ;;  %s14772_s4 = inlined_call_operand.vmem [shape: f32[16,1], index: 4, kind: input, shape index: {}]   ;;  %s14773_s5 = inlined_call_operand.vmem [shape: f32[16,1], index: 5, kind: input, shape index: {}]   ;;  %s14774_s6 = inlined_call_operand.<no memory space> [shape: f32[1,1], index: 6, kind: input, shape index: {}]   ;;  %s14775_s7 = inlined_call_operand.vmem [shape: f32[16,1], index: 7, kind: input, shape index: {}]   ;;  %s14776_s8 = inlined_call_operand.vmem [shape: f32[16,1], index: 8, kind: input, shape index: {}]   ;;  %s14777_s9 = inlined_call_operand.vmem [shape: f32[1,1000], index: 9, kind: input, shape index: {}]   ;;  %s14778_s10 = inlined_call_operand.hbm [shape: f32[2,16,1000], index: 10, kind: output, shape index: {}]  }
   0x1   :  { %14958 = sst [smem:[#allocation35_spill]] %s14768_s0  ;;  %v15_v0 = vstv %s14774_s6 }
   0x2   :  { %14959 = sst [smem:[#allocation36_spill]] %s14769_s1  ;;  %16 = vst [vmem:[#allocation4] sm:$0x1] %v15_v0 }
   0x3   :  { %14960 = sst [smem:[#allocation37_spill]] %s14770_s2 }
   0x4   :  { %14961 = sst [smem:[#allocation38_spill]] %s14777_s9 }
   0x5   :  { %14962 = sst [smem:[#allocation39_spill]] %s14778_s10 }
   0x6   :  { %17 = vsyncpa [#allocation6], 0 }
   0x7   :  { %19 = vsyncpa [#allocation6 + $0x1], 0 }
   0x8   :  { %20 = vsyncpa [#allocation7], 0 }
   0x9   :  { %22 = vsyncpa [#allocation7 + $0x1], 0  ;;  %s10414_s15 = smov 0   ;;  %s10416_s16 = smov 0  }
   0xa   :  { %s10418_s17 = smov 0   ;;  %s10420_s18 = smov 0  }
   0xb LB: > { %14963 = sst [smem:[#allocation11_spill]] %s10310_s15  ;;  %s10435_s6 = sadd.s32 4294967295, %s10322_s18   ;;  %s10322_s18 = sphi %s10420_s18, %s15255_s18   ;;  %s10318_s17 = sphi %s10418_s17, %s15258_s17   ;;  %s10314_s16 = sphi %s10416_s16, %s15257_s16   ;;  %s10310_s15 = sphi %s10414_s15, %s15256_s15  }
   0xc   : > { %14964 = sst [smem:[#allocation12_spill]] %s10314_s16  ;;  %s7864_s19 = sadd.s32 4294967294, %s10322_s18  }
   0xd   : > { %14965 = sst [smem:[#allocation13_spill]] %s10318_s17  ;;  %s10439_s20 = sadd.s32 1, %s10322_s18  }
   0xe   : > { %14966 = sst [smem:[#allocation14_spill]] %s10322_s18  ;;  %s35_s21 = sadd.s32 1, %s10318_s17 }
   0xf   : > { %14967 = sst [smem:[#allocation15_spill]] %s10435_s6  ;;  %s32_s22 = ssub.s32 %s10322_s18, %s10439_s20 }
  0x10   : > { %14968 = sst [smem:[#allocation16_spill]] %s10439_s20  ;;  %p42_p0 = scmp.ne.s32.totalorder %s10318_s17, %s10314_s16 }
  0x11   : > { %p33_p1 = scmp.eq.s32.totalorder %s32_s22, 0  ;;  %p43_p2 = scmp.eq.s32.totalorder %s10322_s18, 0 }
  0x12   : > { %p48_p3 = scmp.ne.s32.totalorder %s10314_s16, %s10310_s15  ;;  %p49_p4 = scmp.eq.s32.totalorder %s10435_s6, 0 }
  0x13   : > { %s10451_s23 = scalar_select %p33_p1, %s10318_s17, %s35_s21  }
  0x14   : > { %p44_p5 = por %p43_p2, %p42_p0  ;;  %p10453_p6 = por %p49_p4, %p48_p3 }
  0x15   : > { %14969 = sst [smem:[#allocation17_spill]] %s10451_s23  ;;  %p261_p7 = scmp.eq.s32.totalorder %s10435_s6, 1 }
  0x16   : > { %p267_p8 = scmp.eq.s32.totalorder %s7864_s19, 1  ;;  %p7866_p9 = scmp.ge.s32.totalorder %s10322_s18, 2 }
  0x17   : > { %p10107_p10 = scmp.lt.s32.totalorder %s10322_s18, 2  ;;  %p10460_p11 = por %p261_p7, %p42_p0 }
  0x18   : > { %p10464_p12 = por %p267_p8, %p48_p3  ;;  %s314_s27 = sand.u32 1, %s10318_s17  }
  0x19   : > { %s14971_s25 = scalar_select %p10460_p11, 1, 0 }
  0x1a   : > { %s14973_s26 = scalar_select %p10464_p12, 1, 0 }
  0x1b   : > { %14972 = sst [smem:[#allocation18_spill]] %s14971_s25  ;;  %s10093_s28 = smul.u32 160, %s10322_s18 }
  0x1c   : > { %14974 = sst [smem:[#allocation19_spill]] %s14973_s26  ;;  %s10092_s29 = smul.u32 160, %s314_s27 }
  0x1d   : > { %s14975_s0 = sld [smem:[#allocation35_spill]]  ;;  %p10473_p13 = pnand %p10107_p10, %p44_p5 }
  0x1e   : > { %s318_s19 = scalar_lea.vmem [#allocation5], %s10092_s29  ;;  %s315_s22 = scalar_lea.sflag [#allocation6], %s314_s27 }
  0x1f   : > { %s326_s21 = sshll.u32 %s318_s19, 4  ;;  %p10230_p1 = pneg %p10473_p13  ;;  %s327_s21 = int_to_ptr.vmem [resolvable:$true] %s326_s21 }
  0x23   : > { %s323_s12 = scalar_lea.hbm %s14975_s0, %s10093_s28  ;;  %s10233_s11 = scalar_lea.hbm %s14975_s0, 320 }
  0x24   : > { %s324_s14 = sshll.u32 %s323_s12, 4  ;;  %s325_s14 = int_to_ptr.hbm [resolvable:$true] %s324_s14 }
  0x25   : > { %s10226_s23 = sshra.s32 %s325_s14, 4  ;;  %s10227_s23 = int_to_ptr.hbm [resolvable:$true] %s10226_s23 }
  0x26   : > { %s10228_s17 = scalar_lea.hbm %s10227_s23, 160  ;;  %p10234_p4 = scmp.lt.s32.totalorder %s10227_s23, %s14975_s0 }
  0x27   : > { %p10229_p0 = scmp.ne.s32.totalorder %s10227_s23, %s10228_s17  ;;  %p10235_p5 = scmp.lt.s32.totalorder %s10233_s11, %s10228_s17 }
  0x29   : > { %p10231_p2 = pnand %p10230_p1, %p10229_p0  ;;  %p10236_p7 = por %p10235_p5, %p10234_p4 }
  0x2b   : > { %p10232_p3 = pneg %p10231_p2 }
  0x2d   : > { %p10237_p8 = pnand %p10236_p7, %p10232_p3 }
  0x2f   : > { %10240 = shalt.err (!%p10237_p8)
}
  0x30   : > { %s10324_s27 = smov 1280   ;;  %s10325_s29 = smov 80  }
  0x31   : > { %10102 = dma.hbm_to_vmem [thread:$0]  (!%p10473_p13), %s325_s14, 2560, %s327_s21, %s315_s22, %s10324_s27, %s10324_s27, %s10325_s29  }
  0x32   : > { %p7868_p10 = scmp.ge.s32.totalorder %s10322_s18, 1  ;;  %p334_p0 = scmp.lt.s32.totalorder %s10322_s18, 3 }
  0x34   : > { %p335_p1 = pnand %p7868_p10, %p334_p0 }
  0x36   : > { %338 = sbr.rel (%p335_p1) target bundleno = 2703 (0xa8f), region = 60 }
  0x3b   : > { %s10490_s12 = sand.u32 1, %s10314_s16  }
  0x3c   : > { %s10094_s17 = smul.u32 160, %s10490_s12  ;;  %s341_s20 = scalar_lea.sflag [#allocation6], %s10490_s12 }
  0x3e   : > { %s10494_s23 = scalar_lea.vmem [#allocation5], %s10094_s17 }
  0x3f   : > { %14977 = sst [smem:[#allocation20_spill]] %s10494_s23 }
  0x40   : > { %10301 = dma.done.wait (%p10453_p6), %s341_s20, 2560  }
  0x41   : > { %10303 = vsyncadd (%p10453_p6), %s341_s20, 4294964736  ;;  %v393_v1 = vld [vmem:[%s10494_s23 + $0x50] sm:$0xff]  ;;  %v394_v2 = vld [vmem:[%s10494_s23 + $0x58] sm:$0xff]  ;;  %s10326_s24 = smov 111   ;;  %s10327_s26 = smov 110   ;;  %vm444_vm0 = vcmask 1043456  }
  0x42   : > { %v387_v3 = vld [vmem:[%s10494_s23 + $0x20] sm:$0xff]  ;;  %v10503_v4 = vpack.c.bf16 %v394_v2, %v393_v1  ;;  %v388_v5 = vld [vmem:[%s10494_s23 + $0x28] sm:$0xff]  ;;  %v389_v12 = vld [vmem:[%s10494_s23 + $0x30] sm:$0xff]  ;;  %s10328_s13 = smov 109   ;;  %s10329_s14 = smov 101   ;;  %vm472_vm1 = vcmask 850948  }
  0x43   : > { %v383_v6 = vld [vmem:[%s10494_s23] sm:$0xff]  ;;  %v384_v7 = vld [vmem:[%s10494_s23 + $0x8] sm:$0xff]  ;;  %v10508_v8 = vpack.c.bf16 %v388_v5, %v387_v3  ;;  %v1225_v14 = vpack.c.bf16 %v389_v12, %v388_v5  ;;  %v385_v15 = vld [vmem:[%s10494_s23 + $0x10] sm:$0xff]  ;;  %s10330_s19 = smov 100   ;;  %vm446_vm3 = vcmask 908288   ;;  %s10331_s21 = smov 99  }
  0x44   : > { %v10510_v9 = vpack.c.bf16 %v384_v7, %v383_v6  ;;  %v395_v10 = vld [vmem:[%s10494_s23 + $0x60] sm:$0xff]  ;;  %428 = vrot.lane.b32.xlu2 %v10503_v4, %s10326_s24  ;;  %v396_v13 = vld [vmem:[%s10494_s23 + $0x68] sm:$0xff]  ;;  %v390_v16 = vld [vmem:[%s10494_s23 + $0x38] sm:$0xff]  ;;  %v1223_v18 = vpack.c.bf16 %v385_v15, %v384_v7  ;;  %vm504_vm4 = vcmask 900096   ;;  %s10332_s22 = smov 91   ;;  %vm559_vm5 = vcmask 891904  }
  0x45   : > { %v1227_v11 = vpack.c.bf16 %v395_v10, %v394_v2  ;;  %424 = vrot.lane.b32.xlu1 %v10508_v8, %s10326_s24  ;;  %v386_v17 = vld [vmem:[%s10494_s23 + $0x18] sm:$0xff]  ;;  %1233 = vst [vmem:[#allocation2 + $0x350] sm:$0xff] %v1225_v14  ;;  %v397_v20 = vld [vmem:[%s10494_s23 + $0x70] sm:$0xff]  ;;  %v10525_v21 = vpack.c.bf16 %v396_v13, %v395_v10  ;;  %v399_v22 = vld [vmem:[%s10494_s23 + $0x80] sm:$0xff]  ;;  %v10529_v25 = vpack.c.bf16 %v390_v16, %v389_v12  ;;  %s10333_s28 = smov 90   ;;  %vm624_vm6 = vcmask 826368  }
  0x46   : > { %420 = vrot.lane.b32.xlu0 %v10510_v9, %s10326_s24  ;;  %v1224_v19 = vpack.c.bf16 %v387_v3, %v386_v17  ;;  %1231 = vst [vmem:[#allocation2 + $0x340] sm:$0xff] %v1223_v18  ;;  %v398_v23 = vld [vmem:[%s10494_s23 + $0x78] sm:$0xff]  ;;  %v1228_v24 = vpack.c.bf16 %v397_v20, %v396_v13  ;;  %v10531_v26 = vpack.c.bf16 %v386_v17, %v385_v15  ;;  %v400_v28 = vld [vmem:[%s10494_s23 + $0x88] sm:$0xff]  ;;  %v391_v31 = vld [vmem:[%s10494_s23 + $0x40] sm:$0xff]  ;;  %s14809_s30 = smov 89   ;;  %vm687_vm7 = vcmask 818176  }
  0x47   : > { %1235 = vst [vmem:[#allocation2 + $0x360] sm:$0xff] %v1227_v11  ;;  %v1229_v27 = vpack.c.bf16 %v399_v22, %v398_v23  ;;  %v10540_v29 = vpack.c.bf16 %v400_v28, %v399_v22  ;;  %v10542_v30 = vpack.c.bf16 %v398_v23, %v397_v20  ;;  %v10587_v32 = vpack.c.bf16 %v391_v31, %v391_v31  ;;  %v401_v33 = vld [vmem:[%s10494_s23 + $0x90] sm:$0xff]  ;;  %vm10609_vm2 = vmor %vm472_vm1, %vm444_vm0  ;;  %s14783_s11 = smov 11   ;;  %s14785_s27 = smov 10  }
  0x48   : > { %1232 = vst [vmem:[#allocation2 + $0x348] sm:$0xff] %v1224_v19  ;;  %v10602_v34 = vpack.c.bf16 %v391_v31, %v390_v16  ;;  %v10604_v35 = vpack.c.bf16 %v401_v33, %v401_v33  ;;  %v10606_v36 = vpack.c.bf16 %v401_v33, %v400_v28  ;;  %vm750_vm8 = vcmask 809984   ;;  %s14787_s29 = smov 9   ;;  %s14802_s17 = smov 1  }
  0x49   : > { %1236 = vst [vmem:[#allocation2 + $0x368] sm:$0xff] %v1228_v24  ;;  %vm813_vm9 = vcmask 744448   ;;  %vm14827_vm10 = vcmask 736256   ;;  %vm14795_vm11 = vcmask 728064   ;;  %s14805_s20 = smov 127   ;;  %vm14796_vm12 = vcmask 89088  }
  0x4a   : > { %1237 = vst [vmem:[#allocation2 + $0x370] sm:$0xff] %v1229_v27  ;;  %vm14799_vm13 = vcmask 80896   ;;  %vm14814_vm14 = vcmask 72704   ;;  %vm14816_vm15 = vcmask 7168   ;;  %vm14817_vm1 = vcmask 1039360   ;;  %s14980_s1 = sld [smem:[#allocation36_spill]] }
  0x4b   : > { %1234 = vst.msk [vmem:[#allocation2 + $0x358] sm:$0xff] %vm10609_vm2, %v10602_v34  ;;  %s14981_s2 = sld [smem:[#allocation37_spill]]  ;;  %s15017_s0 = smov 19  }
  0x4c   : > { %430 = vrot.lane.b32.xlu2 %v10525_v21, %s10326_s24  ;;  %1238 = vst.msk [vmem:[#allocation2 + $0x378] sm:$0xff] %vm10609_vm2, %v10606_v36  ;;  %s14982_s9 = sld [smem:[#allocation38_spill]]  ;;  %s7869_s10 = sshll.u32 %s10490_s12, 7 }
  0x4d   : > { %426 = vrot.lane.b32.xlu1 %v10529_v25, %s10326_s24  ;;  %s14698_s15 = scalar_lea.vmem [#allocation8], %s7869_s10  ;;  %s15249_s16 = sld [smem:[#allocation15_spill]] }
  0x4e   : > { %422 = vrot.lane.b32.xlu0 %v10531_v26, %s10326_s24 }
  0x53   : > { %s10091_s18 = sshll.u32 %s15249_s16, 7 }
  0x54   : > { %479 = vrot.lane.b32.xlu2 %v10510_v9, %s10327_s26 }
  0x55   : > { %434 = vrot.lane.b32.xlu1 %v10540_v29, %s10326_s24 }
  0x56   : > { %432 = vrot.lane.b32.xlu0 %v10542_v30, %s10326_s24 }
  0x5c   : > { %485 = vrot.lane.b32.xlu2 %v10529_v25, %s10327_s26 }
  0x5d   : > { %483 = vrot.lane.b32.xlu1 %v10508_v8, %s10327_s26 }
  0x5e   : > { %481 = vrot.lane.b32.xlu0 %v10531_v26, %s10327_s26 }
  0x64   : > { %491 = vrot.lane.b32.xlu2 %v10542_v30, %s10327_s26 }
  0x65   : > { %489 = vrot.lane.b32.xlu1 %v10525_v21, %s10327_s26 }
  0x66   : > { %487 = vrot.lane.b32.xlu0 %v10503_v4, %s10327_s26 }
  0x6c   : > { %536 = vrot.lane.b32.xlu2 %v10531_v26, %s10328_s13 }
  0x6d   : > { %534 = vrot.lane.b32.xlu1 %v10510_v9, %s10328_s13 }
  0x6e   : > { %493 = vrot.lane.b32.xlu0 %v10540_v29, %s10327_s26 }
  0x74   : > { %542 = vrot.lane.b32.xlu2 %v10503_v4, %s10328_s13 }
  0x75   : > { %540 = vrot.lane.b32.xlu1 %v10529_v25, %s10328_s13 }
  0x76   : > { %538 = vrot.lane.b32.xlu0 %v10508_v8, %s10328_s13 }
  0x7c   : > { %548 = vrot.lane.b32.xlu2 %v10540_v29, %s10328_s13 }
  0x7d   : > { %546 = vrot.lane.b32.xlu1 %v10542_v30, %s10328_s13 }
  0x7e   : > { %544 = vrot.lane.b32.xlu0 %v10525_v21, %s10328_s13 }
  0x84   : > { %597 = vrot.lane.b32.xlu2 %v10508_v8, %s10329_s14 }
  0x85   : > { %595 = vrot.lane.b32.xlu1 %v10531_v26, %s10329_s14 }
  0x86   : > { %593 = vrot.lane.b32.xlu0 %v10510_v9, %s10329_s14 }
  0x8c   : > { %603 = vrot.lane.b32.xlu2 %v10503_v4, %s10329_s14 }
  0x8d   : > { %601 = vrot.lane.b32.xlu1 %v10587_v32, %s10329_s14 }
  0x8e   : > { %599 = vrot.lane.b32.xlu0 %v10529_v25, %s10329_s14 }
  0x94   : > { %609 = vrot.lane.b32.xlu2 %v10540_v29, %s10329_s14 }
  0x95   : > { %607 = vrot.lane.b32.xlu1 %v10542_v30, %s10329_s14 }
  0x96   : > { %605 = vrot.lane.b32.xlu0 %v10525_v21, %s10329_s14 }
  0x9c   : > { %658 = vrot.lane.b32.xlu2 %v10531_v26, %s10330_s19 }
  0x9d   : > { %656 = vrot.lane.b32.xlu1 %v10510_v9, %s10330_s19 }
  0x9e   : > { %611 = vrot.lane.b32.xlu0 %v10604_v35, %s10329_s14  ;;  %v429_v38 = vpop.permute.xlu2 %428 }
  0x9f   : > { %v440_v39 = vrot.slane %v429_v38, 4 }
  0xa4   : > { %664 = vrot.lane.b32.xlu2 %v10587_v32, %s10330_s19 }
  0xa5   : > { %662 = vrot.lane.b32.xlu1 %v10529_v25, %s10330_s19 }
  0xa6   : > { %660 = vrot.lane.b32.xlu0 %v10508_v8, %s10330_s19  ;;  %v431_v40 = vpop.permute.xlu2 %430 }
  0xa7   : > { %v441_v41 = vrot.slane %v431_v40, 4 }
  0xa9   : > { %v453_v42 = vsel %vm444_vm0, %v440_v39, %v441_v41 }
  0xaa   : > { %v454_v43 = vsel %vm446_vm3, %v429_v38, %v453_v42 }
  0xab   : > { %475 = vst [vmem:[#allocation2 + $0x20] sm:$0xff] %v454_v43 }
  0xac   : > { %670 = vrot.lane.b32.xlu2 %v10542_v30, %s10330_s19 }
  0xad   : > { %668 = vrot.lane.b32.xlu1 %v10525_v21, %s10330_s19 }
  0xae   : > { %666 = vrot.lane.b32.xlu0 %v10503_v4, %s10330_s19  ;;  %v10639_v44 = vpop.permute.xlu2 %479 }
  0xaf   : > { %v495_v16 = vrot.slane %v10639_v44, 4 }
  0xb4   : > { %719 = vrot.lane.b32.xlu2 %v10510_v9, %s10331_s21 }
  0xb5   : > { %674 = vrot.lane.b32.xlu1 %v10604_v35, %s10330_s19 }
  0xb6   : > { %672 = vrot.lane.b32.xlu0 %v10540_v29, %s10330_s19  ;;  %v486_v45 = vpop.permute.xlu2 %485 }
  0xb7   : > { %v425_v46 = vpop.permute.xlu1 %424  ;;  %v498_v47 = vrot.slane %v486_v45, 4 }
  0xb8   : > { %v421_v48 = vpop.permute.xlu0 %420  ;;  %v438_v53 = vrot.slane %v425_v46, 4 }
  0xb9   : > { %v510_v49 = vsel %vm504_vm4, %v486_v45, %v498_v47  ;;  %v436_v54 = vrot.slane %v421_v48, 4 }
  0xba   : > { %529 = vst.msk [vmem:[#allocation2 + $0x58] sm:$0xff] %vm10609_vm2, %v510_v49 }
  0xbc   : > { %725 = vrot.lane.b32.xlu2 %v10529_v25, %s10331_s21 }
  0xbd   : > { %723 = vrot.lane.b32.xlu1 %v10508_v8, %s10331_s21 }
  0xbe   : > { %721 = vrot.lane.b32.xlu0 %v10531_v26, %s10331_s21  ;;  %v10656_v50 = vpop.permute.xlu2 %491 }
  0xbf   : > { %v427_v51 = vpop.permute.xlu1 %426  ;;  %v501_v28 = vrot.slane %v10656_v50, 4 }
  0xc0   : > { %v423_v52 = vpop.permute.xlu0 %422  ;;  %v439_v55 = vrot.slane %v427_v51, 4 }
  0xc1   : > { %v437_v56 = vrot.slane %v423_v52, 4 }
  0xc2   : > { %v450_v57 = vsel %vm444_vm0, %v438_v53, %v439_v55  ;;  %v452_v58 = vsel %vm446_vm3, %v427_v51, %v439_v55 }
  0xc3   : > { %v445_v59 = vsel %vm444_vm0, %v436_v54, %v437_v56  ;;  %v448_v60 = vsel %vm444_vm0, %v437_v56, %v438_v53  ;;  %v451_v61 = vsel %vm446_vm3, %v425_v46, %v450_v57  ;;  %474 = vst.msk [vmem:[#allocation2 + $0x18] sm:$0xff] %vm10609_vm2, %v452_v58 }
  0xc4   : > { %v447_v62 = vsel %vm446_vm3, %v421_v48, %v445_v59  ;;  %v449_v63 = vsel %vm446_vm3, %v423_v52, %v448_v60  ;;  %470 = vst [vmem:[#allocation2 + $0x10] sm:$0xff] %v451_v61  ;;  %731 = vrot.lane.b32.xlu2 %v10525_v21, %s10331_s21 }
  0xc5   : > { %468 = vst [vmem:[#allocation2] sm:$0xff] %v447_v62  ;;  %729 = vrot.lane.b32.xlu1 %v10503_v4, %s10331_s21 }
  0xc6   : > { %727 = vrot.lane.b32.xlu0 %v10587_v32, %s10331_s21  ;;  %469 = vst [vmem:[#allocation2 + $0x8] sm:$0xff] %v449_v63  ;;  %v10673_v0 = vpop.permute.xlu2 %536 }
  0xc7   : > { %v435_v1 = vpop.permute.xlu1 %434 }
  0xc8   : > { %v433_v2 = vpop.permute.xlu0 %432  ;;  %v443_v3 = vrot.slane %v435_v1, 4 }
  0xc9   : > { %v442_v5 = vrot.slane %v433_v2, 4 }
  0xca   : > { %v459_v6 = vsel %vm446_vm3, %v435_v1, %v443_v3 }
  0xcb   : > { %v455_v7 = vsel %vm444_vm0, %v441_v41, %v442_v5  ;;  %v457_v10 = vsel %vm444_vm0, %v442_v5, %v443_v3  ;;  %478 = vst.msk [vmem:[#allocation2 + $0x38] sm:$0xff] %vm10609_vm2, %v459_v6 }
  0xcc   : > { %v456_v11 = vsel %vm446_vm3, %v431_v40, %v455_v7  ;;  %v458_v12 = vsel %vm446_vm3, %v433_v2, %v457_v10  ;;  %737 = vrot.lane.b32.xlu2 %v10604_v35, %s10331_s21 }
  0xcd   : > { %476 = vst [vmem:[#allocation2 + $0x28] sm:$0xff] %v456_v11  ;;  %735 = vrot.lane.b32.xlu1 %v10540_v29, %s10331_s21 }
  0xce   : > { %477 = vst [vmem:[#allocation2 + $0x30] sm:$0xff] %v458_v12  ;;  %733 = vrot.lane.b32.xlu0 %v10542_v30, %s10331_s21  ;;  %v10688_v13 = vpop.permute.xlu2 %542 }
  0xcf   : > { %v484_v14 = vpop.permute.xlu1 %483 }
  0xd0   : > { %v482_v15 = vpop.permute.xlu0 %481  ;;  %v497_v17 = vrot.slane %v484_v14, 4 }
  0xd1   : > { %v496_v18 = vrot.slane %v482_v15, 4 }
  0xd2   : > { %v508_v19 = vsel %vm444_vm0, %v497_v17, %v498_v47  ;;  %v551_v47 = vrot.slane %v10673_v0, 4 }
  0xd3   : > { %v503_v20 = vsel %vm444_vm0, %v495_v16, %v496_v18  ;;  %v506_v22 = vsel %vm444_vm0, %v496_v18, %v497_v17  ;;  %v509_v23 = vsel %vm504_vm4, %v484_v14, %v508_v19 }
  0xd4   : > { %v505_v24 = vsel %vm504_vm4, %v10639_v44, %v503_v20  ;;  %v507_v27 = vsel %vm504_vm4, %v482_v15, %v506_v22  ;;  %528 = vst [vmem:[#allocation2 + $0x50] sm:$0xff] %v509_v23  ;;  %786 = vrot.lane.b32.xlu2 %v10508_v8, %s10332_s22 }
  0xd5   : > { %526 = vst [vmem:[#allocation2 + $0x40] sm:$0xff] %v505_v24  ;;  %784 = vrot.lane.b32.xlu1 %v10531_v26, %s10332_s22 }
  0xd6   : > { %782 = vrot.lane.b32.xlu0 %v10510_v9, %s10332_s22  ;;  %527 = vst [vmem:[#allocation2 + $0x48] sm:$0xff] %v507_v27  ;;  %v549_v31 = vpop.permute.xlu2 %548 }
  0xd7   : > { %v490_v33 = vpop.permute.xlu1 %489  ;;  %v557_v38 = vrot.slane %v549_v31, 4 }
  0xd8   : > { %v488_v39 = vpop.permute.xlu0 %487  ;;  %v500_v40 = vrot.slane %v490_v33, 4 }
  0xd9   : > { %v499_v41 = vrot.slane %v488_v39, 4  ;;  %v572_v42 = vsel %vm559_vm5, %v549_v31, %v557_v38 }
  0xda   : > { %v513_v43 = vsel %vm444_vm0, %v500_v40, %v501_v28  ;;  %588 = vst.msk [vmem:[#allocation2 + $0xb8] sm:$0xff] %vm10609_vm2, %v572_v42 }
  0xdb   : > { %v511_v44 = vsel %vm444_vm0, %v499_v41, %v500_v40  ;;  %v514_v45 = vsel %vm504_vm4, %v490_v33, %v513_v43 }
  0xdc   : > { %v512_v46 = vsel %vm504_vm4, %v488_v39, %v511_v44  ;;  %531 = vst [vmem:[#allocation2 + $0x68] sm:$0xff] %v514_v45  ;;  %792 = vrot.lane.b32.xlu2 %v10503_v4, %s10332_s22 }
  0xdd   : > { %530 = vst [vmem:[#allocation2 + $0x60] sm:$0xff] %v512_v46  ;;  %790 = vrot.lane.b32.xlu1 %v10587_v32, %s10332_s22 }
  0xde   : > { %788 = vrot.lane.b32.xlu0 %v10529_v25, %s10332_s22  ;;  %v10719_v48 = vpop.permute.xlu2 %597 }
  0xdf   : > { %v535_v49 = vpop.permute.xlu1 %534  ;;  %v615_v20 = vrot.slane %v10719_v48, 4 }
  0xe0   : > { %v494_v51 = vpop.permute.xlu0 %493  ;;  %v550_v52 = vrot.slane %v535_v49, 4 }
  0xe1   : > { %v502_v53 = vrot.slane %v494_v51, 4 }
  0xe2   : > { %v558_v54 = vsel %vm444_vm0, %v550_v52, %v551_v47 }
  0xe3   : > { %v515_v55 = vsel %vm444_vm0, %v501_v28, %v502_v53  ;;  %v517_v56 = vsel %vm504_vm4, %v494_v51, %v502_v53  ;;  %v560_v57 = vsel %vm559_vm5, %v535_v49, %v558_v54 }
  0xe4   : > { %v516_v58 = vsel %vm504_vm4, %v10656_v50, %v515_v55  ;;  %533 = vst.msk [vmem:[#allocation2 + $0x78] sm:$0xff] %vm10609_vm2, %v517_v56  ;;  %798 = vrot.lane.b32.xlu2 %v10540_v29, %s10332_s22 }
  0xe5   : > { %581 = vst [vmem:[#allocation2 + $0x80] sm:$0xff] %v560_v57  ;;  %796 = vrot.lane.b32.xlu1 %v10542_v30, %s10332_s22 }
  0xe6   : > { %532 = vst [vmem:[#allocation2 + $0x70] sm:$0xff] %v516_v58  ;;  %794 = vrot.lane.b32.xlu0 %v10525_v21, %s10332_s22  ;;  %v10735_v59 = vpop.permute.xlu2 %603 }
  0xe7   : > { %v541_v60 = vpop.permute.xlu1 %540  ;;  %v618_v53 = vrot.slane %v10735_v59, 4 }
  0xe8   : > { %v539_v61 = vpop.permute.xlu0 %538  ;;  %v553_v62 = vrot.slane %v541_v60, 4 }
  0xe9   : > { %v552_v50 = vrot.slane %v539_v61, 4 }
  0xea   : > { %v565_v63 = vsel %vm559_vm5, %v541_v60, %v553_v62 }
  0xeb   : > { %v561_v1 = vsel %vm444_vm0, %v551_v47, %v552_v50  ;;  %v563_v2 = vsel %vm444_vm0, %v552_v50, %v553_v62  ;;  %584 = vst.msk [vmem:[#allocation2 + $0x98] sm:$0xff] %vm10609_vm2, %v565_v63 }
  0xec   : > { %v562_v3 = vsel %vm559_vm5, %v10673_v0, %v561_v1  ;;  %v564_v5 = vsel %vm559_vm5, %v539_v61, %v563_v2  ;;  %847 = vrot.lane.b32.xlu2 %v10531_v26, %s10333_s28  ;;  %v554_v0 = vrot.slane %v10688_v13, 4 }
  0xed   : > { %582 = vst [vmem:[#allocation2 + $0x88] sm:$0xff] %v562_v3  ;;  %845 = vrot.lane.b32.xlu1 %v10510_v9, %s10333_s28 }
  0xee   : > { %583 = vst [vmem:[#allocation2 + $0x90] sm:$0xff] %v564_v5  ;;  %800 = vrot.lane.b32.xlu0 %v10604_v35, %s10332_s22  ;;  %v10751_v6 = vpop.permute.xlu2 %609 }
  0xef   : > { %v547_v7 = vpop.permute.xlu1 %546  ;;  %v621_v49 = vrot.slane %v10751_v6, 4 }
  0xf0   : > { %v545_v10 = vpop.permute.xlu0 %544  ;;  %v556_v11 = vrot.slane %v547_v7, 4 }
  0xf1   : > { %v555_v12 = vrot.slane %v545_v10, 4 }
  0xf2   : > { %v570_v14 = vsel %vm444_vm0, %v556_v11, %v557_v38 }
  0xf3   : > { %v566_v15 = vsel %vm444_vm0, %v554_v0, %v555_v12  ;;  %v568_v16 = vsel %vm444_vm0, %v555_v12, %v556_v11  ;;  %v571_v17 = vsel %vm559_vm5, %v547_v7, %v570_v14 }
  0xf4   : > { %v567_v18 = vsel %vm559_vm5, %v10688_v13, %v566_v15  ;;  %v569_v19 = vsel %vm559_vm5, %v545_v10, %v568_v16  ;;  %587 = vst [vmem:[#allocation2 + $0xb0] sm:$0xff] %v571_v17  ;;  %853 = vrot.lane.b32.xlu2 %v10587_v32, %s10333_s28 }
  0xf5   : > { %585 = vst [vmem:[#allocation2 + $0xa0] sm:$0xff] %v567_v18  ;;  %851 = vrot.lane.b32.xlu1 %v10529_v25, %s10333_s28 }
  0xf6   : > { %849 = vrot.lane.b32.xlu0 %v10508_v8, %s10333_s28  ;;  %586 = vst [vmem:[#allocation2 + $0xa8] sm:$0xff] %v569_v19  ;;  %v10768_v22 = vpop.permute.xlu2 %658 }
  0xf7   : > { %v596_v23 = vpop.permute.xlu1 %595  ;;  %v677_v50 = vrot.slane %v10768_v22, 4 }
  0xf8   : > { %v594_v13 = vpop.permute.xlu0 %593  ;;  %v614_v24 = vrot.slane %v596_v23, 4 }
  0xf9   : > { %v613_v27 = vrot.slane %v594_v13, 4 }
  0xfa   : > { %v626_v28 = vsel %vm444_vm0, %v614_v24, %v615_v20 }
  0xfb   : > { %v623_v31 = vsel %vm444_vm0, %v613_v27, %v614_v24  ;;  %v627_v33 = vsel %vm624_vm6, %v596_v23, %v626_v28 }
  0xfc   : > { %v625_v38 = vsel %vm624_vm6, %v594_v13, %v623_v31  ;;  %649 = vst [vmem:[#allocation2 + $0xc8] sm:$0xff] %v627_v33  ;;  %859 = vrot.lane.b32.xlu2 %v10542_v30, %s10333_s28 }
  0xfd   : > { %648 = vst [vmem:[#allocation2 + $0xc0] sm:$0xff] %v625_v38  ;;  %857 = vrot.lane.b32.xlu1 %v10525_v21, %s10333_s28 }
  0xfe   : > { %855 = vrot.lane.b32.xlu0 %v10503_v4, %s10333_s28  ;;  %v665_v39 = vpop.permute.xlu2 %664 }
  0xff   : > { %v602_v40 = vpop.permute.xlu1 %601  ;;  %v680_v11 = vrot.slane %v665_v39, 4 }
 0x100   : > { %v600_v41 = vpop.permute.xlu0 %599  ;;  %v617_v42 = vrot.slane %v602_v40, 4 }
 0x101   : > { %v616_v43 = vrot.slane %v600_v41, 4 }
 0x103   : > { %v628_v44 = vsel %vm444_vm0, %v615_v20, %v616_v43  ;;  %v630_v45 = vsel %vm444_vm0, %v616_v43, %v617_v42 }
 0x104   : > { %v629_v46 = vsel %vm624_vm6, %v10719_v48, %v628_v44  ;;  %v631_v47 = vsel %vm624_vm6, %v600_v41, %v630_v45  ;;  %908 = vrot.lane.b32.xlu2 %v10510_v9, %s14809_s30 }
 0x105   : > { %650 = vst [vmem:[#allocation2 + $0xd0] sm:$0xff] %v629_v46  ;;  %863 = vrot.lane.b32.xlu1 %v10604_v35, %s10333_s28 }
 0x106   : > { %651 = vst.msk [vmem:[#allocation2 + $0xd8] sm:$0xff] %vm10609_vm2, %v631_v47  ;;  %861 = vrot.lane.b32.xlu0 %v10540_v29, %s10333_s28  ;;  %v10794_v51 = vpop.permute.xlu2 %670 }
 0x107   : > { %v608_v48 = vpop.permute.xlu1 %607  ;;  %v683_v24 = vrot.slane %v10794_v51, 4 }
 0x108   : > { %v606_v52 = vpop.permute.xlu0 %605  ;;  %v620_v54 = vrot.slane %v608_v48, 4 }
 0x109   : > { %v619_v55 = vrot.slane %v606_v52, 4 }
 0x10a   : > { %v636_v56 = vsel %vm444_vm0, %v620_v54, %v621_v49 }
 0x10b   : > { %v632_v57 = vsel %vm444_vm0, %v618_v53, %v619_v55  ;;  %v634_v58 = vsel %vm444_vm0, %v619_v55, %v620_v54  ;;  %v637_v60 = vsel %vm624_vm6, %v608_v48, %v636_v56 }
 0x10c   : > { %v633_v61 = vsel %vm624_vm6, %v10735_v59, %v632_v57  ;;  %v635_v62 = vsel %vm624_vm6, %v606_v52, %v634_v58  ;;  %654 = vst [vmem:[#allocation2 + $0xf0] sm:$0xff] %v637_v60  ;;  %914 = vrot.lane.b32.xlu2 %v10529_v25, %s14809_s30 }
 0x10d   : > { %652 = vst [vmem:[#allocation2 + $0xe0] sm:$0xff] %v633_v61  ;;  %912 = vrot.lane.b32.xlu1 %v10508_v8, %s14809_s30 }
 0x10e   : > { %910 = vrot.lane.b32.xlu0 %v10531_v26, %s14809_s30  ;;  %653 = vst [vmem:[#allocation2 + $0xe8] sm:$0xff] %v635_v62  ;;  %v10811_v63 = vpop.permute.xlu2 %719 }
 0x10f   : > { %v657_v1 = vpop.permute.xlu1 %656  ;;  %v739_v56 = vrot.slane %v10811_v63, 4 }
 0x110   : > { %v612_v59 = vpop.permute.xlu0 %611  ;;  %v676_v2 = vrot.slane %v657_v1, 4 }
 0x111   : > { %v622_v3 = vrot.slane %v612_v59, 4 }
 0x112   : > { %v686_v5 = vsel %vm444_vm0, %v676_v2, %v677_v50 }
 0x113   : > { %v638_v7 = vsel %vm444_vm0, %v621_v49, %v622_v3  ;;  %v688_v10 = vsel %vm687_vm7, %v657_v1, %v686_v5 }
 0x114   : > { %v639_v0 = vsel %vm624_vm6, %v10751_v6, %v638_v7  ;;  %711 = vst [vmem:[#allocation2 + $0x100] sm:$0xff] %v688_v10  ;;  %920 = vrot.lane.b32.xlu2 %v10525_v21, %s14809_s30 }
 0x115   : > { %655 = vst.msk [vmem:[#allocation2 + $0xf8] sm:$0xff] %vm10609_vm2, %v639_v0  ;;  %918 = vrot.lane.b32.xlu1 %v10503_v4, %s14809_s30 }
 0x116   : > { %916 = vrot.lane.b32.xlu0 %v10587_v32, %s14809_s30  ;;  %v10826_v12 = vpop.permute.xlu2 %725 }
 0x117   : > { %v663_v14 = vpop.permute.xlu1 %662  ;;  %v742_v53 = vrot.slane %v10826_v12, 4 }
 0x118   : > { %v661_v15 = vpop.permute.xlu0 %660  ;;  %v679_v16 = vrot.slane %v663_v14, 4 }
 0x119   : > { %v678_v6 = vrot.slane %v661_v15, 4 }
 0x11a   : > { %v693_v17 = vsel %vm444_vm0, %v679_v16, %v680_v11 }
 0x11b   : > { %v689_v18 = vsel %vm444_vm0, %v677_v50, %v678_v6  ;;  %v691_v19 = vsel %vm444_vm0, %v678_v6, %v679_v16  ;;  %v694_v20 = vsel %vm687_vm7, %v663_v14, %v693_v17 }
 0x11c   : > { %v690_v23 = vsel %vm687_vm7, %v10768_v22, %v689_v18  ;;  %v692_v13 = vsel %vm687_vm7, %v661_v15, %v691_v19  ;;  %714 = vst.msk [vmem:[#allocation2 + $0x118] sm:$0xff] %vm10609_vm2, %v694_v20  ;;  %926 = vrot.lane.b32.xlu2 %v10604_v35, %s14809_s30 }
 0x11d   : > { %712 = vst [vmem:[#allocation2 + $0x108] sm:$0xff] %v690_v23  ;;  %924 = vrot.lane.b32.xlu1 %v10540_v29, %s14809_s30 }
 0x11e   : > { %922 = vrot.lane.b32.xlu0 %v10542_v30, %s14809_s30  ;;  %713 = vst [vmem:[#allocation2 + $0x110] sm:$0xff] %v692_v13  ;;  %v10844_v27 = vpop.permute.xlu2 %731  ;;  %s14818_s30 = smov 19  }
 0x11f   : > { %v669_v22 = vpop.permute.xlu1 %668  ;;  %v745_v2 = vrot.slane %v10844_v27, 4 }
 0x120   : > { %v667_v28 = vpop.permute.xlu0 %666  ;;  %v682_v31 = vrot.slane %v669_v22, 4 }
 0x121   : > { %v681_v33 = vrot.slane %v667_v28, 4 }
 0x122   : > { %v697_v38 = vsel %vm444_vm0, %v682_v31, %v683_v24 }
 0x123   : > { %v695_v39 = vsel %vm444_vm0, %v681_v33, %v682_v31  ;;  %v698_v40 = vsel %vm687_vm7, %v669_v22, %v697_v38 }
 0x124   : > { %v696_v41 = vsel %vm687_vm7, %v667_v28, %v695_v39  ;;  %716 = vst [vmem:[#allocation2 + $0x128] sm:$0xff] %v698_v40  ;;  %975 = vrot.lane.b32.xlu2 %v10508_v8, %s14783_s11 }
 0x125   : > { %715 = vst [vmem:[#allocation2 + $0x120] sm:$0xff] %v696_v41  ;;  %973 = vrot.lane.b32.xlu1 %v10531_v26, %s14783_s11 }
 0x126   : > { %971 = vrot.lane.b32.xlu0 %v10510_v9, %s14783_s11  ;;  %v738_v42 = vpop.permute.xlu2 %737 }
 0x127   : > { %v675_v43 = vpop.permute.xlu1 %674  ;;  %v748_v16 = vrot.slane %v738_v42, 4 }
 0x128   : > { %v673_v44 = vpop.permute.xlu0 %672  ;;  %v685_v45 = vrot.slane %v675_v43, 4 }
 0x129   : > { %v684_v46 = vrot.slane %v673_v44, 4 }
 0x12b   : > { %v699_v47 = vsel %vm444_vm0, %v683_v24, %v684_v46  ;;  %v701_v49 = vsel %vm444_vm0, %v684_v46, %v685_v45 }
 0x12c   : > { %v700_v48 = vsel %vm687_vm7, %v10794_v51, %v699_v47  ;;  %v702_v52 = vsel %vm687_vm7, %v673_v44, %v701_v49  ;;  %981 = vrot.lane.b32.xlu2 %v10503_v4, %s14783_s11 }
 0x12d   : > { %717 = vst [vmem:[#allocation2 + $0x130] sm:$0xff] %v700_v48  ;;  %979 = vrot.lane.b32.xlu1 %v10587_v32, %s14783_s11 }
 0x12e   : > { %718 = vst.msk [vmem:[#allocation2 + $0x138] sm:$0xff] %vm10609_vm2, %v702_v52  ;;  %977 = vrot.lane.b32.xlu0 %v10529_v25, %s14783_s11  ;;  %v10870_v54 = vpop.permute.xlu2 %786 }
 0x12f   : > { %v724_v51 = vpop.permute.xlu1 %723  ;;  %v804_v31 = vrot.slane %v10870_v54, 4 }
 0x130   : > { %v722_v55 = vpop.permute.xlu0 %721  ;;  %v741_v57 = vrot.slane %v724_v51, 4 }
 0x131   : > { %v740_v58 = vrot.slane %v722_v55, 4 }
 0x132   : > { %v754_v60 = vsel %vm444_vm0, %v741_v57, %v742_v53 }
 0x133   : > { %v749_v61 = vsel %vm444_vm0, %v739_v56, %v740_v58  ;;  %v752_v62 = vsel %vm444_vm0, %v740_v58, %v741_v57  ;;  %v755_v50 = vsel %vm750_vm8, %v724_v51, %v754_v60 }
 0x134   : > { %v751_v1 = vsel %vm750_vm8, %v10811_v63, %v749_v61  ;;  %v753_v59 = vsel %vm750_vm8, %v722_v55, %v752_v62  ;;  %776 = vst [vmem:[#allocation2 + $0x150] sm:$0xff] %v755_v50  ;;  %987 = vrot.lane.b32.xlu2 %v10540_v29, %s14783_s11 }
 0x135   : > { %774 = vst [vmem:[#allocation2 + $0x140] sm:$0xff] %v751_v1  ;;  %985 = vrot.lane.b32.xlu1 %v10542_v30, %s14783_s11 }
 0x136   : > { %983 = vrot.lane.b32.xlu0 %v10525_v21, %s14783_s11  ;;  %775 = vst [vmem:[#allocation2 + $0x148] sm:$0xff] %v753_v59  ;;  %v10887_v3 = vpop.permute.xlu2 %792 }
 0x137   : > { %v730_v5 = vpop.permute.xlu1 %729  ;;  %v807_v60 = vrot.slane %v10887_v3, 4 }
 0x138   : > { %v728_v63 = vpop.permute.xlu0 %727  ;;  %v744_v7 = vrot.slane %v730_v5, 4 }
 0x139   : > { %v743_v10 = vrot.slane %v728_v63, 4 }
 0x13a   : > { %v758_v0 = vsel %vm444_vm0, %v744_v7, %v745_v2 }
 0x13b   : > { %v756_v11 = vsel %vm444_vm0, %v742_v53, %v743_v10  ;;  %v759_v14 = vsel %vm750_vm8, %v730_v5, %v758_v0 }
 0x13c   : > { %v757_v15 = vsel %vm750_vm8, %v10826_v12, %v756_v11  ;;  %778 = vst [vmem:[#allocation2 + $0x160] sm:$0xff] %v759_v14  ;;  %1036 = vrot.lane.b32.xlu2 %v10531_v26, %s14785_s27 }
 0x13d   : > { %777 = vst.msk [vmem:[#allocation2 + $0x158] sm:$0xff] %vm10609_vm2, %v757_v15  ;;  %1034 = vrot.lane.b32.xlu1 %v10510_v9, %s14785_s27 }
 0x13e   : > { %989 = vrot.lane.b32.xlu0 %v10604_v35, %s14783_s11  ;;  %v10902_v6 = vpop.permute.xlu2 %798  ;;  %s14807_s11 = smov 119  }
 0x13f   : > { %v736_v17 = vpop.permute.xlu1 %735  ;;  %v810_v56 = vrot.slane %v10902_v6, 4 }
 0x140   : > { %v734_v18 = vpop.permute.xlu0 %733  ;;  %v747_v12 = vrot.slane %v736_v17, 4 }
 0x141   : > { %v746_v19 = vrot.slane %v734_v18, 4 }
 0x142   : > { %v764_v20 = vsel %vm444_vm0, %v747_v12, %v748_v16 }
 0x143   : > { %v760_v23 = vsel %vm444_vm0, %v745_v2, %v746_v19  ;;  %v762_v13 = vsel %vm444_vm0, %v746_v19, %v747_v12  ;;  %v765_v24 = vsel %vm750_vm8, %v736_v17, %v764_v20 }
 0x144   : > { %v761_v22 = vsel %vm750_vm8, %v10844_v27, %v760_v23  ;;  %v763_v28 = vsel %vm750_vm8, %v734_v18, %v762_v13  ;;  %781 = vst.msk [vmem:[#allocation2 + $0x178] sm:$0xff] %vm10609_vm2, %v765_v24  ;;  %1042 = vrot.lane.b32.xlu2 %v10587_v32, %s14785_s27 }
 0x145   : > { %779 = vst [vmem:[#allocation2 + $0x168] sm:$0xff] %v761_v22  ;;  %1040 = vrot.lane.b32.xlu1 %v10529_v25, %s14785_s27 }
 0x146   : > { %1038 = vrot.lane.b32.xlu0 %v10508_v8, %s14785_s27  ;;  %780 = vst [vmem:[#allocation2 + $0x170] sm:$0xff] %v763_v28  ;;  %v10920_v33 = vpop.permute.xlu2 %847 }
 0x147   : > { %v785_v27 = vpop.permute.xlu1 %784  ;;  %v866_v7 = vrot.slane %v10920_v33, 4 }
 0x148   : > { %v783_v38 = vpop.permute.xlu0 %782  ;;  %v803_v39 = vrot.slane %v785_v27, 4 }
 0x149   : > { %v802_v40 = vrot.slane %v783_v38, 4 }
 0x14a   : > { %v815_v41 = vsel %vm444_vm0, %v803_v39, %v804_v31 }
 0x14b   : > { %v812_v42 = vsel %vm444_vm0, %v802_v40, %v803_v39  ;;  %v816_v43 = vsel %vm813_vm9, %v785_v27, %v815_v41 }
 0x14c   : > { %v814_v44 = vsel %vm813_vm9, %v783_v38, %v812_v42  ;;  %838 = vst [vmem:[#allocation2 + $0x188] sm:$0xff] %v816_v43  ;;  %1048 = vrot.lane.b32.xlu2 %v10542_v30, %s14785_s27 }
 0x14d   : > { %837 = vst [vmem:[#allocation2 + $0x180] sm:$0xff] %v814_v44  ;;  %1046 = vrot.lane.b32.xlu1 %v10525_v21, %s14785_s27 }
 0x14e   : > { %1044 = vrot.lane.b32.xlu0 %v10503_v4, %s14785_s27  ;;  %v854_v45 = vpop.permute.xlu2 %853 }
 0x14f   : > { %v791_v46 = vpop.permute.xlu1 %790  ;;  %v869_v12 = vrot.slane %v854_v45, 4 }
 0x150   : > { %v789_v47 = vpop.permute.xlu0 %788  ;;  %v806_v49 = vrot.slane %v791_v46, 4 }
 0x151   : > { %v805_v48 = vrot.slane %v789_v47, 4 }
 0x153   : > { %v817_v52 = vsel %vm444_vm0, %v804_v31, %v805_v48  ;;  %v819_v53 = vsel %vm444_vm0, %v805_v48, %v806_v49 }
 0x154   : > { %v818_v51 = vsel %vm813_vm9, %v10870_v54, %v817_v52  ;;  %v820_v55 = vsel %vm813_vm9, %v789_v47, %v819_v53  ;;  %1097 = vrot.lane.b32.xlu2 %v10510_v9, %s14787_s29 }
 0x155   : > { %839 = vst [vmem:[#allocation2 + $0x190] sm:$0xff] %v818_v51  ;;  %1052 = vrot.lane.b32.xlu1 %v10604_v35, %s14785_s27 }
 0x156   : > { %840 = vst.msk [vmem:[#allocation2 + $0x198] sm:$0xff] %vm10609_vm2, %v820_v55  ;;  %1050 = vrot.lane.b32.xlu0 %v10540_v29, %s14785_s27  ;;  %v10946_v57 = vpop.permute.xlu2 %859  ;;  %s14789_s27 = smov 118  }
 0x157   : > { %v797_v54 = vpop.permute.xlu1 %796  ;;  %v872_v39 = vrot.slane %v10946_v57, 4 }
 0x158   : > { %v795_v58 = vpop.permute.xlu0 %794  ;;  %v809_v61 = vrot.slane %v797_v54, 4 }
 0x159   : > { %v808_v62 = vrot.slane %v795_v58, 4 }
 0x15a   : > { %v825_v50 = vsel %vm444_vm0, %v809_v61, %v810_v56 }
 0x15b   : > { %v821_v1 = vsel %vm444_vm0, %v807_v60, %v808_v62  ;;  %v823_v59 = vsel %vm444_vm0, %v808_v62, %v809_v61  ;;  %v826_v2 = vsel %vm813_vm9, %v797_v54, %v825_v50 }
 0x15c   : > { %v822_v5 = vsel %vm813_vm9, %v10887_v3, %v821_v1  ;;  %v824_v63 = vsel %vm813_vm9, %v795_v58, %v823_v59  ;;  %843 = vst [vmem:[#allocation2 + $0x1b0] sm:$0xff] %v826_v2  ;;  %1103 = vrot.lane.b32.xlu2 %v10529_v25, %s14787_s29  ;;  %v8080_v2 = vld [vmem:[#allocation2 + $0x180] sm:$0xf] }
 0x15d   : > { %841 = vst [vmem:[#allocation2 + $0x1a0] sm:$0xff] %v822_v5  ;;  %1101 = vrot.lane.b32.xlu1 %v10508_v8, %s14787_s29 }
 0x15e   : > { %1099 = vrot.lane.b32.xlu0 %v10531_v26, %s14787_s29  ;;  %842 = vst [vmem:[#allocation2 + $0x1a8] sm:$0xff] %v824_v63  ;;  %v10963_v10 = vpop.permute.xlu2 %908 }
 0x15f   : > { %v846_v0 = vpop.permute.xlu1 %845  ;;  %v928_v50 = vrot.slane %v10963_v10, 4 }
 0x160   : > { %v801_v3 = vpop.permute.xlu0 %800  ;;  %v865_v11 = vrot.slane %v846_v0, 4 }
 0x161   : > { %v811_v14 = vrot.slane %v801_v3, 4 }
 0x162   : > { %v875_v15 = vsel %vm444_vm0, %v865_v11, %v866_v7 }
 0x163   : > { %v827_v16 = vsel %vm444_vm0, %v810_v56, %v811_v14  ;;  %v877_v17 = vsel %vm14827_vm10, %v846_v0, %v875_v15  ;;  %v8048_v14 = vld [vmem:[#allocation2 + $0x140] sm:$0xf] }
 0x164   : > { %v828_v18 = vsel %vm813_vm9, %v10902_v6, %v827_v16  ;;  %900 = vst [vmem:[#allocation2 + $0x1c0] sm:$0xff] %v877_v17  ;;  %1109 = vrot.lane.b32.xlu2 %v10525_v21, %s14787_s29  ;;  %v9707_v61 = vld [vmem:[#allocation2 + $0x19c] sm:$0xf0] }
 0x165   : > { %844 = vst.msk [vmem:[#allocation2 + $0x1b8] sm:$0xff] %vm10609_vm2, %v828_v18  ;;  %1107 = vrot.lane.b32.xlu1 %v10503_v4, %s14787_s29  ;;  %v8081_v5 = vor.u32 %v9707_v61, %v8080_v2  ;;  %v9691_v17 = vld [vmem:[#allocation2 + $0x11c] sm:$0xf0] }
 0x166   : > { %1105 = vrot.lane.b32.xlu0 %v10587_v32, %s14787_s29  ;;  %v10978_v19 = vpop.permute.xlu2 %914 }
 0x167   : > { %v852_v20 = vpop.permute.xlu1 %851 }
 0x168   : > { %v850_v23 = vpop.permute.xlu0 %849  ;;  %v868_v13 = vrot.slane %v852_v20, 4 }
 0x169   : > { %v867_v6 = vrot.slane %v850_v23, 4 }
 0x16a   : > { %v882_v24 = vsel %vm444_vm0, %v868_v13, %v869_v12 }
 0x16b   : > { %v878_v22 = vsel %vm444_vm0, %v866_v7, %v867_v6  ;;  %v880_v28 = vsel %vm444_vm0, %v867_v6, %v868_v13  ;;  %v883_v31 = vsel %vm14827_vm10, %v852_v20, %v882_v24  ;;  %v9699_v7 = vld [vmem:[#allocation2 + $0x15c] sm:$0xf0] }
 0x16c   : > { %v879_v27 = vsel %vm14827_vm10, %v10920_v33, %v878_v22  ;;  %v881_v38 = vsel %vm14827_vm10, %v850_v23, %v880_v28  ;;  %903 = vst.msk [vmem:[#allocation2 + $0x1d8] sm:$0xff] %vm10609_vm2, %v883_v31  ;;  %1115 = vrot.lane.b32.xlu2 %v10604_v35, %s14787_s29  ;;  %v8049_v15 = vor.u32 %v9699_v7, %v8048_v14  ;;  %v8016_v23 = vld [vmem:[#allocation2 + $0x100] sm:$0xf]  ;;  %v11048_v28 = vld [vmem:[#allocation2 + $0x348] sm:$0xff] }
 0x16d   : > { %901 = vst [vmem:[#allocation2 + $0x1c8] sm:$0xff] %v879_v27  ;;  %1113 = vrot.lane.b32.xlu1 %v10540_v29, %s14787_s29  ;;  %v8017_v13 = vor.u32 %v9691_v17, %v8016_v23  ;;  %v9683_v24 = vld [vmem:[#allocation2 + $0xdc] sm:$0xf0] }
 0x16e   : > { %1111 = vrot.lane.b32.xlu0 %v10542_v30, %s14787_s29  ;;  %902 = vst [vmem:[#allocation2 + $0x1d0] sm:$0xff] %v881_v38  ;;  %v10996_v40 = vpop.permute.xlu2 %920  ;;  %v7984_v31 = vld [vmem:[#allocation2 + $0xc0] sm:$0xf]  ;;  %s14791_s29 = smov 117  }
 0x16f   : > { %v858_v33 = vpop.permute.xlu1 %857  ;;  %v934_v16 = vrot.slane %v10996_v40, 4  ;;  %v11054_v27 = vld [vmem:[#allocation2 + $0x340] sm:$0xff] }
 0x170   : > { %v856_v41 = vpop.permute.xlu0 %855  ;;  %v871_v42 = vrot.slane %v858_v33, 4 }
 0x171   : > { %v870_v43 = vrot.slane %v856_v41, 4 }
 0x172   : > { %v886_v44 = vsel %vm444_vm0, %v871_v42, %v872_v39 }
 0x173   : > { %v884_v45 = vsel %vm444_vm0, %v870_v43, %v871_v42  ;;  %v887_v46 = vsel %vm14827_vm10, %v858_v33, %v886_v44  ;;  %v9675_v33 = vld [vmem:[#allocation2 + $0x9c] sm:$0xf0] }
 0x174   : > { %v885_v47 = vsel %vm14827_vm10, %v856_v41, %v884_v45  ;;  %905 = vst [vmem:[#allocation2 + $0x1e8] sm:$0xff] %v887_v46  ;;  %1164 = vrot.lane.b32.xlu2 %v10508_v8, %s14802_s17  ;;  %v7952_v45 = vld [vmem:[#allocation2 + $0x80] sm:$0xf] }
 0x175   : > { %904 = vst [vmem:[#allocation2 + $0x1e0] sm:$0xff] %v885_v47  ;;  %1162 = vrot.lane.b32.xlu1 %v10531_v26, %s14802_s17  ;;  %v7953_v46 = vor.u32 %v9675_v33, %v7952_v45 }
 0x176   : > { %1160 = vrot.lane.b32.xlu0 %v10510_v9, %s14802_s17  ;;  %v11008_v49 = vpop.permute.xlu2 %926  ;;  %v8112_v9 = vld [vmem:[#allocation2 + $0x1c0] sm:$0xf] }
 0x177   : > { %v864_v48 = vpop.permute.xlu1 %863  ;;  %v937_v38 = vrot.slane %v11008_v49, 4 }
 0x178   : > { %v862_v52 = vpop.permute.xlu0 %861  ;;  %v874_v53 = vrot.slane %v864_v48, 4 }
 0x179   : > { %v873_v51 = vrot.slane %v862_v52, 4 }
 0x17b   : > { %v888_v55 = vsel %vm444_vm0, %v872_v39, %v873_v51  ;;  %v890_v56 = vsel %vm444_vm0, %v873_v51, %v874_v53 }
 0x17c   : > { %v889_v8 = vsel %vm14827_vm10, %v10946_v57, %v888_v55  ;;  %v891_v54 = vsel %vm14827_vm10, %v862_v52, %v890_v56  ;;  %1170 = vrot.lane.b32.xlu2 %v10503_v4, %s14802_s17  ;;  %v9715_v26 = vld [vmem:[#allocation2 + $0x1dc] sm:$0xf0]  ;;  %v931_v57 = vrot.slane %v10978_v19, 4  ;;  %vm14828_vm10 = vcmask 392192  }
 0x17d   : > { %906 = vst [vmem:[#allocation2 + $0x1f0] sm:$0xff] %v889_v8  ;;  %1168 = vrot.lane.b32.xlu1 %v10587_v32, %s14802_s17  ;;  %v8113_v58 = vor.u32 %v9715_v26, %v8112_v9  ;;  %v11072_v55 = vld [vmem:[#allocation2 + $0x360] sm:$0xff]  ;;  %v11078_v8 = vld [vmem:[#allocation2 + $0x350] sm:$0xff] }
 0x17e   : > { %907 = vst.msk [vmem:[#allocation2 + $0x1f8] sm:$0xff] %vm10609_vm2, %v891_v54  ;;  %1166 = vrot.lane.b32.xlu0 %v10529_v25, %s14802_s17  ;;  %v11024_v60 = vpop.permute.xlu2 %975  ;;  %v7920_v56 = vld [vmem:[#allocation2 + $0x40] sm:$0xf] }
 0x17f   : > { %3373 = vmatpush.bf16.msra.mxu0 %v8113_v58  ;;  %v913_v62 = vpop.permute.xlu1 %912  ;;  %v993_v54 = vrot.slane %v11024_v60, 4  ;;  %v7888_v26 = vld [vmem:[#allocation2] sm:$0xf] }
 0x180   : > { %v911_v4 = vpop.permute.xlu0 %910  ;;  %v930_v1 = vrot.slane %v913_v62, 4 }
 0x181   : > { %v929_v59 = vrot.slane %v911_v4, 4 }
 0x182   : > { %v943_v32 = vsel %vm444_vm0, %v930_v1, %v931_v57 }
 0x183   : > { %v938_v25 = vsel %vm444_vm0, %v928_v50, %v929_v59  ;;  %v941_v63 = vsel %vm444_vm0, %v929_v59, %v930_v1  ;;  %v944_v0 = vsel %vm14795_vm11, %v913_v62, %v943_v32  ;;  %3374 = vmatpush.bf16.msra.mxu0 %v8081_v5  ;;  %v11091_v32 = vld [vmem:[#allocation2 + $0x370] sm:$0xff] }
 0x184   : > { %v940_v3 = vsel %vm14795_vm11, %v10963_v10, %v938_v25  ;;  %v942_v11 = vsel %vm14795_vm11, %v911_v4, %v941_v63  ;;  %965 = vst [vmem:[#allocation2 + $0x210] sm:$0xff] %v944_v0  ;;  %1176 = vrot.lane.b32.xlu2 %v10540_v29, %s14802_s17  ;;  %v9659_v4 = vld [vmem:[#allocation2 + $0x1c] sm:$0xf0]  ;;  %v11095_v25 = vld [vmem:[#allocation2 + $0x368] sm:$0xff] }
 0x185   : > { %963 = vst [vmem:[#allocation2 + $0x200] sm:$0xff] %v940_v3  ;;  %1174 = vrot.lane.b32.xlu1 %v10542_v30, %s14802_s17  ;;  %v7889_v50 = vor.u32 %v9659_v4, %v7888_v26 }
 0x186   : > { %1172 = vrot.lane.b32.xlu0 %v10525_v21, %s14802_s17  ;;  %964 = vst [vmem:[#allocation2 + $0x208] sm:$0xff] %v942_v11  ;;  %v11041_v10 = vpop.permute.xlu2 %981 }
 0x187   : > { %3375 = vmatpush.bf16.msra.mxu0 %v8049_v15  ;;  %v919_v18 = vpop.permute.xlu1 %918 }
 0x188   : > { %v917_v12 = vpop.permute.xlu0 %916  ;;  %v933_v20 = vrot.slane %v919_v18, 4 }
 0x189   : > { %v932_v29 = vrot.slane %v917_v12, 4 }
 0x18a   : > { %v947_v6 = vsel %vm444_vm0, %v933_v20, %v934_v16 }
 0x18b   : > { %v945_v30 = vsel %vm444_vm0, %v931_v57, %v932_v29  ;;  %v948_v21 = vsel %vm14795_vm11, %v919_v18, %v947_v6  ;;  %3376 = vmatpush.bf16.msra.mxu0 %v8017_v13  ;;  %v996_v29 = vrot.slane %v11041_v10, 4 }
 0x18c   : > { %v946_v22 = vsel %vm14795_vm11, %v10978_v19, %v945_v30  ;;  %967 = vst [vmem:[#allocation2 + $0x220] sm:$0xff] %v948_v21  ;;  %1249 = vrot.lane.b32.xlu2 %v11048_v28, %s14805_s20  ;;  %v7985_v19 = vor.u32 %v9683_v24, %v7984_v31 }
 0x18d   : > { %966 = vst.msk [vmem:[#allocation2 + $0x218] sm:$0xff] %vm10609_vm2, %v946_v22  ;;  %1247 = vrot.lane.b32.xlu1 %v11054_v27, %s14805_s20 }
 0x18e   : > { %1178 = vrot.lane.b32.xlu0 %v10604_v35, %s14802_s17  ;;  %v11061_v39 = vpop.permute.xlu2 %987  ;;  %v9667_v35 = vld [vmem:[#allocation2 + $0x5c] sm:$0xf0]  ;;  %s14832_s17 = smov 28  }
 0x18f   : > { %3377 = vmatpush.bf16.msra.mxu0 %v7985_v19  ;;  %v925_v41 = vpop.permute.xlu1 %924  ;;  %v999_v18 = vrot.slane %v11061_v39, 4 }
 0x190   : > { %v923_v42 = vpop.permute.xlu0 %922  ;;  %v936_v43 = vrot.slane %v925_v41, 4 }
 0x191   : > { %v935_v44 = vrot.slane %v923_v42, 4 }
 0x192   : > { %v953_v47 = vsel %vm444_vm0, %v936_v43, %v937_v38 }
 0x193   : > { %v949_v48 = vsel %vm444_vm0, %v934_v16, %v935_v44  ;;  %v951_v52 = vsel %vm444_vm0, %v935_v44, %v936_v43  ;;  %v954_v53 = vsel %vm14795_vm11, %v925_v41, %v953_v47  ;;  %3378 = vmatpush.bf16.msra.mxu0 %v7953_v46 }
 0x194   : > { %v950_v49 = vsel %vm14795_vm11, %v10996_v40, %v949_v48  ;;  %v952_v51 = vsel %vm14795_vm11, %v923_v42, %v951_v52  ;;  %970 = vst.msk [vmem:[#allocation2 + $0x238] sm:$0xff] %vm10609_vm2, %v954_v53  ;;  %1255 = vrot.lane.b32.xlu2 %v11072_v55, %s14805_s20  ;;  %v7921_v40 = vor.u32 %v9667_v35, %v7920_v56  ;;  %vm14804_vm11 = vcmask 965632  }
 0x195   : > { %968 = vst [vmem:[#allocation2 + $0x228] sm:$0xff] %v950_v49  ;;  %1253 = vrot.lane.b32.xlu1 %v10602_v34, %s14805_s20 }
 0x196   : > { %1251 = vrot.lane.b32.xlu0 %v11078_v8, %s14805_s20  ;;  %969 = vst [vmem:[#allocation2 + $0x230] sm:$0xff] %v952_v51  ;;  %v11083_v9 = vpop.permute.xlu2 %1036 }
 0x197   : > { %3379 = vmatpush.bf16.msra.mxu0 %v7921_v40  ;;  %v974_v58 = vpop.permute.xlu1 %973  ;;  %v1055_v19 = vrot.slane %v11083_v9, 4 }
 0x198   : > { %v972_v57 = vpop.permute.xlu0 %971  ;;  %v992_v61 = vrot.slane %v974_v58, 4 }
 0x199   : > { %v991_v62 = vrot.slane %v972_v57, 4 }
 0x19a   : > { %v1004_v1 = vsel %vm444_vm0, %v992_v61, %v993_v54 }
 0x19b   : > { %v1001_v59 = vsel %vm444_vm0, %v991_v62, %v992_v61  ;;  %v1005_v2 = vsel %vm14796_vm12, %v974_v58, %v1004_v1  ;;  %3380 = vmatpush.bf16.msra.mxu0 %v7889_v50 }
 0x19c   : > { %v1003_v5 = vsel %vm14796_vm12, %v972_v57, %v1001_v59  ;;  %1027 = vst [vmem:[#allocation2 + $0x248] sm:$0xff] %v1005_v2  ;;  %1261 = vrot.lane.b32.xlu2 %v10606_v36, %s14805_s20 }
 0x19d   : > { %1026 = vst [vmem:[#allocation2 + $0x240] sm:$0xff] %v1003_v5  ;;  %1259 = vrot.lane.b32.xlu1 %v11091_v32, %s14805_s20 }
 0x19e   : > { %1257 = vrot.lane.b32.xlu0 %v11095_v25, %s14805_s20  ;;  %v1043_v63 = vpop.permute.xlu2 %1042  ;;  %s14822_s20 = smov 17  }
 0x19f   : > { %v980_v7 = vpop.permute.xlu1 %979  ;;  %v1058_v47 = vrot.slane %v1043_v63, 4 }
 0x1a0   : > { %v978_v0 = vpop.permute.xlu0 %977  ;;  %v995_v3 = vrot.slane %v980_v7, 4 }
 0x1a1   : > { %v994_v11 = vrot.slane %v978_v0, 4 }
 0x1a3   : > { %v1006_v14 = vsel %vm444_vm0, %v993_v54, %v994_v11  ;;  %v1008_v15 = vsel %vm444_vm0, %v994_v11, %v995_v3 }
 0x1a4   : > { %v1007_v16 = vsel %vm14796_vm12, %v11024_v60, %v1006_v14  ;;  %v1009_v17 = vsel %vm14796_vm12, %v978_v0, %v1008_v15  ;;  %1306 = vrot.lane.b32.xlu2 %v11078_v8, %s14807_s11 }
 0x1a5   : > { %1028 = vst [vmem:[#allocation2 + $0x250] sm:$0xff] %v1007_v16  ;;  %1304 = vrot.lane.b32.xlu1 %v11048_v28, %s14807_s11 }
 0x1a6   : > { %1029 = vst.msk [vmem:[#allocation2 + $0x258] sm:$0xff] %vm10609_vm2, %v1009_v17  ;;  %1302 = vrot.lane.b32.xlu0 %v11054_v27, %s14807_s11  ;;  %v11113_v12 = vpop.permute.xlu2 %1048 }
 0x1a7   : > { %v986_v60 = vpop.permute.xlu1 %985  ;;  %v1061_v58 = vrot.slane %v11113_v12, 4 }
 0x1a8   : > { %v984_v20 = vpop.permute.xlu0 %983  ;;  %v998_v23 = vrot.slane %v986_v60, 4 }
 0x1a9   : > { %v997_v13 = vrot.slane %v984_v20, 4 }
 0x1aa   : > { %v1014_v6 = vsel %vm444_vm0, %v998_v23, %v999_v18 }
 0x1ab   : > { %v1010_v30 = vsel %vm444_vm0, %v996_v29, %v997_v13  ;;  %v1012_v24 = vsel %vm444_vm0, %v997_v13, %v998_v23  ;;  %v1015_v21 = vsel %vm14796_vm12, %v986_v60, %v1014_v6 }
 0x1ac   : > { %v1011_v22 = vsel %vm14796_vm12, %v11041_v10, %v1010_v30  ;;  %v1013_v31 = vsel %vm14796_vm12, %v984_v20, %v1012_v24  ;;  %1032 = vst [vmem:[#allocation2 + $0x270] sm:$0xff] %v1015_v21  ;;  %1312 = vrot.lane.b32.xlu2 %v11095_v25, %s14807_s11 }
 0x1ad   : > { %1030 = vst [vmem:[#allocation2 + $0x260] sm:$0xff] %v1011_v22  ;;  %1310 = vrot.lane.b32.xlu1 %v11072_v55, %s14807_s11 }
 0x1ae   : > { %1308 = vrot.lane.b32.xlu0 %v10602_v34, %s14807_s11  ;;  %1031 = vst [vmem:[#allocation2 + $0x268] sm:$0xff] %v1013_v31  ;;  %v11130_v38 = vpop.permute.xlu2 %1097 }
 0x1af   : > { %v1035_v33 = vpop.permute.xlu1 %1034  ;;  %v1117_v20 = vrot.slane %v11130_v38, 4 }
 0x1b0   : > { %v990_v10 = vpop.permute.xlu0 %989  ;;  %v1054_v41 = vrot.slane %v1035_v33, 4 }
 0x1b1   : > { %v1000_v42 = vrot.slane %v990_v10, 4 }
 0x1b2   : > { %v1064_v43 = vsel %vm444_vm0, %v1054_v41, %v1055_v19 }
 0x1b3   : > { %v1016_v44 = vsel %vm444_vm0, %v999_v18, %v1000_v42  ;;  %v1066_v45 = vsel %vm14799_vm13, %v1035_v33, %v1064_v43 }
 0x1b4   : > { %v1017_v46 = vsel %vm14796_vm12, %v11061_v39, %v1016_v44  ;;  %1089 = vst [vmem:[#allocation2 + $0x280] sm:$0xff] %v1066_v45  ;;  %1357 = vrot.lane.b32.xlu2 %v11054_v27, %s14789_s27  ;;  %vm14826_vm12 = vcmask 973824  }
 0x1b5   : > { %1033 = vst.msk [vmem:[#allocation2 + $0x278] sm:$0xff] %vm10609_vm2, %v1017_v46  ;;  %1316 = vrot.lane.b32.xlu1 %v10606_v36, %s14807_s11 }
 0x1b6   : > { %1314 = vrot.lane.b32.xlu0 %v11091_v32, %s14807_s11  ;;  %v11145_v48 = vpop.permute.xlu2 %1103  ;;  %s14820_s11 = smov 18  }
 0x1b7   : > { %v1041_v52 = vpop.permute.xlu1 %1040  ;;  %v1120_v17 = vrot.slane %v11145_v48, 4 }
 0x1b8   : > { %v1039_v35 = vpop.permute.xlu0 %1038  ;;  %v1057_v39 = vrot.slane %v1041_v52, 4 }
 0x1b9   : > { %v1056_v53 = vrot.slane %v1039_v35, 4 }
 0x1ba   : > { %v1071_v49 = vsel %vm444_vm0, %v1057_v39, %v1058_v47 }
 0x1bb   : > { %v1067_v51 = vsel %vm444_vm0, %v1055_v19, %v1056_v53  ;;  %v1069_v56 = vsel %vm444_vm0, %v1056_v53, %v1057_v39  ;;  %v1072_v40 = vsel %vm14799_vm13, %v1041_v52, %v1071_v49 }
 0x1bc   : > { %v1068_v54 = vsel %vm14799_vm13, %v11083_v9, %v1067_v51  ;;  %v1070_v26 = vsel %vm14799_vm13, %v1039_v35, %v1069_v56  ;;  %1092 = vst.msk [vmem:[#allocation2 + $0x298] sm:$0xff] %vm10609_vm2, %v1072_v40  ;;  %1363 = vrot.lane.b32.xlu2 %v10602_v34, %s14789_s27 }
 0x1bd   : > { %1090 = vst [vmem:[#allocation2 + $0x288] sm:$0xff] %v1068_v54  ;;  %1361 = vrot.lane.b32.xlu1 %v11078_v8, %s14789_s27 }
 0x1be   : > { %1359 = vrot.lane.b32.xlu0 %v11048_v28, %s14789_s27  ;;  %1091 = vst [vmem:[#allocation2 + $0x290] sm:$0xff] %v1070_v26  ;;  %v11163_v57 = vpop.permute.xlu2 %1109 }
 0x1bf   : > { %v1047_v9 = vpop.permute.xlu1 %1046  ;;  %v1123_v31 = vrot.slane %v11163_v57, 4 }
 0x1c0   : > { %v1045_v61 = vpop.permute.xlu0 %1044  ;;  %v1060_v62 = vrot.slane %v1047_v9, 4 }
 0x1c1   : > { %v1059_v4 = vrot.slane %v1045_v61, 4 }
 0x1c2   : > { %v1075_v50 = vsel %vm444_vm0, %v1060_v62, %v1061_v58 }
 0x1c3   : > { %v1073_v1 = vsel %vm444_vm0, %v1059_v4, %v1060_v62  ;;  %v1076_v59 = vsel %vm14799_vm13, %v1047_v9, %v1075_v50 }
 0x1c4   : > { %v1074_v2 = vsel %vm14799_vm13, %v1045_v61, %v1073_v1  ;;  %1094 = vst [vmem:[#allocation2 + $0x2a8] sm:$0xff] %v1076_v59  ;;  %1369 = vrot.lane.b32.xlu2 %v11091_v32, %s14789_s27 }
 0x1c5   : > { %1093 = vst [vmem:[#allocation2 + $0x2a0] sm:$0xff] %v1074_v2  ;;  %1367 = vrot.lane.b32.xlu1 %v11095_v25, %s14789_s27 }
 0x1c6   : > { %1365 = vrot.lane.b32.xlu0 %v11072_v55, %s14789_s27  ;;  %v1116_v5 = vpop.permute.xlu2 %1115 }
 0x1c7   : > { %v1053_v63 = vpop.permute.xlu1 %1052  ;;  %v1126_v46 = vrot.slane %v1116_v5, 4 }
 0x1c8   : > { %v1051_v7 = vpop.permute.xlu0 %1050  ;;  %v1063_v0 = vrot.slane %v1053_v63, 4 }
 0x1c9   : > { %v1062_v3 = vrot.slane %v1051_v7, 4 }
 0x1cb   : > { %v1077_v11 = vsel %vm444_vm0, %v1061_v58, %v1062_v3  ;;  %v1079_v14 = vsel %vm444_vm0, %v1062_v3, %v1063_v0 }
 0x1cc   : > { %v1078_v15 = vsel %vm14799_vm13, %v11113_v12, %v1077_v11  ;;  %v1080_v16 = vsel %vm14799_vm13, %v1051_v7, %v1079_v14  ;;  %1414 = vrot.lane.b32.xlu2 %v11048_v28, %s14791_s29  ;;  %vm14811_vm13 = vcmask 957440  }
 0x1cd   : > { %1095 = vst [vmem:[#allocation2 + $0x2b0] sm:$0xff] %v1078_v15  ;;  %1412 = vrot.lane.b32.xlu1 %v11054_v27, %s14791_s29 }
 0x1ce   : > { %1096 = vst.msk [vmem:[#allocation2 + $0x2b8] sm:$0xff] %vm10609_vm2, %v1080_v16  ;;  %1371 = vrot.lane.b32.xlu0 %v10606_v36, %s14789_s27  ;;  %v11189_v18 = vpop.permute.xlu2 %1164  ;;  %s14793_s27 = smov 39  }
 0x1cf   : > { %v1102_v12 = vpop.permute.xlu1 %1101  ;;  %v1182_v26 = vrot.slane %v11189_v18, 4 }
 0x1d0   : > { %v1100_v60 = vpop.permute.xlu0 %1099  ;;  %v1119_v29 = vrot.slane %v1102_v12, 4 }
 0x1d1   : > { %v1118_v23 = vrot.slane %v1100_v60, 4 }
 0x1d2   : > { %v1132_v13 = vsel %vm444_vm0, %v1119_v29, %v1120_v17 }
 0x1d3   : > { %v1127_v6 = vsel %vm444_vm0, %v1117_v20, %v1118_v23  ;;  %v1130_v30 = vsel %vm444_vm0, %v1118_v23, %v1119_v29  ;;  %v1133_v24 = vsel %vm14814_vm14, %v1102_v12, %v1132_v13 }
 0x1d4   : > { %v1129_v21 = vsel %vm14814_vm14, %v11130_v38, %v1127_v6  ;;  %v1131_v22 = vsel %vm14814_vm14, %v1100_v60, %v1130_v30  ;;  %1154 = vst [vmem:[#allocation2 + $0x2d0] sm:$0xff] %v1133_v24  ;;  %1420 = vrot.lane.b32.xlu2 %v11072_v55, %s14791_s29 }
 0x1d5   : > { %1152 = vst [vmem:[#allocation2 + $0x2c0] sm:$0xff] %v1129_v21  ;;  %1418 = vrot.lane.b32.xlu1 %v10602_v34, %s14791_s29 }
 0x1d6   : > { %1416 = vrot.lane.b32.xlu0 %v11078_v8, %s14791_s29  ;;  %1153 = vst [vmem:[#allocation2 + $0x2c8] sm:$0xff] %v1131_v22  ;;  %v11206_v19 = vpop.permute.xlu2 %1170 }
 0x1d7   : > { %v1108_v33 = vpop.permute.xlu1 %1107  ;;  %v1185_v13 = vrot.slane %v11206_v19, 4 }
 0x1d8   : > { %v1106_v38 = vpop.permute.xlu0 %1105  ;;  %v1122_v10 = vrot.slane %v1108_v33, 4 }
 0x1d9   : > { %v1121_v41 = vrot.slane %v1106_v38, 4 }
 0x1da   : > { %v1136_v42 = vsel %vm444_vm0, %v1122_v10, %v1123_v31 }
 0x1db   : > { %v1134_v43 = vsel %vm444_vm0, %v1120_v17, %v1121_v41  ;;  %v1137_v44 = vsel %vm14814_vm14, %v1108_v33, %v1136_v42 }
 0x1dc   : > { %v1135_v45 = vsel %vm14814_vm14, %v11145_v48, %v1134_v43  ;;  %1156 = vst [vmem:[#allocation2 + $0x2e0] sm:$0xff] %v1137_v44  ;;  %1426 = vrot.lane.b32.xlu2 %v10606_v36, %s14791_s29 }
 0x1dd   : > { %1155 = vst.msk [vmem:[#allocation2 + $0x2d8] sm:$0xff] %vm10609_vm2, %v1135_v45  ;;  %1424 = vrot.lane.b32.xlu1 %v11091_v32, %s14791_s29 }
 0x1de   : > { %1422 = vrot.lane.b32.xlu0 %v11095_v25, %s14791_s29  ;;  %v11221_v47 = vpop.permute.xlu2 %1176  ;;  %s14797_s29 = smov 38  }
 0x1df   : > { %v1114_v52 = vpop.permute.xlu1 %1113  ;;  %v1188_v12 = vrot.slane %v11221_v47, 4 }
 0x1e0   : > { %v1112_v35 = vpop.permute.xlu0 %1111  ;;  %v1125_v39 = vrot.slane %v1114_v52, 4 }
 0x1e1   : > { %v1124_v48 = vrot.slane %v1112_v35, 4 }
 0x1e2   : > { %v1142_v53 = vsel %vm444_vm0, %v1125_v39, %v1126_v46 }
 0x1e3   : > { %v1138_v49 = vsel %vm444_vm0, %v1123_v31, %v1124_v48  ;;  %v1140_v51 = vsel %vm444_vm0, %v1124_v48, %v1125_v39  ;;  %v1143_v56 = vsel %vm14814_vm14, %v1114_v52, %v1142_v53 }
 0x1e4   : > { %v1139_v40 = vsel %vm14814_vm14, %v11163_v57, %v1138_v49  ;;  %v1141_v54 = vsel %vm14814_vm14, %v1112_v35, %v1140_v51  ;;  %1159 = vst.msk [vmem:[#allocation2 + $0x2f8] sm:$0xff] %vm10609_vm2, %v1143_v56  ;;  %1475 = vrot.lane.b32.xlu2 %v11078_v8, %s14793_s27  ;;  %v392_v57 = vld [vmem:[%s10494_s23 + $0x48] sm:$0xff]  ;;  %vm1817_vm14 = vcmask 220160  }
 0x1e5   : > { %1157 = vst [vmem:[#allocation2 + $0x2e8] sm:$0xff] %v1139_v40  ;;  %1473 = vrot.lane.b32.xlu1 %v11048_v28, %s14793_s27  ;;  %v11242_v50 = vpack.c.bf16 %v392_v57, %v392_v57 }
 0x1e6   : > { %1471 = vrot.lane.b32.xlu0 %v11054_v27, %s14793_s27  ;;  %1158 = vst [vmem:[#allocation2 + $0x2f0] sm:$0xff] %v1141_v54  ;;  %v11239_v58 = vpop.permute.xlu2 %1249 }
 0x1e7   : > { %v1163_v9 = vpop.permute.xlu1 %1162  ;;  %v1264_v42 = vrot.slane %v11239_v58, 4 }
 0x1e8   : > { %v1161_v61 = vpop.permute.xlu0 %1160  ;;  %v1181_v62 = vrot.slane %v1163_v9, 4 }
 0x1e9   : > { %v1180_v4 = vrot.slane %v1161_v61, 4 }
 0x1ea   : > { %v1193_v1 = vsel %vm444_vm0, %v1181_v62, %v1182_v26 }
 0x1eb   : > { %v1190_v59 = vsel %vm444_vm0, %v1180_v4, %v1181_v62  ;;  %v1194_v2 = vsel %vm14816_vm15, %v1163_v9, %v1193_v1 }
 0x1ec   : > { %v1192_v5 = vsel %vm14816_vm15, %v1161_v61, %v1190_v59  ;;  %1216 = vst [vmem:[#allocation2 + $0x308] sm:$0xff] %v1194_v2  ;;  %1481 = vrot.lane.b32.xlu2 %v11072_v55, %s14793_s27 }
 0x1ed   : > { %1215 = vst [vmem:[#allocation2 + $0x300] sm:$0xff] %v1192_v5  ;;  %1479 = vrot.lane.b32.xlu1 %v11242_v50, %s14793_s27 }
 0x1ee   : > { %1477 = vrot.lane.b32.xlu0 %v10602_v34, %s14793_s27  ;;  %v11254_v63 = vpop.permute.xlu2 %1255 }
 0x1ef   : > { %v1169_v7 = vpop.permute.xlu1 %1168  ;;  %v1267_v1 = vrot.slane %v11254_v63, 4 }
 0x1f0   : > { %v1167_v0 = vpop.permute.xlu0 %1166  ;;  %v1184_v3 = vrot.slane %v1169_v7, 4 }
 0x1f1   : > { %v1183_v11 = vrot.slane %v1167_v0, 4 }
 0x1f3   : > { %v1195_v14 = vsel %vm444_vm0, %v1182_v26, %v1183_v11  ;;  %v1197_v15 = vsel %vm444_vm0, %v1183_v11, %v1184_v3 }
 0x1f4   : > { %v1196_v16 = vsel %vm14816_vm15, %v11189_v18, %v1195_v14  ;;  %v1198_v17 = vsel %vm14816_vm15, %v1167_v0, %v1197_v15  ;;  %1487 = vrot.lane.b32.xlu2 %v10606_v36, %s14793_s27  ;;  %v402_v18 = vld [vmem:[%s10494_s23 + $0x98] sm:$0xff]  ;;  %s15250_s23 = sld [smem:[#allocation39_spill]] }
 0x1f5   : > { %1217 = vst [vmem:[#allocation2 + $0x310] sm:$0xff] %v1196_v16  ;;  %1485 = vrot.lane.b32.xlu1 %v11091_v32, %s14793_s27  ;;  %v11277_v21 = vpack.c.bf16 %v402_v18, %v402_v18 }
 0x1f6   : > { %1218 = vst.msk [vmem:[#allocation2 + $0x318] sm:$0xff] %vm10609_vm2, %v1198_v17  ;;  %1483 = vrot.lane.b32.xlu0 %v11095_v25, %s14793_s27  ;;  %v11270_v60 = vpop.permute.xlu2 %1261 }
 0x1f7   : > { %v1175_v20 = vpop.permute.xlu1 %1174  ;;  %v1270_v29 = vrot.slane %v11270_v60, 4 }
 0x1f8   : > { %v1173_v23 = vpop.permute.xlu0 %1172  ;;  %v1187_v6 = vrot.slane %v1175_v20, 4 }
 0x1f9   : > { %v1186_v30 = vrot.slane %v1173_v23, 4  ;;  %v1285_v24 = vsel %vm14817_vm1, %v11270_v60, %v1270_v29 }
 0x1fa   : > { %v1203_v22 = vsel %vm444_vm0, %v1187_v6, %v1188_v12  ;;  %1301 = vst.msk [vmem:[#allocation2 + $0x3b8] sm:$0xff] %vm10609_vm2, %v1285_v24 }
 0x1fb   : > { %v1199_v31 = vsel %vm444_vm0, %v1185_v13, %v1186_v30  ;;  %v1201_v33 = vsel %vm444_vm0, %v1186_v30, %v1187_v6  ;;  %v1204_v38 = vsel %vm14816_vm15, %v1175_v20, %v1203_v22 }
 0x1fc   : > { %v1200_v10 = vsel %vm14816_vm15, %v11206_v19, %v1199_v31  ;;  %v1202_v41 = vsel %vm14816_vm15, %v1173_v23, %v1201_v33  ;;  %1221 = vst [vmem:[#allocation2 + $0x330] sm:$0xff] %v1204_v38  ;;  %1536 = vrot.lane.b32.xlu2 %v11048_v28, %s14797_s29 }
 0x1fd   : > { %1219 = vst [vmem:[#allocation2 + $0x320] sm:$0xff] %v1200_v10  ;;  %1534 = vrot.lane.b32.xlu1 %v11054_v27, %s14797_s29 }
 0x1fe   : > { %1489 = vrot.lane.b32.xlu0 %v11277_v21, %s14793_s27  ;;  %1220 = vst [vmem:[#allocation2 + $0x328] sm:$0xff] %v1202_v41  ;;  %v11295_v43 = vpop.permute.xlu2 %1306  ;;  %s14800_s27 = smov 37  }
 0x1ff   : > { %v1248_v19 = vpop.permute.xlu1 %1247  ;;  %v1320_v14 = vrot.slane %v11295_v43, 4 }
 0x200   : > { %v1179_v44 = vpop.permute.xlu0 %1178  ;;  %v1263_v45 = vrot.slane %v1248_v19, 4 }
 0x201   : > { %v1189_v46 = vrot.slane %v1179_v44, 4 }
 0x202   : > { %v1271_v52 = vsel %vm444_vm0, %v1263_v45, %v1264_v42 }
 0x203   : > { %v1205_v35 = vsel %vm444_vm0, %v1188_v12, %v1189_v46  ;;  %v1273_v39 = vsel %vm14817_vm1, %v1248_v19, %v1271_v52 }
 0x204   : > { %v1206_v48 = vsel %vm14816_vm15, %v11221_v47, %v1205_v35  ;;  %1294 = vst [vmem:[#allocation2 + $0x380] sm:$0xff] %v1273_v39  ;;  %1542 = vrot.lane.b32.xlu2 %v11242_v50, %s14797_s29  ;;  %vm14831_vm15 = vcmask 138240  }
 0x205   : > { %1222 = vst.msk [vmem:[#allocation2 + $0x338] sm:$0xff] %vm10609_vm2, %v1206_v48  ;;  %1540 = vrot.lane.b32.xlu1 %v10602_v34, %s14797_s29 }
 0x206   : > { %1538 = vrot.lane.b32.xlu0 %v11078_v8, %s14797_s29  ;;  %v11310_v53 = vpop.permute.xlu2 %1312 }
 0x207   : > { %v1254_v49 = vpop.permute.xlu1 %1253  ;;  %v1323_v6 = vrot.slane %v11310_v53, 4 }
 0x208   : > { %v1252_v51 = vpop.permute.xlu0 %1251  ;;  %v1266_v56 = vrot.slane %v1254_v49, 4 }
 0x209   : > { %v1265_v40 = vrot.slane %v1252_v51, 4 }
 0x20a   : > { %v1278_v47 = vsel %vm14817_vm1, %v1254_v49, %v1266_v56 }
 0x20b   : > { %v1274_v54 = vsel %vm444_vm0, %v1264_v42, %v1265_v40  ;;  %v1276_v26 = vsel %vm444_vm0, %v1265_v40, %v1266_v56  ;;  %1297 = vst.msk [vmem:[#allocation2 + $0x398] sm:$0xff] %vm10609_vm2, %v1278_v47 }
 0x20c   : > { %v1275_v57 = vsel %vm14817_vm1, %v11239_v58, %v1274_v54  ;;  %v1277_v9 = vsel %vm14817_vm1, %v1252_v51, %v1276_v26  ;;  %1548 = vrot.lane.b32.xlu2 %v11091_v32, %s14797_s29 }
 0x20d   : > { %1295 = vst [vmem:[#allocation2 + $0x388] sm:$0xff] %v1275_v57  ;;  %1546 = vrot.lane.b32.xlu1 %v11095_v25, %s14797_s29 }
 0x20e   : > { %1296 = vst [vmem:[#allocation2 + $0x390] sm:$0xff] %v1277_v9  ;;  %1544 = vrot.lane.b32.xlu0 %v11072_v55, %s14797_s29  ;;  %v11326_v61 = vpop.permute.xlu2 %1357  ;;  %v8304_v9 = vld [vmem:[#allocation2 + $0x340] sm:$0xf] }
 0x20f   : > { %v1260_v62 = vpop.permute.xlu1 %1259 }
 0x210   : > { %v1258_v4 = vpop.permute.xlu0 %1257  ;;  %v1269_v58 = vrot.slane %v1260_v62, 4 }
 0x211   : > { %v1268_v59 = vrot.slane %v1258_v4, 4 }
 0x212   : > { %v1283_v2 = vsel %vm444_vm0, %v1269_v58, %v1270_v29 }
 0x213   : > { %v1279_v5 = vsel %vm444_vm0, %v1267_v1, %v1268_v59  ;;  %v1281_v7 = vsel %vm444_vm0, %v1268_v59, %v1269_v58  ;;  %v1284_v0 = vsel %vm14817_vm1, %v1260_v62, %v1283_v2  ;;  %v9763_v1 = vld [vmem:[#allocation2 + $0x35c] sm:$0xf0]  ;;  %v9759_v58 = vld [vmem:[#allocation2 + $0x344] sm:$0xf]  ;;  %v1373_v2 = vrot.slane %v11326_v61, 4 }
 0x214   : > { %v1280_v3 = vsel %vm14817_vm1, %v11254_v63, %v1279_v5  ;;  %v1282_v11 = vsel %vm14817_vm1, %v1258_v4, %v1281_v7  ;;  %1300 = vst [vmem:[#allocation2 + $0x3b0] sm:$0xff] %v1284_v0  ;;  %1597 = vrot.lane.b32.xlu2 %v11054_v27, %s14800_s27  ;;  %v8306_v59 = vld [vmem:[#allocation2 + $0x360] sm:$0xf0]  ;;  %v8336_v0 = vld [vmem:[#allocation2 + $0x380] sm:$0xf]  ;;  %vm14830_vm1 = vcmask 146432  }
 0x215   : > { %1298 = vst [vmem:[#allocation2 + $0x3a0] sm:$0xff] %v1280_v3  ;;  %1552 = vrot.lane.b32.xlu1 %v11277_v21, %s14797_s29  ;;  %v9767_v3 = vld [vmem:[#allocation2 + $0x384] sm:$0xf] }
 0x216   : > { %1550 = vrot.lane.b32.xlu0 %v10606_v36, %s14797_s29  ;;  %1299 = vst [vmem:[#allocation2 + $0x3a8] sm:$0xff] %v1282_v11  ;;  %v11343_v15 = vpop.permute.xlu2 %1363  ;;  %s14824_s29 = smov 29  }
 0x217   : > { %v1305_v63 = vpop.permute.xlu1 %1304  ;;  %v1376_v16 = vrot.slane %v11343_v15, 4 }
 0x218   : > { %v1303_v17 = vpop.permute.xlu0 %1302  ;;  %v1319_v12 = vrot.slane %v1305_v63, 4 }
 0x219   : > { %v1318_v60 = vrot.slane %v1303_v17, 4  ;;  %v1388_v18 = vsel %vm14804_vm11, %v11343_v15, %v1376_v16  ;;  %v9755_v15 = vld [vmem:[#allocation2 + $0x31c] sm:$0xf0] }
 0x21a   : > { %v1329_v20 = vsel %vm444_vm0, %v1319_v12, %v1320_v14  ;;  %1407 = vst.msk [vmem:[#allocation2 + $0x418] sm:$0xff] %vm10609_vm2, %v1388_v18 }
 0x21b   : > { %v1326_v29 = vsel %vm444_vm0, %v1318_v60, %v1319_v12  ;;  %v1330_v23 = vsel %vm14826_vm12, %v1305_v63, %v1329_v20  ;;  %v8309_v12 = vor.u32 %v9759_v58, %v8306_v59 }
 0x21c   : > { %v1328_v13 = vsel %vm14826_vm12, %v1303_v17, %v1326_v29  ;;  %1350 = vst [vmem:[#allocation2 + $0x3c8] sm:$0xff] %v1330_v23  ;;  %1603 = vrot.lane.b32.xlu2 %v10602_v34, %s14800_s27  ;;  %v9771_v62 = vld [vmem:[#allocation2 + $0x39c] sm:$0xf0] }
 0x21d   : > { %1349 = vst [vmem:[#allocation2 + $0x3c0] sm:$0xff] %v1328_v13  ;;  %1601 = vrot.lane.b32.xlu1 %v11078_v8, %s14800_s27  ;;  %v8337_v63 = vor.u32 %v9771_v62, %v8336_v0  ;;  %v8208_v62 = vld [vmem:[#allocation2 + $0x280] sm:$0xf] }
 0x21e   : > { %1599 = vrot.lane.b32.xlu0 %v11048_v28, %s14800_s27  ;;  %v11363_v30 = vpop.permute.xlu2 %1369 }
 0x21f   : > { %v1311_v24 = vpop.permute.xlu1 %1310 }
 0x220   : > { %v1309_v22 = vpop.permute.xlu0 %1308  ;;  %v1322_v31 = vrot.slane %v1311_v24, 4 }
 0x221   : > { %v1321_v33 = vrot.slane %v1309_v22, 4 }
 0x222   : > { %v1334_v38 = vsel %vm444_vm0, %v1322_v31, %v1323_v6 }
 0x223   : > { %v1331_v10 = vsel %vm444_vm0, %v1320_v14, %v1321_v33  ;;  %v1333_v41 = vsel %vm14826_vm12, %v1309_v22, %v1321_v33  ;;  %v1335_v42 = vsel %vm14826_vm12, %v1311_v24, %v1334_v38  ;;  %v8272_v24 = vld [vmem:[#allocation2 + $0x300] sm:$0xf]  ;;  %v9751_v38 = vld [vmem:[#allocation2 + $0x304] sm:$0xf] }
 0x224   : > { %v1332_v19 = vsel %vm14826_vm12, %v11295_v43, %v1331_v10  ;;  %1352 = vst.msk [vmem:[#allocation2 + $0x3d8] sm:$0xff] %vm10609_vm2, %v1333_v41  ;;  %1609 = vrot.lane.b32.xlu2 %v11095_v25, %s14800_s27  ;;  %v8368_v49 = vld [vmem:[#allocation2 + $0x3c0] sm:$0xf]  ;;  %v9775_v51 = vld [vmem:[#allocation2 + $0x3c4] sm:$0xf]  ;;  %v8273_v33 = vor.u32 %v9755_v15, %v8272_v24 }
 0x225   : > { %1353 = vst [vmem:[#allocation2 + $0x3e0] sm:$0xff] %v1335_v42  ;;  %1607 = vrot.lane.b32.xlu1 %v11072_v55, %s14800_s27  ;;  %v9719_v15 = vld [vmem:[#allocation2 + $0x204] sm:$0xf] }
 0x226   : > { %1351 = vst [vmem:[#allocation2 + $0x3d0] sm:$0xff] %v1332_v19  ;;  %1605 = vrot.lane.b32.xlu0 %v11242_v50, %s14800_s27  ;;  %v11379_v44 = vpop.permute.xlu2 %1414 }
 0x227   : > { %v1317_v45 = vpop.permute.xlu1 %1316 }
 0x228   : > { %v1315_v46 = vpop.permute.xlu0 %1314  ;;  %v1325_v52 = vrot.slane %v1317_v45, 4 }
 0x229   : > { %v1324_v43 = vrot.slane %v1315_v46, 4 }
 0x22a   : > { %v1340_v35 = vsel %vm14826_vm12, %v1317_v45, %v1325_v52  ;;  %v9747_v45 = vld [vmem:[#allocation2 + $0x2dc] sm:$0xf0] }
 0x22b   : > { %v1336_v39 = vsel %vm444_vm0, %v1323_v6, %v1324_v43  ;;  %v1338_v48 = vsel %vm444_vm0, %v1324_v43, %v1325_v52  ;;  %1356 = vst.msk [vmem:[#allocation2 + $0x3f8] sm:$0xff] %vm10609_vm2, %v1340_v35  ;;  %v1379_v6 = vrot.slane %v11363_v30, 4 }
 0x22c   : > { %v1337_v56 = vsel %vm14826_vm12, %v11310_v53, %v1336_v39  ;;  %v1339_v40 = vsel %vm14826_vm12, %v1315_v46, %v1338_v48  ;;  %v9779_v47 = vld [vmem:[#allocation2 + $0x3dc] sm:$0xf0]  ;;  %v8370_v54 = vld [vmem:[#allocation2 + $0x3e0] sm:$0xf0]  ;;  %1615 = vrot.lane.b32.xlu2 %v11277_v21, %s14800_s27  ;;  %vm14829_vm12 = vcmask 154624  }
 0x22d   : > { %1354 = vst [vmem:[#allocation2 + $0x3e8] sm:$0xff] %v1337_v56  ;;  %v8369_v26 = vor.u32 %v9779_v47, %v8368_v49  ;;  %v8373_v57 = vor.u32 %v9775_v51, %v8370_v54  ;;  %1613 = vrot.lane.b32.xlu1 %v10606_v36, %s14800_s27  ;;  %v8338_v53 = vld [vmem:[#allocation2 + $0x3a0] sm:$0xf0]  ;;  %v8240_v48 = vld [vmem:[#allocation2 + $0x2c0] sm:$0xf]  ;;  %v1429_v54 = vrot.slane %v11379_v44, 4 }
 0x22e   : > { %1355 = vst [vmem:[#allocation2 + $0x3f0] sm:$0xff] %v1339_v40  ;;  %1611 = vrot.lane.b32.xlu0 %v11091_v32, %s14800_s27  ;;  %v11395_v4 = vpop.permute.xlu2 %1420  ;;  %v8341_v17 = vor.u32 %v9767_v3, %v8338_v53  ;;  %v8305_v32 = vor.u32 %v9763_v1, %v8304_v9  ;;  %v8242_v46 = vld [vmem:[#allocation2 + $0x2e0] sm:$0xf0]  ;;  %v8241_v51 = vor.u32 %v9747_v45, %v8240_v48  ;;  %v9739_v40 = vld [vmem:[#allocation2 + $0x29c] sm:$0xf0]  ;;  %s14834_s27 = smov 27  }
 0x22f   : > { %3387 = vmatpush.bf16.msra.mxu1 %v8369_v26  ;;  %3443 = vmatpush.bf16.msrb.mxu0 %v8373_v57  ;;  %v1362_v5 = vpop.permute.xlu1 %1361  ;;  %v9743_v49 = vld [vmem:[#allocation2 + $0x2c4] sm:$0xf]  ;;  %v8209_v59 = vor.u32 %v9739_v40, %v8208_v62 }
 0x230   : > { %v1360_v7 = vpop.permute.xlu0 %1359  ;;  %v1375_v11 = vrot.slane %v1362_v5, 4  ;;  %v8245_v56 = vor.u32 %v9743_v49, %v8242_v46  ;;  %v8210_v47 = vld [vmem:[#allocation2 + $0x2a0] sm:$0xf0] }
 0x231   : > { %v1374_v14 = vrot.slane %v1360_v7, 4  ;;  %v9735_v53 = vld [vmem:[#allocation2 + $0x284] sm:$0xf] }
 0x232   : > { %v1386_v60 = vsel %vm444_vm0, %v1375_v11, %v1376_v16  ;;  %v8274_v16 = vld [vmem:[#allocation2 + $0x320] sm:$0xf0] }
 0x233   : > { %v1381_v18 = vsel %vm444_vm0, %v1373_v2, %v1374_v14  ;;  %v1384_v20 = vsel %vm444_vm0, %v1374_v14, %v1375_v11  ;;  %3388 = vmatpush.bf16.msra.mxu1 %v8337_v63  ;;  %3444 = vmatpush.bf16.msrb.mxu0 %v8341_v17  ;;  %v1387_v29 = vsel %vm14804_vm11, %v1362_v5, %v1386_v60  ;;  %v9731_v5 = vld [vmem:[#allocation2 + $0x25c] sm:$0xf0] }
 0x234   : > { %v1383_v23 = vsel %vm14804_vm11, %v11326_v61, %v1381_v18  ;;  %v1385_v13 = vsel %vm14804_vm11, %v1360_v7, %v1384_v20  ;;  %1406 = vst [vmem:[#allocation2 + $0x410] sm:$0xff] %v1387_v29  ;;  %1664 = vrot.lane.b32.xlu2 %v11078_v8, %s14824_s29  ;;  %v8277_v42 = vor.u32 %v9751_v38, %v8274_v16  ;;  %v8178_v7 = vld [vmem:[#allocation2 + $0x260] sm:$0xf0]  ;;  %v8176_v17 = vld [vmem:[#allocation2 + $0x240] sm:$0xf] }
 0x235   : > { %1404 = vst [vmem:[#allocation2 + $0x400] sm:$0xff] %v1383_v23  ;;  %1662 = vrot.lane.b32.xlu1 %v11048_v28, %s14824_s29  ;;  %v8213_v2 = vor.u32 %v9735_v53, %v8210_v47  ;;  %v8146_v18 = vld [vmem:[#allocation2 + $0x220] sm:$0xf0] }
 0x236   : > { %1660 = vrot.lane.b32.xlu0 %v11054_v27, %s14824_s29  ;;  %1405 = vst [vmem:[#allocation2 + $0x408] sm:$0xff] %v1385_v13  ;;  %v11414_v61 = vpop.permute.xlu2 %1426  ;;  %v8144_v13 = vld [vmem:[#allocation2 + $0x200] sm:$0xf] }
 0x237   : > { %3389 = vmatpush.bf16.msra.mxu1 %v8305_v32  ;;  %3445 = vmatpush.bf16.msrb.mxu0 %v8309_v12  ;;  %v1368_v22 = vpop.permute.xlu1 %1367  ;;  %v1435_v8 = vrot.slane %v11414_v61, 4  ;;  %v9727_v32 = vld [vmem:[#allocation2 + $0x244] sm:$0xf]  ;;  %v8177_v12 = vor.u32 %v9731_v5, %v8176_v17 }
 0x238   : > { %v1366_v31 = vpop.permute.xlu0 %1365  ;;  %v1378_v10 = vrot.slane %v1368_v22, 4  ;;  %v8181_v60 = vor.u32 %v9727_v32, %v8178_v7  ;;  %v10199_v62 = vld [vmem:[#allocation2 + $0x340] sm:$0xff] }
 0x239   : > { %v1377_v41 = vrot.slane %v1366_v31, 4  ;;  %v1450_v19 = vsel %vm14811_vm13, %v11414_v61, %v1435_v8 }
 0x23a   : > { %v1391_v52 = vsel %vm444_vm0, %v1378_v10, %v1379_v6  ;;  %1466 = vst.msk [vmem:[#allocation2 + $0x478] sm:$0xff] %vm10609_vm2, %v1450_v19 }
 0x23b   : > { %v1389_v43 = vsel %vm444_vm0, %v1377_v41, %v1378_v10  ;;  %3390 = vmatpush.bf16.msra.mxu1 %v8273_v33  ;;  %3446 = vmatpush.bf16.msrb.mxu0 %v8277_v42  ;;  %v1392_v35 = vsel %vm14804_vm11, %v1368_v22, %v1391_v52  ;;  %v8149_v22 = vor.u32 %v9719_v15, %v8146_v18 }
 0x23c   : > { %v1390_v39 = vsel %vm14804_vm11, %v1366_v31, %v1389_v43  ;;  %1409 = vst [vmem:[#allocation2 + $0x428] sm:$0xff] %v1392_v35  ;;  %1670 = vrot.lane.b32.xlu2 %v11072_v55, %s14824_s29 }
 0x23d   : > { %1408 = vst [vmem:[#allocation2 + $0x420] sm:$0xff] %v1390_v39  ;;  %1668 = vrot.lane.b32.xlu1 %v11242_v50, %s14824_s29 }
 0x23e   : > { %1666 = vrot.lane.b32.xlu0 %v10602_v34, %s14824_s29  ;;  %v11434_v26 = vpop.permute.xlu2 %1475 }
 0x23f   : > { %3391 = vmatpush.bf16.msra.mxu1 %v8241_v51  ;;  %3447 = vmatpush.bf16.msrb.mxu0 %v8245_v56  ;;  %v1413_v57 = vpop.permute.xlu1 %1412  ;;  %v1493_v61 = vrot.slane %v11434_v26, 4 }
 0x240   : > { %v1372_v9 = vpop.permute.xlu0 %1371  ;;  %v1428_v1 = vrot.slane %v1413_v57, 4 }
 0x241   : > { %v1380_v58 = vrot.slane %v1372_v9, 4 }
 0x242   : > { %v1436_v0 = vsel %vm444_vm0, %v1428_v1, %v1429_v54 }
 0x243   : > { %v1393_v3 = vsel %vm444_vm0, %v1379_v6, %v1380_v58  ;;  %v1395_v11 = vsel %vm14804_vm11, %v1372_v9, %v1380_v58  ;;  %3392 = vmatpush.bf16.msra.mxu1 %v8209_v59  ;;  %3448 = vmatpush.bf16.msrb.mxu0 %v8213_v2  ;;  %v1438_v14 = vsel %vm14811_vm13, %v1413_v57, %v1436_v0  ;;  %v10198_v9 = vld [vmem:[#allocation2 + $0x348] sm:$0xff] }
 0x244   : > { %v1394_v63 = vsel %vm14804_vm11, %v11363_v30, %v1393_v3  ;;  %1411 = vst.msk [vmem:[#allocation2 + $0x438] sm:$0xff] %vm10609_vm2, %v1395_v11  ;;  %1796 = vrot.lane.b32.xlu2 %v11072_v55, %s14834_s27  ;;  %v9723_v30 = vld [vmem:[#allocation2 + $0x21c] sm:$0xf0]  ;;  %vm14812_vm11 = vcmask 318464  }
 0x245   : > { %1459 = vst [vmem:[#allocation2 + $0x440] sm:$0xff] %v1438_v14  ;;  %1788 = vrot.lane.b32.xlu1 %v11048_v28, %s14834_s27  ;;  %v8145_v24 = vor.u32 %v9723_v30, %v8144_v13  ;;  %v10201_v13 = vld [vmem:[#allocation2 + $0x360] sm:$0xff] }
 0x246   : > { %1410 = vst [vmem:[#allocation2 + $0x430] sm:$0xff] %v1394_v63  ;;  %1786 = vrot.lane.b32.xlu0 %v11054_v27, %s14834_s27  ;;  %v11450_v20 = vpop.permute.xlu2 %1481 }
 0x247   : > { %3393 = vmatpush.bf16.msra.mxu1 %v8177_v12  ;;  %3449 = vmatpush.bf16.msrb.mxu0 %v8181_v60  ;;  %v1419_v29 = vpop.permute.xlu1 %1418  ;;  %v1496_v63 = vrot.slane %v11450_v20, 4 }
 0x248   : > { %v1417_v23 = vpop.permute.xlu0 %1416  ;;  %v1431_v16 = vrot.slane %v1419_v29, 4 }
 0x249   : > { %v1430_v6 = vrot.slane %v1417_v23, 4 }
 0x24a   : > { %v1443_v31 = vsel %vm14811_vm13, %v1419_v29, %v1431_v16 }
 0x24b   : > { %v1439_v33 = vsel %vm444_vm0, %v1429_v54, %v1430_v6  ;;  %v1441_v38 = vsel %vm444_vm0, %v1430_v6, %v1431_v16  ;;  %3394 = vmatpush.bf16.msra.mxu1 %v8145_v24  ;;  %3450 = vmatpush.bf16.msrb.mxu0 %v8149_v22  ;;  %1462 = vst.msk [vmem:[#allocation2 + $0x458] sm:$0xff] %vm10609_vm2, %v1443_v31 }
 0x24c   : > { %v1440_v10 = vsel %vm14811_vm13, %v11379_v44, %v1439_v33  ;;  %v1442_v41 = vsel %vm14811_vm13, %v1417_v23, %v1441_v38  ;;  %1725 = vrot.lane.b32.xlu2 %v11048_v28, %s14832_s17  ;;  %v1432_v44 = vrot.slane %v11395_v4, 4  ;;  %v10200_v23 = vld [vmem:[#allocation2 + $0x368] sm:$0xff] }
 0x24d   : > { %1460 = vst [vmem:[#allocation2 + $0x448] sm:$0xff] %v1440_v10  ;;  %1723 = vrot.lane.b32.xlu1 %v11054_v27, %s14832_s17 }
 0x24e   : > { %1461 = vst [vmem:[#allocation2 + $0x450] sm:$0xff] %v1442_v41  ;;  %1798 = vrot.lane.b32.xlu0 %v11095_v25, %s14834_s27  ;;  %v11466_v42 = vpop.permute.xlu2 %1487 }
 0x24f   : > { %v1425_v19 = vpop.permute.xlu1 %1424  ;;  %v1499_v3 = vrot.slane %v11466_v42, 4 }
 0x250   : > { %v1423_v45 = vpop.permute.xlu0 %1422  ;;  %v1434_v46 = vrot.slane %v1425_v19, 4 }
 0x251   : > { %v1433_v52 = vrot.slane %v1423_v45, 4 }
 0x252   : > { %v1448_v43 = vsel %vm444_vm0, %v1434_v46, %v1435_v8 }
 0x253   : > { %v1444_v28 = vsel %vm444_vm0, %v1432_v44, %v1433_v52  ;;  %v1446_v35 = vsel %vm444_vm0, %v1433_v52, %v1434_v46  ;;  %v1449_v27 = vsel %vm14811_vm13, %v1425_v19, %v1448_v43 }
 0x254   : > { %v1445_v39 = vsel %vm14811_vm13, %v11395_v4, %v1444_v28  ;;  %v1447_v48 = vsel %vm14811_vm13, %v1423_v45, %v1446_v35  ;;  %1465 = vst [vmem:[#allocation2 + $0x470] sm:$0xff] %v1449_v27  ;;  %1672 = vrot.lane.b32.xlu2 %v11095_v25, %s14824_s29  ;;  %vm14813_vm13 = vcmask 310272  }
 0x255   : > { %1463 = vst [vmem:[#allocation2 + $0x460] sm:$0xff] %v1445_v39  ;;  %1735 = vrot.lane.b32.xlu1 %v11095_v25, %s14832_s17 }
 0x256   : > { %1733 = vrot.lane.b32.xlu0 %v11072_v55, %s14832_s17  ;;  %1464 = vst [vmem:[#allocation2 + $0x468] sm:$0xff] %v1447_v48  ;;  %v11485_v8 = vpop.permute.xlu2 %1536  ;;  %v10202_v48 = vld [vmem:[#allocation2 + $0x350] sm:$0xff] }
 0x257   : > { %v1474_v49 = vpop.permute.xlu1 %1473  ;;  %v1555_v15 = vrot.slane %v11485_v8, 4 }
 0x258   : > { %v1472_v4 = vpop.permute.xlu0 %1471  ;;  %v1492_v51 = vrot.slane %v1474_v49, 4 }
 0x259   : > { %v1491_v56 = vrot.slane %v1472_v4, 4 }
 0x25a   : > { %v1504_v40 = vsel %vm444_vm0, %v1492_v51, %v1493_v61 }
 0x25b   : > { %v1501_v47 = vsel %vm444_vm0, %v1491_v56, %v1492_v51  ;;  %v1505_v54 = vsel %vm14812_vm11, %v1474_v49, %v1504_v40 }
 0x25c   : > { %v1503_v57 = vsel %vm14812_vm11, %v1472_v4, %v1501_v47  ;;  %1527 = vst [vmem:[#allocation2 + $0x488] sm:$0xff] %v1505_v54  ;;  %1985 = vrot.lane.b32.xlu2 %v11072_v55, %s14822_s20 }
 0x25d   : > { %1526 = vst [vmem:[#allocation2 + $0x480] sm:$0xff] %v1503_v57  ;;  %1977 = vrot.lane.b32.xlu1 %v10198_v9, %s14822_s20 }
 0x25e   : > { %1975 = vrot.lane.b32.xlu0 %v10199_v62, %s14822_s20  ;;  %v1543_v53 = vpop.permute.xlu2 %1542 }
 0x25f   : > { %v1480_v1 = vpop.permute.xlu1 %1479  ;;  %v1558_v41 = vrot.slane %v1543_v53, 4 }
 0x260   : > { %v1478_v58 = vpop.permute.xlu0 %1477  ;;  %v1495_v59 = vrot.slane %v1480_v1, 4 }
 0x261   : > { %v1494_v2 = vrot.slane %v1478_v58, 4 }
 0x263   : > { %v1506_v5 = vsel %vm444_vm0, %v1493_v61, %v1494_v2  ;;  %v1508_v7 = vsel %vm444_vm0, %v1494_v2, %v1495_v59  ;;  %v10203_v61 = vld [vmem:[#allocation2 + $0x370] sm:$0xff] }
 0x264   : > { %v1507_v0 = vsel %vm14812_vm11, %v11434_v26, %v1506_v5  ;;  %v1509_v55 = vsel %vm14812_vm11, %v1478_v58, %v1508_v7  ;;  %1914 = vrot.lane.b32.xlu2 %v10198_v9, %s14820_s11 }
 0x265   : > { %1528 = vst [vmem:[#allocation2 + $0x490] sm:$0xff] %v1507_v0  ;;  %1912 = vrot.lane.b32.xlu1 %v10199_v62, %s14820_s11 }
 0x266   : > { %1529 = vst.msk [vmem:[#allocation2 + $0x498] sm:$0xff] %vm10609_vm2, %v1509_v55  ;;  %1987 = vrot.lane.b32.xlu0 %v11095_v25, %s14822_s20  ;;  %v11507_v11 = vpop.permute.xlu2 %1548 }
 0x267   : > { %v1486_v14 = vpop.permute.xlu1 %1485  ;;  %v1561_v49 = vrot.slane %v11507_v11, 4 }
 0x268   : > { %v1484_v26 = vpop.permute.xlu0 %1483  ;;  %v1498_v17 = vrot.slane %v1486_v14, 4 }
 0x269   : > { %v1497_v32 = vrot.slane %v1484_v26, 4 }
 0x26a   : > { %v1514_v12 = vsel %vm444_vm0, %v1498_v17, %v1499_v3 }
 0x26b   : > { %v1510_v60 = vsel %vm444_vm0, %v1496_v63, %v1497_v32  ;;  %v1512_v30 = vsel %vm444_vm0, %v1497_v32, %v1498_v17  ;;  %v1515_v18 = vsel %vm14812_vm11, %v1486_v14, %v1514_v12 }
 0x26c   : > { %v1511_v25 = vsel %vm14812_vm11, %v11450_v20, %v1510_v60  ;;  %v1513_v29 = vsel %vm14812_vm11, %v1484_v26, %v1512_v30  ;;  %1532 = vst [vmem:[#allocation2 + $0x4b0] sm:$0xff] %v1515_v18  ;;  %1849 = vrot.lane.b32.xlu2 %v10199_v62, %s14818_s30 }
 0x26d   : > { %1530 = vst [vmem:[#allocation2 + $0x4a0] sm:$0xff] %v1511_v25  ;;  %1924 = vrot.lane.b32.xlu1 %v10200_v23, %s14820_s11 }
 0x26e   : > { %1922 = vrot.lane.b32.xlu0 %v10201_v13, %s14820_s11  ;;  %1531 = vst [vmem:[#allocation2 + $0x4a8] sm:$0xff] %v1513_v29  ;;  %v11521_v16 = vpop.permute.xlu2 %1597 }
 0x26f   : > { %v1535_v6 = vpop.permute.xlu1 %1534 }
 0x270   : > { %v1490_v20 = vpop.permute.xlu0 %1489  ;;  %v1554_v24 = vrot.slane %v1535_v6, 4 }
 0x271   : > { %v1500_v22 = vrot.slane %v1490_v20, 4 }
 0x272   : > { %v1564_v31 = vsel %vm444_vm0, %v1554_v24, %v1555_v15 }
 0x273   : > { %v1516_v33 = vsel %vm444_vm0, %v1499_v3, %v1500_v22  ;;  %v1566_v38 = vsel %vm14813_vm13, %v1535_v6, %v1564_v31 }
 0x274   : > { %v1517_v10 = vsel %vm14812_vm11, %v11466_v42, %v1516_v33  ;;  %1589 = vst [vmem:[#allocation2 + $0x4c0] sm:$0xff] %v1566_v38  ;;  %1861 = vrot.lane.b32.xlu2 %v10200_v23, %s14818_s30  ;;  %vm14815_vm11 = vcmask 302080  }
 0x275   : > { %1533 = vst.msk [vmem:[#allocation2 + $0x4b8] sm:$0xff] %vm10609_vm2, %v1517_v10  ;;  %1859 = vrot.lane.b32.xlu1 %v10201_v13, %s14818_s30 }
 0x276   : > { %1851 = vrot.lane.b32.xlu0 %v10198_v9, %s14818_s30  ;;  %v11533_v19 = vpop.permute.xlu2 %1603 }
 0x277   : > { %v1541_v45 = vpop.permute.xlu1 %1540  ;;  %v1620_v55 = vrot.slane %v11533_v19, 4 }
 0x278   : > { %v1539_v44 = vpop.permute.xlu0 %1538  ;;  %v1557_v46 = vrot.slane %v1541_v45, 4 }
 0x279   : > { %v1556_v52 = vrot.slane %v1539_v44, 4 }
 0x27a   : > { %v1571_v43 = vsel %vm444_vm0, %v1557_v46, %v1558_v41 }
 0x27b   : > { %v1567_v42 = vsel %vm444_vm0, %v1555_v15, %v1556_v52  ;;  %v1569_v28 = vsel %vm444_vm0, %v1556_v52, %v1557_v46  ;;  %v1572_v35 = vsel %vm14813_vm13, %v1541_v45, %v1571_v43 }
 0x27c   : > { %v1568_v27 = vsel %vm14813_vm13, %v11485_v8, %v1567_v42  ;;  %v1570_v39 = vsel %vm14813_vm13, %v1539_v44, %v1569_v28  ;;  %1592 = vst.msk [vmem:[#allocation2 + $0x4d8] sm:$0xff] %vm10609_vm2, %v1572_v35  ;;  %1727 = vrot.lane.b32.xlu2 %v10202_v48, %s14832_s17 }
 0x27d   : > { %1590 = vst [vmem:[#allocation2 + $0x4c8] sm:$0xff] %v1568_v27  ;;  %1800 = vrot.lane.b32.xlu1 %v10203_v61, %s14834_s27 }
 0x27e   : > { %1790 = vrot.lane.b32.xlu0 %v10202_v48, %s14834_s27  ;;  %1591 = vst [vmem:[#allocation2 + $0x4d0] sm:$0xff] %v1570_v39  ;;  %v11548_v4 = vpop.permute.xlu2 %1609 }
 0x27f   : > { %v1547_v8 = vpop.permute.xlu1 %1546  ;;  %v1623_v29 = vrot.slane %v11548_v4, 4 }
 0x280   : > { %v1545_v51 = vpop.permute.xlu0 %1544  ;;  %v1560_v56 = vrot.slane %v1547_v8, 4 }
 0x281   : > { %v1559_v40 = vrot.slane %v1545_v51, 4 }
 0x282   : > { %v1575_v47 = vsel %vm444_vm0, %v1560_v56, %v1561_v49 }
 0x283   : > { %v1573_v54 = vsel %vm444_vm0, %v1559_v40, %v1560_v56  ;;  %v1576_v57 = vsel %vm14813_vm13, %v1547_v8, %v1575_v47 }
 0x284   : > { %v1574_v9 = vsel %vm14813_vm13, %v1545_v51, %v1573_v54  ;;  %1594 = vst [vmem:[#allocation2 + $0x4e8] sm:$0xff] %v1576_v57  ;;  %1979 = vrot.lane.b32.xlu2 %v10202_v48, %s14822_s20 }
 0x285   : > { %1593 = vst [vmem:[#allocation2 + $0x4e0] sm:$0xff] %v1574_v9  ;;  %1674 = vrot.lane.b32.xlu1 %v10203_v61, %s14824_s29 }
 0x286   : > { %1737 = vrot.lane.b32.xlu0 %v10203_v61, %s14832_s17  ;;  %v1616_v62 = vpop.permute.xlu2 %1615 }
 0x287   : > { %v1553_v53 = vpop.permute.xlu1 %1552  ;;  %v1626_v33 = vrot.slane %v1616_v62, 4 }
 0x288   : > { %v1551_v1 = vpop.permute.xlu0 %1550  ;;  %v1563_v58 = vrot.slane %v1553_v53, 4 }
 0x289   : > { %v1562_v59 = vrot.slane %v1551_v1, 4 }
 0x28b   : > { %v1577_v2 = vsel %vm444_vm0, %v1561_v49, %v1562_v59  ;;  %v1579_v5 = vsel %vm444_vm0, %v1562_v59, %v1563_v58 }
 0x28c   : > { %v1578_v7 = vsel %vm14813_vm13, %v11507_v11, %v1577_v2  ;;  %v1580_v0 = vsel %vm14813_vm13, %v1551_v1, %v1579_v5  ;;  %1926 = vrot.lane.b32.xlu2 %v10203_v61, %s14820_s11  ;;  %v1617_v11 = vrot.slane %v11521_v16, 4  ;;  %vm1691_vm13 = vcmask 236544  }
 0x28d   : > { %1595 = vst [vmem:[#allocation2 + $0x4f0] sm:$0xff] %v1578_v7  ;;  %1916 = vrot.lane.b32.xlu1 %v10202_v48, %s14820_s11 }
 0x28e   : > { %1596 = vst.msk [vmem:[#allocation2 + $0x4f8] sm:$0xff] %vm10609_vm2, %v1580_v0  ;;  %1989 = vrot.lane.b32.xlu0 %v10203_v61, %s14822_s20  ;;  %v11568_v3 = vpop.permute.xlu2 %1664 }
 0x28f   : > { %v1602_v14 = vpop.permute.xlu1 %1601  ;;  %v1682_v35 = vrot.slane %v11568_v3, 4 }
 0x290   : > { %v1600_v26 = vpop.permute.xlu0 %1599  ;;  %v1619_v63 = vrot.slane %v1602_v14, 4 }
 0x291   : > { %v1618_v17 = vrot.slane %v1600_v26, 4 }
 0x292   : > { %v1632_v32 = vsel %vm444_vm0, %v1619_v63, %v1620_v55 }
 0x293   : > { %v1627_v12 = vsel %vm444_vm0, %v1617_v11, %v1618_v17  ;;  %v1630_v60 = vsel %vm444_vm0, %v1618_v17, %v1619_v63  ;;  %v1633_v30 = vsel %vm14815_vm11, %v1602_v14, %v1632_v32 }
 0x294   : > { %v1629_v18 = vsel %vm14815_vm11, %v11521_v16, %v1627_v12  ;;  %v1631_v25 = vsel %vm14815_vm11, %v1600_v26, %v1630_v60  ;;  %1654 = vst [vmem:[#allocation2 + $0x510] sm:$0xff] %v1633_v30  ;;  %1792 = vrot.lane.b32.xlu2 %v10602_v34, %s14834_s27 }
 0x295   : > { %1652 = vst [vmem:[#allocation2 + $0x500] sm:$0xff] %v1629_v18  ;;  %1863 = vrot.lane.b32.xlu1 %v10203_v61, %s14818_s30 }
 0x296   : > { %1853 = vrot.lane.b32.xlu0 %v10202_v48, %s14818_s30  ;;  %1653 = vst [vmem:[#allocation2 + $0x508] sm:$0xff] %v1631_v25  ;;  %v1671_v23 = vpop.permute.xlu2 %1670 }
 0x297   : > { %v1608_v13 = vpop.permute.xlu1 %1607  ;;  %v1685_v40 = vrot.slane %v1671_v23, 4 }
 0x298   : > { %v1606_v15 = vpop.permute.xlu0 %1605  ;;  %v1622_v6 = vrot.slane %v1608_v13, 4 }
 0x299   : > { %v1621_v20 = vrot.slane %v1606_v15, 4 }
 0x29a   : > { %v1636_v16 = vsel %vm444_vm0, %v1622_v6, %v1623_v29 }
 0x29b   : > { %v1634_v24 = vsel %vm444_vm0, %v1620_v55, %v1621_v20  ;;  %v1637_v22 = vsel %vm14815_vm11, %v1608_v13, %v1636_v16 }
 0x29c   : > { %v1635_v31 = vsel %vm14815_vm11, %v11533_v19, %v1634_v24  ;;  %1656 = vst [vmem:[#allocation2 + $0x520] sm:$0xff] %v1637_v22  ;;  %1739 = vrot.lane.b32.xlu2 %v10606_v36, %s14832_s17 }
 0x29d   : > { %1655 = vst.msk [vmem:[#allocation2 + $0x518] sm:$0xff] %vm10609_vm2, %v1635_v31  ;;  %1729 = vrot.lane.b32.xlu1 %v10602_v34, %s14832_s17 }
 0x29e   : > { %1802 = vrot.lane.b32.xlu0 %v10606_v36, %s14834_s27  ;;  %v11596_v38 = vpop.permute.xlu2 %1796 }
 0x29f   : > { %v1614_v10 = vpop.permute.xlu1 %1613  ;;  %v1811_v12 = vrot.slane %v11596_v38, 4 }
 0x2a0   : > { %v1612_v41 = vpop.permute.xlu0 %1611  ;;  %v1625_v45 = vrot.slane %v1614_v10, 4 }
 0x2a1   : > { %v1624_v19 = vrot.slane %v1612_v41, 4 }
 0x2a2   : > { %v1642_v44 = vsel %vm444_vm0, %v1625_v45, %v1626_v33 }
 0x2a3   : > { %v1638_v46 = vsel %vm444_vm0, %v1623_v29, %v1624_v19  ;;  %v1640_v52 = vsel %vm444_vm0, %v1624_v19, %v1625_v45  ;;  %v1643_v43 = vsel %vm14815_vm11, %v1614_v10, %v1642_v44 }
 0x2a4   : > { %v1639_v42 = vsel %vm14815_vm11, %v11548_v4, %v1638_v46  ;;  %v1641_v28 = vsel %vm14815_vm11, %v1612_v41, %v1640_v52  ;;  %1659 = vst.msk [vmem:[#allocation2 + $0x538] sm:$0xff] %vm10609_vm2, %v1643_v43  ;;  %1991 = vrot.lane.b32.xlu2 %v10606_v36, %s14822_s20  ;;  %vm1754_vm11 = vcmask 228352  }
 0x2a5   : > { %1657 = vst [vmem:[#allocation2 + $0x528] sm:$0xff] %v1639_v42  ;;  %1981 = vrot.lane.b32.xlu1 %v10602_v34, %s14822_s20 }
 0x2a6   : > { %1676 = vrot.lane.b32.xlu0 %v10606_v36, %s14824_s29  ;;  %1658 = vst [vmem:[#allocation2 + $0x530] sm:$0xff] %v1641_v28  ;;  %v11614_v27 = vpop.permute.xlu2 %1725 }
 0x2a7   : > { %v1663_v39 = vpop.permute.xlu1 %1662 }
 0x2a8   : > { %v1661_v48 = vpop.permute.xlu0 %1660  ;;  %v1681_v61 = vrot.slane %v1663_v39, 4 }
 0x2a9   : > { %v1680_v49 = vrot.slane %v1661_v48, 4 }
 0x2aa   : > { %v1693_v4 = vsel %vm444_vm0, %v1681_v61, %v1682_v35 }
 0x2ab   : > { %v1690_v8 = vsel %vm444_vm0, %v1680_v49, %v1681_v61  ;;  %v1694_v51 = vsel %vm1691_vm13, %v1663_v39, %v1693_v4 }
 0x2ac   : > { %v1692_v56 = vsel %vm1691_vm13, %v1661_v48, %v1690_v8  ;;  %1716 = vst [vmem:[#allocation2 + $0x548] sm:$0xff] %v1694_v51  ;;  %1855 = vrot.lane.b32.xlu2 %v10602_v34, %s14818_s30 }
 0x2ad   : > { %1715 = vst [vmem:[#allocation2 + $0x540] sm:$0xff] %v1692_v56  ;;  %1928 = vrot.lane.b32.xlu1 %v10606_v36, %s14820_s11 }
 0x2ae   : > { %1918 = vrot.lane.b32.xlu0 %v10602_v34, %s14820_s11  ;;  %v11626_v47 = vpop.permute.xlu2 %1672 }
 0x2af   : > { %v1669_v54 = vpop.permute.xlu1 %1668  ;;  %v1686_v57 = vrot.slane %v11626_v47, 4 }
 0x2b0   : > { %v1667_v9 = vpop.permute.xlu0 %1666  ;;  %v1684_v62 = vrot.slane %v1669_v54, 4 }
 0x2b1   : > { %v1683_v53 = vrot.slane %v1667_v9, 4  ;;  %v1699_v1 = vsel %vm444_vm0, %v1685_v40, %v1686_v57 }
 0x2b2   : > { %v1700_v58 = vsel %vm1691_vm13, %v1671_v23, %v1699_v1 }
 0x2b3   : > { %v1695_v59 = vsel %vm444_vm0, %v1682_v35, %v1683_v53  ;;  %v1697_v2 = vsel %vm444_vm0, %v1683_v53, %v1684_v62  ;;  %1719 = vst [vmem:[#allocation2 + $0x560] sm:$0xff] %v1700_v58 }
 0x2b4   : > { %v1696_v34 = vsel %vm1691_vm13, %v11568_v3, %v1695_v59  ;;  %v1698_v5 = vsel %vm1691_vm13, %v1667_v9, %v1697_v2  ;;  %1804 = vrot.lane.b32.xlu2 %v11277_v21, %s14834_s27  ;;  %v8560_v56 = vld [vmem:[#allocation2 + $0x540] sm:$0xf]  ;;  %v9823_v53 = vld [vmem:[#allocation2 + $0x544] sm:$0xf] }
 0x2b5   : > { %1717 = vst [vmem:[#allocation2 + $0x550] sm:$0xff] %v1696_v34  ;;  %1794 = vrot.lane.b32.xlu1 %v11242_v50, %s14834_s27 }
 0x2b6   : > { %1718 = vst.msk [vmem:[#allocation2 + $0x558] sm:$0xff] %vm10609_vm2, %v1698_v5  ;;  %1865 = vrot.lane.b32.xlu0 %v10606_v36, %s14818_s30  ;;  %v11646_v7 = vpop.permute.xlu2 %1985  ;;  %v1744_v36 = vrot.slane %v11614_v27, 4  ;;  %v9819_v5 = vld [vmem:[#allocation2 + $0x51c] sm:$0xf0] }
 0x2b7   : > { %v11648_v0 = vpop.permute.xlu1 %1788  ;;  %v2000_v40 = vrot.slane %v11646_v7, 4 }
 0x2b8   : > { %v1787_v55 = vpop.permute.xlu0 %1786  ;;  %v1807_v3 = vrot.slane %v11648_v0, 4 }
 0x2b9   : > { %v1806_v14 = vrot.slane %v1787_v55, 4 }
 0x2ba   : > { %v9827_v49 = vld [vmem:[#allocation2 + $0x55c] sm:$0xf0]  ;;  %v8562_v4 = vld [vmem:[#allocation2 + $0x560] sm:$0xf0] }
 0x2bb   : > { %v1816_v26 = vsel %vm444_vm0, %v1806_v14, %v1807_v3  ;;  %v8561_v59 = vor.u32 %v9827_v49, %v8560_v56  ;;  %v8565_v2 = vor.u32 %v9823_v53, %v8562_v4  ;;  %v9799_v49 = vld [vmem:[#allocation2 + $0x484] sm:$0xf]  ;;  %v8432_v53 = vld [vmem:[#allocation2 + $0x440] sm:$0xf] }
 0x2bc   : > { %v1818_v11 = vsel %vm1817_vm14, %v1787_v55, %v1816_v26  ;;  %1678 = vrot.lane.b32.xlu2 %v11277_v21, %s14824_s29  ;;  %v8530_v55 = vld [vmem:[#allocation2 + $0x520] sm:$0xf0]  ;;  %s15001_s29 = smov 17  }
 0x2bd   : > { %1841 = vst [vmem:[#allocation2 + $0x5c0] sm:$0xff] %v1818_v11  ;;  %1741 = vrot.lane.b32.xlu1 %v11277_v21, %s14832_s17 }
 0x2be   : > { %1731 = vrot.lane.b32.xlu0 %v11242_v50, %s14832_s17  ;;  %v11662_v63 = vpop.permute.xlu2 %1914 }
 0x2bf   : > { %v1724_v17 = vpop.permute.xlu1 %1723  ;;  %v1933_v8 = vrot.slane %v11662_v63, 4 }
 0x2c0   : > { %v11664_v32 = vpop.permute.xlu0 %1798  ;;  %v1743_v60 = vrot.slane %v1724_v17, 4 }
 0x2c1   : > { %v1812_v30 = vrot.slane %v11664_v32, 4 }
 0x2c2   : > { %v1753_v18 = vsel %vm444_vm0, %v1743_v60, %v1744_v36  ;;  %v9815_v60 = vld [vmem:[#allocation2 + $0x504] sm:$0xf] }
 0x2c3   : > { %v1825_v25 = vsel %vm444_vm0, %v1811_v12, %v1812_v30  ;;  %v1755_v29 = vsel %vm1754_vm11, %v1724_v17, %v1753_v18  ;;  %v8528_v12 = vld [vmem:[#allocation2 + $0x500] sm:$0xf] }
 0x2c4   : > { %v1826_v23 = vsel %vm1817_vm14, %v11596_v38, %v1825_v25  ;;  %1778 = vst [vmem:[#allocation2 + $0x580] sm:$0xff] %v1755_v29  ;;  %1920 = vrot.lane.b32.xlu2 %v11242_v50, %s14820_s11  ;;  %v8624_v31 = vld [vmem:[#allocation2 + $0x5c0] sm:$0xf]  ;;  %v9839_v33 = vld [vmem:[#allocation2 + $0x5c4] sm:$0xf]  ;;  %v8529_v18 = vor.u32 %v9819_v5, %v8528_v12  ;;  %v8533_v25 = vor.u32 %v9815_v60, %v8530_v55 }
 0x2c5   : > { %1845 = vst [vmem:[#allocation2 + $0x5e0] sm:$0xff] %v1826_v23  ;;  %1993 = vrot.lane.b32.xlu1 %v11277_v21, %s14822_s20  ;;  %v9811_v29 = vld [vmem:[#allocation2 + $0x4dc] sm:$0xf0]  ;;  %v8498_v23 = vld [vmem:[#allocation2 + $0x4e0] sm:$0xf0] }
 0x2c6   : > { %1983 = vrot.lane.b32.xlu0 %v11242_v50, %s14822_s20  ;;  %v11683_v13 = vpop.permute.xlu2 %1849  ;;  %s15007_s20 = smov 10  }
 0x2c7   : > { %v11685_v15 = vpop.permute.xlu1 %1735 }
 0x2c8   : > { %v1734_v6 = vpop.permute.xlu0 %1733  ;;  %v1749_v20 = vrot.slane %v11685_v15, 4 }
 0x2c9   : > { %v1748_v16 = vrot.slane %v1734_v6, 4 }
 0x2cb   : > { %v1762_v24 = vsel %vm444_vm0, %v1748_v16, %v1749_v20  ;;  %v8592_v28 = vld [vmem:[#allocation2 + $0x580] sm:$0xf] }
 0x2cc   : > { %v1763_v22 = vsel %vm1754_vm11, %v1734_v6, %v1762_v24  ;;  %v9843_v38 = vld [vmem:[#allocation2 + $0x5dc] sm:$0xf0]  ;;  %v8626_v10 = vld [vmem:[#allocation2 + $0x5e0] sm:$0xf0]  ;;  %1867 = vrot.lane.b32.xlu2 %v11277_v21, %s14818_s30  ;;  %v9653_v6 = vld [vmem:[%s14980_s1 + $0xc] sm:$0xf0] }
 0x2cd   : > { %1782 = vst [vmem:[#allocation2 + $0x5a0] sm:$0xff] %v1763_v22  ;;  %v8625_v41 = vor.u32 %v9843_v38, %v8624_v31  ;;  %v8629_v45 = vor.u32 %v9839_v33, %v8626_v10  ;;  %1857 = vrot.lane.b32.xlu1 %v11242_v50, %s14818_s30  ;;  %v9831_v50 = vld [vmem:[#allocation2 + $0x584] sm:$0xf]  ;;  %v8496_v33 = vld [vmem:[#allocation2 + $0x4c0] sm:$0xf]  ;;  %s15009_s30 = smov 39  }
 0x2ce   : > { %1930 = vrot.lane.b32.xlu0 %v11277_v21, %s14820_s11  ;;  %v11698_v19 = vpop.permute.xlu2 %1861  ;;  %v9807_v38 = vld [vmem:[#allocation2 + $0x4c4] sm:$0xf]  ;;  %s15012_s11 = smov 18  }
 0x2cf   : > { %3401 = vmatpush.bf16.msra.mxu2 %v8625_v41  ;;  %3457 = vmatpush.bf16.msrb.mxu1 %v8629_v45  ;;  %v11700_v44 = vpop.permute.xlu1 %1977  ;;  %v8497_v45 = vor.u32 %v9811_v29, %v8496_v33  ;;  %v9787_v29 = vld [vmem:[#allocation2 + $0x41c] sm:$0xf0] }
 0x2d0   : > { %v1976_v46 = vpop.permute.xlu0 %1975  ;;  %v1996_v52 = vrot.slane %v11700_v44, 4 }
 0x2d1   : > { %v1995_v43 = vrot.slane %v1976_v46, 4 }
 0x2d3   : > { %v2005_v42 = vsel %vm444_vm0, %v1995_v43, %v1996_v52 }
 0x2d4   : > { %v2007_v21 = vsel %vm14831_vm15, %v1976_v46, %v2005_v42  ;;  %v9835_v35 = vld [vmem:[#allocation2 + $0x59c] sm:$0xf0]  ;;  %v8594_v39 = vld [vmem:[#allocation2 + $0x5a0] sm:$0xf0]  ;;  %v8501_v46 = vor.u32 %v9807_v38, %v8498_v23  ;;  %v7880_v38 = vld [vmem:[%s14980_s1 + $0x8] sm:$0xf] }
 0x2d5   : > { %2030 = vst [vmem:[#allocation2 + $0x680] sm:$0xff] %v2007_v21  ;;  %v8593_v48 = vor.u32 %v9835_v35, %v8592_v28  ;;  %v8597_v61 = vor.u32 %v9831_v50, %v8594_v39  ;;  %v9803_v42 = vld [vmem:[#allocation2 + $0x49c] sm:$0xf0]  ;;  %v8466_v28 = vld [vmem:[#allocation2 + $0x4a0] sm:$0xf0] }
 0x2d6   : > { %v11708_v51 = vpop.permute.xlu2 %1727  ;;  %v9795_v50 = vld [vmem:[#allocation2 + $0x45c] sm:$0xf0]  ;;  %v8434_v39 = vld [vmem:[#allocation2 + $0x460] sm:$0xf0] }
 0x2d7   : > { %3402 = vmatpush.bf16.msra.mxu2 %v8593_v48  ;;  %3458 = vmatpush.bf16.msrb.mxu1 %v8597_v61  ;;  %v1913_v54 = vpop.permute.xlu1 %1912  ;;  %v1745_v9 = vrot.slane %v11708_v51, 4  ;;  %v8464_v61 = vld [vmem:[#allocation2 + $0x480] sm:$0xf]  ;;  %v8402_v23 = vld [vmem:[#allocation2 + $0x420] sm:$0xf0] }
 0x2d8   : > { %v11712_v62 = vpop.permute.xlu0 %1987  ;;  %v1932_v1 = vrot.slane %v1913_v54, 4  ;;  %v8465_v4 = vor.u32 %v9803_v42, %v8464_v61 }
 0x2d9   : > { %v2001_v58 = vrot.slane %v11712_v62, 4  ;;  %v1756_v34 = vsel %vm444_vm0, %v1744_v36, %v1745_v9 }
 0x2da   : > { %v1942_v14 = vsel %vm444_vm0, %v1932_v1, %v1933_v8  ;;  %v1757_v26 = vsel %vm1754_vm11, %v11614_v27, %v1756_v34  ;;  %v7872_v27 = vld [vmem:[%s14980_s1] sm:$0xf]  ;;  %v9791_v1 = vld [vmem:[#allocation2 + $0x444] sm:$0xf]  ;;  %v7874_v34 = vld [vmem:[%s14980_s1 + $0x10] sm:$0xf0] }
 0x2db   : > { %v2014_v11 = vsel %vm444_vm0, %v2000_v40, %v2001_v58  ;;  %3403 = vmatpush.bf16.msra.mxu2 %v8561_v59  ;;  %3459 = vmatpush.bf16.msrb.mxu1 %v8565_v2  ;;  %v1944_v17 = vsel %vm14830_vm1, %v1913_v54, %v1942_v14  ;;  %1779 = vst [vmem:[#allocation2 + $0x588] sm:$0xff] %v1757_v26  ;;  %v9651_v2 = vld [vmem:[%s14980_s1 + $0x4] sm:$0xf] }
 0x2dc   : > { %v2015_v36 = vsel %vm14831_vm15, %v11646_v7, %v2014_v11  ;;  %1967 = vst [vmem:[#allocation2 + $0x640] sm:$0xff] %v1944_v17  ;;  %v11739_v7 = vor.u32 %v9653_v6, %v7872_v27  ;;  %v8720_v56 = vld [vmem:[#allocation2 + $0x680] sm:$0xf]  ;;  %v8469_v40 = vor.u32 %v9799_v49, %v8466_v28  ;;  %v8433_v26 = vor.u32 %v9795_v50, %v8432_v53  ;;  %v9783_v28 = vld [vmem:[#allocation2 + $0x404] sm:$0xf] }
 0x2dd   : > { %2034 = vst [vmem:[#allocation2 + $0x6a0] sm:$0xff] %v2015_v36  ;;  %v8437_v11 = vor.u32 %v9791_v1, %v8434_v39  ;;  %v11764_v17 = vor.u32 %v9651_v2, %v7874_v34  ;;  %v1869_v36 = vrot.slane %v11683_v13, 4  ;;  %v8114_v34 = vld [vmem:[#allocation2 + $0x1e0] sm:$0xf0] }
 0x2de   : > { %v11737_v16 = vpop.permute.xlu2 %1979  ;;  %3381 = vmatmul.bf16.vlgmr.msra.gmra.mxu0 %v11739_v7 }
 0x2df   : > { %3404 = vmatpush.bf16.msra.mxu2 %v8529_v18  ;;  %3460 = vmatpush.bf16.msrb.mxu1 %v8533_v25  ;;  %v1925_v24 = vpop.permute.xlu1 %1924  ;;  %v1997_v22 = vrot.slane %v11737_v16, 4  ;;  %v8400_v25 = vld [vmem:[#allocation2 + $0x400] sm:$0xf] }
 0x2e0   : > { %v1923_v31 = vpop.permute.xlu0 %1922  ;;  %v1938_v10 = vrot.slane %v1925_v24, 4  ;;  %3395 = vmatmul.bf16.vlgmr.msra.gmra.mxu1 %v11764_v17 }
 0x2e1   : > { %v1937_v41 = vrot.slane %v1923_v31, 4  ;;  %v2008_v43 = vsel %vm444_vm0, %v1996_v52, %v1997_v22 }
 0x2e2   : > { %v2009_v21 = vsel %vm14831_vm15, %v11700_v44, %v2008_v43  ;;  %v1875_v44 = vrot.slane %v11698_v19, 4  ;;  %v8401_v43 = vor.u32 %v9787_v29, %v8400_v25 }
 0x2e3   : > { %v1951_v35 = vsel %vm444_vm0, %v1937_v41, %v1938_v10  ;;  %3405 = vmatpush.bf16.msra.mxu2 %v8497_v45  ;;  %3461 = vmatpush.bf16.msrb.mxu1 %v8501_v46  ;;  %2031 = vst [vmem:[#allocation2 + $0x688] sm:$0xff] %v2009_v21  ;;  %v8688_v45 = vld [vmem:[#allocation2 + $0x640] sm:$0xf]  ;;  %v9863_v21 = vld [vmem:[#allocation2 + $0x684] sm:$0xf] }
 0x2e4   : > { %v1952_v48 = vsel %vm14830_vm1, %v1923_v31, %v1951_v35  ;;  %v9867_v52 = vld [vmem:[#allocation2 + $0x69c] sm:$0xf0]  ;;  %v8722_v33 = vld [vmem:[#allocation2 + $0x6a0] sm:$0xf0]  ;;  %v8405_v35 = vor.u32 %v9783_v28, %v8402_v23 }
 0x2e5   : > { %1971 = vst [vmem:[#allocation2 + $0x660] sm:$0xff] %v1952_v48  ;;  %v8721_v54 = vor.u32 %v9867_v52, %v8720_v56  ;;  %v8725_v50 = vor.u32 %v9863_v21, %v8722_v33  ;;  %v9703_v28 = vld [vmem:[#allocation2 + $0x184] sm:$0xf] }
 0x2e6   : > { %v11753_v59 = vpop.permute.xlu2 %1926 }
 0x2e7   : > { %3406 = vmatpush.bf16.msra.mxu2 %v8465_v4  ;;  %3462 = vmatpush.bf16.msrb.mxu1 %v8469_v40  ;;  %v1860_v5 = vpop.permute.xlu1 %1859  ;;  %v1939_v55 = vrot.slane %v11753_v59, 4  ;;  %v9855_v40 = vld [vmem:[#allocation2 + $0x644] sm:$0xf] }
 0x2e8   : > { %3420 = vmatpush.bf16.msra.mxu3 %v8721_v54  ;;  %v11762_v14 = vpop.permute.xlu0 %1851  ;;  %v1874_v12 = vrot.slane %v1860_v5, 4 }
 0x2e9   : > { %v1870_v60 = vrot.slane %v11762_v14, 4  ;;  %v1953_v18 = vsel %vm444_vm0, %v1938_v10, %v1939_v55  ;;  %v9654_v10 = vld [vmem:[%s14980_s1 + $0x14] sm:$0xf0] }
 0x2ea   : > { %v1888_v27 = vsel %vm444_vm0, %v1874_v12, %v1875_v44  ;;  %v1954_v6 = vsel %vm14830_vm1, %v1925_v24, %v1953_v18  ;;  %v11788_v39 = vor.u32 %v9654_v10, %v7880_v38  ;;  %v7882_v18 = vld [vmem:[%s14980_s1 + $0x18] sm:$0xf0]  ;;  %v8082_v38 = vld [vmem:[#allocation2 + $0x1a0] sm:$0xf0] }
 0x2eb   : > { %v1879_v31 = vsel %vm444_vm0, %v1869_v36, %v1870_v60  ;;  %3407 = vmatpush.bf16.msra.mxu2 %v8433_v26  ;;  %3463 = vmatpush.bf16.msrb.mxu1 %v8437_v11  ;;  %v1889_v41 = vsel %vm14829_vm12, %v1860_v5, %v1888_v27  ;;  %1972 = vst [vmem:[#allocation2 + $0x668] sm:$0xff] %v1954_v6  ;;  %v9780_v5 = vld [vmem:[#allocation2 + $0x3e4] sm:$0xf0]  ;;  %v9652_v26 = vld [vmem:[%s14980_s1 + $0xc] sm:$0xf]  ;;  %s15020_s1 = smov 118  }
 0x2ec   : > { %v1881_v24 = vsel %vm14829_vm12, %v11683_v13, %v1879_v31  ;;  %v9859_v46 = vld [vmem:[#allocation2 + $0x65c] sm:$0xf0]  ;;  %1908 = vst [vmem:[#allocation2 + $0x620] sm:$0xff] %v1889_v41  ;;  %v8690_v61 = vld [vmem:[#allocation2 + $0x660] sm:$0xf0]  ;;  %v11822_v10 = vor.u32 %v9652_v26, %v7882_v18  ;;  %v8085_v21 = vor.u32 %v9703_v28, %v8082_v38 }
 0x2ed   : > { %v8689_v42 = vor.u32 %v9859_v46, %v8688_v45  ;;  %1904 = vst [vmem:[#allocation2 + $0x600] sm:$0xff] %v1881_v24  ;;  %v8693_v54 = vor.u32 %v9855_v40, %v8690_v61  ;;  %v9711_v27 = vld [vmem:[#allocation2 + $0x1c4] sm:$0xf]  ;;  %v9772_v46 = vld [vmem:[#allocation2 + $0x3a4] sm:$0xf0] }
 0x2ee   : > { %v11790_v48 = vpop.permute.xlu2 %1792  ;;  %3451 = vmatmul.bf16.vlgmr.msrb.gmra.mxu0 %v11764_v17  ;;  %v9764_v61 = vld [vmem:[#allocation2 + $0x364] sm:$0xf0] }
 0x2ef   : > { %3408 = vmatpush.bf16.msra.mxu2 %v8401_v43  ;;  %3421 = vmatpush.bf16.msra.mxu3 %v8689_v42  ;;  %v11792_v49 = vpop.permute.xlu1 %1800  ;;  %v1809_v13 = vrot.slane %v11790_v48, 4 }
 0x2f0   : > { %3464 = vmatpush.bf16.msrb.mxu1 %v8405_v35  ;;  %v1791_v4 = vpop.permute.xlu0 %1790  ;;  %v1813_v56 = vrot.slane %v11792_v49, 4  ;;  %v8344_v35 = vld [vmem:[#allocation2 + $0x388] sm:$0xf] }
 0x2f1   : > { %v1808_v52 = vrot.slane %v1791_v4, 4 }
 0x2f2   : > { %3409 = vmatmul.bf16.vlgmr.msra.gmra.mxu2 %v11788_v39  ;;  %v1827_v53 = vsel %vm444_vm0, %v1812_v30, %v1813_v56 }
 0x2f3   : > { %3476 = vmatpush.bf16.msrb.mxu2 %v8725_v50  ;;  %v1819_v1 = vsel %vm444_vm0, %v1807_v3, %v1808_v52  ;;  %v1821_v2 = vsel %vm444_vm0, %v1808_v52, %v1809_v13  ;;  %v1828_v11 = vsel %vm1817_vm14, %v11664_v32, %v1827_v53  ;;  %v9851_v3 = vld [vmem:[#allocation2 + $0x61c] sm:$0xf0]  ;;  %v8658_v12 = vld [vmem:[#allocation2 + $0x620] sm:$0xf0]  ;;  %v8376_v32 = vld [vmem:[#allocation2 + $0x3c8] sm:$0xf]  ;;  %3465 = vmatmul.bf16.vlgmr.msrb.gmra.mxu1 %v11788_v39 }
 0x2f4   : > { %v1820_v30 = vsel %vm1817_vm14, %v11648_v0, %v1819_v1  ;;  %v1822_v36 = vsel %vm1817_vm14, %v1791_v4, %v1821_v2  ;;  %1846 = vst [vmem:[#allocation2 + $0x5e8] sm:$0xff] %v1828_v11  ;;  %v8656_v25 = vld [vmem:[#allocation2 + $0x600] sm:$0xf]  ;;  %v9847_v29 = vld [vmem:[#allocation2 + $0x604] sm:$0xf]  ;;  %v8117_v0 = vor.u32 %v9711_v27, %v8114_v34  ;;  %v8377_v33 = vor.u32 %v9780_v5, %v8376_v32 }
 0x2f5   : > { %1842 = vst [vmem:[#allocation2 + $0x5c8] sm:$0xff] %v1820_v30  ;;  %v8657_v23 = vor.u32 %v9851_v3, %v8656_v25  ;;  %v8661_v6 = vor.u32 %v9847_v29, %v8658_v12  ;;  %v8312_v50 = vld [vmem:[#allocation2 + $0x348] sm:$0xf]  ;;  %v8050_v34 = vld [vmem:[#allocation2 + $0x160] sm:$0xf0]  ;;  %v10352_v29 = vmov 0  }
 0x2f6   : > { %1843 = vst [vmem:[#allocation2 + $0x5d0] sm:$0xff] %v1822_v36  ;;  %v11820_v31 = vpop.permute.xlu2 %1739  ;;  %v8313_v5 = vor.u32 %v9764_v61, %v8312_v50  ;;  %v9695_v11 = vld [vmem:[#allocation2 + $0x144] sm:$0xf]  ;;  %v9756_v3 = vld [vmem:[#allocation2 + $0x324] sm:$0xf0]  ;;  %10174 = vset.pattern.permute.xlu1 %v10352_v29  ;;  %10173 = vset.pattern.permute.xlu0 %v10352_v29 }
 0x2f7   : > { %3477 = vmatpush.bf16.msrb.mxu2 %v8693_v54  ;;  %3422 = vmatpush.bf16.msra.mxu3 %v8657_v23  ;;  %v11824_v41 = vpop.permute.xlu1 %1674  ;;  %v1751_v24 = vrot.slane %v11820_v31, 4  ;;  %v8345_v54 = vor.u32 %v9772_v46, %v8344_v35  ;;  %v8053_v36 = vor.u32 %v9695_v11, %v8050_v34  ;;  %v9687_v25 = vld [vmem:[#allocation2 + $0x104] sm:$0xf]  ;;  %v2259_v23 = vld [vmem:[%s14981_s2 + $0x8] sm:$0xff] }
 0x2f8   : > { %v1738_v45 = vpop.permute.xlu0 %1737  ;;  %v1687_v43 = vrot.slane %v11824_v41, 4  ;;  %v8280_v32 = vld [vmem:[#allocation2 + $0x308] sm:$0xf]  ;;  %2267 = vperm.xlu1 %10174, %v2259_v23   ;;  %v7986_v50 = vld [vmem:[#allocation2 + $0xe0] sm:$0xf0]  ;;  %10175 = vset.pattern.permute.xlu2 %v10352_v29 }
 0x2f9   : > { %v1750_v42 = vrot.slane %v1738_v45, 4  ;;  %v8281_v38 = vor.u32 %v9756_v3, %v8280_v32  ;;  %v8568_v11 = vld [vmem:[#allocation2 + $0x548] sm:$0xf] }
 0x2fa   : > { %v1701_v4 = vsel %vm444_vm0, %v1686_v57, %v1687_v43  ;;  %8750 = vmatmul.msk.bf16.vlgmr.msra.gmra.mxu3 %vm14828_vm10, %v11822_v10  ;;  %v9820_v32 = vld [vmem:[#allocation2 + $0x524] sm:$0xf0] }
 0x2fb   : > { %3478 = vmatpush.bf16.msrb.mxu2 %v8661_v6  ;;  %3429 = vmatpush.bf16.msrb.mxu3 %v8117_v0  ;;  %v1764_v52 = vsel %vm444_vm0, %v1749_v20, %v1750_v42  ;;  %v1766_v40 = vsel %vm444_vm0, %v1750_v42, %v1751_v24  ;;  %v1702_v53 = vsel %vm1691_vm13, %v11626_v47, %v1701_v4  ;;  %v9844_v2 = vld [vmem:[#allocation2 + $0x5e4] sm:$0xf0]  ;;  %v8018_v47 = vld [vmem:[#allocation2 + $0x120] sm:$0xf0] }
 0x2fc   : > { %v1765_v1 = vsel %vm1754_vm11, %v11685_v15, %v1764_v52  ;;  %v1767_v57 = vsel %vm1754_vm11, %v1738_v45, %v1766_v40  ;;  %1720 = vst [vmem:[#allocation2 + $0x568] sm:$0xff] %v1702_v53  ;;  %v8632_v20 = vld [vmem:[#allocation2 + $0x5c8] sm:$0xf]  ;;  %v2258_v0 = vld [vmem:[%s14981_s2] sm:$0xff]  ;;  %s15024_s2 = smov 27  }
 0x2fd   : > { %1783 = vst [vmem:[#allocation2 + $0x5a8] sm:$0xff] %v1765_v1  ;;  %v8633_v26 = vor.u32 %v9844_v2, %v8632_v20  ;;  %2262 = vperm.xlu0 %10173, %v2258_v0   ;;  %v9679_v52 = vld [vmem:[#allocation2 + $0xc4] sm:$0xf]  ;;  %v8248_v40 = vld [vmem:[#allocation2 + $0x2c8] sm:$0xf] }
 0x2fe   : > { %1784 = vst [vmem:[#allocation2 + $0x5b0] sm:$0xff] %v1767_v57  ;;  %v11847_v30 = vpop.permute.xlu2 %1991  ;;  %v7954_v1 = vld [vmem:[#allocation2 + $0xa0] sm:$0xf0]  ;;  %v9740_v20 = vld [vmem:[#allocation2 + $0x2a4] sm:$0xf0] }
 0x2ff   : > { %3499 = vmatpush.bf16.msra.mxu2 %v8377_v33  ;;  %3430 = vmatpush.bf16.msrb.mxu3 %v8085_v21  ;;  %v11849_v15 = vpop.permute.xlu1 %1916  ;;  %v2003_v12 = vrot.slane %v11847_v30, 4  ;;  %v8021_v33 = vor.u32 %v9687_v25, %v8018_v47 }
 0x300   : > { %3513 = vmatpush.bf16.msra.mxu0 %v8633_v26  ;;  %v1990_v18 = vpop.permute.xlu0 %1989  ;;  %v1934_v27 = vrot.slane %v11849_v15, 4 }
 0x301   : > { %v2002_v6 = vrot.slane %v1990_v18, 4 }
 0x302   : > { %8751 = vmatmul.msk.bf16.vlgmr.msrb.gmra.mxu2 %vm14828_vm10, %v11822_v10  ;;  %v1945_v45 = vsel %vm444_vm0, %v1933_v8, %v1934_v27  ;;  %v9748_v8 = vld [vmem:[#allocation2 + $0x2e4] sm:$0xf0] }
 0x303   : > { %3500 = vmatpush.bf16.msra.mxu2 %v8345_v54  ;;  %3431 = vmatpush.bf16.msrb.mxu3 %v8053_v36  ;;  %v2016_v46 = vsel %vm444_vm0, %v2001_v58, %v2002_v6  ;;  %v2018_v42 = vsel %vm444_vm0, %v2002_v6, %v2003_v12  ;;  %v1946_v28 = vsel %vm14830_vm1, %v11662_v63, %v1945_v45  ;;  %v8600_v58 = vld [vmem:[#allocation2 + $0x588] sm:$0xf]  ;;  %v9671_v36 = vld [vmem:[#allocation2 + $0x84] sm:$0xf] }
 0x304   : > { %v2017_v21 = vsel %vm14831_vm15, %v11712_v62, %v2016_v46  ;;  %v2019_v35 = vsel %vm14831_vm15, %v1990_v18, %v2018_v42  ;;  %1968 = vst [vmem:[#allocation2 + $0x648] sm:$0xff] %v1946_v28  ;;  %v9836_v61 = vld [vmem:[#allocation2 + $0x5a4] sm:$0xf0]  ;;  %v7989_v63 = vor.u32 %v9679_v52, %v7986_v50  ;;  %v8249_v53 = vor.u32 %v9748_v8, %v8248_v40  ;;  %v9663_v45 = vld [vmem:[#allocation2 + $0x44] sm:$0xf] }
 0x305   : > { %2035 = vst [vmem:[#allocation2 + $0x6a8] sm:$0xff] %v2017_v21  ;;  %v8601_v4 = vor.u32 %v9836_v61, %v8600_v58  ;;  %v9828_v62 = vld [vmem:[#allocation2 + $0x564] sm:$0xf0]  ;;  %v7957_v3 = vor.u32 %v9671_v36, %v7954_v1  ;;  %v7922_v46 = vld [vmem:[#allocation2 + $0x60] sm:$0xf0] }
 0x306   : > { %2036 = vst [vmem:[#allocation2 + $0x6b0] sm:$0xff] %v2019_v35  ;;  %v11877_v54 = vpop.permute.xlu2 %1855  ;;  %v8569_v47 = vor.u32 %v9828_v62, %v8568_v11  ;;  %v8216_v18 = vld [vmem:[#allocation2 + $0x288] sm:$0xf]  ;;  %v7890_v58 = vld [vmem:[#allocation2 + $0x20] sm:$0xf0] }
 0x307   : > { %3501 = vmatpush.bf16.msra.mxu2 %v8313_v5  ;;  %3432 = vmatpush.bf16.msrb.mxu3 %v8021_v33  ;;  %v11879_v57 = vpop.permute.xlu1 %1863  ;;  %v1872_v2 = vrot.slane %v11877_v54, 4  ;;  %v8217_v6 = vor.u32 %v9740_v20, %v8216_v18  ;;  %v9732_v42 = vld [vmem:[#allocation2 + $0x264] sm:$0xf0]  ;;  %v8634_v11 = vld [vmem:[#allocation2 + $0x5e8] sm:$0xf0] }
 0x308   : > { %3514 = vmatpush.bf16.msra.mxu0 %v8601_v4  ;;  %v1854_v34 = vpop.permute.xlu0 %1853  ;;  %v1876_v5 = vrot.slane %v11879_v57, 4  ;;  %v8728_v28 = vld [vmem:[#allocation2 + $0x688] sm:$0xf]  ;;  %v7925_v4 = vor.u32 %v9663_v45, %v7922_v46 }
 0x309   : > { %v1871_v26 = vrot.slane %v1854_v34, 4  ;;  %v9716_v35 = vld [vmem:[#allocation2 + $0x1e4] sm:$0xf0] }
 0x30a   : > { %v1890_v25 = vsel %vm444_vm0, %v1875_v44, %v1876_v5  ;;  %v8536_v44 = vld [vmem:[#allocation2 + $0x508] sm:$0xf] }
 0x30b   : > { %3502 = vmatpush.bf16.msra.mxu2 %v8281_v38  ;;  %3433 = vmatpush.bf16.msrb.mxu3 %v7989_v63  ;;  %v1882_v29 = vsel %vm444_vm0, %v1870_v60, %v1871_v26  ;;  %v1884_v23 = vsel %vm444_vm0, %v1871_v26, %v1872_v2  ;;  %v1891_v0 = vsel %vm14829_vm12, %v11698_v19, %v1890_v25  ;;  %v9655_v60 = vld [vmem:[#allocation2 + $0x4] sm:$0xf]  ;;  %v8184_v8 = vld [vmem:[#allocation2 + $0x248] sm:$0xf]  ;;  %v9840_v26 = vld [vmem:[#allocation2 + $0x5cc] sm:$0xf] }
 0x30c   : > { %v1883_v33 = vsel %vm14829_vm12, %v11762_v14, %v1882_v29  ;;  %v1885_v38 = vsel %vm14829_vm12, %v1854_v34, %v1884_v23  ;;  %3515 = vmatpush.bf16.msra.mxu0 %v8569_v47  ;;  %1909 = vst [vmem:[#allocation2 + $0x628] sm:$0xff] %v1891_v0  ;;  %v9868_v21 = vld [vmem:[#allocation2 + $0x6a4] sm:$0xf0]  ;;  %v8537_v50 = vor.u32 %v9820_v32, %v8536_v44 }
 0x30d   : > { %1905 = vst [vmem:[#allocation2 + $0x608] sm:$0xff] %v1883_v33  ;;  %v8729_v19 = vor.u32 %v9868_v21, %v8728_v28  ;;  %v9724_v14 = vld [vmem:[#allocation2 + $0x224] sm:$0xf0]  ;;  %v8185_v52 = vor.u32 %v9732_v42, %v8184_v8  ;;  %v7893_v25 = vor.u32 %v9655_v60, %v7890_v58  ;;  %v8637_v44 = vor.u32 %v9840_v26, %v8634_v11 }
 0x30e   : > { %1906 = vst [vmem:[#allocation2 + $0x610] sm:$0xff] %v1885_v38  ;;  %v1805_v61 = vpop.permute.xlu2 %1804  ;;  %v9812_v40 = vld [vmem:[#allocation2 + $0x4e4] sm:$0xf0] }
 0x30f   : > { %3503 = vmatpush.bf16.msra.mxu2 %v8249_v53  ;;  %3434 = vmatpush.bf16.msrb.mxu3 %v7957_v3  ;;  %v8696_v63 = vld [vmem:[#allocation2 + $0x648] sm:$0xf]  ;;  %v11899_v1 = vpop.permute.xlu1 %1729  ;;  %v1815_v34 = vrot.slane %v1805_v61, 4 }
 0x310   : > { %v8120_v53 = vld [vmem:[#allocation2 + $0x1c8] sm:$0xf]  ;;  %3516 = vmatpush.bf16.msra.mxu0 %v8537_v50  ;;  %3532 = vmatpush.bf16.msra.mxu1 %v8729_v19  ;;  %v1803_v20 = vpop.permute.xlu0 %1802  ;;  %v1746_v36 = vrot.slane %v11899_v1, 4 }
 0x311   : > { %v8152_v62 = vld [vmem:[#allocation2 + $0x208] sm:$0xf]  ;;  %v1814_v47 = vrot.slane %v1803_v20, 4 }
 0x312   : > { %v8504_v3 = vld [vmem:[#allocation2 + $0x4c8] sm:$0xf]  ;;  %v8153_v32 = vor.u32 %v9724_v14, %v8152_v62  ;;  %v1758_v0 = vsel %vm444_vm0, %v1745_v9, %v1746_v36  ;;  %v8378_v9 = vld [vmem:[#allocation2 + $0x3e8] sm:$0xf0] }
 0x313   : > { %3504 = vmatpush.bf16.msra.mxu2 %v8217_v6  ;;  %3435 = vmatpush.bf16.msrb.mxu3 %v7925_v4  ;;  %v9860_v18 = vld [vmem:[#allocation2 + $0x664] sm:$0xf0]  ;;  %v8505_v29 = vor.u32 %v9812_v40, %v8504_v3  ;;  %v8121_v6 = vor.u32 %v9716_v35, %v8120_v53  ;;  %v1829_v33 = vsel %vm444_vm0, %v1813_v56, %v1814_v47  ;;  %v9776_v14 = vld [vmem:[#allocation2 + $0x3cc] sm:$0xf] }
 0x314   : > { %v8697_v23 = vor.u32 %v9860_v18, %v8696_v63  ;;  %v1831_v38 = vsel %vm444_vm0, %v1814_v47, %v1815_v34  ;;  %v9804_v45 = vld [vmem:[#allocation2 + $0x4a4] sm:$0xf0]  ;;  %v1759_v46 = vsel %vm1754_vm11, %v11708_v51, %v1758_v0  ;;  %v1830_v42 = vsel %vm1817_vm14, %v11792_v49, %v1829_v33  ;;  %v8602_v49 = vld [vmem:[#allocation2 + $0x5a8] sm:$0xf0] }
 0x315   : > { %v1832_v60 = vsel %vm1817_vm14, %v1803_v20, %v1831_v38  ;;  %3517 = vmatpush.bf16.msra.mxu0 %v8505_v29  ;;  %v9852_v28 = vld [vmem:[#allocation2 + $0x624] sm:$0xf0]  ;;  %1780 = vst [vmem:[#allocation2 + $0x590] sm:$0xff] %v1759_v46  ;;  %v8381_v40 = vor.u32 %v9776_v14, %v8378_v9  ;;  %v9832_v62 = vld [vmem:[#allocation2 + $0x58c] sm:$0xf] }
 0x316   : > { %3533 = vmatpush.bf16.msra.mxu1 %v8697_v23  ;;  %v9708_v21 = vld [vmem:[#allocation2 + $0x1a4] sm:$0xf0]  ;;  %1847 = vst [vmem:[#allocation2 + $0x5f0] sm:$0xff] %v1830_v42  ;;  %v1679_v58 = vpop.permute.xlu2 %1678  ;;  %v8346_v34 = vld [vmem:[#allocation2 + $0x3a8] sm:$0xf0]  ;;  %v8605_v11 = vor.u32 %v9832_v62, %v8602_v49 }
 0x317   : > { %3505 = vmatpush.bf16.msra.mxu2 %v8185_v52  ;;  %3436 = vmatpush.bf16.msrb.mxu3 %v7893_v25  ;;  %v8472_v56 = vld [vmem:[#allocation2 + $0x488] sm:$0xf]  ;;  %1848 = vst.msk [vmem:[#allocation2 + $0x5f8] sm:$0xff] %vm10609_vm2, %v1832_v60  ;;  %v11919_v4 = vpop.permute.xlu1 %1981  ;;  %v1689_v52 = vrot.slane %v1679_v58, 4  ;;  %v9768_v25 = vld [vmem:[#allocation2 + $0x38c] sm:$0xf] }
 0x318   : > { %v8664_v35 = vld [vmem:[#allocation2 + $0x608] sm:$0xf]  ;;  %v8473_v51 = vor.u32 %v9804_v45, %v8472_v56  ;;  %v1677_v63 = vpop.permute.xlu0 %1676  ;;  %v1998_v20 = vrot.slane %v11919_v4, 4  ;;  %v8570_v23 = vld [vmem:[#allocation2 + $0x568] sm:$0xf0]  ;;  %v8349_v33 = vor.u32 %v9768_v25, %v8346_v34 }
 0x319   : > { %v9700_v50 = vld [vmem:[#allocation2 + $0x164] sm:$0xf0]  ;;  %v8665_v19 = vor.u32 %v9852_v28, %v8664_v35  ;;  %v1688_v26 = vrot.slane %v1677_v63, 4  ;;  %v8314_v45 = vld [vmem:[#allocation2 + $0x368] sm:$0xf0] }
 0x31a   : > { %v8088_v8 = vld [vmem:[#allocation2 + $0x188] sm:$0xf]  ;;  %3437 = vmatmul.bf16.vlgmr.msrb.gmra.mxu3 %v11739_v7  ;;  %3518 = vmatpush.bf16.msra.mxu0 %v8473_v51  ;;  %v8730_v28 = vld [vmem:[#allocation2 + $0x6a8] sm:$0xf0] }
 0x31b   : > { %3506 = vmatpush.bf16.msra.mxu2 %v8153_v32  ;;  %3485 = vmatpush.bf16.msra.mxu3 %v8121_v6  ;;  %v9796_v61 = vld [vmem:[#allocation2 + $0x464] sm:$0xf0]  ;;  %v8089_v53 = vor.u32 %v9708_v21, %v8088_v8  ;;  %v2010_v6 = vsel %vm444_vm0, %v1997_v22, %v1998_v20  ;;  %v1703_v32 = vsel %vm444_vm0, %v1687_v43, %v1688_v26  ;;  %v9824_v22 = vld [vmem:[#allocation2 + $0x54c] sm:$0xf] }
 0x31c   : > { %3534 = vmatpush.bf16.msra.mxu1 %v8665_v19  ;;  %v8440_v47 = vld [vmem:[#allocation2 + $0x448] sm:$0xf]  ;;  %v1705_v0 = vsel %vm444_vm0, %v1688_v26, %v1689_v52  ;;  %v2011_v46 = vsel %vm14831_vm15, %v11737_v16, %v2010_v6  ;;  %v1704_v42 = vsel %vm1691_vm13, %v11824_v41, %v1703_v32  ;;  %v8573_v43 = vor.u32 %v9824_v22, %v8570_v23  ;;  %v9864_v35 = vld [vmem:[#allocation2 + $0x68c] sm:$0xf] }
 0x31d   : > { %v8056_v3 = vld [vmem:[#allocation2 + $0x148] sm:$0xf]  ;;  %v8441_v18 = vor.u32 %v9796_v61, %v8440_v47  ;;  %v1706_v60 = vsel %vm1691_vm13, %v1677_v63, %v1705_v0  ;;  %2032 = vst [vmem:[#allocation2 + $0x690] sm:$0xff] %v2011_v46  ;;  %v8733_v41 = vor.u32 %v9864_v35, %v8730_v28  ;;  %v9816_v14 = vld [vmem:[#allocation2 + $0x50c] sm:$0xf] }
 0x31e   : > { %3507 = vmatmul.bf16.vlgmr.msra.gmra.mxu2 %v11764_v17  ;;  %v8057_v29 = vor.u32 %v9700_v50, %v8056_v3  ;;  %v9788_v38 = vld [vmem:[#allocation2 + $0x424] sm:$0xf0]  ;;  %1721 = vst [vmem:[#allocation2 + $0x570] sm:$0xff] %v1704_v42  ;;  %v8538_v50 = vld [vmem:[#allocation2 + $0x528] sm:$0xf0]  ;;  %v1921_v23 = vpop.permute.xlu2 %1920 }
 0x31f   : > { %3569 = vmatpush.bf16.msrb.mxu2 %v8637_v44  ;;  %3486 = vmatpush.bf16.msra.mxu3 %v8089_v53  ;;  %v9760_v44 = vld [vmem:[#allocation2 + $0x34c] sm:$0xf]  ;;  %v8408_v9 = vld [vmem:[#allocation2 + $0x408] sm:$0xf]  ;;  %1722 = vst.msk [vmem:[#allocation2 + $0x578] sm:$0xff] %vm10609_vm2, %v1706_v60  ;;  %v11941_v8 = vpop.permute.xlu1 %1928  ;;  %v8541_v63 = vor.u32 %v9816_v14, %v8538_v50 }
 0x320   : > { %3555 = vmatpush.bf16.msrb.mxu1 %v8381_v40  ;;  %3519 = vmatpush.bf16.msra.mxu0 %v8441_v18  ;;  %v9692_v21 = vld [vmem:[#allocation2 + $0x124] sm:$0xf0]  ;;  %v8409_v56 = vor.u32 %v9788_v38, %v8408_v9  ;;  %v8317_v16 = vor.u32 %v9760_v44, %v8314_v45  ;;  %v1919_v49 = vpop.permute.xlu0 %1918  ;;  %v9856_v61 = vld [vmem:[#allocation2 + $0x64c] sm:$0xf]  ;;  %v1940_v52 = vrot.slane %v11941_v8, 4  ;;  %v1936_v38 = vrot.slane %v1921_v23, 4 }
 0x321   : > { %8752 = vmatmul.msk.bf16.vlgmr.msra.gmra.mxu1 %vm14828_vm10, %v11822_v10  ;;  %v8024_v51 = vld [vmem:[#allocation2 + $0x108] sm:$0xf]  ;;  %v1935_v40 = vrot.slane %v1919_v49, 4  ;;  %v8282_v53 = vld [vmem:[#allocation2 + $0x328] sm:$0xf0] }
 0x322   : > { %v9684_v19 = vld [vmem:[#allocation2 + $0xe4] sm:$0xf0]  ;;  %v8025_v58 = vor.u32 %v9692_v21, %v8024_v51  ;;  %v8698_v34 = vld [vmem:[#allocation2 + $0x668] sm:$0xf0]  ;;  %v1955_v47 = vsel %vm444_vm0, %v1939_v55, %v1940_v52  ;;  %v9781_v46 = vld [vmem:[#allocation2 + $0x3ec] sm:$0xf0] }
 0x323   : > { %3570 = vmatpush.bf16.msrb.mxu2 %v8605_v11  ;;  %3487 = vmatpush.bf16.msra.mxu3 %v8057_v29  ;;  %v7992_v62 = vld [vmem:[#allocation2 + $0xc8] sm:$0xf]  ;;  %v8506_v11 = vld [vmem:[#allocation2 + $0x4e8] sm:$0xf0]  ;;  %v1947_v3 = vsel %vm444_vm0, %v1934_v27, %v1935_v40  ;;  %v8701_v25 = vor.u32 %v9856_v61, %v8698_v34  ;;  %v1956_v6 = vsel %vm14830_vm1, %v11753_v59, %v1955_v47  ;;  %v8352_v34 = vld [vmem:[#allocation2 + $0x390] sm:$0xf] }
 0x324   : > { %3556 = vmatpush.bf16.msrb.mxu1 %v8349_v33  ;;  %3520 = vmatpush.bf16.msra.mxu0 %v8409_v56  ;;  %v7993_v26 = vor.u32 %v9684_v19, %v7992_v62  ;;  %v9752_v18 = vld [vmem:[#allocation2 + $0x30c] sm:$0xf]  ;;  %v1948_v32 = vsel %vm14830_vm1, %v11849_v15, %v1947_v3  ;;  %1973 = vst [vmem:[#allocation2 + $0x670] sm:$0xff] %v1956_v6  ;;  %v9676_v45 = vld [vmem:[#allocation2 + $0xa4] sm:$0xf0] }
 0x325   : > { %v9808_v29 = vld [vmem:[#allocation2 + $0x4cc] sm:$0xf]  ;;  %v8285_v0 = vor.u32 %v9752_v18, %v8282_v53  ;;  %1969 = vst [vmem:[#allocation2 + $0x650] sm:$0xff] %v1948_v32  ;;  %v1949_v60 = vsel %vm444_vm0, %v1935_v40, %v1936_v38  ;;  %v7960_v15 = vld [vmem:[#allocation2 + $0x88] sm:$0xf] }
 0x326   : > { %v9848_v33 = vld [vmem:[#allocation2 + $0x60c] sm:$0xf]  ;;  %v8509_v27 = vor.u32 %v9808_v29, %v8506_v11  ;;  %v9668_v28 = vld [vmem:[#allocation2 + $0x64] sm:$0xf0]  ;;  %v7961_v56 = vor.u32 %v9676_v45, %v7960_v15  ;;  %v9773_v40 = vld [vmem:[#allocation2 + $0x3ac] sm:$0xf0]  ;;  %v1868_v47 = vpop.permute.xlu2 %1867 }
 0x327   : > { %3571 = vmatpush.bf16.msrb.mxu2 %v8573_v43  ;;  %3488 = vmatpush.bf16.msra.mxu3 %v8025_v58  ;;  %v8666_v55 = vld [vmem:[#allocation2 + $0x628] sm:$0xf0]  ;;  %v1950_v43 = vsel %vm14830_vm1, %v1919_v49, %v1949_v60  ;;  %v1795_v50 = vpop.permute.xlu1 %1794  ;;  %v7928_v61 = vld [vmem:[#allocation2 + $0x48] sm:$0xf]  ;;  %v8320_v29 = vld [vmem:[#allocation2 + $0x350] sm:$0xf]  ;;  %v8353_v6 = vor.u32 %v9773_v40, %v8352_v34 }
 0x328   : > { %3588 = vmatpush.bf16.msrb.mxu0 %v8733_v41  ;;  %3557 = vmatpush.bf16.msrb.mxu1 %v8317_v16  ;;  %v8250_v44 = vld [vmem:[#allocation2 + $0x2e8] sm:$0xf0]  ;;  %v8669_v22 = vor.u32 %v9848_v33, %v8666_v55  ;;  %v1866_v21 = vpop.permute.xlu0 %1865  ;;  %v8384_v16 = vld [vmem:[#allocation2 + $0x3d0] sm:$0xf]  ;;  %1970 = vst.msk [vmem:[#allocation2 + $0x658] sm:$0xff] %vm10609_vm2, %v1950_v43  ;;  %v1810_v14 = vrot.slane %v1795_v50, 4  ;;  %v7929_v62 = vor.u32 %v9668_v28, %v7928_v61 }
 0x329   : > { %3521 = vmatmul.bf16.vlgmr.msra.gmra.mxu0 %v11788_v39  ;;  %v8474_v42 = vld [vmem:[#allocation2 + $0x4a8] sm:$0xf0]  ;;  %v1877_v41 = vrot.slane %v1866_v21, 4  ;;  %v8385_v51 = vor.u32 %v9781_v46, %v8384_v16  ;;  %v1878_v23 = vrot.slane %v1868_v47, 4  ;;  %v9660_v33 = vld [vmem:[#allocation2 + $0x24] sm:$0xf0] }
 0x32a   : > { %v9744_v59 = vld [vmem:[#allocation2 + $0x2cc] sm:$0xf]  ;;  %v9757_v50 = vld [vmem:[#allocation2 + $0x32c] sm:$0xf0] }
 0x32b   : > { %3572 = vmatpush.bf16.msrb.mxu2 %v8541_v63  ;;  %3489 = vmatpush.bf16.msra.mxu3 %v7993_v26  ;;  %v8253_v9 = vor.u32 %v9744_v59, %v8250_v44  ;;  %v9800_v35 = vld [vmem:[#allocation2 + $0x48c] sm:$0xf]  ;;  %v1892_v63 = vsel %vm444_vm0, %v1876_v5, %v1877_v41  ;;  %v1823_v26 = vsel %vm444_vm0, %v1809_v13, %v1810_v14  ;;  %v9765_v5 = vld [vmem:[#allocation2 + $0x36c] sm:$0xf0]  ;;  %v7896_v13 = vld [vmem:[#allocation2 + $0x8] sm:$0xf] }
 0x32c   : > { %3589 = vmatpush.bf16.msrb.mxu0 %v8701_v25  ;;  %3558 = vmatpush.bf16.msrb.mxu1 %v8285_v0  ;;  %v8477_v19 = vor.u32 %v9800_v35, %v8474_v42  ;;  %v8218_v58 = vld [vmem:[#allocation2 + $0x2a8] sm:$0xf0]  ;;  %v1893_v3 = vsel %vm14829_vm12, %v11879_v57, %v1892_v63  ;;  %v1824_v25 = vsel %vm1817_vm14, %v11790_v48, %v1823_v26  ;;  %v8736_v59 = vld [vmem:[#allocation2 + $0x690] sm:$0xf] }
 0x32d   : > { %v8442_v49 = vld [vmem:[#allocation2 + $0x468] sm:$0xf0]  ;;  %1910 = vst [vmem:[#allocation2 + $0x630] sm:$0xff] %v1893_v3  ;;  %v1894_v57 = vsel %vm444_vm0, %v1877_v41, %v1878_v23  ;;  %v8321_v38 = vor.u32 %v9765_v5, %v8320_v29  ;;  %v7897_v42 = vor.u32 %v9660_v33, %v7896_v13  ;;  %v8640_v41 = vld [vmem:[#allocation2 + $0x5d0] sm:$0xf] }
 0x32e   : > { %v9736_v53 = vld [vmem:[#allocation2 + $0x28c] sm:$0xf]  ;;  %1844 = vst.msk [vmem:[#allocation2 + $0x5d8] sm:$0xff] %vm10609_vm2, %v1824_v25  ;;  %v1895_v45 = vsel %vm14829_vm12, %v1866_v21, %v1894_v57  ;;  %v9845_v21 = vld [vmem:[#allocation2 + $0x5ec] sm:$0xf0] }
 0x32f   : > { %3573 = vmatpush.bf16.msrb.mxu2 %v8509_v27  ;;  %3490 = vmatpush.bf16.msra.mxu3 %v7961_v56  ;;  %v9792_v11 = vld [vmem:[#allocation2 + $0x44c] sm:$0xf]  ;;  %v8221_v18 = vor.u32 %v9736_v53, %v8218_v58  ;;  %v1742_v15 = vpop.permute.xlu1 %1741  ;;  %1911 = vst.msk [vmem:[#allocation2 + $0x638] sm:$0xff] %vm10609_vm2, %v1895_v45  ;;  %v8288_v63 = vld [vmem:[#allocation2 + $0x310] sm:$0xf] }
 0x330   : > { %3590 = vmatpush.bf16.msrb.mxu0 %v8669_v22  ;;  %3559 = vmatpush.bf16.msrb.mxu1 %v8253_v9  ;;  %v8445_v32 = vor.u32 %v9792_v11, %v8442_v49  ;;  %v8186_v0 = vld [vmem:[#allocation2 + $0x268] sm:$0xf0]  ;;  %v1732_v60 = vpop.permute.xlu0 %1731  ;;  %v9869_v22 = vld [vmem:[#allocation2 + $0x6ac] sm:$0xf0]  ;;  %v1752_v16 = vrot.slane %v1742_v15, 4 }
 0x331   : > { %v8122_v55 = vld [vmem:[#allocation2 + $0x1e8] sm:$0xf0]  ;;  %v1747_v9 = vrot.slane %v1732_v60, 4  ;;  %v9861_v34 = vld [vmem:[#allocation2 + $0x66c] sm:$0xf0] }
 0x332   : > { %v9728_v48 = vld [vmem:[#allocation2 + $0x24c] sm:$0xf]  ;;  %v1768_v14 = vsel %vm444_vm0, %v1751_v24, %v1752_v16  ;;  %v8289_v24 = vor.u32 %v9757_v50, %v8288_v63  ;;  %v8608_v11 = vld [vmem:[#allocation2 + $0x590] sm:$0xf]  ;;  %v8098_v16 = vld [vmem:[#allocation2 + $0x1b0] sm:$0xf0] }
 0x333   : > { %3574 = vmatpush.bf16.msrb.mxu2 %v8477_v19  ;;  %3491 = vmatpush.bf16.msra.mxu3 %v7929_v62  ;;  %v9712_v27 = vld [vmem:[#allocation2 + $0x1cc] sm:$0xf]  ;;  %v8189_v46 = vor.u32 %v9728_v48, %v8186_v0  ;;  %v8737_v19 = vor.u32 %v9869_v22, %v8736_v59  ;;  %v1769_v53 = vsel %vm1754_vm11, %v11820_v31, %v1768_v14  ;;  %v8704_v62 = vld [vmem:[#allocation2 + $0x650] sm:$0xf]  ;;  %v9705_v50 = vld [vmem:[#allocation2 + $0x194] sm:$0xf] }
 0x334   : > { %3611 = vmatpush.bf16.msra.mxu0 %v8385_v51  ;;  %3560 = vmatpush.bf16.msrb.mxu1 %v8221_v18  ;;  %v8410_v44 = vld [vmem:[#allocation2 + $0x428] sm:$0xf0]  ;;  %v8125_v28 = vor.u32 %v9712_v27, %v8122_v55  ;;  %v1760_v51 = vsel %vm444_vm0, %v1746_v36, %v1747_v9  ;;  %v8641_v36 = vor.u32 %v9845_v21, %v8640_v41  ;;  %v9837_v47 = vld [vmem:[#allocation2 + $0x5ac] sm:$0xf0]  ;;  %v8130_v55 = vld [vmem:[#allocation2 + $0x1f0] sm:$0xf0] }
 0x335   : > { %v9784_v43 = vld [vmem:[#allocation2 + $0x40c] sm:$0xf]  ;;  %v1761_v40 = vsel %vm1754_vm11, %v11899_v1, %v1760_v51  ;;  %v9749_v1 = vld [vmem:[#allocation2 + $0x2ec] sm:$0xf0]  ;;  %1785 = vst.msk [vmem:[#allocation2 + $0x5b8] sm:$0xff] %vm10609_vm2, %v1769_v53  ;;  %v8705_v3 = vor.u32 %v9861_v34, %v8704_v62  ;;  %v8609_v0 = vor.u32 %v9837_v47, %v8608_v11 }
 0x336   : > { %v8154_v56 = vld [vmem:[#allocation2 + $0x228] sm:$0xf0]  ;;  %v8413_v35 = vor.u32 %v9784_v43, %v8410_v44  ;;  %1781 = vst.msk [vmem:[#allocation2 + $0x598] sm:$0xff] %vm10609_vm2, %v1761_v40  ;;  %v8256_v25 = vld [vmem:[#allocation2 + $0x2d0] sm:$0xf] }
 0x337   : > { %3575 = vmatpush.bf16.msrb.mxu2 %v8445_v32  ;;  %3492 = vmatpush.bf16.msra.mxu3 %v7897_v42  ;;  %v9720_v58 = vld [vmem:[#allocation2 + $0x20c] sm:$0xf]  ;;  %v8672_v5 = vld [vmem:[#allocation2 + $0x610] sm:$0xf]  ;;  %v8257_v32 = vor.u32 %v9749_v1, %v8256_v25  ;;  %v8066_v63 = vld [vmem:[#allocation2 + $0x170] sm:$0xf0] }
 0x338   : > { %3612 = vmatpush.bf16.msra.mxu0 %v8353_v6  ;;  %3561 = vmatpush.bf16.msrb.mxu1 %v8189_v46  ;;  %v8090_v61 = vld [vmem:[#allocation2 + $0x1a8] sm:$0xf0]  ;;  %v8157_v49 = vor.u32 %v9720_v58, %v8154_v56  ;;  %v1984_v29 = vpop.permute.xlu0 %1983  ;;  %v9853_v23 = vld [vmem:[#allocation2 + $0x62c] sm:$0xf0]  ;;  %v1994_v6 = vpop.permute.xlu1 %1993  ;;  %v9713_v46 = vld [vmem:[#allocation2 + $0x1d4] sm:$0xf] }
 0x339   : > { %8753 = vmatmul.msk.bf16.vlgmr.msrb.gmra.mxu0 %vm14828_vm10, %v11822_v10  ;;  %v9704_v26 = vld [vmem:[#allocation2 + $0x18c] sm:$0xf]  ;;  %v1999_v13 = vrot.slane %v1984_v29, 4  ;;  %v2004_v57 = vrot.slane %v1994_v6, 4  ;;  %v9829_v27 = vld [vmem:[#allocation2 + $0x56c] sm:$0xf0]  ;;  %v8673_v45 = vor.u32 %v9853_v23, %v8672_v5  ;;  %v8133_v22 = vor.u32 %v9713_v46, %v8130_v55 }
 0x33a   : > { %3493 = vmatmul.bf16.vlgmr.msra.gmra.mxu3 %v11739_v7  ;;  %v8093_v31 = vor.u32 %v9704_v26, %v8090_v61  ;;  %v8058_v18 = vld [vmem:[#allocation2 + $0x168] sm:$0xf0]  ;;  %v8224_v15 = vld [vmem:[#allocation2 + $0x290] sm:$0xf]  ;;  %v9697_v1 = vld [vmem:[#allocation2 + $0x154] sm:$0xf] }
 0x33b   : > { %3541 = vmatpush.bf16.msrb.mxu3 %v8125_v28  ;;  %3576 = vmatpush.bf16.msrb.mxu2 %v8413_v35  ;;  %v9696_v33 = vld [vmem:[#allocation2 + $0x14c] sm:$0xf]  ;;  %v2012_v44 = vsel %vm444_vm0, %v1998_v20, %v1999_v13  ;;  %v2020_v42 = vsel %vm444_vm0, %v2003_v12, %v2004_v57  ;;  %v8576_v28 = vld [vmem:[#allocation2 + $0x550] sm:$0xf]  ;;  %v8642_v11 = vld [vmem:[#allocation2 + $0x5f0] sm:$0xf0] }
 0x33c   : > { %3613 = vmatpush.bf16.msra.mxu0 %v8321_v38  ;;  %3562 = vmatpush.bf16.msrb.mxu1 %v8157_v49  ;;  %v8061_v48 = vor.u32 %v9696_v33, %v8058_v18  ;;  %v9741_v38 = vld [vmem:[#allocation2 + $0x2ac] sm:$0xf0]  ;;  %v8026_v60 = vld [vmem:[#allocation2 + $0x128] sm:$0xf0]  ;;  %v2013_v59 = vsel %vm14831_vm15, %v11919_v4, %v2012_v44  ;;  %v2021_v43 = vsel %vm14831_vm15, %v11847_v30, %v2020_v42  ;;  %v9689_v13 = vld [vmem:[#allocation2 + $0x114] sm:$0xf] }
 0x33d   : > { %2033 = vst.msk [vmem:[#allocation2 + $0x698] sm:$0xff] %vm10609_vm2, %v2013_v59  ;;  %v8225_v20 = vor.u32 %v9741_v38, %v8224_v15  ;;  %v8577_v9 = vor.u32 %v9829_v27, %v8576_v28  ;;  %v9688_v56 = vld [vmem:[#allocation2 + $0x10c] sm:$0xf]  ;;  %v9733_v4 = vld [vmem:[#allocation2 + $0x26c] sm:$0xf0]  ;;  %v8101_v30 = vor.u32 %v9705_v50, %v8098_v16  ;;  %v8069_v18 = vor.u32 %v9697_v1, %v8066_v63 }
 0x33e   : > { %3577 = vmatmul.bf16.vlgmr.msrb.gmra.mxu2 %v11788_v39  ;;  %2037 = vst.msk [vmem:[#allocation2 + $0x6b8] sm:$0xff] %vm10609_vm2, %v2021_v43  ;;  %v8029_v12 = vor.u32 %v9688_v56, %v8026_v60  ;;  %v9821_v35 = vld [vmem:[#allocation2 + $0x52c] sm:$0xf0]  ;;  %v7994_v41 = vld [vmem:[#allocation2 + $0xe8] sm:$0xf0] }
 0x33f   : > { %3644 = vmatpush.bf16.msra.mxu2 %v8737_v19  ;;  %3542 = vmatpush.bf16.msrb.mxu3 %v8093_v31  ;;  %v8192_v21 = vld [vmem:[#allocation2 + $0x250] sm:$0xf]  ;;  %v9680_v40 = vld [vmem:[#allocation2 + $0xcc] sm:$0xf]  ;;  %v9841_v31 = vld [vmem:[#allocation2 + $0x5d4] sm:$0xf] }
 0x340   : > { %3614 = vmatpush.bf16.msra.mxu0 %v8289_v24  ;;  %3625 = vmatpush.bf16.msra.mxu1 %v8641_v36  ;;  %v8544_v51 = vld [vmem:[#allocation2 + $0x510] sm:$0xf]  ;;  %v1931_v19 = vpop.permute.xlu0 %1930  ;;  %v1858_v58 = vpop.permute.xlu1 %1857  ;;  %v8193_v14 = vor.u32 %v9733_v4, %v8192_v21  ;;  %v7997_v62 = vor.u32 %v9680_v40, %v7994_v41  ;;  %v7962_v36 = vld [vmem:[#allocation2 + $0xa8] sm:$0xf0]  ;;  %v9833_v55 = vld [vmem:[#allocation2 + $0x594] sm:$0xf] }
 0x341   : > { %3563 = vmatmul.bf16.vlgmr.msrb.gmra.mxu1 %v11764_v17  ;;  %v8545_v61 = vor.u32 %v9821_v35, %v8544_v51  ;;  %v1941_v49 = vrot.slane %v1931_v19, 4  ;;  %v1873_v53 = vrot.slane %v1858_v58, 4  ;;  %v9725_v34 = vld [vmem:[#allocation2 + $0x22c] sm:$0xf0]  ;;  %v9672_v6 = vld [vmem:[#allocation2 + $0x8c] sm:$0xf] }
 0x342   : > { %v9813_v24 = vld [vmem:[#allocation2 + $0x4ec] sm:$0xf0]  ;;  %v9664_v27 = vld [vmem:[#allocation2 + $0x4c] sm:$0xf]  ;;  %v8002_v44 = vld [vmem:[#allocation2 + $0xf0] sm:$0xf0] }
 0x343   : > { %3645 = vmatpush.bf16.msra.mxu2 %v8705_v3  ;;  %3543 = vmatpush.bf16.msrb.mxu3 %v8061_v48  ;;  %v1957_v26 = vsel %vm444_vm0, %v1940_v52, %v1941_v49  ;;  %v1886_v47 = vsel %vm444_vm0, %v1872_v2, %v1873_v53  ;;  %v8160_v25 = vld [vmem:[#allocation2 + $0x210] sm:$0xf]  ;;  %v8645_v2 = vor.u32 %v9841_v31, %v8642_v11  ;;  %v9681_v60 = vld [vmem:[#allocation2 + $0xd4] sm:$0xf]  ;;  %v7898_v59 = vld [vmem:[#allocation2 + $0x28] sm:$0xf0] }
 0x344   : > { %3615 = vmatpush.bf16.msra.mxu0 %v8257_v32  ;;  %3626 = vmatpush.bf16.msra.mxu1 %v8609_v0  ;;  %v1958_v3 = vsel %vm14830_vm1, %v11941_v8, %v1957_v26  ;;  %v8512_v29 = vld [vmem:[#allocation2 + $0x4d0] sm:$0xf]  ;;  %v1887_v5 = vsel %vm14829_vm12, %v11877_v54, %v1886_v47  ;;  %v8161_v52 = vor.u32 %v9725_v34, %v8160_v25  ;;  %v8034_v32 = vld [vmem:[#allocation2 + $0x130] sm:$0xf0]  ;;  %v7930_v8 = vld [vmem:[#allocation2 + $0x68] sm:$0xf0] }
 0x345   : > { %1974 = vst.msk [vmem:[#allocation2 + $0x678] sm:$0xff] %vm10609_vm2, %v1958_v3  ;;  %v8513_v23 = vor.u32 %v9813_v24, %v8512_v29  ;;  %v7965_v0 = vor.u32 %v9672_v6, %v7962_v36  ;;  %v9805_v33 = vld [vmem:[#allocation2 + $0x4ac] sm:$0xf0]  ;;  %v8610_v54 = vld [vmem:[#allocation2 + $0x5b0] sm:$0xf0]  ;;  %v8037_v57 = vor.u32 %v9689_v13, %v8034_v32  ;;  %v8005_v15 = vor.u32 %v9681_v60, %v8002_v44 }
 0x346   : > { %1907 = vst.msk [vmem:[#allocation2 + $0x618] sm:$0xff] %vm10609_vm2, %v1887_v5  ;;  %v8480_v48 = vld [vmem:[#allocation2 + $0x490] sm:$0xf]  ;;  %v8613_v46 = vor.u32 %v9833_v55, %v8610_v54  ;;  %v9825_v56 = vld [vmem:[#allocation2 + $0x554] sm:$0xf] }
 0x347   : > { %3646 = vmatpush.bf16.msra.mxu2 %v8673_v45  ;;  %3544 = vmatpush.bf16.msrb.mxu3 %v8029_v12  ;;  %v8481_v38 = vor.u32 %v9805_v33, %v8480_v48  ;;  %v7933_v45 = vor.u32 %v9664_v27, %v7930_v8  ;;  %v9797_v42 = vld [vmem:[#allocation2 + $0x46c] sm:$0xf0]  ;;  %v7970_v16 = vld [vmem:[#allocation2 + $0xb0] sm:$0xf0]  ;;  %v8392_v8 = vld [vmem:[#allocation2 + $0x3d8] sm:$0xf] }
 0x348   : > { %3616 = vmatpush.bf16.msra.mxu0 %v8225_v20  ;;  %3627 = vmatpush.bf16.msra.mxu1 %v8577_v9  ;;  %v8448_v28 = vld [vmem:[#allocation2 + $0x450] sm:$0xf]  ;;  %v9656_v9 = vld [vmem:[#allocation2 + $0xc] sm:$0xf]  ;;  %v9673_v50 = vld [vmem:[#allocation2 + $0x94] sm:$0xf] }
 0x349   : > { %v9717_v43 = vld [vmem:[#allocation2 + $0x1ec] sm:$0xf0]  ;;  %v8449_v20 = vor.u32 %v9797_v42, %v8448_v28  ;;  %v7901_v12 = vor.u32 %v9656_v9, %v7898_v59  ;;  %v8546_v21 = vld [vmem:[#allocation2 + $0x530] sm:$0xf0]  ;;  %v7973_v58 = vor.u32 %v9673_v50, %v7970_v16  ;;  %v9718_v55 = vld [vmem:[#allocation2 + $0x1f4] sm:$0xf0] }
 0x34a   : > { %v8128_v35 = vld [vmem:[#allocation2 + $0x1d0] sm:$0xf]  ;;  %v9865_v51 = vld [vmem:[#allocation2 + $0x694] sm:$0xf]  ;;  %v8136_v44 = vld [vmem:[#allocation2 + $0x1d8] sm:$0xf] }
 0x34b   : > { %3653 = vmatpush.bf16.msrb.mxu2 %v8133_v22  ;;  %3545 = vmatpush.bf16.msrb.mxu3 %v7997_v62  ;;  %v8578_v22 = vld [vmem:[#allocation2 + $0x570] sm:$0xf0]  ;;  %v9789_v41 = vld [vmem:[#allocation2 + $0x42c] sm:$0xf0]  ;;  %v8137_v60 = vor.u32 %v9718_v55, %v8136_v44  ;;  %v8328_v28 = vld [vmem:[#allocation2 + $0x358] sm:$0xf] }
 0x34c   : > { %3617 = vmatpush.bf16.msra.mxu0 %v8193_v14  ;;  %3628 = vmatpush.bf16.msra.mxu1 %v8545_v61  ;;  %v8581_v4 = vor.u32 %v9825_v56, %v8578_v22  ;;  %v8738_v19 = vld [vmem:[#allocation2 + $0x6b0] sm:$0xf0]  ;;  %v8416_v14 = vld [vmem:[#allocation2 + $0x410] sm:$0xf]  ;;  %v9742_v55 = vld [vmem:[#allocation2 + $0x2b4] sm:$0xf0] }
 0x34d   : > { %v9709_v61 = vld [vmem:[#allocation2 + $0x1ac] sm:$0xf0]  ;;  %v8417_v40 = vor.u32 %v9789_v41, %v8416_v14  ;;  %v9817_v49 = vld [vmem:[#allocation2 + $0x514] sm:$0xf]  ;;  %v8741_v62 = vor.u32 %v9865_v51, %v8738_v19  ;;  %v8744_v19 = vld [vmem:[#allocation2 + $0x698] sm:$0xf] }
 0x34e   : > { %8754 = vmatmul.msk.bf16.vlgmr.msra.gmra.mxu2 %vm14828_vm10, %v11822_v10  ;;  %v7938_v63 = vld [vmem:[#allocation2 + $0x70] sm:$0xf0]  ;;  %v8549_v53 = vor.u32 %v9817_v49, %v8546_v21  ;;  %v8096_v34 = vld [vmem:[#allocation2 + $0x190] sm:$0xf]  ;;  %v9702_v21 = vld [vmem:[#allocation2 + $0x174] sm:$0xf0] }
 0x34f   : > { %3654 = vmatpush.bf16.msrb.mxu2 %v8101_v30  ;;  %3546 = vmatpush.bf16.msrb.mxu3 %v7965_v0  ;;  %v8129_v30 = vor.u32 %v9717_v43, %v8128_v35  ;;  %v9665_v24 = vld [vmem:[#allocation2 + $0x54] sm:$0xf]  ;;  %v8097_v36 = vor.u32 %v9709_v61, %v8096_v34  ;;  %v9701_v47 = vld [vmem:[#allocation2 + $0x16c] sm:$0xf0]  ;;  %v9766_v43 = vld [vmem:[#allocation2 + $0x374] sm:$0xf0] }
 0x350   : > { %3618 = vmatpush.bf16.msra.mxu0 %v8161_v52  ;;  %3629 = vmatpush.bf16.msra.mxu1 %v8513_v23  ;;  %v8514_v26 = vld [vmem:[#allocation2 + $0x4f0] sm:$0xf0]  ;;  %v7941_v11 = vor.u32 %v9665_v24, %v7938_v63  ;;  %v8064_v5 = vld [vmem:[#allocation2 + $0x150] sm:$0xf]  ;;  %v9782_v23 = vld [vmem:[#allocation2 + $0x3f4] sm:$0xf0]  ;;  %v8329_v50 = vor.u32 %v9766_v43, %v8328_v28 }
 0x351   : > { %v9857_v1 = vld [vmem:[#allocation2 + $0x654] sm:$0xf]  ;;  %v8065_v6 = vor.u32 %v9701_v47, %v8064_v5  ;;  %v9693_v13 = vld [vmem:[#allocation2 + $0x12c] sm:$0xf0]  ;;  %v8393_v54 = vor.u32 %v9782_v23, %v8392_v8  ;;  %v9758_v49 = vld [vmem:[#allocation2 + $0x334] sm:$0xf0] }
 0x352   : > { %v8706_v31 = vld [vmem:[#allocation2 + $0x670] sm:$0xf0]  ;;  %v8032_v48 = vld [vmem:[#allocation2 + $0x110] sm:$0xf]  ;;  %v8296_v34 = vld [vmem:[#allocation2 + $0x318] sm:$0xf] }
 0x353   : > { %3655 = vmatpush.bf16.msrb.mxu2 %v8069_v18  ;;  %3619 = vmatmul.bf16.vlgmr.msra.gmra.mxu0 %v11764_v17  ;;  %v9809_v3 = vld [vmem:[#allocation2 + $0x4d4] sm:$0xf]  ;;  %v8709_v29 = vor.u32 %v9857_v1, %v8706_v31  ;;  %v8033_v42 = vor.u32 %v9693_v13, %v8032_v48  ;;  %v9685_v22 = vld [vmem:[#allocation2 + $0xec] sm:$0xf0]  ;;  %v8712_v1 = vld [vmem:[#allocation2 + $0x658] sm:$0xf] }
 0x354   : > { %3681 = vmatpush.bf16.msrb.mxu0 %v8645_v2  ;;  %3630 = vmatpush.bf16.msra.mxu1 %v8481_v38  ;;  %v7906_v18 = vld [vmem:[#allocation2 + $0x30] sm:$0xf0]  ;;  %v8517_v25 = vor.u32 %v9809_v3, %v8514_v26  ;;  %v8000_v16 = vld [vmem:[#allocation2 + $0xd0] sm:$0xf]  ;;  %v8297_v26 = vor.u32 %v9758_v49, %v8296_v34  ;;  %v9862_v31 = vld [vmem:[#allocation2 + $0x674] sm:$0xf0] }
 0x355   : > { %3547 = vmatpush.bf16.msrb.mxu3 %v7933_v45  ;;  %v9657_v52 = vld [vmem:[#allocation2 + $0x14] sm:$0xf]  ;;  %v8360_v45 = vld [vmem:[#allocation2 + $0x398] sm:$0xf]  ;;  %v7968_v61 = vld [vmem:[#allocation2 + $0x90] sm:$0xf] }
 0x356   : > { %v8482_v32 = vld [vmem:[#allocation2 + $0x4b0] sm:$0xf0]  ;;  %v7909_v33 = vor.u32 %v9657_v52, %v7906_v18  ;;  %v9669_v24 = vld [vmem:[#allocation2 + $0x6c] sm:$0xf0]  ;;  %v8040_v47 = vld [vmem:[#allocation2 + $0x118] sm:$0xf] }
 0x357   : > { %3656 = vmatpush.bf16.msrb.mxu2 %v8037_v57  ;;  %v9849_v0 = vld [vmem:[#allocation2 + $0x614] sm:$0xf]  ;;  %v9750_v3 = vld [vmem:[#allocation2 + $0x2f4] sm:$0xf0]  ;;  %v7904_v52 = vld [vmem:[#allocation2 + $0x10] sm:$0xf] }
 0x358   : > { %3682 = vmatpush.bf16.msrb.mxu0 %v8613_v46  ;;  %3631 = vmatpush.bf16.msra.mxu1 %v8449_v20  ;;  %v8674_v2 = vld [vmem:[#allocation2 + $0x630] sm:$0xf0]  ;;  %v9774_v46 = vld [vmem:[#allocation2 + $0x3b4] sm:$0xf0]  ;;  %v9661_v23 = vld [vmem:[#allocation2 + $0x2c] sm:$0xf0] }
 0x359   : > { %3548 = vmatpush.bf16.msrb.mxu3 %v7901_v12  ;;  %v9801_v57 = vld [vmem:[#allocation2 + $0x494] sm:$0xf]  ;;  %v8677_v27 = vor.u32 %v9849_v0, %v8674_v2  ;;  %v8361_v20 = vor.u32 %v9774_v46, %v8360_v45  ;;  %v8104_v12 = vld [vmem:[#allocation2 + $0x198] sm:$0xf]  ;;  %v8138_v13 = vld [vmem:[#allocation2 + $0x1f8] sm:$0xf0] }
 0x35a   : > { %v8485_v38 = vor.u32 %v9801_v57, %v8482_v32  ;;  %v8450_v59 = vld [vmem:[#allocation2 + $0x470] sm:$0xf0]  ;;  %v8264_v5 = vld [vmem:[#allocation2 + $0x2d8] sm:$0xf]  ;;  %v9714_v45 = vld [vmem:[#allocation2 + $0x1dc] sm:$0xf] }
 0x35b   : > { %3657 = vmatpush.bf16.msrb.mxu2 %v8005_v15  ;;  %v9710_v15 = vld [vmem:[#allocation2 + $0x1b4] sm:$0xf0]  ;;  %v9793_v9 = vld [vmem:[#allocation2 + $0x454] sm:$0xf]  ;;  %v8265_v32 = vor.u32 %v9750_v3, %v8264_v5 }
 0x35c   : > { %3683 = vmatpush.bf16.msrb.mxu0 %v8581_v4  ;;  %3549 = vmatmul.bf16.vlgmr.msrb.gmra.mxu3 %v11739_v7  ;;  %v8453_v56 = vor.u32 %v9793_v9, %v8450_v59  ;;  %v8001_v4 = vor.u32 %v9685_v22, %v8000_v16  ;;  %v8105_v35 = vor.u32 %v9710_v15, %v8104_v12  ;;  %v8418_v41 = vld [vmem:[#allocation2 + $0x430] sm:$0xf0]  ;;  %v8680_v0 = vld [vmem:[#allocation2 + $0x618] sm:$0xf]  ;;  %v8106_v15 = vld [vmem:[#allocation2 + $0x1b8] sm:$0xf0] }
 0x35d   : > { %3597 = vmatpush.bf16.msra.mxu3 %v8129_v30  ;;  %3632 = vmatpush.bf16.msra.mxu1 %v8417_v40  ;;  %v9677_v30 = vld [vmem:[#allocation2 + $0xac] sm:$0xf0]  ;;  %v9785_v51 = vld [vmem:[#allocation2 + $0x414] sm:$0xf]  ;;  %v8072_v40 = vld [vmem:[#allocation2 + $0x158] sm:$0xf] }
 0x35e   : > { %v8421_v14 = vor.u32 %v9785_v51, %v8418_v41  ;;  %v7969_v63 = vor.u32 %v9677_v30, %v7968_v61  ;;  %v9854_v2 = vld [vmem:[#allocation2 + $0x634] sm:$0xf0]  ;;  %v9777_v48 = vld [vmem:[#allocation2 + $0x3d4] sm:$0xf]  ;;  %v9706_v12 = vld [vmem:[#allocation2 + $0x19c] sm:$0xf] }
 0x35f   : > { %3658 = vmatpush.bf16.msrb.mxu2 %v7973_v58  ;;  %v9870_v58 = vld [vmem:[#allocation2 + $0x6b4] sm:$0xf0]  ;;  %v8354_v22 = vld [vmem:[#allocation2 + $0x3b0] sm:$0xf0]  ;;  %v8074_v51 = vld [vmem:[#allocation2 + $0x178] sm:$0xf0] }
 0x360   : > { %3684 = vmatpush.bf16.msrb.mxu0 %v8549_v53  ;;  %3633 = vmatmul.bf16.vlgmr.msra.gmra.mxu1 %v11788_v39  ;;  %v8073_v53 = vor.u32 %v9702_v21, %v8072_v40  ;;  %v8008_v8 = vld [vmem:[#allocation2 + $0xd8] sm:$0xf]  ;;  %v9761_v9 = vld [vmem:[#allocation2 + $0x354] sm:$0xf]  ;;  %v8650_v61 = vld [vmem:[#allocation2 + $0x5f8] sm:$0xf0] }
 0x361   : > { %3700 = vmatpush.bf16.msrb.mxu1 %v8741_v62  ;;  %3598 = vmatpush.bf16.msra.mxu3 %v8097_v36  ;;  %v8745_v62 = vor.u32 %v9870_v58, %v8744_v19  ;;  %v9694_v36 = vld [vmem:[#allocation2 + $0x134] sm:$0xf0]  ;;  %v9698_v40 = vld [vmem:[#allocation2 + $0x15c] sm:$0xf]  ;;  %v8290_v34 = vld [vmem:[#allocation2 + $0x330] sm:$0xf0] }
 0x362   : > { %v8232_v46 = vld [vmem:[#allocation2 + $0x298] sm:$0xf] }
 0x363   : > { %3659 = vmatpush.bf16.msrb.mxu2 %v7941_v11  ;;  %v7936_v11 = vld [vmem:[#allocation2 + $0x50] sm:$0xf]  ;;  %v8233_v59 = vor.u32 %v9742_v55, %v8232_v46  ;;  %v9734_v28 = vld [vmem:[#allocation2 + $0x274] sm:$0xf0] }
 0x364   : > { %3685 = vmatpush.bf16.msrb.mxu0 %v8517_v25  ;;  %v7937_v18 = vor.u32 %v9669_v24, %v7936_v11  ;;  %v8041_v25 = vor.u32 %v9694_v36, %v8040_v47  ;;  %v7944_v30 = vld [vmem:[#allocation2 + $0x58] sm:$0xf]  ;;  %v8394_v24 = vld [vmem:[#allocation2 + $0x3f8] sm:$0xf0]  ;;  %v3382_v11 = vpop.f32.mrf.mxu0 }
 0x365   : > { %3701 = vmatpush.bf16.msrb.mxu1 %v8709_v29  ;;  %3599 = vmatpush.bf16.msra.mxu3 %v8065_v6  ;;  %v8713_v29 = vor.u32 %v9862_v31, %v8712_v1  ;;  %v9686_v6 = vld [vmem:[#allocation2 + $0xf4] sm:$0xf0]  ;;  %v9753_v1 = vld [vmem:[#allocation2 + $0x314] sm:$0xf]  ;;  %v8042_v31 = vld [vmem:[#allocation2 + $0x138] sm:$0xf0] }
 0x366   : > { %v8009_v57 = vor.u32 %v9686_v6, %v8008_v8  ;;  %v9726_v19 = vld [vmem:[#allocation2 + $0x234] sm:$0xf0]  ;;  %v8362_v8 = vld [vmem:[#allocation2 + $0x3b8] sm:$0xf0] }
 0x367   : > { %3660 = vmatpush.bf16.msrb.mxu2 %v7909_v33  ;;  %v8386_v33 = vld [vmem:[#allocation2 + $0x3f0] sm:$0xf0]  ;;  %v8168_v49 = vld [vmem:[#allocation2 + $0x218] sm:$0xf] }
 0x368   : > { %3686 = vmatpush.bf16.msrb.mxu0 %v8485_v38  ;;  %v9678_v38 = vld [vmem:[#allocation2 + $0xb4] sm:$0xf0]  ;;  %v8389_v44 = vor.u32 %v9777_v48, %v8386_v33  ;;  %v9770_v33 = vld [vmem:[#allocation2 + $0x39c] sm:$0xf] }
 0x369   : > { %3702 = vmatpush.bf16.msrb.mxu1 %v8677_v27  ;;  %3600 = vmatpush.bf16.msra.mxu3 %v8033_v42  ;;  %v8681_v27 = vor.u32 %v9854_v2, %v8680_v0  ;;  %v7976_v42 = vld [vmem:[#allocation2 + $0x98] sm:$0xf]  ;;  %v8258_v2 = vld [vmem:[#allocation2 + $0x2f0] sm:$0xf0] }
 0x36a   : > { %3661 = vmatmul.bf16.vlgmr.msrb.gmra.mxu2 %v11739_v7  ;;  %v7977_v43 = vor.u32 %v9678_v38, %v7976_v42  ;;  %v8586_v38 = vld [vmem:[#allocation2 + $0x578] sm:$0xf0] }
 0x36b   : > { %3723 = vmatpush.bf16.msra.mxu2 %v8393_v54  ;;  %v7905_v54 = vor.u32 %v9661_v23, %v7904_v52  ;;  %v8293_v52 = vor.u32 %v9753_v1, %v8290_v34  ;;  %v9690_v23 = vld [vmem:[#allocation2 + $0x11c] sm:$0xf]  ;;  %v8162_v34 = vld [vmem:[#allocation2 + $0x230] sm:$0xf0]  ;;  %v8648_v1 = vld [vmem:[#allocation2 + $0x5d8] sm:$0xf] }
 0x36c   : > { %3687 = vmatpush.bf16.msrb.mxu0 %v8453_v56  ;;  %v8322_v56 = vld [vmem:[#allocation2 + $0x370] sm:$0xf0]  ;;  %v8045_v0 = vor.u32 %v9690_v23, %v8042_v31  ;;  %v9682_v42 = vld [vmem:[#allocation2 + $0xdc] sm:$0xf]  ;;  %v9846_v31 = vld [vmem:[#allocation2 + $0x5f4] sm:$0xf0] }
 0x36d   : > { %3709 = vmatpush.bf16.msra.mxu1 %v8137_v60  ;;  %3601 = vmatpush.bf16.msra.mxu3 %v8001_v4  ;;  %v8141_v60 = vor.u32 %v9714_v45, %v8138_v13  ;;  %v8200_v4 = vld [vmem:[#allocation2 + $0x258] sm:$0xf]  ;;  %v8325_v21 = vor.u32 %v9761_v9, %v8322_v56  ;;  %v8649_v23 = vor.u32 %v9846_v31, %v8648_v1  ;;  %v8746_v1 = vld [vmem:[#allocation2 + $0x6b8] sm:$0xf0] }
 0x36e   : > { %v8201_v41 = vor.u32 %v9734_v28, %v8200_v4  ;;  %v8424_v31 = vld [vmem:[#allocation2 + $0x418] sm:$0xf] }
 0x36f   : > { %3724 = vmatpush.bf16.msra.mxu2 %v8361_v20  ;;  %v9769_v20 = vld [vmem:[#allocation2 + $0x394] sm:$0xf]  ;;  %v12034_v47 = vpop.permute.xlu0 %2262 }
 0x370   : > { %3688 = vmatpush.bf16.msrb.mxu0 %v8421_v14  ;;  %8755 = vmatmul.msk.bf16.vlgmr.msrb.gmra.mxu1 %vm14828_vm10, %v11822_v10  ;;  %v8357_v16 = vor.u32 %v9769_v20, %v8354_v22  ;;  %v9842_v14 = vld [vmem:[#allocation2 + $0x5dc] sm:$0xf]  ;;  %v3383_v5 = vadd.f32 %v3382_v11, %v12034_v47  ;;  %v9721_v11 = vld [vmem:[#allocation2 + $0x214] sm:$0xf] }
 0x371   : > { %3710 = vmatpush.bf16.msra.mxu1 %v8105_v35  ;;  %3602 = vmatpush.bf16.msra.mxu3 %v7969_v63  ;;  %v9670_v35 = vld [vmem:[#allocation2 + $0x74] sm:$0xf0]  ;;  %v8653_v36 = vor.u32 %v9842_v14, %v8650_v61  ;;  %v9826_v22 = vld [vmem:[#allocation2 + $0x55c] sm:$0xf] }
 0x372   : > { %v7945_v58 = vor.u32 %v9670_v35, %v7944_v30  ;;  %v9662_v63 = vld [vmem:[#allocation2 + $0x34] sm:$0xf0]  ;;  %v8589_v28 = vor.u32 %v9826_v22, %v8586_v38  ;;  %v7978_v20 = vld [vmem:[#allocation2 + $0xb8] sm:$0xf0]  ;;  %v8194_v30 = vld [vmem:[#allocation2 + $0x270] sm:$0xf0] }
 0x373   : > { %3725 = vmatpush.bf16.msra.mxu2 %v8329_v50  ;;  %3689 = vmatmul.bf16.vlgmr.msrb.gmra.mxu0 %v11788_v39  ;;  %v8109_v50 = vor.u32 %v9706_v12, %v8106_v15  ;;  %v8226_v15 = vld [vmem:[#allocation2 + $0x2b0] sm:$0xf0]  ;;  %v8554_v12 = vld [vmem:[#allocation2 + $0x538] sm:$0xf0] }
 0x374   : > { %3756 = vmatpush.bf16.msra.mxu0 %v8745_v62  ;;  %v8169_v62 = vor.u32 %v9726_v19, %v8168_v49  ;;  %v7946_v19 = vld [vmem:[#allocation2 + $0x78] sm:$0xf0] }
 0x375   : > { %3711 = vmatpush.bf16.msra.mxu1 %v8073_v53  ;;  %3603 = vmatpush.bf16.msra.mxu3 %v7937_v18  ;;  %v8077_v53 = vor.u32 %v9698_v40, %v8074_v51  ;;  %v9778_v18 = vld [vmem:[#allocation2 + $0x3dc] sm:$0xf]  ;;  %v3410_v48 = vpop.f32.mrf.mxu2 }
 0x376   : > { %v8397_v6 = vor.u32 %v9778_v18, %v8394_v24  ;;  %v9754_v14 = vld [vmem:[#allocation2 + $0x31c] sm:$0xf] }
 0x377   : > { %3726 = vmatpush.bf16.msra.mxu2 %v8297_v26  ;;  %v7912_v26 = vld [vmem:[#allocation2 + $0x18] sm:$0xf]  ;;  %v8522_v61 = vld [vmem:[#allocation2 + $0x4f8] sm:$0xf0] }
 0x378   : > { %3757 = vmatpush.bf16.msra.mxu0 %v8713_v29  ;;  %v7913_v3 = vor.u32 %v9662_v63, %v7912_v26  ;;  %v8618_v29 = vld [vmem:[#allocation2 + $0x5b8] sm:$0xf0] }
 0x379   : > { %3712 = vmatpush.bf16.msra.mxu1 %v8041_v25  ;;  %3604 = vmatpush.bf16.msra.mxu3 %v7905_v54  ;;  %v9834_v25 = vld [vmem:[#allocation2 + $0x59c] sm:$0xf]  ;;  %v9745_v54 = vld [vmem:[#allocation2 + $0x2d4] sm:$0xf] }
 0x37a   : > { %v8621_v55 = vor.u32 %v9834_v25, %v8618_v29  ;;  %v8261_v46 = vor.u32 %v9745_v54, %v8258_v2  ;;  %v9666_v49 = vld [vmem:[#allocation2 + $0x5c] sm:$0xf]  ;;  %v8165_v25 = vor.u32 %v9721_v11, %v8162_v34  ;;  %v8616_v2 = vld [vmem:[#allocation2 + $0x598] sm:$0xf] }
 0x37b   : > { %3727 = vmatpush.bf16.msra.mxu2 %v8265_v32  ;;  %v3396_v32 = vpop.f32.mrf.mxu1  ;;  %v8266_v24 = vld [vmem:[#allocation2 + $0x2f8] sm:$0xf0] }
 0x37c   : > { %3758 = vmatpush.bf16.msra.mxu0 %v8681_v27  ;;  %3605 = vmatmul.bf16.vlgmr.msra.gmra.mxu3 %v11739_v7  ;;  %v3397_v13 = vadd.f32 %v3396_v32, %v3383_v5  ;;  %v9762_v27 = vld [vmem:[#allocation2 + $0x35c] sm:$0xf] }
 0x37d   : > { %3713 = vmatpush.bf16.msra.mxu1 %v8009_v57  ;;  %3667 = vmatpush.bf16.msrb.mxu3 %v8389_v44  ;;  %v8010_v57 = vld [vmem:[#allocation2 + $0xf8] sm:$0xf0]  ;;  %v3424_v56 = vpop.f32.mrf.mxu3 }
 0x37e   : > { %v8330_v44 = vld [vmem:[#allocation2 + $0x378] sm:$0xf0]  ;;  %v3411_v45 = vadd.f32 %v3410_v48, %v3397_v13 }
 0x37f   : > { %3728 = vmatpush.bf16.msra.mxu2 %v8233_v59  ;;  %v8013_v59 = vor.u32 %v9682_v42, %v8010_v57  ;;  %v8333_v9 = vor.u32 %v9762_v27, %v8330_v44  ;;  %v7914_v26 = vld [vmem:[#allocation2 + $0x38] sm:$0xf0]  ;;  %v9830_v27 = vld [vmem:[#allocation2 + $0x574] sm:$0xf0] }
 0x380   : > { %3765 = vmatpush.bf16.msrb.mxu0 %v8141_v60  ;;  %v8365_v60 = vor.u32 %v9770_v33, %v8362_v8  ;;  %v12041_v4 = vadd.f32 %v3424_v56, %v3411_v45  ;;  %v8490_v18 = vld [vmem:[#allocation2 + $0x4b8] sm:$0xf0]  ;;  %v9838_v33 = vld [vmem:[#allocation2 + $0x5b4] sm:$0xf0] }
 0x381   : > { %3714 = vmatpush.bf16.msra.mxu1 %v7977_v43  ;;  %3668 = vmatpush.bf16.msrb.mxu3 %v8357_v16  ;;  %v9674_v43 = vld [vmem:[#allocation2 + $0x9c] sm:$0xf]  ;;  %v9737_v16 = vld [vmem:[#allocation2 + $0x294] sm:$0xf]  ;;  %v8617_v57 = vor.u32 %v9838_v33, %v8616_v2  ;;  %v8584_v42 = vld [vmem:[#allocation2 + $0x558] sm:$0xf] }
 0x382   : > { %v8229_v35 = vor.u32 %v9737_v16, %v8226_v15  ;;  %v9658_v29 = vld [vmem:[#allocation2 + $0x1c] sm:$0xf]  ;;  %v8552_v56 = vld [vmem:[#allocation2 + $0x518] sm:$0xf] }
 0x383   : > { %3729 = vmatpush.bf16.msra.mxu2 %v8201_v41  ;;  %8756 = vmatmul.msk.bf16.vlgmr.msra.gmra.mxu0 %vm14828_vm10, %v11822_v10  ;;  %v9818_v41 = vld [vmem:[#allocation2 + $0x51c] sm:$0xf]  ;;  %v12049_v16 = vpop.f32.mrf.mxu1 }
 0x384   : > { %3766 = vmatpush.bf16.msrb.mxu0 %v8109_v50  ;;  %v7981_v50 = vor.u32 %v9674_v43, %v7978_v20  ;;  %v8557_v51 = vor.u32 %v9818_v41, %v8554_v12  ;;  %v8234_v32 = vld [vmem:[#allocation2 + $0x2b8] sm:$0xf0]  ;;  %v9822_v43 = vld [vmem:[#allocation2 + $0x534] sm:$0xf0]  ;;  %v12047_v20 = vpop.f32.mrf.mxu0 }
 0x385   : > { %3715 = vmatpush.bf16.msra.mxu1 %v7945_v58  ;;  %3669 = vmatpush.bf16.msrb.mxu3 %v8325_v21  ;;  %v8298_v21 = vld [vmem:[#allocation2 + $0x338] sm:$0xf0]  ;;  %v9729_v58 = vld [vmem:[#allocation2 + $0x254] sm:$0xf]  ;;  %v8553_v12 = vor.u32 %v9822_v43, %v8552_v56  ;;  %v8520_v41 = vld [vmem:[#allocation2 + $0x4d8] sm:$0xf] }
 0x386   : > { %v8197_v40 = vor.u32 %v9729_v58, %v8194_v30  ;;  %v8301_v63 = vor.u32 %v9754_v14, %v8298_v21  ;;  %v9738_v8 = vld [vmem:[#allocation2 + $0x29c] sm:$0xf]  ;;  %v9806_v21 = vld [vmem:[#allocation2 + $0x4b4] sm:$0xf0] }
 0x387   : > { %3730 = vmatpush.bf16.msra.mxu2 %v8169_v62  ;;  %v9810_v62 = vld [vmem:[#allocation2 + $0x4dc] sm:$0xf]  ;;  %v8237_v54 = vor.u32 %v9738_v8, %v8234_v32  ;;  %v8488_v14 = vld [vmem:[#allocation2 + $0x498] sm:$0xf] }
 0x388   : > { %3767 = vmatpush.bf16.msrb.mxu0 %v8077_v53  ;;  %v7949_v53 = vor.u32 %v9666_v49, %v7946_v19  ;;  %v9794_v13 = vld [vmem:[#allocation2 + $0x45c] sm:$0xf] }
 0x389   : > { %3716 = vmatpush.bf16.msra.mxu1 %v7913_v3  ;;  %3670 = vmatpush.bf16.msrb.mxu3 %v8293_v52  ;;  %v9746_v3 = vld [vmem:[#allocation2 + $0x2dc] sm:$0xf]  ;;  %v7917_v52 = vor.u32 %v9658_v29, %v7914_v26  ;;  %v9790_v26 = vld [vmem:[#allocation2 + $0x434] sm:$0xf0] }
 0x38a   : > { %3731 = vmatmul.bf16.vlgmr.msra.gmra.mxu2 %v11764_v17  ;;  %v8269_v5 = vor.u32 %v9746_v3, %v8266_v24  ;;  %v8202_v48 = vld [vmem:[#allocation2 + $0x278] sm:$0xf0]  ;;  %v8425_v11 = vor.u32 %v9790_v26, %v8424_v31 }
 0x38b   : > { %3793 = vmatpush.bf16.msrb.mxu2 %v8653_v36  ;;  %v8525_v36 = vor.u32 %v9810_v62, %v8522_v61  ;;  %v9730_v44 = vld [vmem:[#allocation2 + $0x25c] sm:$0xf]  ;;  %v8489_v61 = vor.u32 %v9806_v21, %v8488_v14 }
 0x38c   : > { %3768 = vmatpush.bf16.msrb.mxu0 %v8045_v0  ;;  %3717 = vmatmul.bf16.vlgmr.msra.gmra.mxu1 %v11739_v7  ;;  %v8426_v45 = vld [vmem:[#allocation2 + $0x438] sm:$0xf0]  ;;  %v3452_v19 = vpop.f32.mrf.mxu0 }
 0x38d   : > { %3779 = vmatpush.bf16.msrb.mxu1 %v8397_v6  ;;  %3671 = vmatpush.bf16.msrb.mxu3 %v8261_v46  ;;  %v9802_v6 = vld [vmem:[#allocation2 + $0x49c] sm:$0xf]  ;;  %v8205_v46 = vor.u32 %v9730_v44, %v8202_v48 }
 0x38e   : > { %v8493_v0 = vor.u32 %v9802_v6, %v8490_v18  ;;  %v9786_v22 = vld [vmem:[#allocation2 + $0x41c] sm:$0xf] }
 0x38f   : > { %3794 = vmatpush.bf16.msrb.mxu2 %v8621_v55  ;;  %v8458_v55 = vld [vmem:[#allocation2 + $0x478] sm:$0xf0] }
 0x390   : > { %3769 = vmatpush.bf16.msrb.mxu0 %v8013_v59  ;;  %v8461_v38 = vor.u32 %v9794_v13, %v8458_v55  ;;  %v12045_v59 = vpop.f32.mrf.mxu3  ;;  %v8170_v15 = vld [vmem:[#allocation2 + $0x238] sm:$0xf0] }
 0x391   : > { %3780 = vmatpush.bf16.msrb.mxu1 %v8365_v60  ;;  %3672 = vmatpush.bf16.msrb.mxu3 %v8229_v35  ;;  %v8585_v60 = vor.u32 %v9830_v27, %v8584_v42  ;;  %v9814_v35 = vld [vmem:[#allocation2 + $0x4f4] sm:$0xf0]  ;;  %v9858_v18 = vld [vmem:[#allocation2 + $0x65c] sm:$0xf] }
 0x392   : > { %v8521_v30 = vor.u32 %v9814_v35, %v8520_v41 }
 0x393   : > { %3795 = vmatpush.bf16.msrb.mxu2 %v8589_v28  ;;  %v8429_v28 = vor.u32 %v9786_v22, %v8426_v45 }
 0x394   : > { %3770 = vmatpush.bf16.msrb.mxu0 %v7981_v50  ;;  %v12051_v50 = vpop.f32.mrf.mxu2 }
 0x395   : > { %3781 = vmatpush.bf16.msrb.mxu1 %v8333_v9  ;;  %3673 = vmatpush.bf16.msrb.mxu3 %v8197_v40  ;;  %v9722_v9 = vld [vmem:[#allocation2 + $0x21c] sm:$0xf]  ;;  %v3466_v40 = vpop.f32.mrf.mxu1 }
 0x397   : > { %3796 = vmatpush.bf16.msrb.mxu2 %v8557_v51 }
 0x398   : > { %3771 = vmatpush.bf16.msrb.mxu0 %v7949_v53  ;;  %v9798_v53 = vld [vmem:[#allocation2 + $0x474] sm:$0xf0] }
 0x399   : > { %3782 = vmatpush.bf16.msrb.mxu1 %v8301_v63  ;;  %3674 = vmatpush.bf16.msrb.mxu3 %v8165_v25  ;;  %v8456_v63 = vld [vmem:[#allocation2 + $0x458] sm:$0xf]  ;;  %v8714_v25 = vld [vmem:[#allocation2 + $0x678] sm:$0xf0] }
 0x39a   : > { %v8457_v24 = vor.u32 %v9798_v53, %v8456_v63  ;;  %v8717_v29 = vor.u32 %v9858_v18, %v8714_v25 }
 0x39b   : > { %3797 = vmatpush.bf16.msrb.mxu2 %v8525_v36 }
 0x39c   : > { %3772 = vmatpush.bf16.msrb.mxu0 %v7917_v52  ;;  %3675 = vmatmul.bf16.vlgmr.msrb.gmra.mxu3 %v11764_v17  ;;  %v3480_v62 = vpop.f32.mrf.mxu2  ;;  %v8682_v52 = vld [vmem:[#allocation2 + $0x638] sm:$0xf0] }
 0x39d   : > { %3783 = vmatpush.bf16.msrb.mxu1 %v8269_v5  ;;  %3737 = vmatpush.bf16.msra.mxu3 %v8649_v23  ;;  %v3438_v51 = vpop.f32.mrf.mxu3  ;;  %v9850_v5 = vld [vmem:[#allocation2 + $0x61c] sm:$0xf]  ;;  %v3468_v2 = vpop.f32.mrf.mxu1 }
 0x39e   : > { %v3439_v58 = vadd.f32 %v3438_v51, %v12034_v47  ;;  %v8685_v23 = vor.u32 %v9850_v5, %v8682_v52 }
 0x39f   : > { %3798 = vmatpush.bf16.msrb.mxu2 %v8493_v0  ;;  %3773 = vmatmul.bf16.vlgmr.msrb.gmra.mxu0 %v11739_v7  ;;  %v8173_v7 = vor.u32 %v9722_v9, %v8170_v15  ;;  %v3454_v0 = vpop.f32.mrf.mxu0 }
 0x3a0   : > { %v3453_v49 = vadd.f32 %v3452_v19, %v3439_v58 }
 0x3a1   : > { %3784 = vmatpush.bf16.msrb.mxu1 %v8237_v54  ;;  %3738 = vmatpush.bf16.msra.mxu3 %v8617_v57 }
 0x3a2   : > { %v3467_v34 = vadd.f32 %v3466_v40, %v3453_v49 }
 0x3a3   : > { %3799 = vmatpush.bf16.msrb.mxu2 %v8461_v38 }
 0x3a4   : > { %v12056_v36 = vadd.f32 %v3480_v62, %v3467_v34  ;;  %v12059_v32 = vpop.f32.mrf.mxu2  ;;  %v12088_v62 = vpop.permute.xlu1 %2267 }
 0x3a5   : > { %3785 = vmatpush.bf16.msrb.mxu1 %v8205_v46  ;;  %3739 = vmatpush.bf16.msra.mxu3 %v8585_v60  ;;  %v3440_v6 = vpop.f32.mrf.mxu3  ;;  %v3536_v54 = vpop.f32.mrf.mxu1  ;;  %v3385_v34 = vadd.f32 %v12047_v20, %v12088_v62 }
 0x3a6   : > { %v3441_v26 = vadd.f32 %v3440_v6, %v12088_v62 }
 0x3a7   : > { %3800 = vmatpush.bf16.msrb.mxu2 %v8429_v28  ;;  %v3522_v55 = vpop.f32.mrf.mxu0  ;;  %v3399_v18 = vadd.f32 %v12049_v16, %v3385_v34 }
 0x3a8   : > { %v3455_v25 = vadd.f32 %v3454_v0, %v3441_v26 }
 0x3a9   : > { %3786 = vmatpush.bf16.msrb.mxu1 %v8173_v7  ;;  %3740 = vmatpush.bf16.msra.mxu3 %v8553_v12 }
 0x3aa   : > { %3801 = vmatmul.bf16.vlgmr.msrb.gmra.mxu2 %v11788_v39 }
 0x3ac   : > { %3787 = vmatmul.bf16.vlgmr.msrb.gmra.mxu1 %v11764_v17  ;;  %v9866_v17 = vld [vmem:[#allocation2 + $0x69c] sm:$0xf]  ;;  %v3508_v8 = vpop.f32.mrf.mxu2 }
 0x3ad   : > { %3741 = vmatpush.bf16.msra.mxu3 %v8521_v30  ;;  %v8749_v3 = vor.u32 %v9866_v17, %v8746_v1  ;;  %v12068_v27 = vpop.f32.mrf.mxu1 }
 0x3af   : > { %v12066_v38 = vpop.f32.mrf.mxu0 }
 0x3b1   : > { %3742 = vmatpush.bf16.msra.mxu3 %v8489_v61 }
 0x3b4   : > { %v3510_v45 = vpop.f32.mrf.mxu2 }
 0x3b5   : > { %3743 = vmatpush.bf16.msra.mxu3 %v8457_v24 }
 0x3b7   : > { %v12070_v44 = vpop.f32.mrf.mxu0 }
 0x3b9   : > { %3744 = vmatpush.bf16.msra.mxu3 %v8425_v11  ;;  %v12099_v11 = vld [vmem:[%s14982_s9] sm:$0xff]  ;;  %s15027_s9 = smov 28  }
 0x3ba   : > { %v12104_v20 = vperm.slane %v12099_v11, 0 }
 0x3bc   : > { %3745 = vmatmul.bf16.vlgmr.msra.gmra.mxu3 %v11788_v39  ;;  %14983 = vst [vmem:[#allocation21_spill] sm:$0xff] %v12104_v20 }
 0x3bd   : > { %3812 = vmatpush.bf16.msrb.mxu3 %v8749_v3  ;;  %v3494_v33 = vpop.f32.mrf.mxu3 }
 0x3be   : > { %v3495_v13 = vadd.f32 %v3494_v33, %v12034_v47  ;;  %v3564_v46 = vpop.f32.mrf.mxu1  ;;  %v3413_v33 = vadd.f32 %v12051_v50, %v3399_v18 }
 0x3bf   : > { %v12072_v60 = vpop.f32.mrf.mxu0 }
 0x3c0   : > { %v3509_v39 = vadd.f32 %v3508_v8, %v3495_v13  ;;  %v12110_v8 = vperm.slane %v12099_v11, 1 }
 0x3c1   : > { %3813 = vmatpush.bf16.msrb.mxu3 %v8717_v29  ;;  %v3578_v42 = vpop.f32.mrf.mxu2 }
 0x3c2   : > { %v3523_v57 = vadd.f32 %v3522_v55, %v3509_v39  ;;  %14984 = vst [vmem:[#allocation22_spill] sm:$0xff] %v12110_v8  ;;  %v3469_v55 = vadd.f32 %v3468_v2, %v3455_v25  ;;  %v12116_v39 = vmul.f32 %v12104_v20, %v12041_v4  ;;  %v12125_v2 = vmul.f32 %v12110_v8, %v12056_v36 }
 0x3c4   : > { %v12064_v48 = vadd.f32 %v3536_v54, %v3523_v57  ;;  %v12119_v54 = vperm.slane %v12099_v11, 2  ;;  %v3483_v4 = vadd.f32 %v12059_v32, %v3469_v55  ;;  %v12141_v32 = vperm.slane %v12099_v11, 4 }
 0x3c5   : > { %3814 = vmatpush.bf16.msrb.mxu3 %v8685_v23  ;;  %v3496_v22 = vpop.f32.mrf.mxu3 }
 0x3c6   : > { %v3566_v15 = vpop.f32.mrf.mxu1  ;;  %v3497_v23 = vadd.f32 %v3496_v22, %v12088_v62  ;;  %14985 = vst [vmem:[#allocation23_spill] sm:$0xff] %v12119_v54 }
 0x3c7   : > { %14987 = vst [vmem:[#allocation25_spill] sm:$0xff] %v12141_v32 }
 0x3c8   : > { %v3511_v50 = vadd.f32 %v3510_v45, %v3497_v23  ;;  %v3875_v45 = vmul.f32 %v12116_v39, %v12116_v39 }
 0x3c9   : > { %v12074_v28 = vpop.f32.mrf.mxu2 }
 0x3cc   : > { %8757 = vmatmul.msk.bf16.vlgmr.msrb.gmra.mxu3 %vm14828_vm10, %v11822_v10  ;;  %vm3860_vm10 = vcmask 850944  }
 0x3d0   : > { %v3620_v10 = vpop.f32.mrf.mxu0 }
 0x3d1   : > { %v3648_v7 = vpop.f32.mrf.mxu2 }
 0x3d8   : > { %v3622_v56 = vpop.f32.mrf.mxu0 }
 0x3d9   : > { %v12078_v30 = vpop.f32.mrf.mxu2 }
 0x3dd   : > { %v3634_v9 = vpop.f32.mrf.mxu1 }
 0x3df   : > { %v3550_v43 = vpop.f32.mrf.mxu3 }
 0x3e0   : > { %v3551_v17 = vadd.f32 %v3550_v43, %v12034_v47 }
 0x3e2   : > { %v3565_v29 = vadd.f32 %v3564_v46, %v3551_v17 }
 0x3e4   : > { %v3579_v16 = vadd.f32 %v3578_v42, %v3565_v29 }
 0x3e5   : > { %v12076_v35 = vpop.f32.mrf.mxu1 }
 0x3e7   : > { %v3552_v12 = vpop.f32.mrf.mxu3 }
 0x3e8   : > { %v3553_v0 = vadd.f32 %v3552_v12, %v12088_v62 }
 0x3ed   : > { %v12080_v51 = vpop.f32.mrf.mxu1  ;;  %v3662_v19 = vpop.f32.mrf.mxu2 }
 0x3ee   : > { %v3663_v5 = vadd.f32 %v3662_v19, %v12034_v47  ;;  %v3593_v19 = vadd.f32 %v12070_v44, %v3579_v16 }
 0x3f0   : > { %v3690_v41 = vpop.f32.mrf.mxu0 }
 0x3f5   : > { %v12084_v61 = vpop.f32.mrf.mxu1  ;;  %v3664_v40 = vpop.f32.mrf.mxu2 }
 0x3f6   : > { %v3665_v36 = vadd.f32 %v3664_v40, %v12088_v62  ;;  %v12151_v40 = vmul.f32 %v12110_v8, %v3483_v4 }
 0x3f8   : > { %v12082_v58 = vpop.f32.mrf.mxu0 }
 0x3ff   : > { %v3606_v21 = vpop.f32.mrf.mxu3 }
 0x400   : > { %v12086_v63 = vpop.f32.mrf.mxu0  ;;  %v3607_v3 = vadd.f32 %v3606_v21, %v12034_v47  ;;  %v3427_v21 = vadd.f32 %v12045_v59, %v3413_v33  ;;  %v12136_v59 = vmul.f32 %v12119_v54, %v12064_v48  ;;  %v3876_v48 = vmul.f32 %v12125_v2, %v12125_v2 }
 0x402   : > { %v3621_v6 = vadd.f32 %v3620_v10, %v3607_v3  ;;  %v12160_v3 = vperm.slane %v12099_v11, 5 }
 0x404   : > { %v3635_v10 = vadd.f32 %v3634_v9, %v3621_v6  ;;  %14988 = vst [vmem:[#allocation26_spill] sm:$0xff] %v12160_v3 }
 0x406   : > { %v3649_v34 = vadd.f32 %v3648_v7, %v3635_v10 }
 0x407   : > { %v3608_v14 = vpop.f32.mrf.mxu3 }
 0x408   : > { %v12094_v31 = vpop.f32.mrf.mxu0  ;;  %v3609_v43 = vadd.f32 %v3608_v14, %v12088_v62  ;;  %v3525_v14 = vadd.f32 %v12066_v38, %v3511_v50  ;;  %v12167_v6 = vmul.f32 %v12141_v32, %v3649_v34 }
 0x409   : > { %v3718_v53 = vpop.f32.mrf.mxu1 }
 0x40a   : > { %v3719_v13 = vadd.f32 %v3718_v53, %v12034_v47  ;;  %v3567_v53 = vadd.f32 %v3566_v15, %v3553_v0  ;;  %v3623_v44 = vadd.f32 %v3622_v56, %v3609_v43  ;;  %v3854_v15 = vadd.f32 %v12125_v2, %v12116_v39 }
 0x40b   : > { %v3539_v23 = vadd.f32 %v12068_v27, %v3525_v14  ;;  %v3879_v43 = vmul.f32 %v12167_v6, %v12167_v6 }
 0x40c   : > { %v3581_v7 = vadd.f32 %v12074_v28, %v3567_v53  ;;  %v3637_v28 = vadd.f32 %v12076_v35, %v3623_v44  ;;  %v3855_v27 = vadd.f32 %v3854_v15, %v12136_v59  ;;  %v12200_v53 = vperm.slane %v12099_v11, 7 }
 0x40d   : > { %v3732_v24 = vpop.f32.mrf.mxu2  ;;  %v12187_v10 = vmul.f32 %v12119_v54, %v3539_v23 }
 0x40e   : > { %v3733_v42 = vadd.f32 %v3732_v24, %v3719_v13  ;;  %v12144_v24 = vmul.f32 %v12104_v20, %v3427_v21  ;;  %v3595_v35 = vadd.f32 %v12072_v60, %v3581_v7  ;;  %v3651_v21 = vadd.f32 %v12078_v30, %v3637_v28  ;;  %14990 = vst [vmem:[#allocation28_spill] sm:$0xff] %v12200_v53 }
 0x40f   : > { %v3885_v44 = vmul.f32 %v12187_v10, %v12187_v10 }
 0x410   : > { %v3865_v13 = vadd.f32 %v12151_v40, %v12144_v24 }
 0x411   : > { %v3720_v52 = vpop.f32.mrf.mxu1 }
 0x412   : > { %v3721_v25 = vadd.f32 %v3720_v52, %v12088_v62  ;;  %v3866_v7 = vadd.f32 %v3865_v13, %v12187_v10 }
 0x415   : > { %v3734_v46 = vpop.f32.mrf.mxu2 }
 0x41c   : > { %v3774_v12 = vpop.f32.mrf.mxu0 }
 0x41d   : > { %v3775_v56 = vadd.f32 %v3774_v12, %v12034_v47  ;;  %v3883_v47 = vmul.f32 %v12144_v24, %v12144_v24 }
 0x41f   : > { %v3676_v49 = vpop.f32.mrf.mxu3 }
 0x420   : > { %v3677_v57 = vadd.f32 %v3676_v49, %v3663_v5  ;;  %v12130_v49 = vperm.slane %v12099_v11, 3  ;;  %v3877_v5 = vmul.f32 %v12136_v59, %v12136_v59 }
 0x422   : > { %14986 = vst [vmem:[#allocation24_spill] sm:$0xff] %v12130_v49  ;;  %v3691_v9 = vadd.f32 %v3690_v41, %v3677_v57  ;;  %v12154_v38 = vmul.f32 %v12130_v49, %v3593_v19  ;;  %v3735_v57 = vadd.f32 %v3734_v46, %v3721_v25 }
 0x424   : > { %v3705_v17 = vadd.f32 %v12080_v51, %v3691_v9  ;;  %v3891_v51 = vadd.f32 %v3876_v48, %v3875_v45  ;;  %v3878_v55 = vmul.f32 %v12154_v38, %v12154_v38  ;;  %v3856_v60 = vadd.f32 %v3855_v27, %v12154_v38 }
 0x425   : > { %v12203_v45 = vmul.f32 %v12130_v49, %v3595_v35 }
 0x426   : > { %v12183_v0 = vmul.f32 %v12160_v3, %v3705_v17  ;;  %v3892_v50 = vadd.f32 %v3891_v51, %v3877_v5  ;;  %v3857_v30 = vadd.f32 %v3856_v60, %v12167_v6 }
 0x427   : > { %v3678_v1 = vpop.f32.mrf.mxu3  ;;  %v3867_v28 = vadd.f32 %v3866_v7, %v12203_v45 }
 0x428   : > { %v3679_v18 = vadd.f32 %v3678_v1, %v3665_v36  ;;  %v12174_v1 = vperm.slane %v12099_v11, 6  ;;  %v3893_v46 = vadd.f32 %v3892_v50, %v3878_v55  ;;  %v3880_v34 = vmul.f32 %v12183_v0, %v12183_v0 }
 0x429   : > { %v3788_v41 = vpop.f32.mrf.mxu1 }
 0x42a   : > { %14989 = vst [vmem:[#allocation27_spill] sm:$0xff] %v12174_v1  ;;  %v3789_v16 = vadd.f32 %v3788_v41, %v3775_v56  ;;  %v3894_v15 = vadd.f32 %v3893_v46, %v3879_v43 }
 0x42c   : > { %v3895_v5 = vadd.f32 %v3894_v15, %v3880_v34 }
 0x42d   : > { %v3802_v52 = vpop.f32.mrf.mxu2 }
 0x42e   : > { %v3803_v4 = vadd.f32 %v3802_v52, %v3789_v16 }
 0x431   : > { %v3790_v36 = vpop.f32.mrf.mxu1 }
 0x43f   : > { %v3746_v22 = vpop.f32.mrf.mxu3 }
 0x440   : > { %v3747_v26 = vadd.f32 %v3746_v22, %v3733_v42  ;;  %v3776_v22 = vpop.f32.mrf.mxu0  ;;  %v3884_v42 = vmul.f32 %v12151_v40, %v12151_v40 }
 0x441   : > { %v3777_v19 = vadd.f32 %v3776_v22, %v12088_v62  ;;  %v12212_v62 = vmul.f32 %v12141_v32, %v3651_v21 }
 0x442   : > { %v3761_v33 = vadd.f32 %v12086_v63, %v3747_v26  ;;  %v3693_v63 = vadd.f32 %v12082_v58, %v3679_v18  ;;  %v3858_v26 = vadd.f32 %v3857_v30, %v12183_v0  ;;  %v3901_v41 = vadd.f32 %v3884_v42, %v3883_v47 }
 0x443   : > { %v3791_v56 = vadd.f32 %v3790_v36, %v3777_v19  ;;  %v3886_v18 = vmul.f32 %v12203_v45, %v12203_v45 }
 0x444   : > { %v12196_v12 = vmul.f32 %v12174_v1, %v3761_v33  ;;  %v3707_v9 = vadd.f32 %v12084_v61, %v3693_v63  ;;  %v3902_v23 = vadd.f32 %v3901_v41, %v3885_v44  ;;  %v3887_v33 = vmul.f32 %v12212_v62, %v12212_v62 }
 0x445   : > { %v3868_v63 = vadd.f32 %v3867_v28, %v12212_v62  ;;  %v10353_v44 = vmov 0.0  }
 0x446   : > { %v3881_v61 = vmul.f32 %v12196_v12, %v12196_v12  ;;  %v12225_v25 = vmul.f32 %v12160_v3, %v3707_v9  ;;  %v3903_v35 = vadd.f32 %v3902_v23, %v3886_v18  ;;  %4013 = vst [vmem:[#allocation3 + $0x40] sm:$0xff] %v10353_v44 }
 0x447   : > { %v3748_v29 = vpop.f32.mrf.mxu3  ;;  %4014 = vst.msk [vmem:[#allocation3 + $0x48] sm:$0xff] %vm3860_vm10, %v10353_v44 }
 0x448   : > { %v3749_v58 = vadd.f32 %v3748_v29, %v3735_v57  ;;  %v3859_v29 = vadd.f32 %v3858_v26, %v12196_v12  ;;  %v3896_v27 = vadd.f32 %v3895_v5, %v3881_v61  ;;  %v3888_v50 = vmul.f32 %v12225_v25, %v12225_v25  ;;  %4023 = vst [vmem:[#allocation3 + $0x90] sm:$0xff] %v10353_v44 }
 0x449   : > { %v3904_v21 = vadd.f32 %v3903_v35, %v3887_v33  ;;  %v3869_v42 = vadd.f32 %v3868_v63, %v12225_v25  ;;  %4024 = vst.msk [vmem:[#allocation3 + $0x98] sm:$0xff] %vm3860_vm10, %v10353_v44 }
 0x44a   : > { %v3763_v48 = vadd.f32 %v12094_v31, %v3749_v58  ;;  %v3804_v31 = vpop.f32.mrf.mxu2 }
 0x44b   : > { %v3805_v55 = vadd.f32 %v3804_v31, %v3791_v56 }
 0x44c   : > { %v12236_v52 = vmul.f32 %v12174_v1, %v3763_v48 }
 0x44e   : > { %v3889_v60 = vmul.f32 %v12236_v52, %v12236_v52  ;;  %v3870_v46 = vadd.f32 %v3869_v42, %v12236_v52 }
 0x44f   : > { %v3816_v14 = vpop.f32.mrf.mxu3 }
 0x450   : > { %v3817_v11 = vadd.f32 %v3816_v14, %v3803_v4  ;;  %v3905_v4 = vadd.f32 %v3904_v21, %v3888_v50 }
 0x452   : > { %v12220_v17 = vmul.f32 %v12200_v53, %v3817_v11  ;;  %v3906_v36 = vadd.f32 %v3905_v4, %v3889_v60 }
 0x454   : > { %v3861_v47 = vsel %vm3860_vm10, %v12220_v17, 0.0  ;;  %v3882_v51 = vmul.f32 %v12220_v17, %v12220_v17 }
 0x455   : > { %v3862_v13 = vadd.f32 %v3861_v47, %v3859_v29 }
 0x456   : > { %v3897_v16 = vsel %vm3860_vm10, %v3882_v51, 0.0 }
 0x457   : > { %v3818_v57 = vpop.f32.mrf.mxu3  ;;  %3863 = vadd.xlane.f32.xlu2 %v3862_v13  ;;  %v3898_v22 = vadd.f32 %v3897_v16, %v3896_v27 }
 0x458   : > { %v3819_v43 = vadd.f32 %v3818_v57, %v3805_v55 }
 0x459   : > { %3899 = vadd.xlane.f32.xlu0 %v3898_v22 }
 0x45a   : > { %v12246_v58 = vmul.f32 %v12200_v53, %v3819_v43 }
 0x45c   : > { %v3871_v19 = vsel %vm3860_vm10, %v12246_v58, 0.0  ;;  %v3890_v30 = vmul.f32 %v12246_v58, %v12246_v58 }
 0x45d   : > { %v3872_v9 = vadd.f32 %v3871_v19, %v3870_v46 }
 0x45e   : > { %v3907_v14 = vsel %vm3860_vm10, %v3890_v30, 0.0 }
 0x45f   : > { %3873 = vadd.xlane.f32.xlu1 %v3872_v9  ;;  %v3908_v34 = vadd.f32 %v3907_v14, %v3906_v36 }
 0x461   : > { %3909 = vadd.xlane.f32.xlu2 %v3908_v34 }
 0x4ca   : > { %v3864_v15 = vpop.xlane.xlu2 %3863 }
 0x4cb   : > { %v3911_v11 = vmul.f32 0.001953125, %v3864_v15 }
 0x4cc   : > { %v3900_v48 = vpop.xlane.xlu0 %3899 }
 0x4cd   : > { %v3913_v26 = vmul.f32 0.001953125, %v3900_v48  ;;  %v3915_v61 = vmul.f32 %v3911_v11, %v3911_v11  ;;  %v3919_v55 = vsub.f32 %v12116_v39, %v3911_v11  ;;  %v3920_v35 = vsub.f32 %v12125_v2, %v3911_v11 }
 0x4ce   : > { %v3921_v63 = vsub.f32 %v12136_v59, %v3911_v11  ;;  %v3922_v57 = vsub.f32 %v12154_v38, %v3911_v11  ;;  %v3923_v22 = vsub.f32 %v12167_v6, %v3911_v11  ;;  %v3924_v50 = vsub.f32 %v12183_v0, %v3911_v11 }
 0x4cf   : > { %v3917_v41 = vsub.f32 %v3913_v26, %v3915_v61  ;;  %v3925_v43 = vsub.f32 %v12196_v12, %v3911_v11  ;;  %v3926_v21 = vsub.f32 %v12220_v17, %v3911_v11 }
 0x4d1   : > { %v3935_v7 = vadd.f32 1e-05, %v3917_v41 }
 0x4d2   : > { %v3874_v56 = vpop.xlane.xlu1 %3873 }
 0x4d3   : > { %10176 = vrsqrt.f32 %v3935_v7  ;;  %v12260_v18 = vmul.f32 0.001953125, %v3874_v56  ;;  %vm3943_vm1 = vweird.f32 %v3935_v7 }
 0x4d4   : > { %v3910_v31 = vpop.xlane.xlu2 %3909 }
 0x4d5   : > { %v3916_v29 = vmul.f32 %v12260_v18, %v12260_v18  ;;  %v3914_v5 = vmul.f32 0.001953125, %v3910_v31 }
 0x4d7   : > { %v3918_v28 = vsub.f32 %v3914_v5, %v3916_v29 }
 0x4d9   : > { %v10177_v23 = vpop.eup %10176  ;;  %v12264_v51 = vadd.f32 1e-05, %v3918_v28 }
 0x4da   : > { %v3938_v47 = vmul.f32 %v10177_v23, %v3935_v7  ;;  %vm3944_vm12 = vweird.f32 %v10177_v23 }
 0x4db   : > { %10178 = vrsqrt.f32 %v12264_v51  ;;  %vm3945_vm15 = vmor %vm3943_vm1, %vm3944_vm12 }
 0x4dc   : > { %v3939_v33 = vmul.f32 %v10177_v23, %v3938_v47 }
 0x4de   : > { %v3940_v13 = vmul.f32 0.5, %v3939_v33 }
 0x4e0   : > { %v3941_v27 = vsub.f32 1.5, %v3940_v13 }
 0x4e1   : > { %v10179_v60 = vpop.eup %10178 }
 0x4e2   : > { %v3942_v16 = vmul.f32 %v10177_v23, %v3941_v27  ;;  %v3948_v12 = vmul.f32 %v10179_v60, %v12264_v51  ;;  %vm3954_vm12 = vweird.f32 %v10179_v60 }
 0x4e4   : > { %v3946_v42 = vsel %vm3945_vm15, %v10177_v23, %v3942_v16  ;;  %v3949_v5 = vmul.f32 %v10179_v60, %v3948_v12  ;;  %v3927_v16 = vsub.f32 %v12144_v24, %v12260_v18  ;;  %vm3953_vm15 = vweird.f32 %v12264_v51 }
 0x4e5   : > { %v3957_v39 = vmul.f32 %v3946_v42, %v3919_v55  ;;  %v3958_v46 = vmul.f32 %v3946_v42, %v3920_v35  ;;  %v3959_v4 = vmul.f32 %v3946_v42, %v3921_v63  ;;  %v3960_v19 = vmul.f32 %v3946_v42, %v3922_v57  ;;  %vm3955_vm1 = vmor %vm3953_vm15, %vm3954_vm12 }
 0x4e6   : > { %v3961_v2 = vmul.f32 %v3946_v42, %v3923_v22  ;;  %v3962_v30 = vmul.f32 %v3946_v42, %v3924_v50  ;;  %v3963_v59 = vmul.f32 %v3946_v42, %v3925_v43  ;;  %v3964_v9 = vmul.f32 %v3946_v42, %v3926_v21 }
 0x4e7   : > { %v3973_v38 = vmax.f32 %v3957_v39, 0.0  ;;  %v3974_v36 = vmax.f32 %v3958_v46, 0.0  ;;  %v3975_v6 = vmax.f32 %v3959_v4, 0.0  ;;  %v3976_v14 = vmax.f32 %v3960_v19, 0.0 }
 0x4e8   : > { %v3977_v34 = vmax.f32 %v3961_v2, 0.0  ;;  %v3978_v0 = vmax.f32 %v3962_v30, 0.0  ;;  %v3979_v15 = vmax.f32 %v3963_v59, 0.0  ;;  %v3980_v61 = vmax.f32 %v3964_v9, 0.0 }
 0x4e9   : > { %v3989_v17 = vmul.f32 %v3973_v38, %v12104_v20  ;;  %v3990_v11 = vmul.f32 %v3974_v36, %v12110_v8  ;;  %v3991_v48 = vmul.f32 %v3975_v6, %v12119_v54  ;;  %v3992_v26 = vmul.f32 %v3976_v14, %v12130_v49 }
 0x4ea   : > { %v3993_v41 = vmul.f32 %v3977_v34, %v12141_v32  ;;  %v3994_v31 = vmul.f32 %v3978_v0, %v12160_v3  ;;  %v12290_v23 = vmul.f32 %v3979_v15, %v12174_v1  ;;  %v3996_v28 = vmul.f32 %v3980_v61, %v12200_v53 }
 0x4eb   : > { %v12282_v7 = vpack.c.bf16 %v3989_v17, %v10353_v44  ;;  %v12284_v56 = vpack.c.bf16 %v3991_v48, %v3990_v11  ;;  %v3950_v47 = vmul.f32 0.5, %v3949_v5  ;;  %v12299_v33 = vpack.c.bf16 %v3990_v11, %v3989_v17 }
 0x4ec   : > { %v12287_v29 = vpack.c.bf16 %v3993_v41, %v3992_v26  ;;  %v12301_v13 = vpack.c.bf16 %v3992_v26, %v3991_v48  ;;  %v4865_v55 = vpack.c.bf16 %v3994_v31, %v3993_v41  ;;  %4032 = vst.msk [vmem:[#allocation3 + $0x40] sm:$0xff] %vm3860_vm10, %v3996_v28  ;;  %v3928_v35 = vsub.f32 %v12151_v40, %v12260_v18 }
 0x4ed   : > { %4079 = vrot.lane.b32.xlu1 %v12284_v56, %s10326_s24  ;;  %4077 = vrot.lane.b32.xlu2 %v12282_v7, %s10326_s24  ;;  %v3951_v27 = vsub.f32 1.5, %v3950_v47  ;;  %4871 = vst [vmem:[#allocation2 + $0x340] sm:$0xff] %v12299_v33  ;;  %v3929_v57 = vsub.f32 %v12187_v10, %v12260_v18  ;;  %v3930_v22 = vsub.f32 %v12203_v45, %v12260_v18  ;;  %vm15010_vm15 = vcmask 973824  }
 0x4ee   : > { %4081 = vrot.lane.b32.xlu0 %v12287_v29, %s10326_s24  ;;  %v3931_v50 = vsub.f32 %v12212_v62, %v12260_v18  ;;  %v3932_v24 = vsub.f32 %v12225_v25, %v12260_v18  ;;  %v12319_v40 = vpack.c.bf16 %v12290_v23, %v3994_v31  ;;  %4872 = vst [vmem:[#allocation2 + $0x348] sm:$0xff] %v12301_v13 }
 0x4ef   : > { %v3952_v63 = vmul.f32 %v10179_v60, %v3951_v27  ;;  %v3933_v51 = vsub.f32 %v12236_v52, %v12260_v18  ;;  %v3934_v10 = vsub.f32 %v12246_v58, %v12260_v18  ;;  %4873 = vst [vmem:[#allocation2 + $0x350] sm:$0xff] %v4865_v55 }
 0x4f1   : > { %v3956_v43 = vsel %vm3955_vm1, %v10179_v60, %v3952_v63  ;;  %vm15011_vm1 = vmmov %vm15010_vm15 }
 0x4f2   : > { %v3965_v45 = vmul.f32 %v3956_v43, %v3927_v16  ;;  %v3966_v21 = vmul.f32 %v3956_v43, %v3928_v35  ;;  %v3967_v62 = vmul.f32 %v3956_v43, %v3929_v57  ;;  %v3968_v42 = vmul.f32 %v3956_v43, %v3930_v22 }
 0x4f3   : > { %v3969_v39 = vmul.f32 %v3956_v43, %v3931_v50  ;;  %v3970_v25 = vmul.f32 %v3956_v43, %v3932_v24  ;;  %v3971_v46 = vmul.f32 %v3956_v43, %v3933_v51  ;;  %v3972_v4 = vmul.f32 %v3956_v43, %v3934_v10  ;;  %v4049_v48 = vld [vmem:[#allocation3 + $0x40] sm:$0xff] }
 0x4f4   : > { %v3981_v19 = vmax.f32 %v3965_v45, 0.0  ;;  %v3982_v2 = vmax.f32 %v3966_v21, 0.0  ;;  %v3983_v30 = vmax.f32 %v3967_v62, 0.0  ;;  %v3984_v52 = vmax.f32 %v3968_v42, 0.0 }
 0x4f5   : > { %4083 = vrot.lane.b32.xlu2 %v12319_v40, %s10326_s24  ;;  %v3985_v59 = vmax.f32 %v3969_v39, 0.0  ;;  %v3986_v9 = vmax.f32 %v3970_v25, 0.0  ;;  %v3987_v58 = vmax.f32 %v3971_v46, 0.0  ;;  %v3988_v6 = vmax.f32 %v3972_v4, 0.0 }
 0x4f6   : > { %v3997_v18 = vmul.f32 %v3981_v19, %v12104_v20  ;;  %v3998_v60 = vmul.f32 %v3982_v2, %v12110_v8  ;;  %v3999_v38 = vmul.f32 %v3983_v30, %v12119_v54  ;;  %v4000_v36 = vmul.f32 %v3984_v52, %v12130_v49 }
 0x4f7   : > { %v4001_v14 = vmul.f32 %v3985_v59, %v12141_v32  ;;  %v4002_v15 = vmul.f32 %v3986_v9, %v12160_v3  ;;  %v4003_v17 = vmul.f32 %v3987_v58, %v12174_v1  ;;  %v4004_v11 = vmul.f32 %v3988_v6, %v12200_v53 }
 0x4f8   : > { %v12334_v34 = vpack.c.bf16 %v3997_v18, %v10353_v44  ;;  %v12336_v0 = vpack.c.bf16 %v3999_v38, %v3998_v60  ;;  %v12349_v44 = vpack.c.bf16 %v3998_v60, %v3997_v18  ;;  %v12351_v26 = vpack.c.bf16 %v4000_v36, %v3999_v38 }
 0x4f9   : > { %v12339_v12 = vpack.c.bf16 %v4001_v14, %v4000_v36  ;;  %v4869_v61 = vpack.c.bf16 %v4002_v15, %v4001_v14  ;;  %4040 = vst.msk [vmem:[#allocation3 + $0x90] sm:$0xff] %vm3860_vm10, %v4004_v11  ;;  %v12355_v41 = vpack.c.bf16 %v4049_v48, %v12290_v23  ;;  %v12357_v31 = vpack.c.bf16 %v4003_v17, %v4002_v15 }
 0x4fa   : > { %4087 = vrot.lane.b32.xlu0 %v12336_v0, %s10326_s24  ;;  %4085 = vrot.lane.b32.xlu1 %v12334_v34, %s10326_s24  ;;  %4875 = vst [vmem:[#allocation2 + $0x360] sm:$0xff] %v12349_v44  ;;  %v12411_v28 = vpack.c.bf16 %v4049_v48, %v4049_v48 }
 0x4fb   : > { %4876 = vst [vmem:[#allocation2 + $0x368] sm:$0xff] %v12351_v26 }
 0x4fc   : > { %4877 = vst [vmem:[#allocation2 + $0x370] sm:$0xff] %v4869_v61 }
 0x4fd   : > { %4089 = vrot.lane.b32.xlu2 %v12339_v12, %s10326_s24  ;;  %4874 = vst.msk [vmem:[#allocation2 + $0x358] sm:$0xff] %vm10609_vm2, %v12355_v41 }
 0x500   : > { %v4059_v5 = vld [vmem:[#allocation3 + $0x90] sm:$0xff] }
 0x501   : > { %v12370_v23 = vpack.c.bf16 %v4059_v5, %v4003_v17  ;;  %v12419_v47 = vpack.c.bf16 %v4059_v5, %v4059_v5 }
 0x502   : > { %4131 = vrot.lane.b32.xlu0 %v12282_v7, %s10327_s26  ;;  %4091 = vrot.lane.b32.xlu1 %v12357_v31, %s10326_s24  ;;  %s14991_s24 = smov 89  }
 0x503   : > { %4878 = vst.msk [vmem:[#allocation2 + $0x378] sm:$0xff] %vm10609_vm2, %v12370_v23 }
 0x505   : > { %4133 = vrot.lane.b32.xlu2 %v12284_v56, %s10327_s26 }
 0x50a   : > { %4137 = vrot.lane.b32.xlu0 %v12319_v40, %s10327_s26  ;;  %4135 = vrot.lane.b32.xlu1 %v12287_v29, %s10327_s26 }
 0x50d   : > { %4139 = vrot.lane.b32.xlu2 %v12334_v34, %s10327_s26 }
 0x512   : > { %4143 = vrot.lane.b32.xlu0 %v12339_v12, %s10327_s26  ;;  %4141 = vrot.lane.b32.xlu1 %v12336_v0, %s10327_s26 }
 0x515   : > { %4145 = vrot.lane.b32.xlu2 %v12357_v31, %s10327_s26  ;;  %s14992_s26 = smov 119  }
 0x51a   : > { %4187 = vrot.lane.b32.xlu0 %v12284_v56, %s10328_s13  ;;  %4185 = vrot.lane.b32.xlu1 %v12282_v7, %s10328_s13 }
 0x51d   : > { %4189 = vrot.lane.b32.xlu2 %v12287_v29, %s10328_s13 }
 0x522   : > { %4193 = vrot.lane.b32.xlu0 %v12334_v34, %s10328_s13  ;;  %4191 = vrot.lane.b32.xlu1 %v12319_v40, %s10328_s13 }
 0x525   : > { %4195 = vrot.lane.b32.xlu2 %v12336_v0, %s10328_s13 }
 0x52a   : > { %4199 = vrot.lane.b32.xlu0 %v12357_v31, %s10328_s13  ;;  %4197 = vrot.lane.b32.xlu1 %v12339_v12, %s10328_s13  ;;  %s14993_s13 = smov 127  }
 0x52d   : > { %4243 = vrot.lane.b32.xlu2 %v12282_v7, %s10329_s14 }
 0x532   : > { %4247 = vrot.lane.b32.xlu0 %v12287_v29, %s10329_s14  ;;  %4245 = vrot.lane.b32.xlu1 %v12284_v56, %s10329_s14 }
 0x535   : > { %4249 = vrot.lane.b32.xlu2 %v12319_v40, %s10329_s14 }
 0x53a   : > { %4253 = vrot.lane.b32.xlu0 %v12334_v34, %s10329_s14  ;;  %4251 = vrot.lane.b32.xlu1 %v12411_v28, %s10329_s14 }
 0x53d   : > { %4255 = vrot.lane.b32.xlu2 %v12336_v0, %s10329_s14 }
 0x542   : > { %4259 = vrot.lane.b32.xlu0 %v12357_v31, %s10329_s14  ;;  %4257 = vrot.lane.b32.xlu1 %v12339_v12, %s10329_s14 }
 0x545   : > { %4261 = vrot.lane.b32.xlu2 %v12419_v47, %s10329_s14  ;;  %s14994_s14 = smov 29  }
 0x547   : > { %v4078_v27 = vpop.permute.xlu2 %4077 }
 0x548   : > { %v4093_v22 = vrot.slane %v4078_v27, 4 }
 0x54a   : > { %4307 = vrot.lane.b32.xlu0 %v12284_v56, %s10330_s19  ;;  %4305 = vrot.lane.b32.xlu1 %v12282_v7, %s10330_s19 }
 0x54d   : > { %4309 = vrot.lane.b32.xlu2 %v12287_v29, %s10330_s19 }
 0x54f   : > { %v4084_v55 = vpop.permute.xlu2 %4083 }
 0x550   : > { %v4096_v16 = vrot.slane %v4084_v55, 4 }
 0x552   : > { %v4107_v35 = vsel %vm446_vm3, %v4084_v55, %v4096_v16  ;;  %4313 = vrot.lane.b32.xlu0 %v12411_v28, %s10330_s19  ;;  %4311 = vrot.lane.b32.xlu1 %v12319_v40, %s10330_s19 }
 0x553   : > { %4126 = vst.msk [vmem:[#allocation2 + $0x18] sm:$0xff] %vm10609_vm2, %v4107_v35 }
 0x555   : > { %4315 = vrot.lane.b32.xlu2 %v12334_v34, %s10330_s19 }
 0x557   : > { %v4090_v63 = vpop.permute.xlu2 %4089 }
 0x558   : > { %v4099_v19 = vrot.slane %v4090_v63, 4 }
 0x55a   : > { %4319 = vrot.lane.b32.xlu0 %v12339_v12, %s10330_s19  ;;  %4317 = vrot.lane.b32.xlu1 %v12336_v0, %s10330_s19 }
 0x55d   : > { %4321 = vrot.lane.b32.xlu2 %v12357_v31, %s10330_s19 }
 0x55f   : > { %v4080_v57 = vpop.permute.xlu1 %4079  ;;  %v12448_v51 = vpop.permute.xlu2 %4133 }
 0x560   : > { %v4082_v50 = vpop.permute.xlu0 %4081  ;;  %v4094_v24 = vrot.slane %v4080_v57, 4  ;;  %v4148_v14 = vrot.slane %v12448_v51, 4 }
 0x561   : > { %v4095_v10 = vrot.slane %v4082_v50, 4 }
 0x562   : > { %v4101_v43 = vsel %vm444_vm0, %v4093_v22, %v4094_v24  ;;  %4367 = vrot.lane.b32.xlu0 %v12282_v7, %s10331_s21  ;;  %4323 = vrot.lane.b32.xlu1 %v12419_v47, %s10330_s19  ;;  %s14995_s19 = smov 1  }
 0x563   : > { %v4105_v45 = vsel %vm444_vm0, %v4095_v10, %v4096_v16  ;;  %v4102_v21 = vsel %vm446_vm3, %v4078_v27, %v4101_v43  ;;  %v4103_v62 = vsel %vm444_vm0, %v4094_v24, %v4095_v10 }
 0x564   : > { %v4106_v42 = vsel %vm446_vm3, %v4082_v50, %v4105_v45  ;;  %v4104_v39 = vsel %vm446_vm3, %v4080_v57, %v4103_v62  ;;  %4123 = vst [vmem:[#allocation2] sm:$0xff] %v4102_v21 }
 0x565   : > { %4125 = vst [vmem:[#allocation2 + $0x10] sm:$0xff] %v4106_v42  ;;  %4369 = vrot.lane.b32.xlu2 %v12284_v56, %s10331_s21 }
 0x566   : > { %4124 = vst [vmem:[#allocation2 + $0x8] sm:$0xff] %v4104_v39 }
 0x567   : > { %v12462_v25 = vpop.permute.xlu2 %4139 }
 0x568   : > { %v4151_v42 = vrot.slane %v12462_v25, 4 }
 0x56a   : > { %4373 = vrot.lane.b32.xlu0 %v12319_v40, %s10331_s21  ;;  %4371 = vrot.lane.b32.xlu1 %v12287_v29, %s10331_s21 }
 0x56c   : > { %v4088_v46 = vpop.permute.xlu0 %4087  ;;  %v4086_v4 = vpop.permute.xlu1 %4085 }
 0x56d   : > { %4375 = vrot.lane.b32.xlu2 %v12411_v28, %s10331_s21  ;;  %v4098_v2 = vrot.slane %v4088_v46, 4  ;;  %v4097_v30 = vrot.slane %v4086_v4, 4 }
 0x56f   : > { %v4146_v52 = vpop.permute.xlu2 %4145  ;;  %v4110_v9 = vsel %vm444_vm0, %v4098_v2, %v4099_v19  ;;  %v4108_v58 = vsel %vm444_vm0, %v4097_v30, %v4098_v2 }
 0x570   : > { %v4154_v59 = vrot.slane %v4146_v52, 4  ;;  %v4111_v18 = vsel %vm446_vm3, %v4088_v46, %v4110_v9  ;;  %v4109_v60 = vsel %vm446_vm3, %v4086_v4, %v4108_v58 }
 0x571   : > { %4128 = vst [vmem:[#allocation2 + $0x28] sm:$0xff] %v4111_v18 }
 0x572   : > { %v4168_v38 = vsel %vm504_vm4, %v4146_v52, %v4154_v59  ;;  %4127 = vst [vmem:[#allocation2 + $0x20] sm:$0xff] %v4109_v60  ;;  %4379 = vrot.lane.b32.xlu0 %v12336_v0, %s10331_s21  ;;  %4377 = vrot.lane.b32.xlu1 %v12334_v34, %s10331_s21 }
 0x573   : > { %4184 = vst.msk [vmem:[#allocation2 + $0x78] sm:$0xff] %vm10609_vm2, %v4168_v38 }
 0x574   : > { %v4132_v36 = vpop.permute.xlu0 %4131  ;;  %v4092_v6 = vpop.permute.xlu1 %4091 }
 0x575   : > { %4381 = vrot.lane.b32.xlu2 %v12339_v12, %s10331_s21  ;;  %v4147_v15 = vrot.slane %v4132_v36, 4  ;;  %v4100_v17 = vrot.slane %v4092_v6, 4 }
 0x577   : > { %v12484_v11 = vpop.permute.xlu2 %4189  ;;  %v4155_v48 = vsel %vm444_vm0, %v4147_v15, %v4148_v14  ;;  %v4112_v61 = vsel %vm444_vm0, %v4099_v19, %v4100_v17  ;;  %v4114_v5 = vsel %vm446_vm3, %v4092_v6, %v4100_v17 }
 0x578   : > { %v4156_v27 = vsel %vm504_vm4, %v4132_v36, %v4155_v48  ;;  %v4113_v55 = vsel %vm446_vm3, %v4090_v63, %v4112_v61  ;;  %4130 = vst.msk [vmem:[#allocation2 + $0x38] sm:$0xff] %vm10609_vm2, %v4114_v5  ;;  %v4203_v18 = vrot.slane %v12484_v11, 4  ;;  %vm14999_vm3 = vcmask 736256  }
 0x579   : > { %4177 = vst [vmem:[#allocation2 + $0x40] sm:$0xff] %v4156_v27  ;;  %vm15008_vm12 = vmmov %vm14999_vm3 }
 0x57a   : > { %4129 = vst [vmem:[#allocation2 + $0x30] sm:$0xff] %v4113_v55  ;;  %4385 = vrot.lane.b32.xlu0 %v12419_v47, %s10331_s21  ;;  %4383 = vrot.lane.b32.xlu1 %v12357_v31, %s10331_s21  ;;  %s14996_s21 = smov 37  }
 0x57c   : > { %v4138_v16 = vpop.permute.xlu0 %4137  ;;  %v4136_v35 = vpop.permute.xlu1 %4135 }
 0x57d   : > { %4429 = vrot.lane.b32.xlu2 %v12282_v7, %s10332_s22  ;;  %v4150_v57 = vrot.slane %v4138_v16, 4  ;;  %v4149_v22 = vrot.slane %v4136_v35, 4 }
 0x57f   : > { %v12499_v50 = vpop.permute.xlu2 %4195  ;;  %v4161_v63 = vsel %vm504_vm4, %v4138_v16, %v4150_v57  ;;  %v4157_v24 = vsel %vm444_vm0, %v4148_v14, %v4149_v22  ;;  %v4159_v10 = vsel %vm444_vm0, %v4149_v22, %v4150_v57 }
 0x580   : > { %4180 = vst.msk [vmem:[#allocation2 + $0x58] sm:$0xff] %vm10609_vm2, %v4161_v63  ;;  %v4158_v43 = vsel %vm504_vm4, %v12448_v51, %v4157_v24  ;;  %v4160_v45 = vsel %vm504_vm4, %v4136_v35, %v4159_v10  ;;  %v4206_v61 = vrot.slane %v12499_v50, 4 }
 0x581   : > { %4178 = vst [vmem:[#allocation2 + $0x48] sm:$0xff] %v4158_v43 }
 0x582   : > { %4179 = vst [vmem:[#allocation2 + $0x50] sm:$0xff] %v4160_v45  ;;  %4433 = vrot.lane.b32.xlu0 %v12287_v29, %s10332_s22  ;;  %4431 = vrot.lane.b32.xlu1 %v12284_v56, %s10332_s22 }
 0x584   : > { %v4144_v21 = vpop.permute.xlu0 %4143  ;;  %v4142_v62 = vpop.permute.xlu1 %4141 }
 0x585   : > { %4435 = vrot.lane.b32.xlu2 %v12319_v40, %s10332_s22  ;;  %v4153_v39 = vrot.slane %v4144_v21, 4  ;;  %v4152_v46 = vrot.slane %v4142_v62, 4 }
 0x587   : > { %v12516_v51 = vpop.permute.xlu2 %4243  ;;  %v4166_v4 = vsel %vm444_vm0, %v4153_v39, %v4154_v59  ;;  %v4162_v19 = vsel %vm444_vm0, %v4151_v42, %v4152_v46  ;;  %v4164_v2 = vsel %vm444_vm0, %v4152_v46, %v4153_v39 }
 0x588   : > { %v4167_v30 = vsel %vm504_vm4, %v4144_v21, %v4166_v4  ;;  %v4163_v52 = vsel %vm504_vm4, %v12462_v25, %v4162_v19  ;;  %v4165_v9 = vsel %vm504_vm4, %v4142_v62, %v4164_v2  ;;  %v4263_v2 = vrot.slane %v12516_v51, 4  ;;  %vm15000_vm4 = vmmov %vm14999_vm3 }
 0x589   : > { %4183 = vst [vmem:[#allocation2 + $0x70] sm:$0xff] %v4167_v30 }
 0x58a   : > { %4181 = vst [vmem:[#allocation2 + $0x60] sm:$0xff] %v4163_v52  ;;  %4439 = vrot.lane.b32.xlu0 %v12334_v34, %s10332_s22  ;;  %4437 = vrot.lane.b32.xlu1 %v12411_v28, %s10332_s22 }
 0x58b   : > { %4182 = vst [vmem:[#allocation2 + $0x68] sm:$0xff] %v4165_v9 }
 0x58c   : > { %v4188_v59 = vpop.permute.xlu0 %4187  ;;  %v4186_v58 = vpop.permute.xlu1 %4185 }
 0x58d   : > { %4441 = vrot.lane.b32.xlu2 %v12336_v0, %s10332_s22  ;;  %v4202_v60 = vrot.slane %v4188_v59, 4  ;;  %v4201_v25 = vrot.slane %v4186_v58, 4 }
 0x58f   : > { %v12532_v38 = vpop.permute.xlu2 %4249  ;;  %v4211_v36 = vsel %vm444_vm0, %v4202_v60, %v4203_v18  ;;  %v4209_v6 = vsel %vm444_vm0, %v4201_v25, %v4202_v60 }
 0x590   : > { %v4212_v14 = vsel %vm559_vm5, %v4188_v59, %v4211_v36  ;;  %v4210_v15 = vsel %vm559_vm5, %v4186_v58, %v4209_v6  ;;  %v4266_v30 = vrot.slane %v12532_v38, 4 }
 0x591   : > { %4232 = vst [vmem:[#allocation2 + $0x88] sm:$0xff] %v4212_v14 }
 0x592   : > { %4231 = vst [vmem:[#allocation2 + $0x80] sm:$0xff] %v4210_v15  ;;  %4445 = vrot.lane.b32.xlu0 %v12357_v31, %s10332_s22  ;;  %4443 = vrot.lane.b32.xlu1 %v12339_v12, %s10332_s22 }
 0x594   : > { %v4194_v17 = vpop.permute.xlu0 %4193  ;;  %v4192_v48 = vpop.permute.xlu1 %4191 }
 0x595   : > { %4447 = vrot.lane.b32.xlu2 %v12419_v47, %s10332_s22  ;;  %v4205_v5 = vrot.slane %v4194_v17, 4  ;;  %v4204_v27 = vrot.slane %v4192_v48, 4  ;;  %s14997_s22 = smov 9  }
 0x597   : > { %v12545_v55 = vpop.permute.xlu2 %4255  ;;  %v4216_v16 = vsel %vm444_vm0, %v4205_v5, %v4206_v61  ;;  %v4213_v35 = vsel %vm444_vm0, %v4203_v18, %v4204_v27  ;;  %v4215_v57 = vsel %vm559_vm5, %v4192_v48, %v4204_v27 }
 0x598   : > { %v4217_v22 = vsel %vm559_vm5, %v4194_v17, %v4216_v16  ;;  %v4214_v63 = vsel %vm559_vm5, %v12484_v11, %v4213_v35  ;;  %4234 = vst.msk [vmem:[#allocation2 + $0x98] sm:$0xff] %vm10609_vm2, %v4215_v57  ;;  %v4269_v15 = vrot.slane %v12545_v55, 4 }
 0x599   : > { %4235 = vst [vmem:[#allocation2 + $0xa0] sm:$0xff] %v4217_v22 }
 0x59a   : > { %4233 = vst [vmem:[#allocation2 + $0x90] sm:$0xff] %v4214_v63  ;;  %4493 = vrot.lane.b32.xlu0 %v12284_v56, %s10333_s28  ;;  %4491 = vrot.lane.b32.xlu1 %v12282_v7, %s10333_s28 }
 0x59c   : > { %v4200_v24 = vpop.permute.xlu0 %4199  ;;  %v4198_v10 = vpop.permute.xlu1 %4197 }
 0x59d   : > { %4495 = vrot.lane.b32.xlu2 %v12287_v29, %s10333_s28  ;;  %v4208_v43 = vrot.slane %v4200_v24, 4  ;;  %v4207_v45 = vrot.slane %v4198_v10, 4 }
 0x59f   : > { %v4262_v21 = vpop.permute.xlu2 %4261  ;;  %v4222_v11 = vsel %vm559_vm5, %v4200_v24, %v4208_v43  ;;  %v4218_v62 = vsel %vm444_vm0, %v4206_v61, %v4207_v45  ;;  %v4220_v42 = vsel %vm444_vm0, %v4207_v45, %v4208_v43 }
 0x5a0   : > { %4238 = vst.msk [vmem:[#allocation2 + $0xb8] sm:$0xff] %vm10609_vm2, %v4222_v11  ;;  %v4219_v39 = vsel %vm559_vm5, %v12499_v50, %v4218_v62  ;;  %v4221_v46 = vsel %vm559_vm5, %v4198_v10, %v4220_v42  ;;  %v4272_v22 = vrot.slane %v4262_v21, 4  ;;  %vm15002_vm5 = vmmov %vm14999_vm3 }
 0x5a1   : > { %4236 = vst [vmem:[#allocation2 + $0xa8] sm:$0xff] %v4219_v39 }
 0x5a2   : > { %4237 = vst [vmem:[#allocation2 + $0xb0] sm:$0xff] %v4221_v46  ;;  %4499 = vrot.lane.b32.xlu0 %v12411_v28, %s10333_s28  ;;  %4497 = vrot.lane.b32.xlu1 %v12319_v40, %s10333_s28 }
 0x5a4   : > { %v4248_v4 = vpop.permute.xlu0 %4247  ;;  %v4246_v19 = vpop.permute.xlu1 %4245 }
 0x5a5   : > { %4501 = vrot.lane.b32.xlu2 %v12334_v34, %s10333_s28  ;;  %v4265_v50 = vrot.slane %v4248_v4, 4  ;;  %v4264_v52 = vrot.slane %v4246_v19, 4 }
 0x5a7   : > { %v12577_v9 = vpop.permute.xlu2 %4309  ;;  %v4277_v59 = vsel %vm444_vm0, %v4265_v50, %v4266_v30  ;;  %v4273_v58 = vsel %vm444_vm0, %v4263_v2, %v4264_v52  ;;  %v4275_v18 = vsel %vm444_vm0, %v4264_v52, %v4265_v50 }
 0x5a8   : > { %v4278_v60 = vsel %vm624_vm6, %v4248_v4, %v4277_v59  ;;  %v4274_v25 = vsel %vm624_vm6, %v12516_v51, %v4273_v58  ;;  %v4276_v36 = vsel %vm624_vm6, %v4246_v19, %v4275_v18 }
 0x5a9   : > { %4299 = vst [vmem:[#allocation2 + $0xd0] sm:$0xff] %v4278_v60 }
 0x5aa   : > { %4297 = vst [vmem:[#allocation2 + $0xc0] sm:$0xff] %v4274_v25  ;;  %4505 = vrot.lane.b32.xlu0 %v12339_v12, %s10333_s28  ;;  %4503 = vrot.lane.b32.xlu1 %v12336_v0, %s10333_s28 }
 0x5ab   : > { %4298 = vst [vmem:[#allocation2 + $0xc8] sm:$0xff] %v4276_v36 }
 0x5ac   : > { %v4254_v6 = vpop.permute.xlu0 %4253  ;;  %v4252_v14 = vpop.permute.xlu1 %4251 }
 0x5ad   : > { %4507 = vrot.lane.b32.xlu2 %v12357_v31, %s10333_s28  ;;  %v4268_v17 = vrot.slane %v4254_v6, 4  ;;  %v4267_v51 = vrot.slane %v4252_v14, 4 }
 0x5af   : > { %v12593_v48 = vpop.permute.xlu2 %4315  ;;  %v4281_v61 = vsel %vm444_vm0, %v4268_v17, %v4269_v15  ;;  %v4279_v5 = vsel %vm444_vm0, %v4266_v30, %v4267_v51 }
 0x5b0   : > { %v4282_v27 = vsel %vm624_vm6, %v4254_v6, %v4281_v61  ;;  %v4280_v16 = vsel %vm624_vm6, %v12532_v38, %v4279_v5  ;;  %v4330_v61 = vrot.slane %v12593_v48, 4 }
 0x5b1   : > { %4301 = vst [vmem:[#allocation2 + $0xe0] sm:$0xff] %v4282_v27 }
 0x5b2   : > { %4300 = vst.msk [vmem:[#allocation2 + $0xd8] sm:$0xff] %vm10609_vm2, %v4280_v16  ;;  %4553 = vrot.lane.b32.xlu0 %v12282_v7, %s14991_s24  ;;  %4509 = vrot.lane.b32.xlu1 %v12419_v47, %s10333_s28  ;;  %s14998_s28 = smov 38  }
 0x5b4   : > { %v4260_v35 = vpop.permute.xlu0 %4259  ;;  %v4258_v57 = vpop.permute.xlu1 %4257 }
 0x5b5   : > { %4941 = vrot.lane.b32.xlu2 %v12299_v33, %s14992_s26  ;;  %v4271_v63 = vrot.slane %v4260_v35, 4  ;;  %v4270_v24 = vrot.slane %v4258_v57, 4 }
 0x5b7   : > { %v12608_v10 = vpop.permute.xlu2 %4321  ;;  %v4287_v38 = vsel %vm444_vm0, %v4271_v63, %v4272_v22  ;;  %v4283_v43 = vsel %vm444_vm0, %v4269_v15, %v4270_v24  ;;  %v4285_v45 = vsel %vm444_vm0, %v4270_v24, %v4271_v63 }
 0x5b8   : > { %v4288_v11 = vsel %vm624_vm6, %v4260_v35, %v4287_v38  ;;  %v4284_v62 = vsel %vm624_vm6, %v12545_v55, %v4283_v43  ;;  %v4286_v42 = vsel %vm624_vm6, %v4258_v57, %v4285_v45  ;;  %v4327_v55 = vrot.slane %v12577_v9, 4  ;;  %vm15003_vm6 = vmmov %vm14999_vm3 }
 0x5b9   : > { %4304 = vst.msk [vmem:[#allocation2 + $0xf8] sm:$0xff] %vm10609_vm2, %v4288_v11 }
 0x5ba   : > { %4302 = vst [vmem:[#allocation2 + $0xe8] sm:$0xff] %v4284_v62  ;;  %4949 = vrot.lane.b32.xlu0 %v12349_v44, %s14992_s26  ;;  %4943 = vrot.lane.b32.xlu1 %v12301_v13, %s14992_s26 }
 0x5bb   : > { %4303 = vst [vmem:[#allocation2 + $0xf0] sm:$0xff] %v4286_v42 }
 0x5bc   : > { %v4308_v21 = vpop.permute.xlu0 %4307  ;;  %v4306_v39 = vpop.permute.xlu1 %4305 }
 0x5bd   : > { %4951 = vrot.lane.b32.xlu2 %v12351_v26, %s14992_s26  ;;  %v4326_v46 = vrot.slane %v4308_v21, 4  ;;  %v4325_v4 = vrot.slane %v4306_v39, 4 }
 0x5bf   : > { %v12626_v19 = vpop.permute.xlu2 %4369  ;;  %v4337_v2 = vsel %vm444_vm0, %v4326_v46, %v4327_v55  ;;  %v4335_v30 = vsel %vm444_vm0, %v4325_v4, %v4326_v46 }
 0x5c0   : > { %v4338_v50 = vsel %vm687_vm7, %v4308_v21, %v4337_v2  ;;  %v4336_v52 = vsel %vm687_vm7, %v4306_v39, %v4335_v30  ;;  %v4388_v11 = vrot.slane %v12626_v19, 4 }
 0x5c1   : > { %4360 = vst [vmem:[#allocation2 + $0x108] sm:$0xff] %v4338_v50 }
 0x5c2   : > { %4359 = vst [vmem:[#allocation2 + $0x100] sm:$0xff] %v4336_v52  ;;  %5419 = vrot.lane.b32.xlu0 %v12301_v13, %s14834_s27  ;;  %5417 = vrot.lane.b32.xlu1 %v12299_v33, %s14834_s27 }
 0x5c4   : > { %v4314_v59 = vpop.permute.xlu0 %4313  ;;  %v4312_v58 = vpop.permute.xlu1 %4311 }
 0x5c5   : > { %5427 = vrot.lane.b32.xlu2 %v12349_v44, %s14834_s27  ;;  %v4329_v18 = vrot.slane %v4314_v59, 4  ;;  %v4328_v60 = vrot.slane %v4312_v58, 4 }
 0x5c7   : > { %v4376_v25 = vpop.permute.xlu2 %4375  ;;  %v4339_v36 = vsel %vm444_vm0, %v4327_v55, %v4328_v60  ;;  %v4341_v6 = vsel %vm444_vm0, %v4328_v60, %v4329_v18 }
 0x5c8   : > { %v4340_v14 = vsel %vm687_vm7, %v12577_v9, %v4339_v36  ;;  %v4342_v15 = vsel %vm687_vm7, %v4312_v58, %v4341_v6  ;;  %v4333_v9 = vrot.slane %v12608_v10, 4  ;;  %v4391_v30 = vrot.slane %v4376_v25, 4 }
 0x5c9   : > { %4361 = vst [vmem:[#allocation2 + $0x110] sm:$0xff] %v4340_v14 }
 0x5ca   : > { %4362 = vst.msk [vmem:[#allocation2 + $0x118] sm:$0xff] %vm10609_vm2, %v4342_v15  ;;  %4887 = vrot.lane.b32.xlu0 %v12299_v33, %s14993_s13  ;;  %5429 = vrot.lane.b32.xlu1 %v12351_v26, %s14834_s27  ;;  %s15016_s27 = smov 117  }
 0x5cc   : > { %v4320_v17 = vpop.permute.xlu0 %4319  ;;  %v4318_v51 = vpop.permute.xlu1 %4317 }
 0x5cd   : > { %4889 = vrot.lane.b32.xlu2 %v12301_v13, %s14993_s13  ;;  %v4332_v5 = vrot.slane %v4320_v17, 4  ;;  %v4331_v27 = vrot.slane %v4318_v51, 4 }
 0x5cf   : > { %v12653_v16 = vpop.permute.xlu2 %4381  ;;  %v4347_v35 = vsel %vm444_vm0, %v4332_v5, %v4333_v9  ;;  %v4343_v57 = vsel %vm444_vm0, %v4330_v61, %v4331_v27  ;;  %v4345_v22 = vsel %vm444_vm0, %v4331_v27, %v4332_v5 }
 0x5d0   : > { %v4348_v63 = vsel %vm687_vm7, %v4320_v17, %v4347_v35  ;;  %v4344_v24 = vsel %vm687_vm7, %v12593_v48, %v4343_v57  ;;  %v4346_v38 = vsel %vm687_vm7, %v4318_v51, %v4345_v22 }
 0x5d1   : > { %4365 = vst [vmem:[#allocation2 + $0x130] sm:$0xff] %v4348_v63 }
 0x5d2   : > { %4363 = vst [vmem:[#allocation2 + $0x120] sm:$0xff] %v4344_v24  ;;  %4897 = vrot.lane.b32.xlu0 %v12351_v26, %s14993_s13  ;;  %4895 = vrot.lane.b32.xlu1 %v12349_v44, %s14993_s13 }
 0x5d3   : > { %4364 = vst [vmem:[#allocation2 + $0x128] sm:$0xff] %v4346_v38 }
 0x5d4   : > { %v4368_v43 = vpop.permute.xlu0 %4367  ;;  %v4324_v45 = vpop.permute.xlu1 %4323 }
 0x5d5   : > { %5355 = vrot.lane.b32.xlu2 %v12299_v33, %s14832_s17  ;;  %v4387_v62 = vrot.slane %v4368_v43, 4  ;;  %v4334_v48 = vrot.slane %v4324_v45, 4 }
 0x5d7   : > { %v12669_v42 = vpop.permute.xlu2 %4429  ;;  %v4397_v21 = vsel %vm444_vm0, %v4387_v62, %v4388_v11  ;;  %v4349_v39 = vsel %vm444_vm0, %v4333_v9, %v4334_v48 }
 0x5d8   : > { %v4398_v55 = vsel %vm750_vm8, %v4368_v43, %v4397_v21  ;;  %v4350_v46 = vsel %vm687_vm7, %v12608_v10, %v4349_v39  ;;  %v4449_v21 = vrot.slane %v12669_v42, 4  ;;  %vm15004_vm7 = vmmov %vm14999_vm3 }
 0x5d9   : > { %4421 = vst [vmem:[#allocation2 + $0x140] sm:$0xff] %v4398_v55 }
 0x5da   : > { %4366 = vst.msk [vmem:[#allocation2 + $0x138] sm:$0xff] %vm10609_vm2, %v4350_v46  ;;  %5365 = vrot.lane.b32.xlu0 %v12349_v44, %s14832_s17  ;;  %5357 = vrot.lane.b32.xlu1 %v12301_v13, %s14832_s17 }
 0x5dc   : > { %v4374_v4 = vpop.permute.xlu0 %4373  ;;  %v4372_v2 = vpop.permute.xlu1 %4371 }
 0x5dd   : > { %5367 = vrot.lane.b32.xlu2 %v12351_v26, %s14832_s17  ;;  %v4390_v50 = vrot.slane %v4374_v4, 4  ;;  %v4389_v52 = vrot.slane %v4372_v2, 4  ;;  %s15014_s17 = smov 11  }
 0x5df   : > { %v12684_v59 = vpop.permute.xlu2 %4435  ;;  %v4403_v10 = vsel %vm444_vm0, %v4390_v50, %v4391_v30  ;;  %v4399_v58 = vsel %vm444_vm0, %v4388_v11, %v4389_v52  ;;  %v4401_v18 = vsel %vm444_vm0, %v4389_v52, %v4390_v50 }
 0x5e0   : > { %v4404_v60 = vsel %vm750_vm8, %v4374_v4, %v4403_v10  ;;  %v4400_v36 = vsel %vm750_vm8, %v12626_v19, %v4399_v58  ;;  %v4402_v6 = vsel %vm750_vm8, %v4372_v2, %v4401_v18  ;;  %v4394_v19 = vrot.slane %v12653_v16, 4 }
 0x5e1   : > { %4424 = vst.msk [vmem:[#allocation2 + $0x158] sm:$0xff] %vm10609_vm2, %v4404_v60 }
 0x5e2   : > { %4422 = vst [vmem:[#allocation2 + $0x148] sm:$0xff] %v4400_v36  ;;  %5295 = vrot.lane.b32.xlu0 %v12301_v13, %s14994_s14  ;;  %5293 = vrot.lane.b32.xlu1 %v12299_v33, %s14994_s14 }
 0x5e3   : > { %4423 = vst [vmem:[#allocation2 + $0x150] sm:$0xff] %v4402_v6 }
 0x5e4   : > { %v4380_v25 = vpop.permute.xlu0 %4379  ;;  %v4378_v14 = vpop.permute.xlu1 %4377 }
 0x5e5   : > { %5303 = vrot.lane.b32.xlu2 %v12349_v44, %s14994_s14  ;;  %v4393_v15 = vrot.slane %v4380_v25, 4  ;;  %v4392_v17 = vrot.slane %v4378_v14, 4 }
 0x5e7   : > { %v12702_v51 = vpop.permute.xlu2 %4441  ;;  %v4407_v61 = vsel %vm444_vm0, %v4393_v15, %v4394_v19  ;;  %v4405_v9 = vsel %vm444_vm0, %v4392_v17, %v4393_v15 }
 0x5e8   : > { %v4408_v5 = vsel %vm750_vm8, %v4380_v25, %v4407_v61  ;;  %v4406_v27 = vsel %vm750_vm8, %v4378_v14, %v4405_v9  ;;  %v4455_v60 = vrot.slane %v12702_v51, 4 }
 0x5e9   : > { %4426 = vst [vmem:[#allocation2 + $0x168] sm:$0xff] %v4408_v5 }
 0x5ea   : > { %4425 = vst [vmem:[#allocation2 + $0x160] sm:$0xff] %v4406_v27  ;;  %4801 = vrot.lane.b32.xlu0 %v12282_v7, %s14995_s19  ;;  %5305 = vrot.lane.b32.xlu1 %v12351_v26, %s14994_s14 }
 0x5ec   : > { %v4386_v35 = vpop.permute.xlu0 %4385  ;;  %v4384_v57 = vpop.permute.xlu1 %4383 }
 0x5ed   : > { %4803 = vrot.lane.b32.xlu2 %v12284_v56, %s14995_s19  ;;  %v4396_v22 = vrot.slane %v4386_v35, 4  ;;  %v4395_v63 = vrot.slane %v4384_v57, 4 }
 0x5ef   : > { %v4448_v24 = vpop.permute.xlu2 %4447  ;;  %v4409_v38 = vsel %vm444_vm0, %v4394_v19, %v4395_v63  ;;  %v4411_v43 = vsel %vm444_vm0, %v4395_v63, %v4396_v22 }
 0x5f0   : > { %v4410_v45 = vsel %vm750_vm8, %v12653_v16, %v4409_v38  ;;  %v4412_v11 = vsel %vm750_vm8, %v4384_v57, %v4411_v43  ;;  %v4452_v16 = vrot.slane %v12684_v59, 4  ;;  %v4458_v9 = vrot.slane %v4448_v24, 4  ;;  %vm15005_vm8 = vmmov %vm14999_vm3 }
 0x5f1   : > { %4427 = vst [vmem:[#allocation2 + $0x170] sm:$0xff] %v4410_v45 }
 0x5f2   : > { %4428 = vst.msk [vmem:[#allocation2 + $0x178] sm:$0xff] %vm10609_vm2, %v4412_v11  ;;  %4813 = vrot.lane.b32.xlu0 %v12336_v0, %s14995_s19  ;;  %4811 = vrot.lane.b32.xlu1 %v12334_v34, %s14995_s19 }
 0x5f4   : > { %v4434_v62 = vpop.permute.xlu0 %4433  ;;  %v4432_v48 = vpop.permute.xlu1 %4431 }
 0x5f5   : > { %5231 = vrot.lane.b32.xlu2 %v12299_v33, %s14996_s21  ;;  %v4451_v39 = vrot.slane %v4434_v62, 4  ;;  %v4450_v55 = vrot.slane %v4432_v48, 4 }
 0x5f7   : > { %v12729_v46 = vpop.permute.xlu2 %4495  ;;  %v4463_v4 = vsel %vm444_vm0, %v4451_v39, %v4452_v16  ;;  %v4459_v2 = vsel %vm444_vm0, %v4449_v21, %v4450_v55  ;;  %v4461_v30 = vsel %vm444_vm0, %v4450_v55, %v4451_v39 }
 0x5f8   : > { %v4464_v50 = vsel %vm813_vm9, %v4434_v62, %v4463_v4  ;;  %v4460_v52 = vsel %vm813_vm9, %v12669_v42, %v4459_v2  ;;  %v4462_v10 = vsel %vm813_vm9, %v4432_v48, %v4461_v30 }
 0x5f9   : > { %4485 = vst [vmem:[#allocation2 + $0x190] sm:$0xff] %v4464_v50 }
 0x5fa   : > { %4483 = vst [vmem:[#allocation2 + $0x180] sm:$0xff] %v4460_v52  ;;  %5241 = vrot.lane.b32.xlu0 %v12349_v44, %s14996_s21  ;;  %5233 = vrot.lane.b32.xlu1 %v12301_v13, %s14996_s21 }
 0x5fb   : > { %4484 = vst [vmem:[#allocation2 + $0x188] sm:$0xff] %v4462_v10 }
 0x5fc   : > { %v4440_v58 = vpop.permute.xlu0 %4439  ;;  %v4438_v18 = vpop.permute.xlu1 %4437 }
 0x5fd   : > { %5243 = vrot.lane.b32.xlu2 %v12351_v26, %s14996_s21  ;;  %v4454_v36 = vrot.slane %v4440_v58, 4  ;;  %v4453_v42 = vrot.slane %v4438_v18, 4 }
 0x5ff   : > { %v12745_v6 = vpop.permute.xlu2 %4501  ;;  %v4467_v25 = vsel %vm444_vm0, %v4454_v36, %v4455_v60  ;;  %v4465_v14 = vsel %vm444_vm0, %v4452_v16, %v4453_v42 }
 0x600   : > { %v4468_v19 = vsel %vm813_vm9, %v4440_v58, %v4467_v25  ;;  %v4466_v15 = vsel %vm813_vm9, %v12684_v59, %v4465_v14  ;;  %v4516_v42 = vrot.slane %v12745_v6, 4 }
 0x601   : > { %4487 = vst [vmem:[#allocation2 + $0x1a0] sm:$0xff] %v4468_v19 }
 0x602   : > { %4486 = vst.msk [vmem:[#allocation2 + $0x198] sm:$0xff] %vm10609_vm2, %v4466_v15  ;;  %4741 = vrot.lane.b32.xlu0 %v12284_v56, %s14997_s22  ;;  %4739 = vrot.lane.b32.xlu1 %v12282_v7, %s14997_s22 }
 0x604   : > { %v4446_v17 = vpop.permute.xlu0 %4445  ;;  %v4444_v61 = vpop.permute.xlu1 %4443 }
 0x605   : > { %4749 = vrot.lane.b32.xlu2 %v12334_v34, %s14997_s22  ;;  %v4457_v5 = vrot.slane %v4446_v17, 4  ;;  %v4456_v27 = vrot.slane %v4444_v61, 4 }
 0x607   : > { %v12760_v35 = vpop.permute.xlu2 %4507  ;;  %v4473_v59 = vsel %vm444_vm0, %v4457_v5, %v4458_v9  ;;  %v4469_v57 = vsel %vm444_vm0, %v4455_v60, %v4456_v27  ;;  %v4471_v22 = vsel %vm444_vm0, %v4456_v27, %v4457_v5 }
 0x608   : > { %v4474_v63 = vsel %vm813_vm9, %v4446_v17, %v4473_v59  ;;  %v4470_v38 = vsel %vm813_vm9, %v12702_v51, %v4469_v57  ;;  %v4472_v43 = vsel %vm813_vm9, %v4444_v61, %v4471_v22  ;;  %v4513_v51 = vrot.slane %v12729_v46, 4  ;;  %vm15006_vm9 = vmmov %vm14999_vm3 }
 0x609   : > { %4490 = vst.msk [vmem:[#allocation2 + $0x1b8] sm:$0xff] %vm10609_vm2, %v4474_v63 }
 0x60a   : > { %4488 = vst [vmem:[#allocation2 + $0x1a8] sm:$0xff] %v4470_v38  ;;  %5169 = vrot.lane.b32.xlu0 %v12299_v33, %s14998_s28  ;;  %4751 = vrot.lane.b32.xlu1 %v12336_v0, %s14997_s22 }
 0x60b   : > { %4489 = vst [vmem:[#allocation2 + $0x1b0] sm:$0xff] %v4472_v43 }
 0x60c   : > { %v4494_v24 = vpop.permute.xlu0 %4493  ;;  %v4492_v45 = vpop.permute.xlu1 %4491 }
 0x60d   : > { %5171 = vrot.lane.b32.xlu2 %v12301_v13, %s14998_s28  ;;  %v4512_v11 = vrot.slane %v4494_v24, 4  ;;  %v4511_v62 = vrot.slane %v4492_v45, 4 }
 0x60f   : > { %v12778_v48 = vpop.permute.xlu2 %4941  ;;  %v4523_v21 = vsel %vm444_vm0, %v4512_v11, %v4513_v51  ;;  %v4521_v16 = vsel %vm444_vm0, %v4511_v62, %v4512_v11  ;;  %v12837_v11 = vld [vmem:[#allocation2 + $0x348] sm:$0xff] }
 0x610   : > { %v4524_v39 = vsel %vm14999_vm3, %v4494_v24, %v4523_v21  ;;  %v4522_v55 = vsel %vm15000_vm4, %v4492_v45, %v4521_v16  ;;  %v12831_v24 = vld [vmem:[#allocation2 + $0x340] sm:$0xff]  ;;  %v4957_v21 = vrot.slane %v12778_v48, 4  ;;  %vm15013_vm3 = vcmask 1039360  }
 0x611   : > { %4546 = vst [vmem:[#allocation2 + $0x1c8] sm:$0xff] %v4524_v39  ;;  %vm15015_vm4 = vmmov %vm15013_vm3 }
 0x612   : > { %4545 = vst [vmem:[#allocation2 + $0x1c0] sm:$0xff] %v4522_v55  ;;  %5181 = vrot.lane.b32.xlu0 %v12351_v26, %s14998_s28  ;;  %5179 = vrot.lane.b32.xlu1 %v12349_v44, %s14998_s28 }
 0x614   : > { %v4500_v4 = vpop.permute.xlu0 %4499  ;;  %v4498_v2 = vpop.permute.xlu1 %4497 }
 0x615   : > { %5603 = vrot.lane.b32.xlu2 %v12299_v33, %s15001_s29  ;;  %v4515_v30 = vrot.slane %v4500_v4, 4  ;;  %v4514_v50 = vrot.slane %v4498_v2, 4  ;;  %v8968_v4 = vld [vmem:[#allocation2 + $0x180] sm:$0xf] }
 0x617   : > { %v12790_v52 = vpop.permute.xlu2 %4951  ;;  %v4525_v10 = vsel %vm444_vm0, %v4513_v51, %v4514_v50  ;;  %v4527_v58 = vsel %vm444_vm0, %v4514_v50, %v4515_v30  ;;  %v9927_v51 = vld [vmem:[#allocation2 + $0x19c] sm:$0xf0] }
 0x618   : > { %v4526_v18 = vsel %vm15002_vm5, %v12729_v46, %v4525_v10  ;;  %v4528_v60 = vsel %vm15003_vm6, %v4498_v2, %v4527_v58  ;;  %v4519_v46 = vrot.slane %v12760_v35, 4  ;;  %v14861_v16 = vrot.slane %v12790_v52, 4  ;;  %v9919_v58 = vld [vmem:[#allocation2 + $0x15c] sm:$0xf0] }
 0x619   : > { %4547 = vst [vmem:[#allocation2 + $0x1d0] sm:$0xff] %v4526_v18  ;;  %v9000_v38 = vld [vmem:[#allocation2 + $0x1c0] sm:$0xf]  ;;  %v8969_v30 = vor.u32 %v9927_v51, %v8968_v4  ;;  %vm15018_vm5 = vcmask 7168   ;;  %v9931_v3 = vld [vmem:[#allocation2 + $0x1c4] sm:$0xf] }
 0x61a   : > { %4548 = vst.msk [vmem:[#allocation2 + $0x1d8] sm:$0xff] %vm10609_vm2, %v4528_v60  ;;  %5613 = vrot.lane.b32.xlu0 %v12349_v44, %s15001_s29  ;;  %5605 = vrot.lane.b32.xlu1 %v12301_v13, %s15001_s29  ;;  %v8840_v4 = vld [vmem:[#allocation2 + $0x80] sm:$0xf]  ;;  %vm15019_vm6 = vmmov %vm15018_vm5 }
 0x61c   : > { %v4506_v33 = vpop.permute.xlu0 %4505  ;;  %v4504_v36 = vpop.permute.xlu1 %4503 }
 0x61d   : > { %5615 = vrot.lane.b32.xlu2 %v12351_v26, %s15001_s29  ;;  %v4518_v25 = vrot.slane %v4506_v33, 4  ;;  %v4517_v14 = vrot.slane %v4504_v36, 4 }
 0x61f   : > { %v12807_v19 = vpop.permute.xlu2 %5427  ;;  %v4533_v15 = vsel %vm444_vm0, %v4518_v25, %v4519_v46  ;;  %v4529_v17 = vsel %vm444_vm0, %v4516_v42, %v4517_v14  ;;  %v4531_v61 = vsel %vm444_vm0, %v4517_v14, %v4518_v25  ;;  %v9911_v42 = vld [vmem:[#allocation2 + $0x11c] sm:$0xf0] }
 0x620   : > { %v4534_v13 = vsel %vm15004_vm7, %v4506_v33, %v4533_v15  ;;  %v4530_v9 = vsel %vm15005_vm8, %v12745_v6, %v4529_v17  ;;  %v4532_v5 = vsel %vm15006_vm9, %v4504_v36, %v4531_v61  ;;  %v8936_v33 = vld [vmem:[#allocation2 + $0x140] sm:$0xf]  ;;  %vm15021_vm7 = vcmask 302080  }
 0x621   : > { %4551 = vst [vmem:[#allocation2 + $0x1f0] sm:$0xff] %v4534_v13  ;;  %v8937_v36 = vor.u32 %v9919_v58, %v8936_v33  ;;  %v8904_v15 = vld [vmem:[#allocation2 + $0x100] sm:$0xf]  ;;  %vm15022_vm8 = vmmov %vm15021_vm7  ;;  %vm15023_vm9 = vcmask 72704  }
 0x622   : > { %4549 = vst [vmem:[#allocation2 + $0x1e0] sm:$0xff] %v4530_v9  ;;  %4679 = vrot.lane.b32.xlu0 %v12284_v56, %s15007_s20  ;;  %4677 = vrot.lane.b32.xlu1 %v12282_v7, %s15007_s20  ;;  %v8905_v61 = vor.u32 %v9911_v42, %v8904_v15  ;;  %v9903_v9 = vld [vmem:[#allocation2 + $0xdc] sm:$0xf0] }
 0x623   : > { %4550 = vst [vmem:[#allocation2 + $0x1e8] sm:$0xff] %v4532_v5  ;;  %v9887_v58 = vld [vmem:[#allocation2 + $0x5c] sm:$0xf0] }
 0x624   : > { %v12822_v27 = vpop.permute.xlu0 %4553  ;;  %v4510_v59 = vpop.permute.xlu1 %4509  ;;  %v8808_v33 = vld [vmem:[#allocation2 + $0x40] sm:$0xf] }
 0x625   : > { %4687 = vrot.lane.b32.xlu2 %v12334_v34, %s15007_s20  ;;  %v4520_v57 = vrot.slane %v4510_v59, 4  ;;  %v9879_v42 = vld [vmem:[#allocation2 + $0x1c] sm:$0xf0] }
 0x627   : > { %v12824_v22 = vpop.permute.xlu2 %4889  ;;  %v4535_v6 = vsel %vm444_vm0, %v4519_v46, %v4520_v57  ;;  %v8872_v57 = vld [vmem:[#allocation2 + $0xc0] sm:$0xf] }
 0x628   : > { %v4536_v63 = vsel %vm15008_vm12, %v12760_v35, %v4535_v6  ;;  %vm15025_vm12 = vcmask 310272  }
 0x629   : > { %4552 = vst.msk [vmem:[#allocation2 + $0x1f8] sm:$0xff] %vm10609_vm2, %v4536_v63  ;;  %v9935_v43 = vld [vmem:[#allocation2 + $0x1dc] sm:$0xf0]  ;;  %v8873_v63 = vor.u32 %v9903_v9, %v8872_v57 }
 0x62a   : > { %5107 = vrot.lane.b32.xlu0 %v12831_v24, %s15009_s30  ;;  %4689 = vrot.lane.b32.xlu1 %v12336_v0, %s15007_s20  ;;  %v9001_v45 = vor.u32 %v9935_v43, %v9000_v38  ;;  %v9895_v43 = vld [vmem:[#allocation2 + $0x9c] sm:$0xf0] }
 0x62b   : > { %v8776_v9 = vld [vmem:[#allocation2] sm:$0xf] }
 0x62c   : > { %6999 = vmatpush.bf16.msra.mxu3 %v9001_v45  ;;  %v4950_v35 = vpop.permute.xlu0 %4949  ;;  %v12841_v62 = vpop.permute.xlu1 %4943 }
 0x62d   : > { %5109 = vrot.lane.b32.xlu2 %v12837_v11, %s15009_s30  ;;  %v4961_v39 = vrot.slane %v4950_v35, 4  ;;  %v14857_v55 = vrot.slane %v12841_v62, 4 }
 0x62f   : > { %v12846_v2 = vpop.permute.xlu2 %5355  ;;  %v4972_v50 = vsel %vm444_vm0, %v4961_v39, %v14861_v16  ;;  %v4965_v10 = vsel %vm444_vm0, %v4957_v21, %v14857_v55  ;;  %v14863_v21 = vrot.slane %v12824_v22, 4 }
 0x630   : > { %v4973_v18 = vsel %vm15010_vm15, %v4950_v35, %v4972_v50  ;;  %v4966_v60 = vsel %vm15011_vm1, %v12778_v48, %v4965_v10  ;;  %7000 = vmatpush.bf16.msra.mxu3 %v8969_v30  ;;  %v5442_v35 = vrot.slane %v12807_v19, 4  ;;  %v8841_v50 = vor.u32 %v9895_v43, %v8840_v4  ;;  %vm15026_vm15 = vmmov %vm15023_vm9 }
 0x631   : > { %4991 = vst [vmem:[#allocation2 + $0x3e0] sm:$0xff] %v4973_v18  ;;  %vm15028_vm1 = vmmov %vm15025_vm12 }
 0x632   : > { %4987 = vst [vmem:[#allocation2 + $0x3c0] sm:$0xff] %v4966_v60  ;;  %5119 = vrot.lane.b32.xlu0 %v12351_v26, %s15009_s30  ;;  %5117 = vrot.lane.b32.xlu1 %v12349_v44, %s15009_s30 }
 0x634   : > { %7001 = vmatpush.bf16.msra.mxu3 %v8937_v36  ;;  %v12863_v46 = vpop.permute.xlu0 %5419  ;;  %v5418_v25 = vpop.permute.xlu1 %5417  ;;  %v8809_v36 = vor.u32 %v9887_v58, %v8808_v33 }
 0x635   : > { %5541 = vrot.lane.b32.xlu2 %v12831_v24, %s15012_s11  ;;  %v14851_v48 = vrot.slane %v12863_v46, 4  ;;  %v5437_v14 = vrot.slane %v5418_v25, 4 }
 0x637   : > { %v12866_v17 = vpop.permute.xlu2 %5367  ;;  %v5447_v13 = vsel %vm444_vm0, %v5437_v14, %v14851_v48 }
 0x638   : > { %v5448_v5 = vsel %vm1817_vm14, %v5418_v25, %v5447_v13  ;;  %7002 = vmatpush.bf16.msra.mxu3 %v8905_v61  ;;  %v9999_v59 = vld [vmem:[#allocation2 + $0x3dc] sm:$0xf0]  ;;  %v9258_v15 = vld [vmem:[#allocation2 + $0x3e0] sm:$0xf0]  ;;  %v14855_v4 = vrot.slane %v12866_v17, 4 }
 0x639   : > { %5471 = vst [vmem:[#allocation2 + $0x5c0] sm:$0xff] %v5448_v5  ;;  %v9256_v6 = vld [vmem:[#allocation2 + $0x3c0] sm:$0xf] }
 0x63a   : > { %5551 = vrot.lane.b32.xlu0 %v12349_v44, %s15012_s11  ;;  %5543 = vrot.lane.b32.xlu1 %v12837_v11, %s15012_s11  ;;  %v9257_v38 = vor.u32 %v9999_v59, %v9256_v6  ;;  %v8777_v59 = vor.u32 %v9879_v42, %v8776_v9  ;;  %v12931_v9 = vld [vmem:[#allocation2 + $0x368] sm:$0xff] }
 0x63c   : > { %7003 = vmatpush.bf16.msra.mxu3 %v8873_v63  ;;  %7013 = vmatpush.bf16.msra.mxu0 %v9257_v38  ;;  %v4888_v45 = vpop.permute.xlu0 %4887  ;;  %v12878_v51 = vpop.permute.xlu1 %5429 }
 0x63d   : > { %5553 = vrot.lane.b32.xlu2 %v12351_v26, %s15012_s11  ;;  %v4903_v39 = vrot.slane %v4888_v45, 4  ;;  %v14853_v44 = vrot.slane %v12878_v51, 4 }
 0x63f   : > { %v12883_v30 = vpop.permute.xlu2 %5303  ;;  %v4911_v26 = vsel %vm444_vm0, %v4903_v39, %v14863_v21  ;;  %v5455_v10 = vsel %vm444_vm0, %v5442_v35, %v14853_v44  ;;  %v5375_v39 = vrot.slane %v12846_v2, 4 }
 0x640   : > { %v4912_v18 = vsel %vm15013_vm3, %v4888_v45, %v4911_v26  ;;  %v5456_v60 = vsel %vm1817_vm14, %v12807_v19, %v5455_v10  ;;  %7004 = vmatpush.bf16.msra.mxu3 %v8841_v50  ;;  %v9995_v19 = vld [vmem:[#allocation2 + $0x3c4] sm:$0xf]  ;;  %v9512_v63 = vld [vmem:[#allocation2 + $0x5c0] sm:$0xf]  ;;  %vm15029_vm3 = vcmask 138240  }
 0x641   : > { %4933 = vst [vmem:[#allocation2 + $0x380] sm:$0xff] %v4912_v18  ;;  %v9261_v57 = vor.u32 %v9995_v19, %v9258_v15 }
 0x642   : > { %5475 = vst [vmem:[#allocation2 + $0x5e0] sm:$0xff] %v5456_v60  ;;  %4617 = vrot.lane.b32.xlu0 %v12284_v56, %s15014_s17  ;;  %4615 = vrot.lane.b32.xlu1 %v12282_v7, %s15014_s17 }
 0x644   : > { %7005 = vmatpush.bf16.msra.mxu3 %v8809_v36  ;;  %v12900_v25 = vpop.permute.xlu0 %4897  ;;  %v4896_v14 = vpop.permute.xlu1 %4895 }
 0x645   : > { %4625 = vrot.lane.b32.xlu2 %v12334_v34, %s15014_s17  ;;  %v14839_v61 = vrot.slane %v12900_v25, 4  ;;  %v4907_v13 = vrot.slane %v4896_v14, 4 }
 0x647   : > { %v12903_v5 = vpop.permute.xlu2 %4803  ;;  %v4918_v7 = vsel %vm444_vm0, %v4907_v13, %v14839_v61 }
 0x648   : > { %v4919_v6 = vsel %vm15015_vm4, %v4896_v14, %v4918_v7  ;;  %7006 = vmatpush.bf16.msra.mxu3 %v8777_v59  ;;  %v9224_v60 = vld [vmem:[#allocation2 + $0x380] sm:$0xf]  ;;  %v9987_v14 = vld [vmem:[#allocation2 + $0x384] sm:$0xf]  ;;  %vm15030_vm4 = vmmov %vm15029_vm3 }
 0x649   : > { %4937 = vst [vmem:[#allocation2 + $0x3a0] sm:$0xff] %v4919_v6  ;;  %v10063_v38 = vld [vmem:[#allocation2 + $0x5dc] sm:$0xf0]  ;;  %v9514_v54 = vld [vmem:[#allocation2 + $0x5e0] sm:$0xf0] }
 0x64a   : > { %5049 = vrot.lane.b32.xlu0 %v12831_v24, %s15016_s27  ;;  %4627 = vrot.lane.b32.xlu1 %v12336_v0, %s15014_s17  ;;  %v9513_v43 = vor.u32 %v10063_v38, %v9512_v63  ;;  %v12935_v59 = vld [vmem:[#allocation2 + $0x360] sm:$0xff] }
 0x64b   : > { %v9983_v7 = vld [vmem:[#allocation2 + $0x35c] sm:$0xf0]  ;;  %v9979_v38 = vld [vmem:[#allocation2 + $0x344] sm:$0xf] }
 0x64c   : > { %7069 = vmatpush.bf16.msrb.mxu3 %v9261_v57  ;;  %7027 = vmatpush.bf16.msra.mxu1 %v9513_v43  ;;  %v5366_v45 = vpop.permute.xlu0 %5365  ;;  %v12915_v35 = vpop.permute.xlu1 %5357  ;;  %v9194_v57 = vld [vmem:[#allocation2 + $0x360] sm:$0xf0]  ;;  %v9192_v63 = vld [vmem:[#allocation2 + $0x340] sm:$0xf] }
 0x64d   : > { %5051 = vrot.lane.b32.xlu2 %v12837_v11, %s15016_s27  ;;  %v5380_v50 = vrot.slane %v5366_v45, 4  ;;  %v14845_v26 = vrot.slane %v12915_v35, 4 }
 0x64f   : > { %v12920_v10 = vpop.permute.xlu2 %5231  ;;  %v5393_v58 = vsel %vm444_vm0, %v5380_v50, %v14855_v4  ;;  %v5385_v18 = vsel %vm444_vm0, %v5375_v39, %v14845_v26  ;;  %v9193_v39 = vor.u32 %v9983_v7, %v9192_v63  ;;  %v9197_v50 = vor.u32 %v9979_v38, %v9194_v57 }
 0x650   : > { %v5394_v33 = vsel %vm1754_vm11, %v5366_v45, %v5393_v58  ;;  %v5386_v36 = vsel %vm1754_vm11, %v12846_v2, %v5385_v18  ;;  %v9991_v42 = vld [vmem:[#allocation2 + $0x39c] sm:$0xf0]  ;;  %v9226_v19 = vld [vmem:[#allocation2 + $0x3a0] sm:$0xf0] }
 0x651   : > { %5413 = vst [vmem:[#allocation2 + $0x5a0] sm:$0xff] %v5394_v33  ;;  %v9225_v15 = vor.u32 %v9991_v42, %v9224_v60  ;;  %v9229_v13 = vor.u32 %v9987_v14, %v9226_v19 }
 0x652   : > { %5409 = vst [vmem:[#allocation2 + $0x580] sm:$0xff] %v5386_v36  ;;  %5059 = vrot.lane.b32.xlu0 %v12931_v9, %s15016_s27  ;;  %5057 = vrot.lane.b32.xlu1 %v12935_v59, %s15016_s27 }
 0x653   : > { %7014 = vmatpush.bf16.msra.mxu0 %v9225_v15  ;;  %7070 = vmatpush.bf16.msrb.mxu3 %v9229_v13  ;;  %v5318_v15 = vrot.slane %v12883_v30, 4  ;;  %v14854_v13 = vrot.slane %v12903_v5, 4 }
 0x654   : > { %v12939_v2 = vpop.permute.xlu0 %5295  ;;  %v5294_v6 = vpop.permute.xlu1 %5293 }
 0x655   : > { %5479 = vrot.lane.b32.xlu2 %v12831_v24, %s15017_s0  ;;  %v14837_v43 = vrot.slane %v12939_v2, 4  ;;  %v5313_v45 = vrot.slane %v5294_v6, 4 }
 0x657   : > { %v12944_v58 = vpop.permute.xlu2 %5243  ;;  %v5323_v18 = vsel %vm444_vm0, %v5313_v45, %v14837_v43  ;;  %7015 = vmatpush.bf16.msra.mxu0 %v9193_v39  ;;  %7071 = vmatpush.bf16.msrb.mxu3 %v9197_v50 }
 0x658   : > { %v5324_v60 = vsel %vm1691_vm13, %v5294_v6, %v5323_v18  ;;  %v10055_v33 = vld [vmem:[#allocation2 + $0x59c] sm:$0xf0] }
 0x659   : > { %5347 = vst [vmem:[#allocation2 + $0x540] sm:$0xff] %v5324_v60  ;;  %v9480_v36 = vld [vmem:[#allocation2 + $0x580] sm:$0xf]  ;;  %v10051_v20 = vld [vmem:[#allocation2 + $0x584] sm:$0xf] }
 0x65a   : > { %5489 = vrot.lane.b32.xlu0 %v12935_v59, %s15017_s0  ;;  %5481 = vrot.lane.b32.xlu1 %v12837_v11, %s15017_s0  ;;  %v9481_v42 = vor.u32 %v10055_v33, %v9480_v36 }
 0x65c   : > { %7028 = vmatpush.bf16.msra.mxu1 %v9481_v42  ;;  %v4802_v14 = vpop.permute.xlu0 %4801  ;;  %v12954_v19 = vpop.permute.xlu1 %5305 }
 0x65d   : > { %5491 = vrot.lane.b32.xlu2 %v12931_v9, %s15017_s0  ;;  %v4821_v7 = vrot.slane %v4802_v14, 4  ;;  %v14838_v57 = vrot.slane %v12954_v19, 4 }
 0x65f   : > { %v12961_v6 = vpop.permute.xlu2 %4749  ;;  %v4831_v63 = vsel %vm444_vm0, %v4821_v7, %v14854_v13  ;;  %v5331_v38 = vsel %vm444_vm0, %v5318_v15, %v14838_v57 }
 0x660   : > { %v4832_v45 = vsel %vm15018_vm5, %v4802_v14, %v4831_v63  ;;  %v5332_v39 = vsel %vm1691_vm13, %v12883_v30, %v5331_v38  ;;  %v9448_v42 = vld [vmem:[#allocation2 + $0x540] sm:$0xf]  ;;  %v12987_v14 = vld [vmem:[#allocation2 + $0x370] sm:$0xff]  ;;  %v5251_v38 = vrot.slane %v12920_v10, 4  ;;  %vm15031_vm5 = vcmask 80896  }
 0x661   : > { %4855 = vst [vmem:[#allocation2 + $0x300] sm:$0xff] %v4832_v45  ;;  %v14849_v45 = vrot.slane %v12944_v58, 4 }
 0x662   : > { %5351 = vst [vmem:[#allocation2 + $0x560] sm:$0xff] %v5332_v39  ;;  %4563 = vrot.lane.b32.xlu0 %v12334_v34, %s14991_s24  ;;  %4555 = vrot.lane.b32.xlu1 %v12284_v56, %s14991_s24 }
 0x664   : > { %v12976_v50 = vpop.permute.xlu0 %4813  ;;  %v4812_v18 = vpop.permute.xlu1 %4811 }
 0x665   : > { %4565 = vrot.lane.b32.xlu2 %v12336_v0, %s14991_s24  ;;  %v14836_v60 = vrot.slane %v12976_v50, 4  ;;  %v4826_v33 = vrot.slane %v4812_v18, 4  ;;  %v12991_v0 = vld [vmem:[#allocation2 + $0x350] sm:$0xff] }
 0x667   : > { %v12981_v36 = vpop.permute.xlu2 %5171  ;;  %v4839_v30 = vsel %vm444_vm0, %v4826_v33, %v14836_v60 }
 0x668   : > { %v4840_v34 = vsel %vm15019_vm6, %v4812_v18, %v4839_v30  ;;  %v9971_v60 = vld [vmem:[#allocation2 + $0x304] sm:$0xf]  ;;  %vm15032_vm6 = vcmask 318464  }
 0x669   : > { %4859 = vst [vmem:[#allocation2 + $0x320] sm:$0xff] %v4840_v34  ;;  %v10047_v56 = vld [vmem:[#allocation2 + $0x55c] sm:$0xf0] }
 0x66a   : > { %4953 = vrot.lane.b32.xlu0 %v12987_v14, %s14992_s26  ;;  %4945 = vrot.lane.b32.xlu1 %v12991_v0, %s14992_s26  ;;  %v9449_v15 = vor.u32 %v10047_v56, %v9448_v42  ;;  %v9160_v42 = vld [vmem:[#allocation2 + $0x300] sm:$0xf] }
 0x66c   : > { %7029 = vmatpush.bf16.msra.mxu1 %v9449_v15  ;;  %v5242_v7 = vpop.permute.xlu0 %5241  ;;  %v12995_v63 = vpop.permute.xlu1 %5233 }
 0x66d   : > { %4995 = vrot.lane.b32.xlu2 %v12831_v24, %s15020_s1  ;;  %v5256_v39 = vrot.slane %v5242_v7, 4  ;;  %v14842_v18 = vrot.slane %v12995_v63, 4 }
 0x66f   : > { %v13002_v33 = vpop.permute.xlu2 %5603  ;;  %v5269_v30 = vsel %vm444_vm0, %v5256_v39, %v14849_v45  ;;  %v5261_v34 = vsel %vm444_vm0, %v5251_v38, %v14842_v18 }
 0x670   : > { %v5270_v24 = vsel %vm15021_vm7, %v5242_v7, %v5269_v30  ;;  %v5262_v56 = vsel %vm15022_vm8, %v12920_v10, %v5261_v34  ;;  %v9975_v15 = vld [vmem:[#allocation2 + $0x31c] sm:$0xf0]  ;;  %v9162_v43 = vld [vmem:[#allocation2 + $0x320] sm:$0xf0]  ;;  %v4764_v34 = vrot.slane %v12961_v6, 4  ;;  %vm15033_vm7 = vmmov %vm15031_vm5 }
 0x671   : > { %5289 = vst [vmem:[#allocation2 + $0x520] sm:$0xff] %v5270_v24  ;;  %v9161_v57 = vor.u32 %v9975_v15, %v9160_v42  ;;  %v9165_v61 = vor.u32 %v9971_v60, %v9162_v43  ;;  %v14843_v42 = vrot.slane %v12981_v36, 4  ;;  %vm15034_vm8 = vmmov %vm15032_vm6 }
 0x672   : > { %5285 = vst [vmem:[#allocation2 + $0x500] sm:$0xff] %v5262_v56  ;;  %5003 = vrot.lane.b32.xlu0 %v12935_v59, %s15020_s1  ;;  %4997 = vrot.lane.b32.xlu1 %v12837_v11, %s15020_s1 }
 0x673   : > { %7016 = vmatpush.bf16.msra.mxu0 %v9161_v57  ;;  %7072 = vmatpush.bf16.msrb.mxu3 %v9165_v61 }
 0x674   : > { %v13017_v38 = vpop.permute.xlu0 %4741  ;;  %v4740_v7 = vpop.permute.xlu1 %4739 }
 0x675   : > { %5005 = vrot.lane.b32.xlu2 %v12931_v9, %s15020_s1  ;;  %v14840_v10 = vrot.slane %v13017_v38, 4  ;;  %v4759_v39 = vrot.slane %v4740_v7, 4 }
 0x677   : > { %v13022_v30 = vpop.permute.xlu2 %5615  ;;  %v4769_v59 = vsel %vm444_vm0, %v4759_v39, %v14840_v10 }
 0x678   : > { %v4770_v43 = vsel %vm15023_vm9, %v4740_v7, %v4769_v59  ;;  %v10039_v11 = vld [vmem:[#allocation2 + $0x51c] sm:$0xf0]  ;;  %vm15035_vm9 = vcmask 146432  }
 0x679   : > { %4793 = vst [vmem:[#allocation2 + $0x2c0] sm:$0xff] %v4770_v43  ;;  %v9416_v61 = vld [vmem:[#allocation2 + $0x500] sm:$0xf] }
 0x67a   : > { %5431 = vrot.lane.b32.xlu0 %v12987_v14, %s15024_s2  ;;  %5421 = vrot.lane.b32.xlu1 %v12991_v0, %s15024_s2  ;;  %v9417_v9 = vor.u32 %v10039_v11, %v9416_v61 }
 0x67c   : > { %7030 = vmatpush.bf16.msra.mxu1 %v9417_v9  ;;  %v5170_v57 = vpop.permute.xlu0 %5169  ;;  %v13032_v60 = vpop.permute.xlu1 %4751 }
 0x67d   : > { %4891 = vrot.lane.b32.xlu2 %v12991_v0, %s14993_s13  ;;  %v5189_v24 = vrot.slane %v5170_v57, 4  ;;  %v14841_v56 = vrot.slane %v13032_v60, 4 }
 0x67f   : > { %v13039_v15 = vpop.permute.xlu2 %4687  ;;  %v5199_v7 = vsel %vm444_vm0, %v5189_v24, %v14843_v42  ;;  %v4777_v39 = vsel %vm444_vm0, %v4764_v34, %v14841_v56 }
 0x680   : > { %v5200_v59 = vsel %vm15025_vm12, %v5170_v57, %v5199_v7  ;;  %v4778_v43 = vsel %vm15026_vm15, %v12961_v6, %v4777_v39  ;;  %v9128_v7 = vld [vmem:[#allocation2 + $0x2c0] sm:$0xf]  ;;  %v9963_v39 = vld [vmem:[#allocation2 + $0x2c4] sm:$0xf]  ;;  %vm15036_vm12 = vmmov %vm15035_vm9  ;;  %vm15038_vm15 = vcmask 89088  }
 0x681   : > { %5223 = vst [vmem:[#allocation2 + $0x4c0] sm:$0xff] %v5200_v59 }
 0x682   : > { %4797 = vst [vmem:[#allocation2 + $0x2e0] sm:$0xff] %v4778_v43  ;;  %5359 = vrot.lane.b32.xlu0 %v12991_v0, %s15027_s9  ;;  %4899 = vrot.lane.b32.xlu1 %v12987_v14, %s14993_s13 }
 0x684   : > { %v13054_v11 = vpop.permute.xlu0 %5181  ;;  %v5180_v61 = vpop.permute.xlu1 %5179 }
 0x685   : > { %5369 = vrot.lane.b32.xlu2 %v12987_v14, %s15027_s9  ;;  %v14844_v9 = vrot.slane %v13054_v11, 4  ;;  %v5194_v57 = vrot.slane %v5180_v61, 4 }
 0x687   : > { %v13059_v34 = vpop.permute.xlu2 %5109  ;;  %v5207_v6 = vsel %vm444_vm0, %v5194_v57, %v14844_v9  ;;  %v14846_v57 = vrot.slane %v13022_v30, 4 }
 0x688   : > { %v5208_v24 = vsel %vm15028_vm1, %v5180_v61, %v5207_v6  ;;  %v5623_v61 = vrot.slane %v13002_v33, 4  ;;  %vm15039_vm1 = vcmask 957440  }
 0x689   : > { %5227 = vst [vmem:[#allocation2 + $0x4e0] sm:$0xff] %v5208_v24  ;;  %v9967_v59 = vld [vmem:[#allocation2 + $0x2dc] sm:$0xf0]  ;;  %v9130_v43 = vld [vmem:[#allocation2 + $0x2e0] sm:$0xf0] }
 0x68a   : > { %5307 = vrot.lane.b32.xlu0 %v12987_v14, %s14994_s14  ;;  %5297 = vrot.lane.b32.xlu1 %v12991_v0, %s14994_s14  ;;  %v9129_v10 = vor.u32 %v9967_v59, %v9128_v7  ;;  %v9133_v56 = vor.u32 %v9963_v39, %v9130_v43  ;;  %v9384_v59 = vld [vmem:[#allocation2 + $0x4c0] sm:$0xf] }
 0x68c   : > { %7017 = vmatpush.bf16.msra.mxu0 %v9129_v10  ;;  %7073 = vmatpush.bf16.msrb.mxu3 %v9133_v56  ;;  %v5614_v18 = vpop.permute.xlu0 %5613  ;;  %v13069_v42 = vpop.permute.xlu1 %5605 }
 0x68d   : > { %v5628_v6 = vrot.slane %v5614_v18, 4  ;;  %v14847_v24 = vrot.slane %v13069_v42, 4  ;;  %4805 = vrot.lane.b32.xlu2 %v12287_v29, %s14995_s19 }
 0x68f   : > { %v13076_v9 = vpop.permute.xlu2 %5541  ;;  %v5641_v10 = vsel %vm444_vm0, %v5628_v6, %v14846_v57  ;;  %v5633_v56 = vsel %vm444_vm0, %v5623_v61, %v14847_v24  ;;  %v4702_v24 = vrot.slane %v13039_v15, 4 }
 0x690   : > { %v5642_v7 = vsel %vm15029_vm3, %v5614_v18, %v5641_v10  ;;  %v5634_v39 = vsel %vm15030_vm4, %v13002_v33, %v5633_v56  ;;  %v10031_v43 = vld [vmem:[#allocation2 + $0x4dc] sm:$0xf0]  ;;  %vm15040_vm3 = vmmov %vm15038_vm15 }
 0x691   : > { %5661 = vst [vmem:[#allocation2 + $0x6a0] sm:$0xff] %v5642_v7  ;;  %v9385_v26 = vor.u32 %v10031_v43, %v9384_v59  ;;  %vm15041_vm4 = vmmov %vm15039_vm1 }
 0x692   : > { %5657 = vst [vmem:[#allocation2 + $0x680] sm:$0xff] %v5634_v39  ;;  %5235 = vrot.lane.b32.xlu0 %v12991_v0, %s14996_s21  ;;  %4815 = vrot.lane.b32.xlu1 %v12339_v12, %s14995_s19 }
 0x693   : > { %7031 = vmatpush.bf16.msra.mxu1 %v9385_v26 }
 0x694   : > { %v13091_v6 = vpop.permute.xlu0 %4679  ;;  %v4678_v61 = vpop.permute.xlu1 %4677 }
 0x695   : > { %v14848_v18 = vrot.slane %v13091_v6, 4  ;;  %v4697_v10 = vrot.slane %v4678_v61, 4  ;;  %5245 = vrot.lane.b32.xlu2 %v12987_v14, %s14996_s21 }
 0x697   : > { %v13096_v33 = vpop.permute.xlu2 %5553  ;;  %v4707_v56 = vsel %vm444_vm0, %v4697_v10, %v14848_v18  ;;  %v14850_v10 = vrot.slane %v13059_v34, 4 }
 0x698   : > { %v4708_v7 = vsel %vm15031_vm5, %v4678_v61, %v4707_v56  ;;  %v10087_v39 = vld [vmem:[#allocation2 + $0x69c] sm:$0xf0]  ;;  %vm15042_vm5 = vcmask 154624  }
 0x699   : > { %4731 = vst [vmem:[#allocation2 + $0x280] sm:$0xff] %v4708_v7  ;;  %v9608_v26 = vld [vmem:[#allocation2 + $0x680] sm:$0xf] }
 0x69a   : > { %4753 = vrot.lane.b32.xlu0 %v12339_v12, %s14997_s22  ;;  %4743 = vrot.lane.b32.xlu1 %v12287_v29, %s14997_s22  ;;  %v9609_v59 = vor.u32 %v10087_v39, %v9608_v26 }
 0x69c   : > { %7046 = vmatpush.bf16.msra.mxu2 %v9609_v59  ;;  %v5108_v43 = vpop.permute.xlu0 %5107  ;;  %v13106_v57 = vpop.permute.xlu1 %4689 }
 0x69d   : > { %v5127_v18 = vrot.slane %v5108_v43, 4  ;;  %v14852_v61 = vrot.slane %v13106_v57, 4  ;;  %5173 = vrot.lane.b32.xlu2 %v12991_v0, %s14998_s28 }
 0x69f   : > { %v13113_v56 = vpop.permute.xlu2 %4625  ;;  %v5137_v7 = vsel %vm444_vm0, %v5127_v18, %v14850_v10  ;;  %v4715_v39 = vsel %vm444_vm0, %v4702_v24, %v14852_v61 }
 0x6a0   : > { %v5138_v26 = vsel %vm15032_vm6, %v5108_v43, %v5137_v7  ;;  %v4716_v59 = vsel %vm15033_vm7, %v13039_v15, %v4715_v39  ;;  %v9096_v7 = vld [vmem:[#allocation2 + $0x280] sm:$0xf]  ;;  %v9955_v39 = vld [vmem:[#allocation2 + $0x284] sm:$0xf]  ;;  %vm15043_vm6 = vmmov %vm15042_vm5  ;;  %vm15044_vm7 = vcmask 728064  }
 0x6a1   : > { %5161 = vst [vmem:[#allocation2 + $0x480] sm:$0xff] %v5138_v26 }
 0x6a2   : > { %4735 = vst [vmem:[#allocation2 + $0x2a0] sm:$0xff] %v4716_v59  ;;  %4681 = vrot.lane.b32.xlu0 %v12287_v29, %s15007_s20  ;;  %5183 = vrot.lane.b32.xlu1 %v12987_v14, %s14998_s28 }
 0x6a4   : > { %v13128_v45 = vpop.permute.xlu0 %5119  ;;  %v5118_v18 = vpop.permute.xlu1 %5117 }
 0x6a5   : > { %v14856_v10 = vrot.slane %v13128_v45, 4  ;;  %v5132_v48 = vrot.slane %v5118_v18, 4  ;;  %4691 = vrot.lane.b32.xlu2 %v12339_v12, %s15007_s20 }
 0x6a7   : > { %v13133_v24 = vpop.permute.xlu2 %5051  ;;  %v5145_v15 = vsel %vm444_vm0, %v5132_v48, %v14856_v10  ;;  %v5561_v48 = vrot.slane %v13076_v9, 4 }
 0x6a8   : > { %v5146_v43 = vsel %vm15034_vm8, %v5118_v18, %v5145_v15  ;;  %v14858_v18 = vrot.slane %v13096_v33, 4  ;;  %vm15045_vm8 = vmmov %vm15044_vm7 }
 0x6a9   : > { %5165 = vst [vmem:[#allocation2 + $0x4a0] sm:$0xff] %v5146_v43  ;;  %v9959_v26 = vld [vmem:[#allocation2 + $0x29c] sm:$0xf0]  ;;  %v9098_v59 = vld [vmem:[#allocation2 + $0x2a0] sm:$0xf0] }
 0x6aa   : > { %5121 = vrot.lane.b32.xlu0 %v12987_v14, %s15009_s30  ;;  %5111 = vrot.lane.b32.xlu1 %v12991_v0, %s15009_s30  ;;  %v9097_v61 = vor.u32 %v9959_v26, %v9096_v7  ;;  %v9101_v44 = vor.u32 %v9955_v39, %v9098_v59  ;;  %v9352_v26 = vld [vmem:[#allocation2 + $0x480] sm:$0xf] }
 0x6ac   : > { %7018 = vmatpush.bf16.msra.mxu0 %v9097_v61  ;;  %7074 = vmatpush.bf16.msrb.mxu3 %v9101_v44  ;;  %v5552_v13 = vpop.permute.xlu0 %5551  ;;  %v13143_v4 = vpop.permute.xlu1 %5543 }
 0x6ad   : > { %v5566_v15 = vrot.slane %v5552_v13, 4  ;;  %v14859_v43 = vrot.slane %v13143_v4, 4  ;;  %5607 = vrot.lane.b32.xlu2 %v12991_v0, %s15001_s29 }
 0x6af   : > { %v13150_v10 = vpop.permute.xlu2 %5479  ;;  %v5579_v61 = vsel %vm444_vm0, %v5566_v15, %v14858_v18  ;;  %v5571_v44 = vsel %vm444_vm0, %v5561_v48, %v14859_v43  ;;  %v4640_v43 = vrot.slane %v13113_v56, 4 }
 0x6b0   : > { %v5580_v7 = vsel %vm15035_vm9, %v5552_v13, %v5579_v61  ;;  %v5572_v39 = vsel %vm15036_vm12, %v13076_v9, %v5571_v44  ;;  %v10023_v59 = vld [vmem:[#allocation2 + $0x49c] sm:$0xf0]  ;;  %vm15047_vm9 = vcmask 1039360   ;;  %vm15051_vm12 = vcmask 392192  }
 0x6b1   : > { %5599 = vst [vmem:[#allocation2 + $0x660] sm:$0xff] %v5580_v7  ;;  %v9353_v55 = vor.u32 %v10023_v59, %v9352_v26 }
 0x6b2   : > { %5595 = vst [vmem:[#allocation2 + $0x640] sm:$0xff] %v5572_v39  ;;  %4619 = vrot.lane.b32.xlu0 %v12287_v29, %s15014_s17  ;;  %5617 = vrot.lane.b32.xlu1 %v12987_v14, %s15001_s29 }
 0x6b3   : > { %7032 = vmatpush.bf16.msra.mxu1 %v9353_v55 }
 0x6b4   : > { %v13165_v15 = vpop.permute.xlu0 %4617  ;;  %v4616_v48 = vpop.permute.xlu1 %4615 }
 0x6b5   : > { %v14860_v13 = vrot.slane %v13165_v15, 4  ;;  %v4635_v61 = vrot.slane %v4616_v48, 4  ;;  %4629 = vrot.lane.b32.xlu2 %v12339_v12, %s15014_s17 }
 0x6b7   : > { %v13170_v9 = vpop.permute.xlu2 %5491  ;;  %v4645_v44 = vsel %vm444_vm0, %v4635_v61, %v14860_v13  ;;  %v14862_v61 = vrot.slane %v13133_v24, 4 }
 0x6b8   : > { %15037 = vst [vmem:[#allocation29_spill] sm:$0xff] %v13170_v9  ;;  %v4646_v7 = vsel %vm15038_vm15, %v4616_v48, %v4645_v44  ;;  %v10079_v39 = vld [vmem:[#allocation2 + $0x65c] sm:$0xf0]  ;;  %vm15052_vm15 = vcmask 973824  }
 0x6b9   : > { %4669 = vst [vmem:[#allocation2 + $0x240] sm:$0xff] %v4646_v7  ;;  %v9576_v55 = vld [vmem:[#allocation2 + $0x640] sm:$0xf] }
 0x6ba   : > { %5061 = vrot.lane.b32.xlu0 %v12987_v14, %s15016_s27  ;;  %5053 = vrot.lane.b32.xlu1 %v12991_v0, %s15016_s27  ;;  %v9577_v26 = vor.u32 %v10079_v39, %v9576_v55 }
 0x6bc   : > { %7047 = vmatpush.bf16.msra.mxu2 %v9577_v26  ;;  %v5050_v59 = vpop.permute.xlu0 %5049  ;;  %v13180_v18 = vpop.permute.xlu1 %4627 }
 0x6bd   : > { %v5065_v13 = vrot.slane %v5050_v59, 4  ;;  %v14864_v48 = vrot.slane %v13180_v18, 4  ;;  %5545 = vrot.lane.b32.xlu2 %v12991_v0, %s15012_s11 }
 0x6bf   : > { %v13187_v44 = vpop.permute.xlu2 %4565  ;;  %v5073_v7 = vsel %vm444_vm0, %v5065_v13, %v14862_v61  ;;  %v4653_v39 = vsel %vm444_vm0, %v4640_v43, %v14864_v48 }
 0x6c0   : > { %v5074_v55 = vsel %vm15039_vm1, %v5050_v59, %v5073_v7  ;;  %v4654_v26 = vsel %vm15040_vm3, %v13113_v56, %v4653_v39  ;;  %v9064_v59 = vld [vmem:[#allocation2 + $0x240] sm:$0xf]  ;;  %v9947_v7 = vld [vmem:[#allocation2 + $0x244] sm:$0xf]  ;;  %vm15053_vm1 = vmmov %vm15052_vm15  ;;  %vm15056_vm3 = vcmask 965632  }
 0x6c1   : > { %5095 = vst [vmem:[#allocation2 + $0x440] sm:$0xff] %v5074_v55 }
 0x6c2   : > { %4673 = vst [vmem:[#allocation2 + $0x260] sm:$0xff] %v4654_v26  ;;  %4557 = vrot.lane.b32.xlu0 %v12287_v29, %s14991_s24  ;;  %5555 = vrot.lane.b32.xlu1 %v12987_v14, %s15012_s11 }
 0x6c4   : > { %v13202_v16 = vpop.permute.xlu0 %5059  ;;  %v5058_v13 = vpop.permute.xlu1 %5057 }
 0x6c5   : > { %v14867_v61 = vrot.slane %v13202_v16, 4  ;;  %v5069_v21 = vrot.slane %v5058_v13, 4  ;;  %4567 = vrot.lane.b32.xlu2 %v12339_v12, %s14991_s24 }
 0x6c7   : > { %v13207_v43 = vpop.permute.xlu2 %4995  ;;  %v5080_v56 = vsel %vm444_vm0, %v5069_v21, %v14867_v61  ;;  %v5499_v21 = vrot.slane %v13150_v10, 4 }
 0x6c8   : > { %v5081_v29 = vsel %vm15041_vm4, %v5058_v13, %v5080_v56  ;;  %v14870_v13 = vrot.slane %v13170_v9, 4  ;;  %v9482_v9 = vld [vmem:[#allocation2 + $0x5a0] sm:$0xf0]  ;;  %vm15057_vm4 = vmmov %vm15056_vm3 }
 0x6c9   : > { %5099 = vst [vmem:[#allocation2 + $0x460] sm:$0xff] %v5081_v29  ;;  %v9951_v39 = vld [vmem:[#allocation2 + $0x25c] sm:$0xf0]  ;;  %v9066_v55 = vld [vmem:[#allocation2 + $0x260] sm:$0xf0] }
 0x6ca   : > { %5007 = vrot.lane.b32.xlu0 %v12987_v14, %s15020_s1  ;;  %4999 = vrot.lane.b32.xlu1 %v12991_v0, %s15020_s1  ;;  %v9065_v12 = vor.u32 %v9951_v39, %v9064_v59  ;;  %v9069_v26 = vor.u32 %v9947_v7, %v9066_v55 }
 0x6cc   : > { %7019 = vmatpush.bf16.msra.mxu0 %v9065_v12  ;;  %7075 = vmatpush.bf16.msrb.mxu3 %v9069_v26  ;;  %v5490_v48 = vpop.permute.xlu0 %5489  ;;  %v13217_v53 = vpop.permute.xlu1 %5481  ;;  %v9320_v12 = vld [vmem:[#allocation2 + $0x440] sm:$0xf] }
 0x6cd   : > { %v5504_v56 = vrot.slane %v5490_v48, 4  ;;  %v14871_v29 = vrot.slane %v13217_v53, 4  ;;  %5483 = vrot.lane.b32.xlu2 %v12991_v0, %s15017_s0 }
 0x6cf   : > { %v13224_v61 = vpop.permute.xlu2 %5005  ;;  %v5517_v59 = vsel %vm444_vm0, %v5504_v56, %v14870_v13  ;;  %v5509_v7 = vsel %vm444_vm0, %v5499_v21, %v14871_v29  ;;  %v14874_v21 = vrot.slane %v13187_v44, 4  ;;  %v9002_v13 = vld [vmem:[#allocation2 + $0x1e0] sm:$0xf0] }
 0x6d0   : > { %v5518_v39 = vsel %vm15042_vm5, %v5490_v48, %v5517_v59  ;;  %v5510_v55 = vsel %vm15043_vm6, %v13150_v10, %v5509_v7  ;;  %v10015_v26 = vld [vmem:[#allocation2 + $0x45c] sm:$0xf0]  ;;  %v4573_v48 = vrot.slane %v12822_v27, 4  ;;  %vm15059_vm5 = vcmask 7168  }
 0x6d1   : > { %5537 = vst [vmem:[#allocation2 + $0x620] sm:$0xff] %v5518_v39  ;;  %v9321_v1 = vor.u32 %v10015_v26, %v9320_v12  ;;  %vm15066_vm6 = vcmask 302080  }
 0x6d2   : > { %5533 = vst [vmem:[#allocation2 + $0x600] sm:$0xff] %v5510_v55  ;;  %4947 = vrot.lane.b32.xlu0 %v12355_v41, %s14992_s26  ;;  %5493 = vrot.lane.b32.xlu1 %v12987_v14, %s15017_s0 }
 0x6d3   : > { %7033 = vmatpush.bf16.msra.mxu1 %v9321_v1 }
 0x6d4   : > { %v4564_v0 = vpop.permute.xlu0 %4563  ;;  %v13239_v56 = vpop.permute.xlu1 %4555 }
 0x6d5   : > { %v4578_v10 = vrot.slane %v4564_v0, 4  ;;  %v14885_v59 = vrot.slane %v13239_v56, 4  ;;  %4955 = vrot.lane.b32.xlu2 %v12370_v23, %s14992_s26  ;;  %s15248_s26 = sld [smem:[#allocation20_spill]] }
 0x6d7   : > { %v13246_v7 = vpop.permute.xlu2 %4891  ;;  %v4591_v14 = vsel %vm444_vm0, %v4578_v10, %v14874_v21  ;;  %v4583_v1 = vsel %vm444_vm0, %v4573_v48, %v14885_v59  ;;  %v15046_v10 = vrot.slane %v12824_v22, 4  ;;  %v9872_v48 = vld [vmem:[%s14771_s3 + $0xc] sm:$0xf] }
 0x6d8   : > { %v14884_v39 = vrot.slane %v13246_v7, 4  ;;  %v4592_v55 = vsel %vm15044_vm7, %v4564_v0, %v4591_v14  ;;  %v4584_v12 = vsel %vm15045_vm8, %v12822_v27, %v4583_v1  ;;  %v10071_v26 = vld [vmem:[#allocation2 + $0x61c] sm:$0xf0]  ;;  %v8770_v14 = vld [vmem:[%s14771_s3 + $0x18] sm:$0xf0]  ;;  %v9005_v1 = vor.u32 %v9931_v3, %v9002_v13  ;;  %vm15069_vm7 = vmmov %vm15047_vm9 }
 0x6d9   : > { %4611 = vst [vmem:[#allocation2 + $0x220] sm:$0xff] %v4592_v55  ;;  %v9544_v29 = vld [vmem:[#allocation2 + $0x600] sm:$0xf]  ;;  %v13275_v55 = vor.u32 %v9872_v48, %v8770_v14  ;;  %vm15071_vm8 = vcmask 310272  }
 0x6da   : > { %v4913_v21 = vsel %vm444_vm0, %v15046_v10, %v14884_v39  ;;  %4607 = vst [vmem:[#allocation2 + $0x200] sm:$0xff] %v4584_v12  ;;  %5433 = vrot.lane.b32.xlu0 %v12370_v23, %s15024_s2  ;;  %5423 = vrot.lane.b32.xlu1 %v12355_v41, %s15024_s2  ;;  %v9545_v0 = vor.u32 %v10071_v26, %v9544_v29  ;;  %v8760_v12 = vld [vmem:[%s14771_s3] sm:$0xf]  ;;  %v8970_v26 = vld [vmem:[#allocation2 + $0x1a0] sm:$0xf0] }
 0x6db   : > { %v4914_v27 = vsel %vm15047_vm9, %v12824_v22, %v4913_v21  ;;  %v9873_v22 = vld [vmem:[%s14771_s3 + $0xc] sm:$0xf0]  ;;  %v8938_v39 = vld [vmem:[#allocation2 + $0x160] sm:$0xf0]  ;;  %vm15075_vm9 = vcmask 80896  }
 0x6dc   : > { %4934 = vst [vmem:[#allocation2 + $0x388] sm:$0xff] %v4914_v27  ;;  %7048 = vmatpush.bf16.msra.mxu2 %v9545_v0  ;;  %v13283_v29 = vpop.permute.xlu0 %4953  ;;  %v13285_v21 = vpop.permute.xlu1 %4945  ;;  %v13287_v10 = vor.u32 %v9873_v22, %v8760_v12  ;;  %v9923_v27 = vld [vmem:[#allocation2 + $0x184] sm:$0xf]  ;;  %v15049_v0 = vrot.slane %v12790_v52, 4  ;;  %v15050_v12 = vrot.slane %v12841_v62, 4 }
 0x6dd   : > { %15048 = vst [vmem:[#allocation30_spill] sm:$0xff] %v13285_v21  ;;  %v14890_v3 = vrot.slane %v13283_v29, 4  ;;  %v14895_v13 = vrot.slane %v13285_v21, 4  ;;  %4893 = vrot.lane.b32.xlu2 %v12355_v41, %s14993_s13  ;;  %v8973_v22 = vor.u32 %v9923_v27, %v8970_v26  ;;  %v15054_v26 = vrot.slane %v12866_v17, 4 }
 0x6de   : > { %7007 = vmatmul.bf16.vlgmr.msra.gmra.mxu3 %v13287_v10  ;;  %v5011_v21 = vrot.slane %v13207_v43, 4 }
 0x6df   : > { %v13293_v48 = vpop.permute.xlu2 %5369  ;;  %v4974_v14 = vsel %vm444_vm0, %v15049_v0, %v14890_v3  ;;  %9638 = vmatmul.msk.bf16.vlgmr.msra.gmra.mxu2 %vm15051_vm12, %v13275_v55  ;;  %vm15078_vm12 = vmmov %vm15066_vm6 }
 0x6e0   : > { %7055 = vmatpush.bf16.msrb.mxu2 %v9005_v1  ;;  %v4967_v1 = vsel %vm444_vm0, %v15050_v12, %v14895_v13  ;;  %v14896_v59 = vrot.slane %v13293_v48, 4  ;;  %v4975_v32 = vsel %vm15052_vm15, %v12790_v52, %v4974_v14  ;;  %v9943_v0 = vld [vmem:[#allocation2 + $0x21c] sm:$0xf0]  ;;  %v9034_v3 = vld [vmem:[#allocation2 + $0x220] sm:$0xf0]  ;;  %vm15079_vm15 = vmmov %vm15059_vm5 }
 0x6e1   : > { %v4968_v49 = vsel %vm15053_vm1, %v12841_v62, %v4967_v1  ;;  %4992 = vst [vmem:[#allocation2 + $0x3e8] sm:$0xff] %v4975_v32  ;;  %v9032_v8 = vld [vmem:[#allocation2 + $0x200] sm:$0xf]  ;;  %v9939_v12 = vld [vmem:[#allocation2 + $0x204] sm:$0xf]  ;;  %vm15080_vm1 = vcmask 392192  }
 0x6e2   : > { %v5395_v27 = vsel %vm444_vm0, %v15054_v26, %v14896_v59  ;;  %4988 = vst [vmem:[#allocation2 + $0x3c8] sm:$0xff] %v4968_v49  ;;  %5361 = vrot.lane.b32.xlu0 %v12355_v41, %s15027_s9  ;;  %4901 = vrot.lane.b32.xlu1 %v12370_v23, %s14993_s13  ;;  %v9033_v52 = vor.u32 %v9943_v0, %v9032_v8  ;;  %v9915_v14 = vld [vmem:[#allocation2 + $0x144] sm:$0xf]  ;;  %v14906_v8 = vrot.slane %v13224_v61, 4  ;;  %s7787_s13 = scalar_lea.hbm %s15250_s23, %s10091_s18 }
 0x6e3   : > { %v9037_v62 = vor.u32 %v9939_v12, %v9034_v3  ;;  %v10059_v32 = vld [vmem:[#allocation2 + $0x5c4] sm:$0xf]  ;;  %v5396_v1 = vsel %vm1754_vm11, %v12866_v17, %v5395_v27  ;;  %v9485_v27 = vor.u32 %v10051_v20, %v9482_v9 }
 0x6e4   : > { %7056 = vmatpush.bf16.msrb.mxu2 %v8973_v22  ;;  %v8941_v22 = vor.u32 %v9915_v14, %v8938_v39  ;;  %v9517_v13 = vor.u32 %v10059_v32, %v9514_v54  ;;  %5414 = vst [vmem:[#allocation2 + $0x5a8] sm:$0xff] %v5396_v1  ;;  %7020 = vmatpush.bf16.msra.mxu0 %v9033_v52  ;;  %v5004_v26 = vpop.permute.xlu0 %5003  ;;  %v13324_v49 = vpop.permute.xlu1 %4997  ;;  %v8906_v59 = vld [vmem:[#allocation2 + $0x120] sm:$0xf0] }
 0x6e5   : > { %7076 = vmatpush.bf16.msrb.mxu3 %v9037_v62  ;;  %v5015_v3 = vrot.slane %v5004_v26, 4  ;;  %v14904_v0 = vrot.slane %v13324_v49, 4  ;;  %v9907_v17 = vld [vmem:[#allocation2 + $0x104] sm:$0xf]  ;;  %5371 = vrot.lane.b32.xlu2 %v12370_v23, %s15027_s9 }
 0x6e6   : > { %v8909_v12 = vor.u32 %v9907_v17, %v8906_v59  ;;  %v8874_v14 = vld [vmem:[#allocation2 + $0xe0] sm:$0xf0] }
 0x6e7   : > { %v5026_v54 = vsel %vm444_vm0, %v5015_v3, %v14906_v8  ;;  %v5019_v39 = vsel %vm444_vm0, %v5011_v21, %v14904_v0  ;;  %v13337_v52 = vpop.permute.xlu2 %4805  ;;  %v9450_v32 = vld [vmem:[#allocation2 + $0x560] sm:$0xf0] }
 0x6e8   : > { %7057 = vmatpush.bf16.msrb.mxu2 %v8941_v22  ;;  %7083 = vmatpush.bf16.msrb.mxu0 %v9517_v13  ;;  %15055 = vst [vmem:[#allocation31_spill] sm:$0xff] %v13337_v52  ;;  %v5027_v62 = vsel %vm15056_vm3, %v5004_v26, %v5026_v54  ;;  %v5020_v13 = vsel %vm15057_vm4, %v13207_v43, %v5019_v39  ;;  %v14903_v1 = vrot.slane %v13337_v52, 4  ;;  %v9899_v20 = vld [vmem:[#allocation2 + $0xc4] sm:$0xf]  ;;  %v15058_v43 = vrot.slane %v12903_v5, 4 }
 0x6e9   : > { %5045 = vst [vmem:[#allocation2 + $0x420] sm:$0xff] %v5027_v62  ;;  %v10043_v9 = vld [vmem:[#allocation2 + $0x544] sm:$0xf]  ;;  %v8877_v21 = vor.u32 %v9899_v20, %v8874_v14  ;;  %v15063_v20 = vrot.slane %v12863_v46, 4  ;;  %vm15082_vm3 = vcmask 138240   ;;  %vm15085_vm4 = vcmask 72704  }
 0x6ea   : > { %5041 = vst [vmem:[#allocation2 + $0x400] sm:$0xff] %v5020_v13  ;;  %5309 = vrot.lane.b32.xlu0 %v12370_v23, %s14994_s14  ;;  %5299 = vrot.lane.b32.xlu1 %v12355_v41, %s14994_s14  ;;  %v4833_v59 = vsel %vm444_vm0, %v15058_v43, %v14903_v1  ;;  %v9453_v22 = vor.u32 %v10043_v9, %v9450_v32  ;;  %v8842_v3 = vld [vmem:[#allocation2 + $0xa0] sm:$0xf0]  ;;  %v8768_v1 = vld [vmem:[%s14771_s3 + $0x8] sm:$0xf] }
 0x6eb   : > { %v4834_v26 = vsel %vm15059_vm5, %v12903_v5, %v4833_v59  ;;  %v10035_v39 = vld [vmem:[#allocation2 + $0x504] sm:$0xf]  ;;  %v15062_v5 = vrot.slane %v12878_v51, 4  ;;  %vm15086_vm5 = vmmov %vm15085_vm4 }
 0x6ec   : > { %7058 = vmatpush.bf16.msrb.mxu2 %v8909_v12  ;;  %7084 = vmatpush.bf16.msrb.mxu0 %v9485_v27  ;;  %v13354_v17 = vpop.permute.xlu0 %5431  ;;  %v13356_v54 = vpop.permute.xlu1 %5421  ;;  %4856 = vst [vmem:[#allocation2 + $0x308] sm:$0xff] %v4834_v26  ;;  %v9418_v12 = vld [vmem:[#allocation2 + $0x520] sm:$0xf0] }
 0x6ed   : > { %15060 = vst [vmem:[#allocation32_spill] sm:$0xff] %v13354_v17  ;;  %v14905_v27 = vrot.slane %v13354_v17, 4  ;;  %v14907_v62 = vrot.slane %v13356_v54, 4  ;;  %v9891_v13 = vld [vmem:[#allocation2 + $0x84] sm:$0xf]  ;;  %4807 = vrot.lane.b32.xlu2 %v12319_v40, %s14995_s19  ;;  %v9421_v59 = vor.u32 %v10035_v39, %v9418_v12 }
 0x6ee   : > { %15061 = vst [vmem:[#allocation33_spill] sm:$0xff] %v13356_v54  ;;  %v8810_v14 = vld [vmem:[#allocation2 + $0x60] sm:$0xf0]  ;;  %v8845_v43 = vor.u32 %v9891_v13, %v8842_v3  ;;  %v9874_v3 = vld [vmem:[%s14771_s3 + $0x14] sm:$0xf0] }
 0x6ef   : > { %v5457_v32 = vsel %vm444_vm0, %v15062_v5, %v14905_v27  ;;  %v5449_v9 = vsel %vm444_vm0, %v15063_v20, %v14907_v62  ;;  %v13372_v26 = vpop.permute.xlu2 %5245  ;;  %v10083_v12 = vld [vmem:[#allocation2 + $0x684] sm:$0xf]  ;;  %v13396_v54 = vor.u32 %v9874_v3, %v8768_v1 }
 0x6f0   : > { %7059 = vmatpush.bf16.msrb.mxu2 %v8877_v21  ;;  %7085 = vmatpush.bf16.msrb.mxu0 %v9453_v22  ;;  %v9386_v21 = vld [vmem:[#allocation2 + $0x4e0] sm:$0xf0]  ;;  %15064 = vst [vmem:[#allocation34_spill] sm:$0xff] %v13372_v26  ;;  %v5458_v0 = vsel %vm1817_vm14, %v12878_v51, %v5457_v32  ;;  %v5450_v5 = vsel %vm1817_vm14, %v12863_v46, %v5449_v9  ;;  %v10007_v27 = vld [vmem:[#allocation2 + $0x41c] sm:$0xf0]  ;;  %v5258_v8 = vrot.slane %v13372_v26, 4 }
 0x6f1   : > { %v9610_v22 = vld [vmem:[#allocation2 + $0x6a0] sm:$0xf0]  ;;  %5476 = vst [vmem:[#allocation2 + $0x5e8] sm:$0xff] %v5458_v0  ;;  %v9288_v39 = vld [vmem:[#allocation2 + $0x400] sm:$0xf]  ;;  %v15065_v32 = vrot.slane %v12944_v58, 4 }
 0x6f2   : > { %5472 = vst [vmem:[#allocation2 + $0x5c8] sm:$0xff] %v5450_v5  ;;  %5237 = vrot.lane.b32.xlu0 %v12355_v41, %s14996_s21  ;;  %4817 = vrot.lane.b32.xlu1 %v12357_v31, %s14995_s19  ;;  %v9289_v46 = vor.u32 %v10007_v27, %v9288_v39  ;;  %v9883_v51 = vld [vmem:[#allocation2 + $0x44] sm:$0xf]  ;;  %v9613_v26 = vor.u32 %v10083_v12, %v9610_v22  ;;  %v15067_v22 = vrot.slane %v12915_v35, 4 }
 0x6f3   : > { %v10027_v13 = vld [vmem:[#allocation2 + $0x4c4] sm:$0xf]  ;;  %v5271_v0 = vsel %vm444_vm0, %v15065_v32, %v5258_v8  ;;  %v8813_v20 = vor.u32 %v9883_v51, %v8810_v14  ;;  %v10000_v51 = vld [vmem:[#allocation2 + $0x3e4] sm:$0xf0] }
 0x6f4   : > { %7060 = vmatpush.bf16.msrb.mxu2 %v8845_v43  ;;  %7086 = vmatpush.bf16.msrb.mxu0 %v9421_v59  ;;  %v9389_v9 = vor.u32 %v10027_v13, %v9386_v21  ;;  %v5272_v43 = vsel %vm15066_vm6, %v12944_v58, %v5271_v0  ;;  %v9875_v59 = vld [vmem:[#allocation2 + $0x4] sm:$0xf]  ;;  %v13398_v27 = vpop.permute.xlu0 %5359  ;;  %v13400_v39 = vpop.permute.xlu1 %4899  ;;  %v9264_v58 = vld [vmem:[#allocation2 + $0x3c8] sm:$0xf]  ;;  %vm15088_vm6 = vcmask 89088  }
 0x6f5   : > { %v8778_v5 = vld [vmem:[#allocation2 + $0x20] sm:$0xf0]  ;;  %7034 = vmatpush.bf16.msra.mxu1 %v9289_v46  ;;  %5290 = vst [vmem:[#allocation2 + $0x528] sm:$0xff] %v5272_v43  ;;  %v14916_v14 = vrot.slane %v13398_v27, 4  ;;  %v4909_v21 = vrot.slane %v13400_v39, 4  ;;  %5247 = vrot.lane.b32.xlu2 %v12370_v23, %s14996_s21  ;;  %v15068_v46 = vrot.slane %v12900_v25, 4 }
 0x6f6   : > { %v9354_v62 = vld [vmem:[#allocation2 + $0x4a0] sm:$0xf0]  ;;  %v8781_v1 = vor.u32 %v9875_v59, %v8778_v5  ;;  %v9265_v59 = vor.u32 %v10000_v51, %v9264_v58  ;;  %v9936_v58 = vld [vmem:[#allocation2 + $0x1e4] sm:$0xf0] }
 0x6f7   : > { %v10075_v17 = vld [vmem:[#allocation2 + $0x644] sm:$0xf]  ;;  %v5387_v12 = vsel %vm444_vm0, %v15067_v22, %v14916_v14  ;;  %v4920_v13 = vsel %vm444_vm0, %v15068_v46, %v4909_v21 }
 0x6f8   : > { %v9578_v52 = vld [vmem:[#allocation2 + $0x660] sm:$0xf0]  ;;  %7061 = vmatpush.bf16.msrb.mxu2 %v8813_v20  ;;  %7087 = vmatpush.bf16.msrb.mxu0 %v9389_v9  ;;  %v13416_v20 = vpop.permute.xlu2 %5173  ;;  %v5388_v9 = vsel %vm1754_vm11, %v12915_v35, %v5387_v12  ;;  %v4921_v43 = vsel %vm15069_vm7, %v12900_v25, %v4920_v13  ;;  %v10064_v5 = vld [vmem:[#allocation2 + $0x5e4] sm:$0xf0]  ;;  %v15070_v35 = vrot.slane %v12981_v36, 4  ;;  %vm15091_vm7 = vmmov %vm15075_vm9 }
 0x6f9   : > { %7102 = vmatpush.bf16.msrb.mxu1 %v9613_v26  ;;  %v10019_v3 = vld [vmem:[#allocation2 + $0x484] sm:$0xf]  ;;  %v9581_v0 = vor.u32 %v10075_v17, %v9578_v52  ;;  %v14946_v14 = vrot.slane %v13416_v20, 4  ;;  %5410 = vst [vmem:[#allocation2 + $0x588] sm:$0xff] %v5388_v9  ;;  %v9520_v52 = vld [vmem:[#allocation2 + $0x5c8] sm:$0xf] }
 0x6fa   : > { %v9357_v32 = vor.u32 %v10019_v3, %v9354_v62  ;;  %v9322_v26 = vld [vmem:[#allocation2 + $0x460] sm:$0xf0]  ;;  %7035 = vmatmul.bf16.vlgmr.msra.gmra.mxu1 %v13396_v54  ;;  %4938 = vst [vmem:[#allocation2 + $0x3a8] sm:$0xff] %v4921_v43  ;;  %v9521_v62 = vor.u32 %v10064_v5, %v9520_v52  ;;  %4755 = vrot.lane.b32.xlu0 %v12357_v31, %s14997_s22  ;;  %v9008_v12 = vld [vmem:[#allocation2 + $0x1c8] sm:$0xf]  ;;  %v15072_v5 = vrot.slane %v12954_v19, 4 }
 0x6fb   : > { %v9546_v22 = vld [vmem:[#allocation2 + $0x620] sm:$0xf0]  ;;  %v5201_v25 = vsel %vm444_vm0, %v15070_v35, %v14946_v14  ;;  %4745 = vrot.lane.b32.xlu1 %v12319_v40, %s14997_s22  ;;  %v15073_v52 = vrot.slane %v12939_v2, 4 }
 0x6fc   : > { %7062 = vmatpush.bf16.msrb.mxu2 %v8781_v1  ;;  %7088 = vmatpush.bf16.msrb.mxu0 %v9357_v32  ;;  %v10067_v17 = vld [vmem:[#allocation2 + $0x604] sm:$0xf]  ;;  %v5202_v1 = vsel %vm15071_vm8, %v12981_v36, %v5201_v25  ;;  %v13435_v46 = vpop.permute.xlu0 %5307  ;;  %v13437_v13 = vpop.permute.xlu1 %5297  ;;  %v9928_v36 = vld [vmem:[#allocation2 + $0x1a4] sm:$0xf0] }
 0x6fd   : > { %7103 = vmatpush.bf16.msrb.mxu1 %v9581_v0  ;;  %v10011_v3 = vld [vmem:[#allocation2 + $0x444] sm:$0xf]  ;;  %7139 = vmatpush.bf16.msra.mxu3 %v9521_v62  ;;  %v9549_v32 = vor.u32 %v10067_v17, %v9546_v22  ;;  %5224 = vst [vmem:[#allocation2 + $0x4c8] sm:$0xff] %v5202_v1  ;;  %v14944_v43 = vrot.slane %v13435_v46, 4  ;;  %v10056_v1 = vld [vmem:[#allocation2 + $0x5a4] sm:$0xf0] }
 0x6fe   : > { %v9325_v51 = vor.u32 %v10011_v3, %v9322_v26  ;;  %v10003_v0 = vld [vmem:[#allocation2 + $0x404] sm:$0xf]  ;;  %v9009_v26 = vor.u32 %v9936_v58, %v9008_v12  ;;  %5175 = vrot.lane.b32.xlu2 %v12355_v41, %s14998_s28  ;;  %v8976_v3 = vld [vmem:[#allocation2 + $0x188] sm:$0xf] }
 0x6ff   : > { %v9290_v9 = vld [vmem:[#allocation2 + $0x420] sm:$0xf0]  ;;  %7063 = vmatmul.bf16.vlgmr.msrb.gmra.mxu2 %v13287_v10  ;;  %v5333_v22 = vsel %vm444_vm0, %v15072_v5, %v14944_v43  ;;  %v9232_v5 = vld [vmem:[#allocation2 + $0x388] sm:$0xf] }
 0x700   : > { %7125 = vmatpush.bf16.msra.mxu2 %v9265_v59  ;;  %v14929_v59 = vrot.slane %v13437_v13, 4  ;;  %7089 = vmatpush.bf16.msrb.mxu0 %v9325_v51  ;;  %v9293_v62 = vor.u32 %v10003_v0, %v9290_v9  ;;  %v13454_v35 = vpop.permute.xlu2 %4691  ;;  %v5334_v25 = vsel %vm1691_vm13, %v12954_v19, %v5333_v22  ;;  %v9488_v51 = vld [vmem:[#allocation2 + $0x588] sm:$0xf]  ;;  %v15074_v9 = vrot.slane %v13106_v57, 4 }
 0x701   : > { %7104 = vmatpush.bf16.msrb.mxu1 %v9549_v32  ;;  %v14917_v12 = vrot.slane %v13454_v35, 4  ;;  %5352 = vst [vmem:[#allocation2 + $0x568] sm:$0xff] %v5334_v25  ;;  %v8977_v32 = vor.u32 %v9928_v36, %v8976_v3  ;;  %v9920_v22 = vld [vmem:[#allocation2 + $0x164] sm:$0xf0] }
 0x702   : > { %v5325_v17 = vsel %vm444_vm0, %v15073_v52, %v14929_v59  ;;  %v9992_v52 = vld [vmem:[#allocation2 + $0x3a4] sm:$0xf0]  ;;  %5609 = vrot.lane.b32.xlu0 %v12355_v41, %s15001_s29  ;;  %v15098_v59 = vrot.slane %v13187_v44, 4 }
 0x703   : > { %v5326_v58 = vsel %vm1691_vm13, %v12939_v2, %v5325_v17  ;;  %v9233_v0 = vor.u32 %v9992_v52, %v9232_v5  ;;  %v4717_v19 = vsel %vm444_vm0, %v15074_v9, %v14917_v12  ;;  %v9984_v36 = vld [vmem:[#allocation2 + $0x364] sm:$0xf0]  ;;  %5185 = vrot.lane.b32.xlu1 %v12370_v23, %s14998_s28  ;;  %v15076_v5 = vrot.slane %v12995_v63, 4 }
 0x704   : > { %7090 = vmatpush.bf16.msrb.mxu0 %v9293_v62  ;;  %5348 = vst [vmem:[#allocation2 + $0x548] sm:$0xff] %v5326_v58  ;;  %v4718_v2 = vsel %vm15075_vm9, %v13106_v57, %v4717_v19  ;;  %v13472_v17 = vpop.permute.xlu0 %5235  ;;  %v13474_v62 = vpop.permute.xlu1 %4815  ;;  %v8944_v3 = vld [vmem:[#allocation2 + $0x148] sm:$0xf]  ;;  %vm15093_vm9 = vcmask 146432  }
 0x705   : > { %7111 = vmatpush.bf16.msra.mxu1 %v9009_v26  ;;  %v9489_v26 = vor.u32 %v10056_v1, %v9488_v51  ;;  %7126 = vmatpush.bf16.msra.mxu2 %v9233_v0  ;;  %4736 = vst [vmem:[#allocation2 + $0x2a8] sm:$0xff] %v4718_v2  ;;  %v14921_v25 = vrot.slane %v13472_v17, 4  ;;  %v14920_v58 = vrot.slane %v13474_v62, 4  ;;  %v8945_v51 = vor.u32 %v9920_v22, %v8944_v3  ;;  %v9200_v1 = vld [vmem:[#allocation2 + $0x348] sm:$0xf] }
 0x706   : > { %v9912_v57 = vld [vmem:[#allocation2 + $0x124] sm:$0xf0]  ;;  %5619 = vrot.lane.b32.xlu2 %v12370_v23, %s15001_s29 }
 0x707   : > { %7140 = vmatpush.bf16.msra.mxu3 %v9489_v26  ;;  %v5263_v52 = vsel %vm444_vm0, %v15076_v5, %v14921_v25  ;;  %v15077_v26 = vrot.slane %v12976_v50, 4  ;;  %v8912_v2 = vld [vmem:[#allocation2 + $0x108] sm:$0xf] }
 0x708   : > { %v13490_v9 = vpop.permute.xlu2 %5607  ;;  %v5264_v19 = vsel %vm15078_vm12, %v12995_v63, %v5263_v52  ;;  %v15081_v63 = vrot.slane %v13069_v42, 4  ;;  %v10040_v12 = vld [vmem:[#allocation2 + $0x524] sm:$0xf0]  ;;  %vm15096_vm12 = vcmask 318464  }
 0x709   : > { %7112 = vmatpush.bf16.msra.mxu1 %v8977_v32  ;;  %v9201_v32 = vor.u32 %v9984_v36, %v9200_v1  ;;  %v4841_v0 = vsel %vm444_vm0, %v15077_v26, %v14920_v58  ;;  %v10048_v36 = vld [vmem:[#allocation2 + $0x564] sm:$0xf0]  ;;  %v14918_v3 = vrot.slane %v13490_v9, 4  ;;  %5286 = vst [vmem:[#allocation2 + $0x508] sm:$0xff] %v5264_v19  ;;  %v8913_v1 = vor.u32 %v9912_v57, %v8912_v2 }
 0x70a   : > { %v4842_v22 = vsel %vm15079_vm15, %v12976_v50, %v4841_v0  ;;  %9639 = vmatmul.msk.bf16.vlgmr.msrb.gmra.mxu1 %vm15080_vm1, %v13275_v55  ;;  %v9904_v50 = vld [vmem:[#allocation2 + $0xe4] sm:$0xf0]  ;;  %4693 = vrot.lane.b32.xlu0 %v12357_v31, %s15007_s20  ;;  %vm15097_vm15 = vmmov %vm15096_vm12  ;;  %vm15099_vm1 = vcmask 728064  }
 0x70b   : > { %7127 = vmatpush.bf16.msra.mxu2 %v9201_v32  ;;  %v9456_v5 = vld [vmem:[#allocation2 + $0x548] sm:$0xf]  ;;  %4860 = vst [vmem:[#allocation2 + $0x328] sm:$0xff] %v4842_v22  ;;  %v5635_v52 = vsel %vm444_vm0, %v15081_v63, %v14918_v3  ;;  %4683 = vrot.lane.b32.xlu1 %v12319_v40, %s15007_s20 }
 0x70c   : > { %v5636_v32 = vsel %vm15082_vm3, %v13069_v42, %v5635_v52  ;;  %v13510_v57 = vpop.permute.xlu0 %4753  ;;  %v13512_v26 = vpop.permute.xlu1 %4743  ;;  %v8880_v0 = vld [vmem:[#allocation2 + $0xc8] sm:$0xf]  ;;  %v15083_v42 = vrot.slane %v13032_v60, 4  ;;  %vm15102_vm3 = vmmov %vm15088_vm6 }
 0x70d   : > { %7113 = vmatpush.bf16.msra.mxu1 %v8945_v51  ;;  %v9457_v51 = vor.u32 %v10048_v36, %v9456_v5  ;;  %5658 = vst [vmem:[#allocation2 + $0x688] sm:$0xff] %v5636_v32  ;;  %v14919_v19 = vrot.slane %v13510_v57, 4  ;;  %v14925_v22 = vrot.slane %v13512_v26, 4  ;;  %v8881_v2 = vor.u32 %v9904_v50, %v8880_v0  ;;  %v9896_v36 = vld [vmem:[#allocation2 + $0xa4] sm:$0xf0] }
 0x70e   : > { %5113 = vrot.lane.b32.xlu2 %v12355_v41, %s15009_s30  ;;  %v15084_v5 = vrot.slane %v13017_v38, 4  ;;  %v8848_v63 = vld [vmem:[#allocation2 + $0x88] sm:$0xf] }
 0x70f   : > { %7141 = vmatpush.bf16.msra.mxu3 %v9457_v51  ;;  %v8849_v3 = vor.u32 %v9896_v36, %v8848_v63  ;;  %v8816_v36 = vld [vmem:[#allocation2 + $0x48] sm:$0xf] }
 0x710   : > { %v4771_v51 = vsel %vm444_vm0, %v15084_v5, %v14925_v22  ;;  %v13528_v52 = vpop.permute.xlu2 %4629  ;;  %v9424_v0 = vld [vmem:[#allocation2 + $0x508] sm:$0xf]  ;;  %v15087_v5 = vrot.slane %v13180_v18, 4  ;;  %v15092_v22 = vrot.slane %v13143_v4, 4 }
 0x711   : > { %7114 = vmatpush.bf16.msra.mxu1 %v8913_v1  ;;  %v4779_v1 = vsel %vm444_vm0, %v15083_v42, %v14919_v19  ;;  %v4772_v32 = vsel %vm15086_vm5, %v13017_v38, %v4771_v51  ;;  %v14922_v42 = vrot.slane %v13528_v52, 4  ;;  %v9168_v19 = vld [vmem:[#allocation2 + $0x308] sm:$0xf]  ;;  %v9425_v25 = vor.u32 %v10040_v12, %v9424_v0 }
 0x712   : > { %v4780_v50 = vsel %vm15085_vm4, %v13032_v60, %v4779_v1  ;;  %v9976_v58 = vld [vmem:[#allocation2 + $0x324] sm:$0xf0]  ;;  %4794 = vst [vmem:[#allocation2 + $0x2c8] sm:$0xff] %v4772_v32  ;;  %5547 = vrot.lane.b32.xlu0 %v12355_v41, %s15012_s11  ;;  %v15089_v0 = vrot.slane %v13091_v6, 4  ;;  %vm15103_vm4 = vcmask 138240   ;;  %vm15105_vm5 = vcmask 154624  }
 0x713   : > { %4798 = vst [vmem:[#allocation2 + $0x2e8] sm:$0xff] %v4780_v50  ;;  %v4655_v60 = vsel %vm444_vm0, %v15087_v5, %v14922_v42  ;;  %v9888_v1 = vld [vmem:[#allocation2 + $0x64] sm:$0xf0]  ;;  %5123 = vrot.lane.b32.xlu1 %v12370_v23, %s15009_s30  ;;  %7142 = vmatpush.bf16.msra.mxu3 %v9425_v25  ;;  %v15090_v25 = vrot.slane %v13054_v11, 4 }
 0x714   : > { %v4656_v38 = vsel %vm15088_vm6, %v13180_v18, %v4655_v60  ;;  %v13546_v12 = vpop.permute.xlu0 %4681  ;;  %v8817_v63 = vor.u32 %v9888_v1, %v8816_v36  ;;  %v9880_v32 = vld [vmem:[#allocation2 + $0x24] sm:$0xf0]  ;;  %v9996_v60 = vld [vmem:[#allocation2 + $0x3cc] sm:$0xf]  ;;  %vm15108_vm6 = vcmask 957440  }
 0x715   : > { %7115 = vmatpush.bf16.msra.mxu1 %v8881_v2  ;;  %v9169_v2 = vor.u32 %v9976_v58, %v9168_v19  ;;  %v13548_v58 = vpop.permute.xlu1 %5183  ;;  %4674 = vst [vmem:[#allocation2 + $0x268] sm:$0xff] %v4656_v38  ;;  %v8762_v19 = vld [vmem:[%s14771_s3 + $0x10] sm:$0xf0]  ;;  %v14923_v18 = vrot.slane %v13546_v12, 4  ;;  %v9266_v1 = vld [vmem:[#allocation2 + $0x3e8] sm:$0xf0] }
 0x716   : > { %v14924_v51 = vrot.slane %v13548_v58, 4  ;;  %5557 = vrot.lane.b32.xlu2 %v12370_v23, %s15012_s11 }
 0x717   : > { %7128 = vmatpush.bf16.msra.mxu2 %v9169_v2  ;;  %v4709_v2 = vsel %vm444_vm0, %v15089_v0, %v14923_v18  ;;  %v9269_v18 = vor.u32 %v9996_v60, %v9266_v1  ;;  %v9988_v1 = vld [vmem:[#allocation2 + $0x38c] sm:$0xf] }
 0x718   : > { %v5209_v5 = vsel %vm444_vm0, %v15090_v25, %v14924_v51  ;;  %v13572_v38 = vpop.permute.xlu2 %5545  ;;  %v4710_v36 = vsel %vm15091_vm7, %v13091_v6, %v4709_v2  ;;  %v9234_v2 = vld [vmem:[#allocation2 + $0x3a8] sm:$0xf0]  ;;  %vm15109_vm7 = vmmov %vm15108_vm6 }
 0x719   : > { %7116 = vmatpush.bf16.msra.mxu1 %v8849_v3  ;;  %v9871_v3 = vld [vmem:[%s14771_s3 + $0x4] sm:$0xf]  ;;  %v14927_v42 = vrot.slane %v13572_v38, 4  ;;  %4732 = vst [vmem:[#allocation2 + $0x288] sm:$0xff] %v4710_v36  ;;  %v9136_v25 = vld [vmem:[#allocation2 + $0x2c8] sm:$0xf]  ;;  %v9237_v36 = vor.u32 %v9988_v1, %v9234_v2 }
 0x71a   : > { %v13558_v50 = vor.u32 %v9871_v3, %v8762_v19  ;;  %v5210_v3 = vsel %vm15071_vm8, %v13054_v11, %v5209_v5  ;;  %v8784_v19 = vld [vmem:[#allocation2 + $0x8] sm:$0xf]  ;;  %4631 = vrot.lane.b32.xlu0 %v12357_v31, %s15014_s17  ;;  %vm15111_vm8 = vcmask 973824  }
 0x71b   : > { %v9968_v0 = vld [vmem:[#allocation2 + $0x2e4] sm:$0xf0]  ;;  %5228 = vst [vmem:[#allocation2 + $0x4e8] sm:$0xff] %v5210_v3  ;;  %v5573_v6 = vsel %vm444_vm0, %v15092_v22, %v14927_v42  ;;  %4621 = vrot.lane.b32.xlu1 %v12319_v40, %s15014_s17 }
 0x71c   : > { %7021 = vmatmul.bf16.vlgmr.msra.gmra.mxu0 %v13558_v50  ;;  %7077 = vmatmul.bf16.vlgmr.msrb.gmra.mxu3 %v13558_v50  ;;  %v9137_v51 = vor.u32 %v9968_v0, %v9136_v25  ;;  %v5574_v11 = vsel %vm15093_vm9, %v13143_v4, %v5573_v6  ;;  %v15094_v4 = vrot.slane %v13128_v45, 4  ;;  %v9202_v0 = vld [vmem:[#allocation2 + $0x368] sm:$0xf0]  ;;  %v9960_v2 = vld [vmem:[#allocation2 + $0x2a4] sm:$0xf0]  ;;  %vm15112_vm9 = vmmov %vm15111_vm8 }
 0x71d   : > { %7117 = vmatpush.bf16.msra.mxu1 %v8817_v63  ;;  %v8785_v63 = vor.u32 %v9880_v32, %v8784_v19  ;;  %v13592_v32 = vpop.permute.xlu0 %5121  ;;  %v13594_v5 = vpop.permute.xlu1 %5111  ;;  %5596 = vst [vmem:[#allocation2 + $0x648] sm:$0xff] %v5574_v11  ;;  %v9980_v19 = vld [vmem:[#allocation2 + $0x34c] sm:$0xf] }
 0x71e   : > { %7129 = vmatpush.bf16.msra.mxu2 %v9137_v51  ;;  %v14926_v22 = vrot.slane %v13592_v32, 4  ;;  %v14928_v60 = vrot.slane %v13594_v5, 4  ;;  %5055 = vrot.lane.b32.xlu2 %v12355_v41, %s15016_s27  ;;  %v15095_v51 = vrot.slane %v13059_v34, 4 }
 0x720   : > { %v5139_v3 = vsel %vm444_vm0, %v15095_v51, %v14928_v60  ;;  %v9104_v11 = vld [vmem:[#allocation2 + $0x288] sm:$0xf]  ;;  %v9205_v51 = vor.u32 %v9980_v19, %v9202_v0 }
 0x721   : > { %7118 = vmatpush.bf16.msra.mxu1 %v8785_v63  ;;  %v13611_v63 = vpop.permute.xlu2 %4567  ;;  %v5140_v6 = vsel %vm15097_vm15, %v13059_v34, %v5139_v3  ;;  %v9972_v3 = vld [vmem:[#allocation2 + $0x30c] sm:$0xf]  ;;  %vm15116_vm15 = vcmask 146432  }
 0x722   : > { %v14930_v1 = vrot.slane %v13611_v63, 4  ;;  %v10032_v42 = vld [vmem:[#allocation2 + $0x4e4] sm:$0xf0]  ;;  %5162 = vst [vmem:[#allocation2 + $0x488] sm:$0xff] %v5140_v6  ;;  %5485 = vrot.lane.b32.xlu0 %v12355_v41, %s15017_s0  ;;  %v9964_v6 = vld [vmem:[#allocation2 + $0x2cc] sm:$0xf] }
 0x723   : > { %5063 = vrot.lane.b32.xlu1 %v12370_v23, %s15016_s27 }
 0x724   : > { %7119 = vmatmul.bf16.vlgmr.msra.gmra.mxu1 %v13287_v10 }
 0x725   : > { %7181 = vmatpush.bf16.msrb.mxu1 %v9269_v18  ;;  %v5147_v18 = vsel %vm444_vm0, %v15094_v4, %v14926_v22  ;;  %v9105_v4 = vor.u32 %v9960_v2, %v9104_v11  ;;  %v9392_v22 = vld [vmem:[#allocation2 + $0x4c8] sm:$0xf]  ;;  %v9138_v11 = vld [vmem:[#allocation2 + $0x2e8] sm:$0xf0] }
 0x726   : > { %v5148_v25 = vsel %vm15096_vm12, %v13128_v45, %v5147_v18  ;;  %v9393_v60 = vor.u32 %v10032_v42, %v9392_v22  ;;  %v4593_v45 = vsel %vm444_vm0, %v15098_v59, %v14930_v1  ;;  %v13629_v18 = vpop.permute.xlu0 %4619  ;;  %v13631_v42 = vpop.permute.xlu1 %5617  ;;  %5495 = vrot.lane.b32.xlu2 %v12370_v23, %s15017_s0  ;;  %vm15115_vm12 = vmmov %vm15099_vm1 }
 0x727   : > { %5166 = vst [vmem:[#allocation2 + $0x4a8] sm:$0xff] %v5148_v25  ;;  %7130 = vmatpush.bf16.msra.mxu2 %v9105_v4  ;;  %v4594_v34 = vsel %vm15099_vm1, %v13187_v44, %v4593_v45  ;;  %v14933_v59 = vrot.slane %v13629_v18, 4  ;;  %v14935_v22 = vrot.slane %v13631_v42, 4  ;;  %v15100_v44 = vrot.slane %v13165_v15, 4 }
 0x728   : > { %4612 = vst [vmem:[#allocation2 + $0x228] sm:$0xff] %v4594_v34  ;;  %7143 = vmatpush.bf16.msra.mxu3 %v9393_v60  ;;  %v15101_v25 = vrot.slane %v13022_v30, 4  ;;  %vm15118_vm1 = vcmask 1039360  }
 0x729   : > { %7182 = vmatpush.bf16.msrb.mxu1 %v9237_v36  ;;  %v9170_v36 = vld [vmem:[#allocation2 + $0x328] sm:$0xf0]  ;;  %v4647_v0 = vsel %vm444_vm0, %v15100_v44, %v14933_v59  ;;  %v13647_v2 = vpop.permute.xlu2 %5483 }
 0x72a   : > { %v9173_v19 = vor.u32 %v9972_v3, %v9170_v36  ;;  %v5643_v60 = vsel %vm444_vm0, %v15101_v25, %v14935_v22  ;;  %v4648_v4 = vsel %vm15102_vm3, %v13165_v15, %v4647_v0  ;;  %v14932_v34 = vrot.slane %v13647_v2, 4  ;;  %v9360_v36 = vld [vmem:[#allocation2 + $0x488] sm:$0xf]  ;;  %4569 = vrot.lane.b32.xlu0 %v12357_v31, %s14991_s24  ;;  %v9956_v15 = vld [vmem:[#allocation2 + $0x28c] sm:$0xf]  ;;  %vm15119_vm3 = vmmov %vm15118_vm1 }
 0x72b   : > { %4670 = vst [vmem:[#allocation2 + $0x248] sm:$0xff] %v4648_v4  ;;  %v9141_v3 = vor.u32 %v9964_v6, %v9138_v11  ;;  %v15104_v25 = vrot.slane %v13217_v53, 4  ;;  %4559 = vrot.lane.b32.xlu1 %v12319_v40, %s14991_s24  ;;  %v9106_v31 = vld [vmem:[#allocation2 + $0x2a8] sm:$0xf0] }
 0x72c   : > { %7091 = vmatmul.bf16.vlgmr.msrb.gmra.mxu0 %v13396_v54  ;;  %v9109_v4 = vor.u32 %v9956_v15, %v9106_v31 }
 0x72d   : > { %7183 = vmatpush.bf16.msrb.mxu1 %v9205_v51  ;;  %v5644_v51 = vsel %vm15103_vm4, %v13022_v30, %v5643_v60  ;;  %v5511_v1 = vsel %vm444_vm0, %v15104_v25, %v14932_v34  ;;  %v4050_v60 = vld [vmem:[#allocation3 + $0x48] sm:$0xff]  ;;  %v4060_v25 = vld [vmem:[#allocation3 + $0x98] sm:$0xff]  ;;  %vm15122_vm4 = vcmask 965632  }
 0x72e   : > { %v10024_v45 = vld [vmem:[#allocation2 + $0x4a4] sm:$0xf0]  ;;  %5662 = vst [vmem:[#allocation2 + $0x6a8] sm:$0xff] %v5644_v51  ;;  %v5512_v30 = vsel %vm15105_vm5, %v13217_v53, %v5511_v1  ;;  %v13668_v0 = vpop.permute.xlu1 %5053  ;;  %5001 = vrot.lane.b32.xlu2 %v12355_v41, %s15020_s1  ;;  %v15106_v53 = vrot.slane %v13202_v16, 4  ;;  %v15107_v1 = vrot.slane %v13133_v24, 4  ;;  %vm15123_vm5 = vmmov %vm15122_vm4 }
 0x72f   : > { %v9361_v44 = vor.u32 %v10024_v45, %v9360_v36  ;;  %5534 = vst [vmem:[#allocation2 + $0x608] sm:$0xff] %v5512_v30  ;;  %v14934_v11 = vrot.slane %v13668_v0, 4  ;;  %v13684_v45 = vpack.c.bf16 %v4050_v60, %v4050_v60  ;;  %v9952_v36 = vld [vmem:[#allocation2 + $0x264] sm:$0xf0]  ;;  %v9362_v14 = vld [vmem:[#allocation2 + $0x4a8] sm:$0xf0] }
 0x730   : > { %v9616_v34 = vld [vmem:[#allocation2 + $0x688] sm:$0xf] }
 0x731   : > { %7184 = vmatpush.bf16.msrb.mxu1 %v9173_v19  ;;  %v13666_v19 = vpop.permute.xlu0 %5061  ;;  %7144 = vmatpush.bf16.msra.mxu3 %v9361_v44  ;;  %v5075_v51 = vsel %vm444_vm0, %v15107_v1, %v14934_v11  ;;  %v4956_v44 = vpop.permute.xlu2 %4955  ;;  %v15110_v11 = vrot.slane %v13283_v29, 4 }
 0x732   : > { %v14931_v6 = vrot.slane %v13666_v19, 4  ;;  %v5076_v30 = vsel %vm15109_vm7, %v13133_v24, %v5075_v51  ;;  %v9072_v15 = vld [vmem:[#allocation2 + $0x248] sm:$0xf]  ;;  %v9948_v31 = vld [vmem:[#allocation2 + $0x24c] sm:$0xf]  ;;  %5425 = vrot.lane.b32.xlu0 %v13684_v45, %s15024_s2 }
 0x733   : > { %5096 = vst [vmem:[#allocation2 + $0x448] sm:$0xff] %v5076_v30  ;;  %5009 = vrot.lane.b32.xlu1 %v12370_v23, %s15020_s1  ;;  %s7790_s1 = sshll.u32 %s7787_s13, 4  ;;  %s7791_s1 = int_to_ptr.hbm [resolvable:$true] %s7790_s1 }
 0x734   : > { %v5082_v40 = vsel %vm444_vm0, %v15106_v53, %v14931_v6  ;;  %v4964_v53 = vrot.slane %v4956_v44, 4  ;;  %v9073_v6 = vor.u32 %v9952_v36, %v9072_v15  ;;  %v15117_v15 = vrot.slane %v13246_v7, 4  ;;  %s10270_s27 = sshra.s32 %s7791_s1, 4  ;;  %s10271_s27 = int_to_ptr.hbm [resolvable:$true] %s10270_s27 }
 0x735   : > { %7185 = vmatpush.bf16.msrb.mxu1 %v9141_v3  ;;  %v9074_v3 = vld [vmem:[#allocation2 + $0x268] sm:$0xf0]  ;;  %v5083_v41 = vsel %vm15108_vm6, %v13202_v16, %v5082_v40  ;;  %v10088_v1 = vld [vmem:[#allocation2 + $0x6a4] sm:$0xf0]  ;;  %v13694_v40 = vpack.c.bf16 %v4060_v25, %v4060_v25  ;;  %vm15127_vm6 = vmmov %vm15111_vm8  ;;  %p10277_p3 = scmp.lt.s32.totalorder %s10271_s27, %s15250_s23 }
 0x736   : > { %5100 = vst [vmem:[#allocation2 + $0x468] sm:$0xff] %v5083_v41  ;;  %v9077_v60 = vor.u32 %v9948_v31, %v9074_v3  ;;  %v9617_v59 = vor.u32 %v10088_v1, %v9616_v34  ;;  %v4976_v22 = vsel %vm444_vm0, %v15110_v11, %v4964_v53  ;;  %v4978_v16 = vsel %vm15111_vm8, %v4956_v44, %v4964_v53  ;;  %v13706_v11 = vpop.permute.xlu1 %5555  ;;  %vm15130_vm7 = vmmov %vm15127_vm6 }
 0x737   : > { %7131 = vmatpush.bf16.msra.mxu2 %v9073_v6  ;;  %v4977_v24 = vsel %vm15112_vm9, %v13283_v29, %v4976_v22  ;;  %4994 = vst.msk [vmem:[#allocation2 + $0x3f8] sm:$0xff] %vm10609_vm2, %v4978_v16  ;;  %v14942_v6 = vrot.slane %v13706_v11, 4  ;;  %5435 = vrot.lane.b32.xlu2 %v13694_v40, %s15024_s2  ;;  %v15113_v29 = vrot.slane %v13239_v56, 4  ;;  %vm15131_vm8 = vcmask 154624  }
 0x738   : > { %7158 = vmatpush.bf16.msra.mxu0 %v9617_v59  ;;  %4993 = vst [vmem:[#allocation2 + $0x3f0] sm:$0xff] %v4977_v24  ;;  %v15114_v59 = vrot.slane %v13096_v33, 4  ;;  %vm15134_vm9 = vcmask 7168  }
 0x739   : > { %7186 = vmatpush.bf16.msrb.mxu1 %v9109_v4  ;;  %v13704_v34 = vpop.permute.xlu0 %4557  ;;  %v4894_v51 = vpop.permute.xlu2 %4893 }
 0x73a   : > { %v14939_v4 = vrot.slane %v13704_v34, 4  ;;  %v5581_v22 = vsel %vm444_vm0, %v15114_v59, %v14942_v6  ;;  %v4906_v25 = vrot.slane %v4894_v51, 4  ;;  %v9328_v41 = vld [vmem:[#allocation2 + $0x448] sm:$0xf]  ;;  %5373 = vrot.lane.b32.xlu0 %v13694_v40, %s15027_s9  ;;  %v9932_v6 = vld [vmem:[#allocation2 + $0x1cc] sm:$0xf] }
 0x73b   : > { %v5582_v3 = vsel %vm15116_vm15, %v13096_v33, %v5581_v22  ;;  %5363 = vrot.lane.b32.xlu1 %v13684_v45, %s15027_s9  ;;  %v9944_v59 = vld [vmem:[#allocation2 + $0x224] sm:$0xf0]  ;;  %v10060_v22 = vld [vmem:[#allocation2 + $0x5cc] sm:$0xf]  ;;  %vm15142_vm15 = vmmov %vm15118_vm1  ;;  %s7776_s9 = scalar_lea.sflag [#allocation7], %s10490_s12 }
 0x73c   : > { %v4585_v23 = vsel %vm444_vm0, %v15113_v29, %v14939_v4  ;;  %5600 = vst [vmem:[#allocation2 + $0x668] sm:$0xff] %v5582_v3  ;;  %v4915_v31 = vsel %vm444_vm0, %v15117_v15, %v4906_v25  ;;  %v4917_v53 = vsel %vm15118_vm1, %v4894_v51, %v4906_v25  ;;  %v15121_v29 = vrot.slane %v13324_v49, 4  ;;  %v9522_v51 = vld [vmem:[#allocation2 + $0x5e8] sm:$0xf0] }
 0x73d   : > { %7187 = vmatpush.bf16.msrb.mxu1 %v9077_v60  ;;  %v4586_v36 = vsel %vm15115_vm12, %v13239_v56, %v4585_v23  ;;  %v10016_v44 = vld [vmem:[#allocation2 + $0x464] sm:$0xf0]  ;;  %v4916_v56 = vsel %vm15119_vm3, %v13246_v7, %v4915_v31  ;;  %4936 = vst.msk [vmem:[#allocation2 + $0x398] sm:$0xff] %vm10609_vm2, %v4917_v53  ;;  %v15120_v7 = vrot.slane %v13224_v61, 4  ;;  %vm15140_vm12 = vcmask 302080  }
 0x73e   : > { %4608 = vst [vmem:[#allocation2 + $0x208] sm:$0xff] %v4586_v36  ;;  %v9329_v30 = vor.u32 %v10016_v44, %v9328_v41  ;;  %v13740_v1 = vpop.permute.xlu1 %4999  ;;  %v9042_v41 = vld [vmem:[#allocation2 + $0x228] sm:$0xf0]  ;;  %v9584_v31 = vld [vmem:[#allocation2 + $0x648] sm:$0xf]  ;;  %vm15143_vm1 = vcmask 392192  }
 0x73f   : > { %4935 = vst [vmem:[#allocation2 + $0x390] sm:$0xff] %v4916_v56  ;;  %v14940_v16 = vrot.slane %v13740_v1, 4  ;;  %5301 = vrot.lane.b32.xlu2 %v13684_v45, %s14994_s14 }
 0x740   : > { %7145 = vmatpush.bf16.msra.mxu3 %v9329_v30 }
 0x741   : > { %v13738_v33 = vpop.permute.xlu0 %5007  ;;  %v5021_v23 = vsel %vm444_vm0, %v15121_v29, %v14940_v16  ;;  %v13760_v30 = vpop.permute.xlu2 %5371 }
 0x742   : > { %v14938_v60 = vrot.slane %v13738_v33, 4  ;;  %v5022_v3 = vsel %vm15123_vm5, %v13324_v49, %v5021_v23  ;;  %4809 = vrot.lane.b32.xlu0 %v12411_v28, %s14995_s19  ;;  %v15124_v49 = vrot.slane %v13293_v48, 4  ;;  %vm15148_vm5 = vmmov %vm15143_vm1 }
 0x743   : > { %v10080_v53 = vld [vmem:[#allocation2 + $0x664] sm:$0xf0]  ;;  %5042 = vst [vmem:[#allocation2 + $0x408] sm:$0xff] %v5022_v3  ;;  %5311 = vrot.lane.b32.xlu1 %v13694_v40, %s14994_s14  ;;  %v10052_v3 = vld [vmem:[#allocation2 + $0x58c] sm:$0xf] }
 0x744   : > { %v5028_v24 = vsel %vm444_vm0, %v15120_v7, %v14938_v60  ;;  %v14936_v7 = vrot.slane %v13760_v30, 4  ;;  %v9585_v29 = vor.u32 %v10080_v53, %v9584_v31 }
 0x745   : > { %v5029_v36 = vsel %vm15122_vm4, %v13224_v61, %v5028_v24  ;;  %v9040_v44 = vld [vmem:[#allocation2 + $0x208] sm:$0xf]  ;;  %v9940_v25 = vld [vmem:[#allocation2 + $0x20c] sm:$0xf]  ;;  %v9525_v61 = vor.u32 %v10060_v22, %v9522_v51  ;;  %vm15145_vm4 = vcmask 310272  }
 0x746   : > { %5046 = vst [vmem:[#allocation2 + $0x428] sm:$0xff] %v5029_v36  ;;  %v9041_v15 = vor.u32 %v9944_v59, %v9040_v44  ;;  %v9045_v56 = vor.u32 %v9940_v25, %v9042_v41  ;;  %v5397_v24 = vsel %vm444_vm0, %v15124_v49, %v14936_v7  ;;  %7159 = vmatpush.bf16.msra.mxu0 %v9585_v29  ;;  %v13772_v59 = vpop.permute.xlu1 %5493  ;;  %v9490_v51 = vld [vmem:[#allocation2 + $0x5a8] sm:$0xf0] }
 0x747   : > { %v5398_v36 = vsel %vm1754_vm11, %v13293_v48, %v5397_v24  ;;  %v14941_v22 = vrot.slane %v13772_v59, 4  ;;  %4819 = vrot.lane.b32.xlu2 %v12419_v47, %s14995_s19  ;;  %v15125_v25 = vld [vmem:[#allocation30_spill] sm:$0xff]  ;;  %v15128_v48 = vld [vmem:[#allocation29_spill] sm:$0xff]  ;;  %v9493_v29 = vor.u32 %v10052_v3, %v9490_v51  ;;  %s10276_s19 = scalar_lea.hbm %s15250_s23, 256 }
 0x748   : > { %7132 = vmatpush.bf16.msra.mxu2 %v9041_v15  ;;  %7188 = vmatpush.bf16.msrb.mxu1 %v9045_v56  ;;  %5415 = vst [vmem:[#allocation2 + $0x5b0] sm:$0xff] %v5398_v36  ;;  %v15126_v41 = vrot.slane %v15125_v25, 4  ;;  %v15129_v53 = vrot.slane %v15128_v48, 4  ;;  %v9458_v49 = vld [vmem:[#allocation2 + $0x568] sm:$0xf0] }
 0x749   : > { %v4948_v23 = vpop.permute.xlu0 %4947 }
 0x74a   : > { %v4960_v44 = vrot.slane %v4948_v23, 4  ;;  %v5519_v56 = vsel %vm444_vm0, %v15129_v53, %v14941_v22  ;;  %v9296_v3 = vld [vmem:[#allocation2 + $0x408] sm:$0xf]  ;;  %5249 = vrot.lane.b32.xlu0 %v13694_v40, %s14996_s21 }
 0x74b   : > { %7133 = vmatmul.bf16.vlgmr.msra.gmra.mxu2 %v13558_v50  ;;  %v5520_v36 = vsel %vm15131_vm8, %v15128_v48, %v5519_v56  ;;  %7189 = vmatmul.bf16.vlgmr.msrb.gmra.mxu1 %v13558_v50  ;;  %v15132_v48 = vld [vmem:[#allocation31_spill] sm:$0xff]  ;;  %v9552_v22 = vld [vmem:[#allocation2 + $0x608] sm:$0xf]  ;;  %vm15154_vm8 = vmmov %vm15134_vm9 }
 0x74c   : > { %7195 = vmatpush.bf16.msrb.mxu2 %v9525_v61  ;;  %v4969_v15 = vsel %vm444_vm0, %v15126_v41, %v4960_v44  ;;  %v4971_v31 = vsel %vm15127_vm6, %v4948_v23, %v4960_v44  ;;  %v10044_v61 = vld [vmem:[#allocation2 + $0x54c] sm:$0xf]  ;;  %v13795_v44 = vpop.permute.xlu2 %4807  ;;  %5538 = vst [vmem:[#allocation2 + $0x628] sm:$0xff] %v5520_v36  ;;  %v15133_v56 = vrot.slane %v15132_v48, 4  ;;  %5239 = vrot.lane.b32.xlu1 %v13684_v45, %s14996_s21  ;;  %vm15150_vm6 = vcmask 138240  }
 0x74d   : > { %v4970_v24 = vsel %vm15130_vm7, %v15125_v25, %v4969_v15  ;;  %4990 = vst.msk [vmem:[#allocation2 + $0x3d8] sm:$0xff] %vm10609_vm2, %v4971_v31  ;;  %v10008_v41 = vld [vmem:[#allocation2 + $0x424] sm:$0xf0]  ;;  %v9618_v23 = vld [vmem:[#allocation2 + $0x6a8] sm:$0xf0]  ;;  %v14937_v51 = vrot.slane %v13795_v44, 4  ;;  %v9461_v15 = vor.u32 %v10044_v61, %v9458_v49  ;;  %vm15153_vm7 = vmmov %vm15140_vm12 }
 0x74e   : > { %4989 = vst [vmem:[#allocation2 + $0x3d0] sm:$0xff] %v4970_v24  ;;  %v9297_v53 = vor.u32 %v10008_v41, %v9296_v3  ;;  %v10084_v25 = vld [vmem:[#allocation2 + $0x68c] sm:$0xf]  ;;  %v13810_v24 = vpop.permute.xlu1 %5423 }
 0x74f   : > { %v9621_v31 = vor.u32 %v10084_v25, %v9618_v23  ;;  %v4835_v7 = vsel %vm444_vm0, %v15133_v56, %v14937_v51  ;;  %v10036_v41 = vld [vmem:[#allocation2 + $0x50c] sm:$0xf]  ;;  %v14945_v23 = vrot.slane %v13810_v24, 4  ;;  %4747 = vrot.lane.b32.xlu2 %v12411_v28, %s14997_s22 }
 0x750   : > { %7196 = vmatpush.bf16.msrb.mxu2 %v9493_v29  ;;  %7146 = vmatpush.bf16.msra.mxu3 %v9297_v53  ;;  %v4836_v36 = vsel %vm15134_vm9, %v15132_v48, %v4835_v7  ;;  %v9586_v61 = vld [vmem:[#allocation2 + $0x668] sm:$0xf0]  ;;  %v15135_v53 = vld [vmem:[#allocation32_spill] sm:$0xff]  ;;  %v15137_v48 = vld [vmem:[#allocation33_spill] sm:$0xff]  ;;  %vm15156_vm9 = vcmask 318464  }
 0x751   : > { %v13808_v29 = vpop.permute.xlu0 %5433  ;;  %4857 = vst [vmem:[#allocation2 + $0x310] sm:$0xff] %v4836_v36  ;;  %v9426_v3 = vld [vmem:[#allocation2 + $0x528] sm:$0xf0]  ;;  %v15136_v56 = vrot.slane %v15135_v53, 4  ;;  %v15138_v51 = vrot.slane %v15137_v48, 4 }
 0x752   : > { %v14943_v49 = vrot.slane %v13808_v29, 4  ;;  %v10076_v25 = vld [vmem:[#allocation2 + $0x64c] sm:$0xf]  ;;  %5177 = vrot.lane.b32.xlu0 %v13684_v45, %s14998_s28 }
 0x753   : > { %v5451_v60 = vsel %vm444_vm0, %v15138_v51, %v14945_v23  ;;  %7147 = vmatmul.bf16.vlgmr.msra.gmra.mxu3 %v13396_v54  ;;  %v9010_v36 = vld [vmem:[#allocation2 + $0x1e8] sm:$0xf0]  ;;  %v10072_v51 = vld [vmem:[#allocation2 + $0x624] sm:$0xf0] }
 0x754   : > { %7197 = vmatpush.bf16.msrb.mxu2 %v9461_v15  ;;  %7214 = vmatpush.bf16.msrb.mxu3 %v9621_v31  ;;  %v5459_v7 = vsel %vm444_vm0, %v15136_v56, %v14943_v49  ;;  %v9429_v15 = vor.u32 %v10036_v41, %v9426_v3  ;;  %v9589_v31 = vor.u32 %v10076_v25, %v9586_v61  ;;  %v9394_v56 = vld [vmem:[#allocation2 + $0x4e8] sm:$0xf0]  ;;  %v13833_v43 = vpop.permute.xlu2 %5247 }
 0x755   : > { %v5460_v4 = vsel %vm1817_vm14, %v15135_v53, %v5459_v7  ;;  %v5452_v16 = vsel %vm1817_vm14, %v15137_v48, %v5451_v60  ;;  %v10068_v49 = vld [vmem:[#allocation2 + $0x60c] sm:$0xf]  ;;  %v14947_v61 = vrot.slane %v13833_v43, 4  ;;  %v9553_v3 = vor.u32 %v10072_v51, %v9552_v22  ;;  %v9937_v7 = vld [vmem:[#allocation2 + $0x1ec] sm:$0xf0]  ;;  %4757 = vrot.lane.b32.xlu1 %v12419_v47, %s14997_s22 }
 0x756   : > { %5477 = vst [vmem:[#allocation2 + $0x5f0] sm:$0xff] %v5460_v4  ;;  %v9554_v41 = vld [vmem:[#allocation2 + $0x628] sm:$0xf0]  ;;  %v9013_v60 = vor.u32 %v9932_v6, %v9010_v36  ;;  %v4902_v22 = vpop.permute.xlu1 %4901 }
 0x757   : > { %5473 = vst [vmem:[#allocation2 + $0x5d0] sm:$0xff] %v5452_v16  ;;  %v10028_v25 = vld [vmem:[#allocation2 + $0x4cc] sm:$0xf]  ;;  %v9557_v53 = vor.u32 %v10068_v49, %v9554_v41  ;;  %v5273_v4 = vsel %vm444_vm0, %v5258_v8, %v14947_v61  ;;  %7160 = vmatpush.bf16.msra.mxu0 %v9553_v3  ;;  %v9016_v49 = vld [vmem:[#allocation2 + $0x1d0] sm:$0xf]  ;;  %5187 = vrot.lane.b32.xlu2 %v13694_v40, %s14998_s28 }
 0x758   : > { %7198 = vmatpush.bf16.msrb.mxu2 %v9429_v15  ;;  %7215 = vmatpush.bf16.msrb.mxu3 %v9589_v31  ;;  %v9397_v48 = vor.u32 %v10028_v25, %v9394_v56  ;;  %v15139_v23 = vld [vmem:[#allocation34_spill] sm:$0xff]  ;;  %v4910_v56 = vrot.slane %v4902_v22, 4  ;;  %v9017_v8 = vor.u32 %v9937_v7, %v9016_v49 }
 0x759   : > { %v8978_v15 = vld [vmem:[#allocation2 + $0x1a8] sm:$0xf0]  ;;  %v13845_v16 = vpop.permute.xlu0 %5361  ;;  %v5274_v6 = vsel %vm15140_vm12, %v15139_v23, %v5273_v4  ;;  %v9929_v61 = vld [vmem:[#allocation2 + $0x1ac] sm:$0xf0]  ;;  %v15141_v23 = vrot.slane %v13398_v27, 4  ;;  %vm15159_vm12 = vcmask 72704  }
 0x75a   : > { %v10020_v31 = vld [vmem:[#allocation2 + $0x48c] sm:$0xf]  ;;  %v14953_v36 = vrot.slane %v13845_v16, 4  ;;  %5291 = vst [vmem:[#allocation2 + $0x530] sm:$0xff] %v5274_v6  ;;  %v4924_v7 = vsel %vm15142_vm15, %v4902_v22, %v4910_v56  ;;  %9640 = vmatmul.msk.bf16.vlgmr.msra.gmra.mxu0 %vm15143_vm1, %v13275_v55  ;;  %4695 = vrot.lane.b32.xlu0 %v12419_v47, %s15007_s20  ;;  %vm15160_vm15 = vmmov %vm15159_vm12  ;;  %vm15162_vm1 = vcmask 146432  }
 0x75b   : > { %7167 = vmatpush.bf16.msrb.mxu0 %v9013_v60  ;;  %v9924_v51 = vld [vmem:[#allocation2 + $0x18c] sm:$0xf]  ;;  %v9365_v25 = vor.u32 %v10020_v31, %v9362_v14  ;;  %v4922_v60 = vsel %vm444_vm0, %v4909_v21, %v4910_v56  ;;  %4940 = vst.msk [vmem:[#allocation2 + $0x3b8] sm:$0xff] %vm10609_vm2, %v4924_v7 }
 0x75c   : > { %7199 = vmatpush.bf16.msrb.mxu2 %v9397_v48  ;;  %7216 = vmatpush.bf16.msrb.mxu3 %v9557_v53  ;;  %v8981_v41 = vor.u32 %v9924_v51, %v8978_v15  ;;  %v5389_v3 = vsel %vm444_vm0, %v15141_v23, %v14953_v36  ;;  %v8984_v53 = vld [vmem:[#allocation2 + $0x190] sm:$0xf]  ;;  %v8946_v48 = vld [vmem:[#allocation2 + $0x168] sm:$0xf0]  ;;  %v4923_v15 = vsel %vm15119_vm3, %v13400_v39, %v4922_v60  ;;  %v13869_v6 = vpop.permute.xlu2 %5175  ;;  %vm15164_vm3 = vmmov %vm15150_vm6 }
 0x75d   : > { %v9330_v14 = vld [vmem:[#allocation2 + $0x468] sm:$0xf0]  ;;  %v5390_v4 = vsel %vm1754_vm11, %v13398_v27, %v5389_v3  ;;  %v10065_v31 = vld [vmem:[#allocation2 + $0x5ec] sm:$0xf0]  ;;  %v8985_v22 = vor.u32 %v9929_v61, %v8984_v53  ;;  %v14948_v56 = vrot.slane %v13869_v6, 4  ;;  %4939 = vst [vmem:[#allocation2 + $0x3b0] sm:$0xff] %v4923_v15  ;;  %4685 = vrot.lane.b32.xlu1 %v12411_v28, %s15007_s20 }
 0x75e   : > { %v10012_v21 = vld [vmem:[#allocation2 + $0x44c] sm:$0xf]  ;;  %5411 = vst [vmem:[#allocation2 + $0x590] sm:$0xff] %v5390_v4  ;;  %v9528_v49 = vld [vmem:[#allocation2 + $0x5d0] sm:$0xf]  ;;  %v15144_v3 = vrot.slane %v13416_v20, 4  ;;  %v13883_v60 = vpop.permute.xlu1 %5299 }
 0x75f   : > { %7168 = vmatpush.bf16.msrb.mxu0 %v8981_v41  ;;  %v9916_v27 = vld [vmem:[#allocation2 + $0x14c] sm:$0xf]  ;;  %v9921_v51 = vld [vmem:[#allocation2 + $0x16c] sm:$0xf0]  ;;  %v9333_v23 = vor.u32 %v10012_v21, %v9330_v14  ;;  %v14956_v15 = vrot.slane %v13883_v60, 4  ;;  %5115 = vrot.lane.b32.xlu2 %v13684_v45, %s15009_s30 }
 0x760   : > { %7223 = vmatpush.bf16.msra.mxu3 %v9017_v8  ;;  %7200 = vmatpush.bf16.msrb.mxu2 %v9365_v25  ;;  %v9529_v8 = vor.u32 %v10065_v31, %v9528_v49  ;;  %v8949_v39 = vor.u32 %v9916_v27, %v8946_v48  ;;  %v5203_v41 = vsel %vm444_vm0, %v15144_v3, %v14948_v56  ;;  %v8914_v61 = vld [vmem:[#allocation2 + $0x128] sm:$0xf0]  ;;  %v8952_v53 = vld [vmem:[#allocation2 + $0x150] sm:$0xf] }
 0x761   : > { %v13881_v25 = vpop.permute.xlu0 %5309  ;;  %v5204_v7 = vsel %vm15145_vm4, %v13416_v20, %v5203_v41  ;;  %v10004_v48 = vld [vmem:[#allocation2 + $0x40c] sm:$0xf]  ;;  %v8953_v31 = vor.u32 %v9921_v51, %v8952_v53  ;;  %v15146_v20 = vrot.slane %v13435_v46, 4  ;;  %v10057_v56 = vld [vmem:[#allocation2 + $0x5ac] sm:$0xf0] }
 0x762   : > { %7251 = vmatpush.bf16.msra.mxu1 %v9529_v8  ;;  %v9298_v14 = vld [vmem:[#allocation2 + $0x428] sm:$0xf0]  ;;  %v14952_v4 = vrot.slane %v13881_v25, 4  ;;  %5225 = vst [vmem:[#allocation2 + $0x4d0] sm:$0xff] %v5204_v7  ;;  %v15147_v8 = vrot.slane %v13437_v13, 4  ;;  %5611 = vrot.lane.b32.xlu0 %v13684_v45, %s15001_s29 }
 0x763   : > { %7169 = vmatpush.bf16.msrb.mxu0 %v8949_v39  ;;  %v9908_v21 = vld [vmem:[#allocation2 + $0x10c] sm:$0xf]  ;;  %v9301_v51 = vor.u32 %v10004_v48, %v9298_v14  ;;  %v8920_v7 = vld [vmem:[#allocation2 + $0x110] sm:$0xf]  ;;  %9641 = vmatmul.msk.bf16.vlgmr.msrb.gmra.mxu3 %vm15148_vm5, %v13275_v55  ;;  %vm15167_vm5 = vcmask 957440  }
 0x764   : > { %7224 = vmatpush.bf16.msra.mxu3 %v8985_v22  ;;  %7201 = vmatpush.bf16.msrb.mxu2 %v9333_v23  ;;  %v9913_v22 = vld [vmem:[#allocation2 + $0x12c] sm:$0xf0]  ;;  %v5335_v49 = vsel %vm444_vm0, %v15146_v20, %v14952_v4  ;;  %v5327_v27 = vsel %vm444_vm0, %v15147_v8, %v14956_v15  ;;  %v8917_v39 = vor.u32 %v9908_v21, %v8914_v61  ;;  %v8882_v23 = vld [vmem:[#allocation2 + $0xe8] sm:$0xf0]  ;;  %v13907_v20 = vpop.permute.xlu2 %5619  ;;  %v15149_v21 = vrot.slane %v13631_v42, 4 }
 0x765   : > { %v5336_v3 = vsel %vm1691_vm13, %v13435_v46, %v5335_v49  ;;  %v5328_v41 = vsel %vm1691_vm13, %v13437_v13, %v5327_v27  ;;  %v9496_v53 = vld [vmem:[#allocation2 + $0x590] sm:$0xf]  ;;  %v8921_v61 = vor.u32 %v9913_v22, %v8920_v7  ;;  %v14949_v14 = vrot.slane %v13907_v20, 4  ;;  %v9900_v46 = vld [vmem:[#allocation2 + $0xcc] sm:$0xf]  ;;  %5125 = vrot.lane.b32.xlu1 %v13694_v40, %s15009_s30 }
 0x766   : > { %5353 = vst [vmem:[#allocation2 + $0x570] sm:$0xff] %v5336_v3  ;;  %v9497_v48 = vor.u32 %v10057_v56, %v9496_v53  ;;  %v8885_v13 = vor.u32 %v9900_v46, %v8882_v23  ;;  %v13921_v22 = vpop.permute.xlu1 %4817  ;;  %v8888_v27 = vld [vmem:[#allocation2 + $0xd0] sm:$0xf] }
 0x767   : > { %7170 = vmatpush.bf16.msrb.mxu0 %v8917_v39  ;;  %5349 = vst [vmem:[#allocation2 + $0x550] sm:$0xff] %v5328_v41  ;;  %v5645_v49 = vsel %vm444_vm0, %v15149_v21, %v14949_v14  ;;  %v8850_v39 = vld [vmem:[#allocation2 + $0xa8] sm:$0xf0]  ;;  %v14955_v23 = vrot.slane %v13921_v22, 4  ;;  %v9897_v7 = vld [vmem:[#allocation2 + $0xac] sm:$0xf0]  ;;  %5621 = vrot.lane.b32.xlu2 %v13694_v40, %s15001_s29 }
 0x768   : > { %7225 = vmatpush.bf16.msra.mxu3 %v8953_v31  ;;  %7202 = vmatpush.bf16.msrb.mxu2 %v9301_v51  ;;  %v9905_v31 = vld [vmem:[#allocation2 + $0xec] sm:$0xf0]  ;;  %v5646_v8 = vsel %vm15150_vm6, %v13631_v42, %v5645_v49  ;;  %v9892_v41 = vld [vmem:[#allocation2 + $0x8c] sm:$0xf]  ;;  %v15151_v42 = vrot.slane %v13472_v17, 4  ;;  %vm15168_vm6 = vmmov %vm15167_vm5 }
 0x769   : > { %7252 = vmatpush.bf16.msra.mxu1 %v9497_v48  ;;  %v13919_v56 = vpop.permute.xlu0 %5237  ;;  %5663 = vst [vmem:[#allocation2 + $0x6b0] sm:$0xff] %v5646_v8  ;;  %v8889_v3 = vor.u32 %v9905_v31, %v8888_v27  ;;  %v8853_v46 = vor.u32 %v9892_v41, %v8850_v39  ;;  %v8856_v21 = vld [vmem:[#allocation2 + $0x90] sm:$0xf]  ;;  %v8818_v8 = vld [vmem:[#allocation2 + $0x68] sm:$0xf0] }
 0x76a   : > { %v14950_v51 = vrot.slane %v13919_v56, 4  ;;  %v9884_v39 = vld [vmem:[#allocation2 + $0x4c] sm:$0xf]  ;;  %v9889_v41 = vld [vmem:[#allocation2 + $0x6c] sm:$0xf0]  ;;  %4633 = vrot.lane.b32.xlu0 %v12419_v47, %s15014_s17 }
 0x76b   : > { %7171 = vmatpush.bf16.msrb.mxu0 %v8885_v13  ;;  %7203 = vmatmul.bf16.vlgmr.msrb.gmra.mxu2 %v13396_v54  ;;  %v9993_v15 = vld [vmem:[#allocation2 + $0x3ac] sm:$0xf0] }
 0x76c   : > { %7226 = vmatpush.bf16.msra.mxu3 %v8921_v61  ;;  %v5265_v53 = vsel %vm444_vm0, %v15151_v42, %v14950_v51  ;;  %v15152_v61 = vrot.slane %v13474_v62, 4  ;;  %v13944_v27 = vpop.permute.xlu2 %5113  ;;  %v8857_v42 = vor.u32 %v9897_v7, %v8856_v21  ;;  %v8824_v7 = vld [vmem:[#allocation2 + $0x50] sm:$0xf] }
 0x76d   : > { %v5266_v31 = vsel %vm15153_vm7, %v13472_v17, %v5265_v53  ;;  %v10049_v49 = vld [vmem:[#allocation2 + $0x56c] sm:$0xf0]  ;;  %v14951_v51 = vrot.slane %v13944_v27, 4  ;;  %v8821_v17 = vor.u32 %v9884_v39, %v8818_v8  ;;  %4623 = vrot.lane.b32.xlu1 %v12411_v28, %s15014_s17  ;;  %vm15170_vm7 = vcmask 80896   ;;  %s10272_s17 = scalar_lea.hbm %s10271_s27, 128 }
 0x76e   : > { %v4843_v48 = vsel %vm444_vm0, %v15152_v61, %v14955_v23  ;;  %5287 = vst [vmem:[#allocation2 + $0x510] sm:$0xff] %v5266_v31  ;;  %v9464_v14 = vld [vmem:[#allocation2 + $0x550] sm:$0xf]  ;;  %v8786_v61 = vld [vmem:[#allocation2 + $0x28] sm:$0xf0]  ;;  %v8825_v31 = vor.u32 %v9889_v41, %v8824_v7  ;;  %p10273_p6 = scmp.ne.s32.totalorder %s10271_s27, %s10272_s17  ;;  %p10278_p4 = scmp.lt.s32.totalorder %s10276_s19, %s10272_s17 }
 0x76f   : > { %v4844_v13 = vsel %vm15154_vm8, %v13474_v62, %v4843_v48  ;;  %7172 = vmatpush.bf16.msrb.mxu0 %v8853_v46  ;;  %v15155_v62 = vrot.slane %v13594_v5, 4  ;;  %v13960_v46 = vpop.permute.xlu1 %4745  ;;  %v9272_v21 = vld [vmem:[#allocation2 + $0x3d0] sm:$0xf]  ;;  %5549 = vrot.lane.b32.xlu2 %v13684_v45, %s15012_s11  ;;  %vm15172_vm8 = vmmov %vm15170_vm7 }
 0x770   : > { %7227 = vmatpush.bf16.msra.mxu3 %v8889_v3  ;;  %4861 = vst [vmem:[#allocation2 + $0x330] sm:$0xff] %v4844_v13  ;;  %v9465_v3 = vor.u32 %v10049_v49, %v9464_v14  ;;  %v9881_v13 = vld [vmem:[#allocation2 + $0x2c] sm:$0xf0]  ;;  %v4762_v8 = vrot.slane %v13960_v46, 4  ;;  %p10274_p13 = pnand %p10273_p6, %p10460_p11  ;;  %p10279_p5 = por %p10278_p4, %p10277_p3 }
 0x771   : > { %v5141_v53 = vsel %vm444_vm0, %v15155_v62, %v14951_v51  ;;  %v13958_v48 = vpop.permute.xlu0 %4755  ;;  %v10001_v39 = vld [vmem:[#allocation2 + $0x3ec] sm:$0xf0]  ;;  %v9997_v62 = vld [vmem:[#allocation2 + $0x3d4] sm:$0xf] }
 0x772   : > { %7253 = vmatpush.bf16.msra.mxu1 %v9465_v3  ;;  %v5142_v14 = vsel %vm15156_vm9, %v13594_v5, %v5141_v53  ;;  %v14954_v49 = vrot.slane %v13958_v48, 4  ;;  %v8792_v3 = vld [vmem:[#allocation2 + $0x10] sm:$0xf]  ;;  %v15158_v53 = vrot.slane %v13512_v26, 4  ;;  %v9273_v51 = vor.u32 %v10001_v39, %v9272_v21  ;;  %4561 = vrot.lane.b32.xlu0 %v12411_v28, %s14991_s24  ;;  %p10275_p2 = pneg %p10274_p13 }
 0x773   : > { %7173 = vmatpush.bf16.msrb.mxu0 %v8821_v17  ;;  %5163 = vst [vmem:[#allocation2 + $0x490] sm:$0xff] %v5142_v14  ;;  %v15157_v17 = vrot.slane %v13510_v57, 4  ;;  %v8793_v7 = vor.u32 %v9881_v13, %v8792_v3  ;;  %v9240_v21 = vld [vmem:[#allocation2 + $0x390] sm:$0xf]  ;;  %vm15174_vm9 = vcmask 154624  }
 0x774   : > { %7228 = vmatpush.bf16.msra.mxu3 %v8857_v42  ;;  %v9876_v42 = vld [vmem:[#allocation2 + $0xc] sm:$0xf]  ;;  %v4773_v14 = vsel %vm444_vm0, %v15158_v53, %v4762_v8  ;;  %v9985_v3 = vld [vmem:[#allocation2 + $0x36c] sm:$0xf0]  ;;  %p10280_p7 = pnand %p10279_p5, %p10275_p2 }
 0x775   : > { %v8789_v5 = vor.u32 %v9876_v42, %v8786_v61  ;;  %v4781_v41 = vsel %vm444_vm0, %v15157_v17, %v14954_v49  ;;  %v9432_v4 = vld [vmem:[#allocation2 + $0x510] sm:$0xf]  ;;  %v13976_v61 = vpop.permute.xlu2 %5557  ;;  %v4774_v36 = vsel %vm15160_vm15, %v13512_v26, %v4773_v14  ;;  %v9274_v17 = vld [vmem:[#allocation2 + $0x3f0] sm:$0xf0]  ;;  %5559 = vrot.lane.b32.xlu1 %v13694_v40, %s15012_s11  ;;  %vm15178_vm15 = vcmask 318464  }
 0x776   : > { %v4782_v42 = vsel %vm15159_vm12, %v13510_v57, %v4781_v41  ;;  %v5569_v23 = vrot.slane %v13976_v61, 4  ;;  %v9277_v13 = vor.u32 %v9997_v62, %v9274_v17  ;;  %4795 = vst [vmem:[#allocation2 + $0x2d0] sm:$0xff] %v4774_v36  ;;  %v15161_v57 = vrot.slane %v13706_v11, 4  ;;  %vm15176_vm12 = vmmov %vm15162_vm1 }
 0x777   : > { %7174 = vmatpush.bf16.msrb.mxu0 %v8789_v5  ;;  %4799 = vst [vmem:[#allocation2 + $0x2f0] sm:$0xff] %v4782_v42  ;;  %v9242_v5 = vld [vmem:[#allocation2 + $0x3b0] sm:$0xf0]  ;;  %v9241_v36 = vor.u32 %v9993_v15, %v9240_v21  ;;  %v13998_v62 = vpop.permute.xlu1 %5185  ;;  %4571 = vrot.lane.b32.xlu2 %v12419_v47, %s14991_s24  ;;  %v15165_v17 = vrot.slane %v13548_v58, 4 }
 0x778   : > { %7229 = vmatpush.bf16.msra.mxu3 %v8825_v31  ;;  %v10041_v31 = vld [vmem:[#allocation2 + $0x52c] sm:$0xf0]  ;;  %v5583_v26 = vsel %vm444_vm0, %v15161_v57, %v5569_v23  ;;  %v5197_v53 = vrot.slane %v13998_v62, 4  ;;  %v9210_v15 = vld [vmem:[#allocation2 + $0x370] sm:$0xf0] }
 0x779   : > { %v9433_v49 = vor.u32 %v10041_v31, %v9432_v4  ;;  %v5584_v4 = vsel %vm15162_vm1, %v13706_v11, %v5583_v26  ;;  %v13995_v28 = vpop.permute.xlu0 %5609  ;;  %v9208_v11 = vld [vmem:[#allocation2 + $0x350] sm:$0xf]  ;;  %v9981_v47 = vld [vmem:[#allocation2 + $0x354] sm:$0xf]  ;;  %vm15180_vm1 = vcmask 965632  }
 0x77a   : > { %7175 = vmatmul.bf16.vlgmr.msrb.gmra.mxu0 %v13287_v10  ;;  %5601 = vst [vmem:[#allocation2 + $0x670] sm:$0xff] %v5584_v4  ;;  %v5626_v39 = vrot.slane %v13995_v28, 4  ;;  %v9977_v26 = vld [vmem:[#allocation2 + $0x32c] sm:$0xf0]  ;;  %5497 = vrot.lane.b32.xlu0 %v13694_v40, %s15017_s0  ;;  %v9973_v40 = vld [vmem:[#allocation2 + $0x314] sm:$0xf] }
 0x77b   : > { %7237 = vmatpush.bf16.msra.mxu0 %v9273_v51  ;;  %7254 = vmatpush.bf16.msra.mxu1 %v9433_v49  ;;  %v9989_v51 = vld [vmem:[#allocation2 + $0x394] sm:$0xf]  ;;  %v15163_v49 = vrot.slane %v13490_v9, 4 }
 0x77c   : > { %7230 = vmatpush.bf16.msra.mxu3 %v8793_v7  ;;  %v9245_v41 = vor.u32 %v9989_v51, %v9242_v5  ;;  %v9209_v7 = vor.u32 %v9985_v3, %v9208_v11  ;;  %v9213_v5 = vor.u32 %v9981_v47, %v9210_v15  ;;  %v9176_v51 = vld [vmem:[#allocation2 + $0x310] sm:$0xf]  ;;  %v9178_v3 = vld [vmem:[#allocation2 + $0x330] sm:$0xf0] }
 0x77d   : > { %v5637_v14 = vsel %vm444_vm0, %v15163_v49, %v5626_v39  ;;  %v5056_v31 = vpop.permute.xlu2 %5055  ;;  %5487 = vrot.lane.b32.xlu1 %v13684_v45, %s15017_s0  ;;  %v9144_v15 = vld [vmem:[#allocation2 + $0x2d0] sm:$0xf]  ;;  %v9181_v45 = vor.u32 %v9973_v40, %v9178_v3  ;;  %s7788_s0 = sshll.u32 %s14698_s15, 4  ;;  %s7789_s0 = int_to_ptr.vmem [resolvable:$true] %s7788_s0 }
 0x77e   : > { %v5638_v42 = vsel %vm15164_vm3, %v13490_v9, %v5637_v14  ;;  %v5068_v57 = vrot.slane %v5056_v31, 4  ;;  %v15166_v9 = vrot.slane %v13668_v0, 4  ;;  %v9969_v49 = vld [vmem:[#allocation2 + $0x2ec] sm:$0xf0]  ;;  %vm15181_vm3 = vmmov %vm15180_vm1 }
 0x77f   : > { %7231 = vmatmul.bf16.vlgmr.msra.gmra.mxu3 %v13287_v10  ;;  %7238 = vmatpush.bf16.msra.mxu0 %v9241_v36  ;;  %5659 = vst [vmem:[#allocation2 + $0x690] sm:$0xff] %v5638_v42  ;;  %v9965_v42 = vld [vmem:[#allocation2 + $0x2d4] sm:$0xf]  ;;  %v9145_v47 = vor.u32 %v9969_v49, %v9144_v15  ;;  %v15173_v49 = vrot.slane %v13772_v59, 4 }
 0x780   : > { %7293 = vmatpush.bf16.msrb.mxu3 %v9277_v13  ;;  %v5211_v13 = vsel %vm444_vm0, %v15165_v17, %v5197_v53  ;;  %v5077_v4 = vsel %vm444_vm0, %v15166_v9, %v5068_v57  ;;  %v5079_v36 = vsel %vm15167_vm5, %v5056_v31, %v5068_v57  ;;  %v15169_v17 = vrot.slane %v13454_v35, 4  ;;  %v5886_v9 = vld [vmem:[%s14772_s4 + $0x8] sm:$0xff] }
 0x781   : > { %v5212_v21 = vsel %vm15145_vm4, %v13548_v58, %v5211_v13  ;;  %v5078_v58 = vsel %vm15168_vm6, %v13668_v0, %v5077_v4  ;;  %5098 = vst.msk [vmem:[#allocation2 + $0x458] sm:$0xff] %vm10609_vm2, %v5079_v36  ;;  %v14030_v11 = vpop.permute.xlu0 %4693  ;;  %v9146_v0 = vld [vmem:[#allocation2 + $0x2f0] sm:$0xf0]  ;;  %v10089_v36 = vld [vmem:[#allocation2 + $0x6ac] sm:$0xf0]  ;;  %vm15183_vm4 = vcmask 89088   ;;  %vm15188_vm6 = vmmov %vm15174_vm9 }
 0x782   : > { %5229 = vst [vmem:[#allocation2 + $0x4f0] sm:$0xff] %v5212_v21  ;;  %v4705_v14 = vrot.slane %v14030_v11, 4  ;;  %v15171_v21 = vrot.slane %v13546_v12, 4  ;;  %vm15185_vm5 = vmmov %vm15183_vm4 }
 0x783   : > { %7239 = vmatpush.bf16.msra.mxu0 %v9209_v7  ;;  %5097 = vst [vmem:[#allocation2 + $0x450] sm:$0xff] %v5078_v58  ;;  %v14033_v7 = vpop.permute.xlu1 %4683  ;;  %v9400_v58 = vld [vmem:[#allocation2 + $0x4d0] sm:$0xf] }
 0x784   : > { %7294 = vmatpush.bf16.msrb.mxu3 %v9245_v41  ;;  %v9177_v41 = vor.u32 %v9977_v26, %v9176_v51  ;;  %v4700_v31 = vrot.slane %v14033_v7, 4  ;;  %v4719_v13 = vsel %vm444_vm0, %v15169_v17, %v4705_v14  ;;  %v5885_v17 = vld [vmem:[%s14772_s4] sm:$0xff] }
 0x785   : > { %v14041_v57 = vpop.permute.xlu2 %5495  ;;  %v4720_v26 = vsel %vm15170_vm7, %v13454_v35, %v4719_v13  ;;  %v9149_v35 = vor.u32 %v9965_v42, %v9146_v0  ;;  %5894 = vperm.xlu1 %10174, %v5886_v9   ;;  %5889 = vperm.xlu2 %10175, %v5885_v17   ;;  %v15177_v9 = vrot.slane %v13592_v32, 4  ;;  %vm15190_vm7 = vcmask 957440  }
 0x786   : > { %v9624_v4 = vld [vmem:[#allocation2 + $0x690] sm:$0xf]  ;;  %v5507_v51 = vrot.slane %v14041_v57, 4  ;;  %4737 = vst [vmem:[#allocation2 + $0x2b0] sm:$0xff] %v4720_v26  ;;  %v15175_v26 = vrot.slane %v13572_v38, 4 }
 0x787   : > { %7240 = vmatpush.bf16.msra.mxu0 %v9177_v41  ;;  %v9625_v40 = vor.u32 %v10089_v36, %v9624_v4 }
 0x788   : > { %7295 = vmatpush.bf16.msrb.mxu3 %v9213_v5  ;;  %v4711_v5 = vsel %vm444_vm0, %v15171_v21, %v4700_v31 }
 0x789   : > { %v4712_v3 = vsel %vm15172_vm8, %v13546_v12, %v4711_v5  ;;  %v10033_v41 = vld [vmem:[#allocation2 + $0x4ec] sm:$0xf0]  ;;  %7270 = vmatpush.bf16.msra.mxu2 %v9625_v40  ;;  %v14066_v42 = vpop.permute.xlu0 %5547  ;;  %vm15191_vm8 = vmmov %vm15190_vm7 }
 0x78a   : > { %4733 = vst [vmem:[#allocation2 + $0x290] sm:$0xff] %v4712_v3  ;;  %v9401_v15 = vor.u32 %v10033_v41, %v9400_v58  ;;  %v5564_v0 = vrot.slane %v14066_v42, 4 }
 0x78b   : > { %7241 = vmatpush.bf16.msra.mxu0 %v9145_v47  ;;  %v14069_v13 = vpop.permute.xlu1 %5123 }
 0x78c   : > { %7296 = vmatpush.bf16.msrb.mxu3 %v9181_v45  ;;  %v5521_v45 = vsel %vm444_vm0, %v15173_v49, %v5507_v51  ;;  %7255 = vmatpush.bf16.msra.mxu1 %v9401_v15  ;;  %v5135_v47 = vrot.slane %v14069_v13, 4  ;;  %v5575_v21 = vsel %vm444_vm0, %v15175_v26, %v5564_v0 }
 0x78d   : > { %v5522_v12 = vsel %vm15174_vm9, %v13772_v59, %v5521_v45  ;;  %v5002_v5 = vpop.permute.xlu2 %5001  ;;  %v5576_v59 = vsel %vm15176_vm12, %v13572_v38, %v5575_v21  ;;  %v9961_v36 = vld [vmem:[#allocation2 + $0x2ac] sm:$0xf0]  ;;  %v9114_v3 = vld [vmem:[#allocation2 + $0x2b0] sm:$0xf0]  ;;  %v15179_v38 = vrot.slane %v13740_v1, 4  ;;  %vm15194_vm9 = vcmask 728064  }
 0x78e   : > { %5539 = vst [vmem:[#allocation2 + $0x630] sm:$0xff] %v5522_v12  ;;  %v5149_v4 = vsel %vm444_vm0, %v15177_v9, %v5135_v47  ;;  %vm15196_vm12 = vmmov %vm15194_vm9 }
 0x78f   : > { %5597 = vst [vmem:[#allocation2 + $0x650] sm:$0xff] %v5576_v59  ;;  %v5150_v58 = vsel %vm15178_vm15, %v13592_v32, %v5149_v4  ;;  %vm15198_vm15 = vcmask 7168  }
 0x790   : > { %7297 = vmatpush.bf16.msrb.mxu3 %v9149_v35  ;;  %v5014_v35 = vrot.slane %v5002_v5, 4  ;;  %5167 = vst [vmem:[#allocation2 + $0x4b0] sm:$0xff] %v5150_v58  ;;  %v10081_v58 = vld [vmem:[#allocation2 + $0x66c] sm:$0xf0] }
 0x791   : > { %v9112_v41 = vld [vmem:[#allocation2 + $0x290] sm:$0xf]  ;;  %v9957_v40 = vld [vmem:[#allocation2 + $0x294] sm:$0xf]  ;;  %v14094_v32 = vpop.permute.xlu0 %4631 }
 0x792   : > { %v9113_v15 = vor.u32 %v9961_v36, %v9112_v41  ;;  %v9117_v49 = vor.u32 %v9957_v40, %v9114_v3  ;;  %v5023_v45 = vsel %vm444_vm0, %v15179_v38, %v5014_v35  ;;  %v5025_v17 = vsel %vm15180_vm1, %v5002_v5, %v5014_v35 }
 0x793   : > { %v5024_v12 = vsel %vm15181_vm3, %v13740_v1, %v5023_v45  ;;  %5044 = vst.msk [vmem:[#allocation2 + $0x418] sm:$0xff] %vm10609_vm2, %v5025_v17  ;;  %v4643_v26 = vrot.slane %v14094_v32, 4  ;;  %v14097_v21 = vpop.permute.xlu1 %4621  ;;  %v15182_v5 = vrot.slane %v13528_v52, 4  ;;  %v15184_v36 = vrot.slane %v13629_v18, 4 }
 0x794   : > { %7242 = vmatpush.bf16.msra.mxu0 %v9113_v15  ;;  %7298 = vmatpush.bf16.msrb.mxu3 %v9117_v49  ;;  %5043 = vst [vmem:[#allocation2 + $0x410] sm:$0xff] %v5024_v12  ;;  %v4638_v59 = vrot.slane %v14097_v21, 4  ;;  %v9368_v15 = vld [vmem:[#allocation2 + $0x490] sm:$0xf]  ;;  %vm15199_vm1 = vcmask 392192  }
 0x795   : > { %v4657_v1 = vsel %vm444_vm0, %v15182_v5, %v4643_v26  ;;  %v5436_v9 = vpop.permute.xlu2 %5435 }
 0x796   : > { %v4658_v4 = vsel %vm15183_vm4, %v13528_v52, %v4657_v1  ;;  %v4649_v3 = vsel %vm444_vm0, %v15184_v36, %v4638_v59  ;;  %v9592_v35 = vld [vmem:[#allocation2 + $0x650] sm:$0xf]  ;;  %v5446_v41 = vrot.slane %v5436_v9, 4  ;;  %v15186_v52 = vrot.slane %v13808_v29, 4  ;;  %vm15202_vm4 = vmmov %vm15181_vm3 }
 0x797   : > { %4675 = vst [vmem:[#allocation2 + $0x270] sm:$0xff] %v4658_v4  ;;  %v4650_v40 = vsel %vm15185_vm5, %v13629_v18, %v4649_v3  ;;  %v10025_v49 = vld [vmem:[#allocation2 + $0x4ac] sm:$0xf0]  ;;  %v9593_v38 = vor.u32 %v10081_v58, %v9592_v35  ;;  %v15187_v4 = vrot.slane %v13647_v2, 4  ;;  %v15189_v35 = vrot.slane %v13666_v19, 4  ;;  %vm15208_vm5 = vmmov %vm15198_vm15 }
 0x798   : > { %4671 = vst [vmem:[#allocation2 + $0x250] sm:$0xff] %v4650_v40  ;;  %v9369_v45 = vor.u32 %v10025_v49, %v9368_v15  ;;  %v5461_v17 = vsel %vm444_vm0, %v15186_v52, %v5446_v41 }
 0x799   : > { %7271 = vmatpush.bf16.msra.mxu2 %v9593_v38  ;;  %v5462_v12 = vsel %vm1817_vm14, %v13808_v29, %v5461_v17  ;;  %v14119_v5 = vpop.permute.xlu0 %5485 }
 0x79a   : > { %7256 = vmatpush.bf16.msra.mxu1 %v9369_v45  ;;  %5478 = vst.msk [vmem:[#allocation2 + $0x5f8] sm:$0xff] %vm10609_vm2, %v5462_v12  ;;  %v14957_v18 = vrot.slane %v14119_v5, 4 }
 0x79b   : > { %v5064_v1 = vpop.permute.xlu1 %5063 }
 0x79c   : > { %v5072_v9 = vrot.slane %v5064_v1, 4  ;;  %v5513_v36 = vsel %vm444_vm0, %v15187_v4, %v14957_v18  ;;  %v8986_v18 = vld [vmem:[#allocation2 + $0x1b0] sm:$0xf0] }
 0x79d   : > { %v5302_v3 = vpop.permute.xlu2 %5301  ;;  %v5514_v29 = vsel %vm15188_vm6, %v13647_v2, %v5513_v36  ;;  %v15192_v2 = vrot.slane %v13883_v60, 4  ;;  %vm15213_vm6 = vcmask 302080  }
 0x79e   : > { %v5084_v58 = vsel %vm444_vm0, %v15189_v35, %v5072_v9  ;;  %v5086_v41 = vsel %vm15190_vm7, %v5064_v1, %v5072_v9  ;;  %v9953_v40 = vld [vmem:[#allocation2 + $0x26c] sm:$0xf0]  ;;  %v9082_v15 = vld [vmem:[#allocation2 + $0x270] sm:$0xf0]  ;;  %v5317_v49 = vrot.slane %v5302_v3, 4  ;;  %5535 = vst [vmem:[#allocation2 + $0x610] sm:$0xff] %v5514_v29  ;;  %vm15215_vm7 = vmmov %vm15213_vm6 }
 0x79f   : > { %v5085_v38 = vsel %vm15191_vm8, %v13666_v19, %v5084_v58  ;;  %v9080_v45 = vld [vmem:[#allocation2 + $0x250] sm:$0xf]  ;;  %v9949_v52 = vld [vmem:[#allocation2 + $0x254] sm:$0xf]  ;;  %5102 = vst.msk [vmem:[#allocation2 + $0x478] sm:$0xff] %vm10609_vm2, %v5086_v41  ;;  %v15193_v29 = vrot.slane %v13611_v63, 4 }
 0x7a0   : > { %5101 = vst [vmem:[#allocation2 + $0x470] sm:$0xff] %v5085_v38  ;;  %v9081_v17 = vor.u32 %v9953_v40, %v9080_v45  ;;  %v9085_v12 = vor.u32 %v9949_v52, %v9082_v15  ;;  %v5329_v4 = vsel %vm444_vm0, %v15192_v2, %v5317_v49  ;;  %v9018_v58 = vld [vmem:[#allocation2 + $0x1f0] sm:$0xf0]  ;;  %v15195_v15 = vrot.slane %v13704_v34, 4  ;;  %v10073_v45 = vld [vmem:[#allocation2 + $0x62c] sm:$0xf0] }
 0x7a1   : > { %v5330_v1 = vsel %vm1691_vm13, %v13883_v60, %v5329_v4  ;;  %v14144_v9 = vpop.permute.xlu0 %4569  ;;  %v9933_v60 = vld [vmem:[#allocation2 + $0x1d4] sm:$0xf]  ;;  %vm15217_vm8 = vcmask 138240  }
 0x7a2   : > { %7243 = vmatpush.bf16.msra.mxu0 %v9081_v17  ;;  %7299 = vmatpush.bf16.msrb.mxu3 %v9085_v12  ;;  %5350 = vst.msk [vmem:[#allocation2 + $0x558] sm:$0xff] %vm10609_vm2, %v5330_v1  ;;  %v4581_v19 = vrot.slane %v14144_v9, 4  ;;  %v9336_v12 = vld [vmem:[#allocation2 + $0x450] sm:$0xf] }
 0x7a3   : > { %v14149_v36 = vpop.permute.xlu1 %4559 }
 0x7a4   : > { %v4576_v3 = vrot.slane %v14149_v36, 4  ;;  %v4595_v35 = vsel %vm444_vm0, %v15193_v29, %v4581_v19  ;;  %v9021_v29 = vor.u32 %v9933_v60, %v9018_v58  ;;  %v15200_v58 = vrot.slane %v13810_v24, 4 }
 0x7a5   : > { %v4820_v41 = vpop.permute.xlu2 %4819  ;;  %v4596_v40 = vsel %vm15194_vm9, %v13611_v63, %v4595_v35  ;;  %v9560_v38 = vld [vmem:[#allocation2 + $0x610] sm:$0xf]  ;;  %v15197_v63 = vrot.slane %v13921_v22, 4 }
 0x7a6   : > { %v4587_v49 = vsel %vm444_vm0, %v15195_v15, %v4576_v3  ;;  %v4830_v52 = vrot.slane %v4820_v41, 4  ;;  %4613 = vst [vmem:[#allocation2 + $0x230] sm:$0xff] %v4596_v40  ;;  %v9561_v4 = vor.u32 %v10073_v45, %v9560_v38 }
 0x7a7   : > { %v4588_v17 = vsel %vm15196_vm12, %v13704_v34, %v4587_v49  ;;  %v10017_v2 = vld [vmem:[#allocation2 + $0x46c] sm:$0xf0]  ;;  %v9925_v49 = vld [vmem:[#allocation2 + $0x194] sm:$0xf]  ;;  %vm15221_vm12 = vmmov %vm15199_vm1 }
 0x7a8   : > { %4609 = vst [vmem:[#allocation2 + $0x210] sm:$0xff] %v4588_v17  ;;  %v9337_v1 = vor.u32 %v10017_v2, %v9336_v12  ;;  %v4845_v35 = vsel %vm444_vm0, %v15197_v63, %v4830_v52  ;;  %7272 = vmatpush.bf16.msra.mxu2 %v9561_v4  ;;  %v8989_v60 = vor.u32 %v9925_v49, %v8986_v18  ;;  %v10061_v52 = vld [vmem:[#allocation2 + $0x5d4] sm:$0xf]  ;;  %v15201_v4 = vrot.slane %v13738_v33, 4 }
 0x7a9   : > { %v4846_v15 = vsel %vm15198_vm15, %v13921_v22, %v4845_v35  ;;  %v5426_v41 = vpop.permute.xlu0 %5425  ;;  %v8954_v22 = vld [vmem:[#allocation2 + $0x170] sm:$0xf0] }
 0x7aa   : > { %7257 = vmatpush.bf16.msra.mxu1 %v9337_v1  ;;  %4862 = vst.msk [vmem:[#allocation2 + $0x338] sm:$0xff] %vm10609_vm2, %v4846_v15  ;;  %v5441_v34 = vrot.slane %v5426_v41, 4  ;;  %v9530_v17 = vld [vmem:[#allocation2 + $0x5f0] sm:$0xf0] }
 0x7ab   : > { %v5010_v40 = vpop.permute.xlu1 %5009  ;;  %9642 = vmatmul.msk.bf16.vlgmr.msra.gmra.mxu2 %vm15199_vm1, %v13275_v55  ;;  %vm15223_vm1 = vcmask 146432  }
 0x7ac   : > { %7279 = vmatpush.bf16.msrb.mxu2 %v9021_v29  ;;  %v5018_v38 = vrot.slane %v5010_v40, 4  ;;  %v5453_v45 = vsel %vm444_vm0, %v15200_v58, %v5441_v34  ;;  %v9917_v58 = vld [vmem:[#allocation2 + $0x154] sm:$0xf] }
 0x7ad   : > { %v4748_v12 = vpop.permute.xlu2 %4747  ;;  %v5454_v2 = vsel %vm1817_vm14, %v13810_v24, %v5453_v45  ;;  %v9945_v29 = vld [vmem:[#allocation2 + $0x22c] sm:$0xf0]  ;;  %v9050_v63 = vld [vmem:[#allocation2 + $0x230] sm:$0xf0]  ;;  %vm15203_vm14 = vcmask 72704  }
 0x7ae   : > { %v5030_v1 = vsel %vm444_vm0, %v15201_v4, %v5018_v38  ;;  %v5032_v18 = vsel %vm15181_vm3, %v5010_v40, %v5018_v38  ;;  %v4763_v35 = vrot.slane %v4748_v12, 4  ;;  %5474 = vst.msk [vmem:[#allocation2 + $0x5d8] sm:$0xff] %vm10609_vm2, %v5454_v2  ;;  %v8957_v38 = vor.u32 %v9917_v58, %v8954_v22  ;;  %v8922_v12 = vld [vmem:[#allocation2 + $0x130] sm:$0xf0]  ;;  %vm15222_vm15 = vmmov %vm15203_vm14 }
 0x7af   : > { %v5031_v15 = vsel %vm15202_vm4, %v13738_v33, %v5030_v1  ;;  %v9048_v41 = vld [vmem:[#allocation2 + $0x210] sm:$0xf]  ;;  %v9941_v34 = vld [vmem:[#allocation2 + $0x214] sm:$0xf]  ;;  %5048 = vst.msk [vmem:[#allocation2 + $0x438] sm:$0xff] %vm10609_vm2, %v5032_v18  ;;  %vm15224_vm3 = vcmask 80896  }
 0x7b0   : > { %7280 = vmatpush.bf16.msrb.mxu2 %v8989_v60  ;;  %5047 = vst [vmem:[#allocation2 + $0x430] sm:$0xff] %v5031_v15  ;;  %v9049_v24 = vor.u32 %v9945_v29, %v9048_v41  ;;  %v9053_v49 = vor.u32 %v9941_v34, %v9050_v63  ;;  %v4775_v40 = vsel %vm444_vm0, %v4762_v8, %v4763_v35  ;;  %v10053_v2 = vld [vmem:[#allocation2 + $0x594] sm:$0xf]  ;;  %vm15225_vm4 = vmmov %vm15224_vm3 }
 0x7b1   : > { %v9533_v60 = vor.u32 %v10061_v52, %v9530_v17  ;;  %v4776_v45 = vsel %vm15203_vm14, %v13960_v46, %v4775_v40  ;;  %v5374_v33 = vpop.permute.xlu0 %5373  ;;  %v9909_v29 = vld [vmem:[#allocation2 + $0x114] sm:$0xf]  ;;  %v15204_v52 = vrot.slane %v13760_v30, 4  ;;  %vm15226_vm14 = vcmask 728064  }
 0x7b2   : > { %7244 = vmatpush.bf16.msra.mxu0 %v9049_v24  ;;  %7300 = vmatpush.bf16.msrb.mxu3 %v9053_v49  ;;  %4796 = vst.msk [vmem:[#allocation2 + $0x2d8] sm:$0xff] %vm10609_vm2, %v4776_v45  ;;  %v5384_v4 = vrot.slane %v5374_v33, 4  ;;  %v9498_v18 = vld [vmem:[#allocation2 + $0x5b0] sm:$0xf0]  ;;  %v8925_v17 = vor.u32 %v9909_v29, %v8922_v12  ;;  %v15205_v49 = vrot.slane %v13845_v16, 4 }
 0x7b3   : > { %v5364_v1 = vpop.permute.xlu1 %5363  ;;  %v8890_v22 = vld [vmem:[#allocation2 + $0xf0] sm:$0xf0]  ;;  %v9501_v63 = vor.u32 %v10053_v2, %v9498_v18  ;;  %v9304_v33 = vld [vmem:[#allocation2 + $0x410] sm:$0xf] }
 0x7b4   : > { %7281 = vmatpush.bf16.msrb.mxu2 %v8957_v38  ;;  %v5379_v8 = vrot.slane %v5364_v1, 4  ;;  %v5399_v46 = vsel %vm444_vm0, %v15204_v52, %v5384_v4  ;;  %v10045_v35 = vld [vmem:[#allocation2 + $0x554] sm:$0xf]  ;;  %v10066_v38 = vld [vmem:[#allocation2 + $0x5f4] sm:$0xf0] }
 0x7b5   : > { %7245 = vmatmul.bf16.vlgmr.msra.gmra.mxu0 %v13558_v50  ;;  %v9466_v15 = vld [vmem:[#allocation2 + $0x570] sm:$0xf0]  ;;  %v5188_v34 = vpop.permute.xlu2 %5187  ;;  %7301 = vmatmul.bf16.vlgmr.msrb.gmra.mxu3 %v13558_v50  ;;  %v5400_v24 = vsel %vm1754_vm11, %v13760_v30, %v5399_v46  ;;  %v9536_v40 = vld [vmem:[#allocation2 + $0x5d8] sm:$0xf] }
 0x7b6   : > { %7307 = vmatpush.bf16.msrb.mxu0 %v9533_v60  ;;  %v10085_v41 = vld [vmem:[#allocation2 + $0x694] sm:$0xf]  ;;  %v5391_v58 = vsel %vm444_vm0, %v15205_v49, %v5379_v8  ;;  %v5198_v60 = vrot.slane %v5188_v34, 4  ;;  %5416 = vst.msk [vmem:[#allocation2 + $0x5b8] sm:$0xff] %vm10609_vm2, %v5400_v24  ;;  %v9537_v2 = vor.u32 %v10066_v38, %v9536_v40  ;;  %v9469_v29 = vor.u32 %v10045_v35, %v9466_v15 }
 0x7b7   : > { %v5392_v45 = vsel %vm1754_vm11, %v13845_v16, %v5391_v58  ;;  %v10009_v12 = vld [vmem:[#allocation2 + $0x42c] sm:$0xf0]  ;;  %v9901_v4 = vld [vmem:[#allocation2 + $0xd4] sm:$0xf]  ;;  %vm15206_vm11 = vcmask 310272   ;;  %v15207_v15 = vrot.slane %v13795_v44, 4 }
 0x7b8   : > { %7282 = vmatpush.bf16.msrb.mxu2 %v8925_v17  ;;  %5412 = vst.msk [vmem:[#allocation2 + $0x598] sm:$0xff] %vm10609_vm2, %v5392_v45  ;;  %v9305_v30 = vor.u32 %v10009_v12, %v9304_v33  ;;  %v5213_v1 = vsel %vm444_vm0, %v5197_v53, %v5198_v60  ;;  %7363 = vmatpush.bf16.msra.mxu3 %v9537_v2  ;;  %v9626_v18 = vld [vmem:[#allocation2 + $0x6b0] sm:$0xf0]  ;;  %v15209_v33 = vrot.slane %v13881_v25, 4  ;;  %vm15219_vm9 = vmmov %vm15206_vm11 }
 0x7b9   : > { %v8893_v8 = vor.u32 %v9901_v4, %v8890_v22  ;;  %v5214_v16 = vsel %vm15206_vm11, %v13998_v62, %v5213_v1  ;;  %v4810_v52 = vpop.permute.xlu0 %4809  ;;  %v9629_v46 = vor.u32 %v10085_v41, %v9626_v18  ;;  %v8858_v17 = vld [vmem:[#allocation2 + $0xb0] sm:$0xf0]  ;;  %vm15227_vm11 = vmmov %vm15217_vm8 }
 0x7ba   : > { %7308 = vmatpush.bf16.msrb.mxu0 %v9501_v63  ;;  %7258 = vmatpush.bf16.msra.mxu1 %v9305_v30  ;;  %5230 = vst.msk [vmem:[#allocation2 + $0x4f8] sm:$0xff] %vm10609_vm2, %v5214_v16  ;;  %v10037_v63 = vld [vmem:[#allocation2 + $0x514] sm:$0xf]  ;;  %v4825_v34 = vrot.slane %v4810_v52, 4 }
 0x7bb   : > { %v5312_v24 = vpop.permute.xlu1 %5311  ;;  %v10077_v53 = vld [vmem:[#allocation2 + $0x654] sm:$0xf] }
 0x7bc   : > { %7283 = vmatpush.bf16.msrb.mxu2 %v8893_v8  ;;  %v5322_v49 = vrot.slane %v5312_v24, 4  ;;  %v9893_v22 = vld [vmem:[#allocation2 + $0x94] sm:$0xf]  ;;  %v4837_v62 = vsel %vm444_vm0, %v15207_v15, %v4825_v34  ;;  %v14238_v34 = vpop.f32.mrf.mxu1 }
 0x7bd   : > { %v9434_v35 = vld [vmem:[#allocation2 + $0x530] sm:$0xf0]  ;;  %7259 = vmatmul.bf16.vlgmr.msra.gmra.mxu1 %v13396_v54  ;;  %v8861_v41 = vor.u32 %v9893_v22, %v8858_v17  ;;  %v5116_v60 = vpop.permute.xlu2 %5115  ;;  %v4838_v45 = vsel %vm15208_vm5, %v13795_v44, %v4837_v62  ;;  %v10058_v30 = vld [vmem:[#allocation2 + $0x5b4] sm:$0xf0] }
 0x7be   : > { %7309 = vmatpush.bf16.msrb.mxu0 %v9469_v29  ;;  %7326 = vmatpush.bf16.msrb.mxu1 %v9629_v46  ;;  %v9437_v58 = vor.u32 %v10037_v63, %v9434_v35  ;;  %v9594_v40 = vld [vmem:[#allocation2 + $0x670] sm:$0xf0]  ;;  %v5337_v12 = vsel %vm444_vm0, %v15209_v33, %v5322_v49  ;;  %v5131_v8 = vrot.slane %v5116_v60, 4  ;;  %4858 = vst.msk [vmem:[#allocation2 + $0x318] sm:$0xff] %vm10609_vm2, %v4838_v45  ;;  %v15210_v46 = vrot.slane %v13944_v27, 4 }
 0x7bf   : > { %v8826_v38 = vld [vmem:[#allocation2 + $0x70] sm:$0xf0]  ;;  %v9597_v2 = vor.u32 %v10077_v53, %v9594_v40  ;;  %v5338_v29 = vsel %vm1691_vm13, %v13881_v25, %v5337_v12  ;;  %v9504_v18 = vld [vmem:[#allocation2 + $0x598] sm:$0xf]  ;;  %vm15211_vm13 = vcmask 318464  }
 0x7c0   : > { %v9885_v4 = vld [vmem:[#allocation2 + $0x54] sm:$0xf]  ;;  %7284 = vmatpush.bf16.msrb.mxu2 %v8861_v41  ;;  %5354 = vst.msk [vmem:[#allocation2 + $0x578] sm:$0xff] %vm10609_vm2, %v5338_v29  ;;  %v9505_v44 = vor.u32 %v10058_v30, %v9504_v18  ;;  %v5143_v17 = vsel %vm444_vm0, %v15210_v46, %v5131_v8  ;;  %v9938_v63 = vld [vmem:[#allocation2 + $0x1f4] sm:$0xf0]  ;;  %v15212_v30 = vrot.slane %v13833_v43, 4  ;;  %vm15228_vm5 = vmmov %vm15211_vm13 }
 0x7c1   : > { %v9402_v1 = vld [vmem:[#allocation2 + $0x4f0] sm:$0xf0]  ;;  %v8829_v24 = vor.u32 %v9885_v4, %v8826_v38  ;;  %v5144_v49 = vsel %vm15211_vm13, %v13944_v27, %v5143_v17  ;;  %v5250_v35 = vpop.permute.xlu0 %5249  ;;  %v9024_v62 = vld [vmem:[#allocation2 + $0x1d8] sm:$0xf]  ;;  %v15214_v46 = vrot.slane %v13919_v56, 4  ;;  %vm15229_vm13 = vcmask 89088  }
 0x7c2   : > { %7310 = vmatpush.bf16.msrb.mxu0 %v9437_v58  ;;  %v10069_v16 = vld [vmem:[#allocation2 + $0x614] sm:$0xf]  ;;  %7327 = vmatpush.bf16.msrb.mxu1 %v9597_v2  ;;  %5164 = vst.msk [vmem:[#allocation2 + $0x498] sm:$0xff] %vm10609_vm2, %v5144_v49  ;;  %v5260_v58 = vrot.slane %v5250_v35, 4  ;;  %v9025_v60 = vor.u32 %v9938_v63, %v9024_v62  ;;  %v9280_v45 = vld [vmem:[#allocation2 + $0x3d8] sm:$0xf]  ;;  %v14244_v2 = vpop.f32.mrf.mxu2 }
 0x7c3   : > { %v10029_v52 = vld [vmem:[#allocation2 + $0x4d4] sm:$0xf]  ;;  %7364 = vmatpush.bf16.msra.mxu3 %v9505_v44  ;;  %v5240_v40 = vpop.permute.xlu1 %5239  ;;  %v9930_v27 = vld [vmem:[#allocation2 + $0x1b4] sm:$0xf0]  ;;  %v14249_v44 = vpop.f32.mrf.mxu3 }
 0x7c4   : > { %v9405_v53 = vor.u32 %v10029_v52, %v9402_v1  ;;  %v9562_v25 = vld [vmem:[#allocation2 + $0x630] sm:$0xf0]  ;;  %7285 = vmatpush.bf16.msrb.mxu2 %v8829_v24  ;;  %v5255_v33 = vrot.slane %v5240_v40, 4  ;;  %v5275_v4 = vsel %vm444_vm0, %v15212_v30, %v5260_v58  ;;  %v8992_v29 = vld [vmem:[#allocation2 + $0x198] sm:$0xf]  ;;  %v15216_v58 = vrot.slane %v13907_v20, 4 }
 0x7c5   : > { %v8794_v22 = vld [vmem:[#allocation2 + $0x30] sm:$0xf0]  ;;  %v9565_v15 = vor.u32 %v10069_v16, %v9562_v25  ;;  %v10002_v18 = vld [vmem:[#allocation2 + $0x3f4] sm:$0xf0]  ;;  %v5622_v16 = vpop.permute.xlu2 %5621  ;;  %v5276_v52 = vsel %vm15213_vm6, %v13833_v43, %v5275_v4  ;;  %v14262_v43 = vpop.f32.mrf.mxu0  ;;  %vm15230_vm6 = vmmov %vm15229_vm13 }
 0x7c6   : > { %v9370_v41 = vld [vmem:[#allocation2 + $0x4b0] sm:$0xf0]  ;;  %7311 = vmatpush.bf16.msrb.mxu0 %v9405_v53  ;;  %v5267_v17 = vsel %vm444_vm0, %v15214_v46, %v5255_v33  ;;  %v9281_v63 = vor.u32 %v10002_v18, %v9280_v45  ;;  %v5632_v53 = vrot.slane %v5622_v16, 4  ;;  %v9994_v25 = vld [vmem:[#allocation2 + $0x3b4] sm:$0xf0]  ;;  %5292 = vst.msk [vmem:[#allocation2 + $0x538] sm:$0xff] %vm10609_vm2, %v5276_v52  ;;  %v14272_v4 = vpop.f32.mrf.mxu1 }
 0x7c7   : > { %v9877_v38 = vld [vmem:[#allocation2 + $0x14] sm:$0xf]  ;;  %7328 = vmatpush.bf16.msrb.mxu1 %v9565_v15  ;;  %v5268_v49 = vsel %vm15215_vm7, %v13919_v56, %v5267_v17  ;;  %v9472_v35 = vld [vmem:[#allocation2 + $0x558] sm:$0xf]  ;;  %v15218_v46 = vrot.slane %v13869_v6, 4  ;;  %vm15231_vm7 = vmmov %vm15226_vm14 }
 0x7c8   : > { %v10021_v12 = vld [vmem:[#allocation2 + $0x494] sm:$0xf]  ;;  %v8797_v1 = vor.u32 %v9877_v38, %v8794_v22  ;;  %v8993_v22 = vor.u32 %v9930_v27, %v8992_v29  ;;  %v10050_v15 = vld [vmem:[#allocation2 + $0x574] sm:$0xf0]  ;;  %5288 = vst.msk [vmem:[#allocation2 + $0x518] sm:$0xff] %vm10609_vm2, %v5268_v49  ;;  %v5647_v40 = vsel %vm444_vm0, %v15216_v58, %v5632_v53  ;;  %v15220_v49 = vrot.slane %v13958_v48, 4 }
 0x7c9   : > { %v9373_v8 = vor.u32 %v10021_v12, %v9370_v41  ;;  %v9338_v24 = vld [vmem:[#allocation2 + $0x470] sm:$0xf0]  ;;  %v9473_v62 = vor.u32 %v10050_v15, %v9472_v35  ;;  %v5648_v38 = vsel %vm15217_vm8, %v13907_v20, %v5647_v40  ;;  %v9248_v45 = vld [vmem:[#allocation2 + $0x398] sm:$0xf]  ;;  %v5178_v33 = vpop.permute.xlu0 %5177  ;;  %vm15232_vm8 = vmmov %vm15223_vm1 }
 0x7ca   : > { %7286 = vmatpush.bf16.msrb.mxu2 %v8797_v1  ;;  %v10013_v41 = vld [vmem:[#allocation2 + $0x454] sm:$0xf]  ;;  %5664 = vst.msk [vmem:[#allocation2 + $0x6b8] sm:$0xff] %vm10609_vm2, %v5648_v38  ;;  %v8960_v12 = vld [vmem:[#allocation2 + $0x158] sm:$0xf]  ;;  %v9249_v27 = vor.u32 %v9994_v25, %v9248_v45  ;;  %v5193_v1 = vrot.slane %v5178_v33, 4 }
 0x7cb   : > { %7335 = vmatpush.bf16.msra.mxu1 %v9025_v60  ;;  %7312 = vmatpush.bf16.msrb.mxu0 %v9373_v8  ;;  %v9922_v60 = vld [vmem:[#allocation2 + $0x174] sm:$0xf0]  ;;  %v9341_v56 = vor.u32 %v10013_v41, %v9338_v24  ;;  %v9306_v30 = vld [vmem:[#allocation2 + $0x430] sm:$0xf0]  ;;  %v4758_v8 = vpop.permute.xlu1 %4757  ;;  %v14282_v41 = vpop.f32.mrf.mxu2 }
 0x7cc   : > { %7365 = vmatpush.bf16.msra.mxu3 %v9473_v62  ;;  %v8961_v29 = vor.u32 %v9922_v60, %v8960_v12  ;;  %v9986_v18 = vld [vmem:[#allocation2 + $0x374] sm:$0xf0]  ;;  %v4768_v16 = vrot.slane %v4758_v8, 4  ;;  %v10005_v20 = vld [vmem:[#allocation2 + $0x414] sm:$0xf]  ;;  %v5205_v17 = vsel %vm444_vm0, %v15218_v46, %v5193_v1  ;;  %v14290_v38 = vpop.f32.mrf.mxu3 }
 0x7cd   : > { %7287 = vmatmul.bf16.vlgmr.msrb.gmra.mxu2 %v13287_v10  ;;  %v9914_v52 = vld [vmem:[#allocation2 + $0x134] sm:$0xf0]  ;;  %v5550_v53 = vpop.permute.xlu2 %5549  ;;  %v5206_v25 = vsel %vm15219_vm9, %v13869_v6, %v5205_v17  ;;  %9643 = vmatmul.msk.bf16.vlgmr.msrb.gmra.mxu1 %vm15221_vm12, %v13275_v55  ;;  %vm15233_vm9 = vcmask 154624  }
 0x7ce   : > { %7349 = vmatpush.bf16.msra.mxu2 %v9281_v63  ;;  %v9309_v63 = vor.u32 %v10005_v20, %v9306_v30  ;;  %v9216_v24 = vld [vmem:[#allocation2 + $0x358] sm:$0xf]  ;;  %v5565_v58 = vrot.slane %v5550_v53, 4  ;;  %5226 = vst.msk [vmem:[#allocation2 + $0x4d8] sm:$0xff] %vm10609_vm2, %v5206_v25  ;;  %v14299_v30 = vpop.f32.mrf.mxu0  ;;  %v14304_v46 = vpop.f32.mrf.mxu1  ;;  %vm15235_vm12 = vmmov %vm15233_vm9 }
 0x7cf   : > { %7336 = vmatpush.bf16.msra.mxu1 %v8993_v22  ;;  %7313 = vmatpush.bf16.msrb.mxu0 %v9341_v56  ;;  %v4783_v22 = vsel %vm444_vm0, %v15220_v49, %v4768_v16  ;;  %v8928_v35 = vld [vmem:[#allocation2 + $0x118] sm:$0xf]  ;;  %v9217_v15 = vor.u32 %v9986_v18, %v9216_v24 }
 0x7d0   : > { %v10042_v62 = vld [vmem:[#allocation2 + $0x534] sm:$0xf0]  ;;  %v4784_v40 = vsel %vm15222_vm15, %v13958_v48, %v4783_v22  ;;  %v8929_v6 = vor.u32 %v9914_v52, %v8928_v35  ;;  %v5577_v33 = vsel %vm444_vm0, %v5564_v0, %v5565_v58 }
 0x7d1   : > { %v9440_v60 = vld [vmem:[#allocation2 + $0x518] sm:$0xf]  ;;  %4800 = vst.msk [vmem:[#allocation2 + $0x2f8] sm:$0xff] %vm10609_vm2, %v4784_v40  ;;  %v5578_v48 = vsel %vm15223_vm1, %v14066_v42, %v5577_v33  ;;  %v4696_v1 = vpop.permute.xlu0 %4695 }
 0x7d2   : > { %7350 = vmatpush.bf16.msra.mxu2 %v9249_v27  ;;  %v9184_v56 = vld [vmem:[#allocation2 + $0x318] sm:$0xf]  ;;  %v9441_v45 = vor.u32 %v10042_v62, %v9440_v60  ;;  %5598 = vst.msk [vmem:[#allocation2 + $0x658] sm:$0xff] %vm10609_vm2, %v5578_v48  ;;  %v4706_v18 = vrot.slane %v4696_v1, 4 }
 0x7d3   : > { %7337 = vmatpush.bf16.msra.mxu1 %v8961_v29  ;;  %7314 = vmatpush.bf16.msrb.mxu0 %v9309_v63  ;;  %v9906_v12 = vld [vmem:[#allocation2 + $0xf4] sm:$0xf0]  ;;  %v4686_v16 = vpop.permute.xlu1 %4685 }
 0x7d4   : > { %v9978_v27 = vld [vmem:[#allocation2 + $0x334] sm:$0xf0]  ;;  %7366 = vmatpush.bf16.msra.mxu3 %v9441_v45  ;;  %v4701_v20 = vrot.slane %v4686_v16, 4  ;;  %v4721_v42 = vsel %vm444_vm0, %v4705_v14, %v4706_v18  ;;  %v14323_v60 = vpop.f32.mrf.mxu3 }
 0x7d5   : > { %v8896_v8 = vld [vmem:[#allocation2 + $0xd8] sm:$0xf]  ;;  %v9185_v29 = vor.u32 %v9978_v27, %v9184_v56  ;;  %v4722_v17 = vsel %vm15224_vm3, %v14030_v11, %v4721_v42  ;;  %v4572_v49 = vpop.permute.xlu2 %4571  ;;  %v9282_v42 = vld [vmem:[#allocation2 + $0x3f8] sm:$0xf0] }
 0x7d6   : > { %7351 = vmatpush.bf16.msra.mxu2 %v9217_v15  ;;  %7315 = vmatmul.bf16.vlgmr.msrb.gmra.mxu0 %v13396_v54  ;;  %v8897_v0 = vor.u32 %v9906_v12, %v8896_v8  ;;  %v9898_v52 = vld [vmem:[#allocation2 + $0xb4] sm:$0xf0]  ;;  %v4713_v63 = vsel %vm444_vm0, %v4700_v31, %v4701_v20  ;;  %4738 = vst.msk [vmem:[#allocation2 + $0x2b8] sm:$0xff] %vm10609_vm2, %v4722_v17  ;;  %v4582_v58 = vrot.slane %v4572_v49, 4  ;;  %v7064_v31 = vpop.f32.mrf.mxu2  ;;  %v14329_v27 = vpop.f32.mrf.mxu0 }
 0x7d7   : > { %7338 = vmatpush.bf16.msra.mxu1 %v8929_v6  ;;  %v8864_v24 = vld [vmem:[#allocation2 + $0x98] sm:$0xf]  ;;  %v4714_v22 = vsel %vm15225_vm4, %v14033_v7, %v4713_v63 }
 0x7d8   : > { %v9408_v53 = vld [vmem:[#allocation2 + $0x4d8] sm:$0xf]  ;;  %v8865_v35 = vor.u32 %v9898_v52, %v8864_v24  ;;  %4734 = vst.msk [vmem:[#allocation2 + $0x298] sm:$0xff] %vm10609_vm2, %v4714_v22  ;;  %v4597_v6 = vsel %vm444_vm0, %v4581_v19, %v4582_v58  ;;  %v9990_v22 = vld [vmem:[#allocation2 + $0x39c] sm:$0xf] }
 0x7d9   : > { %v10034_v25 = vld [vmem:[#allocation2 + $0x4f4] sm:$0xf0]  ;;  %v5612_v7 = vpop.permute.xlu0 %5611  ;;  %v4598_v56 = vsel %vm15226_vm14, %v14144_v9, %v4597_v6 }
 0x7da   : > { %7352 = vmatpush.bf16.msra.mxu2 %v9185_v29  ;;  %v9152_v14 = vld [vmem:[#allocation2 + $0x2d8] sm:$0xf]  ;;  %v9409_v62 = vor.u32 %v10034_v25, %v9408_v53  ;;  %v5627_v33 = vrot.slane %v5612_v7, 4  ;;  %4614 = vst.msk [vmem:[#allocation2 + $0x238] sm:$0xff] %vm10609_vm2, %v4598_v56  ;;  %v9998_v29 = vld [vmem:[#allocation2 + $0x3dc] sm:$0xf] }
 0x7db   : > { %7339 = vmatpush.bf16.msra.mxu1 %v8897_v0  ;;  %v9970_v15 = vld [vmem:[#allocation2 + $0x2f4] sm:$0xf0]  ;;  %v5126_v12 = vpop.permute.xlu1 %5125  ;;  %v14339_v0 = vpop.f32.mrf.mxu1  ;;  %v9982_v7 = vld [vmem:[#allocation2 + $0x35c] sm:$0xf] }
 0x7dc   : > { %v9153_v11 = vor.u32 %v9970_v15, %v9152_v14  ;;  %v8832_v40 = vld [vmem:[#allocation2 + $0x58] sm:$0xf]  ;;  %7367 = vmatpush.bf16.msra.mxu3 %v9409_v62  ;;  %v5136_v1 = vrot.slane %v5126_v12, 4  ;;  %v5639_v19 = vsel %vm444_vm0, %v5626_v39, %v5627_v33  ;;  %v9218_v62 = vld [vmem:[#allocation2 + $0x378] sm:$0xf0] }
 0x7dd   : > { %v9890_v45 = vld [vmem:[#allocation2 + $0x74] sm:$0xf0]  ;;  %v5640_v9 = vsel %vm15227_vm11, %v13995_v28, %v5639_v19  ;;  %v9285_v28 = vor.u32 %v9998_v29, %v9282_v42 }
 0x7de   : > { %7353 = vmatpush.bf16.msra.mxu2 %v9153_v11  ;;  %v8833_v48 = vor.u32 %v9890_v45, %v8832_v40  ;;  %v9882_v8 = vld [vmem:[#allocation2 + $0x34] sm:$0xf0]  ;;  %v5151_v18 = vsel %vm444_vm0, %v5135_v47, %v5136_v1  ;;  %5660 = vst.msk [vmem:[#allocation2 + $0x698] sm:$0xff] %vm10609_vm2, %v5640_v9  ;;  %v9250_v47 = vld [vmem:[#allocation2 + $0x3b8] sm:$0xf0]  ;;  %v14347_v53 = vpop.f32.mrf.mxu2  ;;  %v14357_v11 = vpop.f32.mrf.mxu0 }
 0x7df   : > { %7340 = vmatpush.bf16.msra.mxu1 %v8865_v35  ;;  %v8800_v16 = vld [vmem:[#allocation2 + $0x18] sm:$0xf]  ;;  %v5152_v52 = vsel %vm15228_vm5, %v14069_v13, %v5151_v18  ;;  %v14349_v35 = vpop.f32.mrf.mxu3  ;;  %v9253_v14 = vor.u32 %v9990_v22, %v9250_v47  ;;  %v14355_v58 = vpop.permute.xlu2 %5889  ;;  %vm15246_vm5 = vcmask 7168  }
 0x7e0   : > { %v9962_v20 = vld [vmem:[#allocation2 + $0x2b4] sm:$0xf0]  ;;  %v8801_v39 = vor.u32 %v9882_v8, %v8800_v16  ;;  %5168 = vst.msk [vmem:[#allocation2 + $0x4b8] sm:$0xff] %vm10609_vm2, %v5152_v52  ;;  %v7009_v33 = vadd.f32 %v14249_v44, %v14355_v58  ;;  %v9221_v8 = vor.u32 %v9982_v7, %v9218_v62  ;;  %v9186_v52 = vld [vmem:[#allocation2 + $0x338] sm:$0xf0] }
 0x7e1   : > { %v9120_v17 = vld [vmem:[#allocation2 + $0x298] sm:$0xf]  ;;  %v4634_v24 = vpop.permute.xlu0 %4633 }
 0x7e2   : > { %v9121_v63 = vor.u32 %v9962_v20, %v9120_v17  ;;  %v4644_v25 = vrot.slane %v4634_v24, 4  ;;  %v10090_v45 = vld [vmem:[#allocation2 + $0x6b4] sm:$0xf0]  ;;  %v7023_v29 = vadd.f32 %v14262_v43, %v7009_v33 }
 0x7e3   : > { %7341 = vmatpush.bf16.msra.mxu1 %v8833_v48  ;;  %v4624_v49 = vpop.permute.xlu1 %4623  ;;  %v10018_v9 = vld [vmem:[#allocation2 + $0x474] sm:$0xf0] }
 0x7e4   : > { %7354 = vmatpush.bf16.msra.mxu2 %v9121_v63  ;;  %v4639_v13 = vrot.slane %v4624_v49, 4  ;;  %v4659_v15 = vsel %vm444_vm0, %v4643_v26, %v4644_v25  ;;  %v7065_v26 = vadd.f32 %v7064_v31, %v14355_v58  ;;  %v9974_v31 = vld [vmem:[#allocation2 + $0x31c] sm:$0xf]  ;;  %v7037_v47 = vadd.f32 %v14238_v34, %v7023_v29  ;;  %v10010_v62 = vld [vmem:[#allocation2 + $0x434] sm:$0xf0] }
 0x7e5   : > { %v4660_v40 = vsel %vm15229_vm13, %v14094_v32, %v4659_v15  ;;  %v9632_v56 = vld [vmem:[#allocation2 + $0x698] sm:$0xf]  ;;  %vm15247_vm13 = vmmov %vm15246_vm5 }
 0x7e6   : > { %v4651_v6 = vsel %vm444_vm0, %v4638_v59, %v4639_v13  ;;  %4676 = vst.msk [vmem:[#allocation2 + $0x278] sm:$0xff] %vm10609_vm2, %v4660_v40  ;;  %v9376_v32 = vld [vmem:[#allocation2 + $0x498] sm:$0xf]  ;;  %v9633_v1 = vor.u32 %v10090_v45, %v9632_v56  ;;  %v7120_v59 = vpop.f32.mrf.mxu1  ;;  %v7079_v44 = vadd.f32 %v14323_v60, %v7065_v26  ;;  %v7134_v17 = vpop.f32.mrf.mxu2  ;;  %v9154_v60 = vld [vmem:[#allocation2 + $0x2f8] sm:$0xf0]  ;;  %v14391_v40 = vadd.f32 %v14244_v2, %v7037_v47 }
 0x7e7   : > { %7342 = vmatpush.bf16.msra.mxu1 %v8801_v39  ;;  %v4652_v12 = vsel %vm15230_vm6, %v14097_v21, %v4651_v6  ;;  %v10026_v48 = vld [vmem:[#allocation2 + $0x4b4] sm:$0xf0]  ;;  %v7121_v18 = vadd.f32 %v7120_v59, %v14355_v58  ;;  %v7148_v49 = vpop.f32.mrf.mxu3  ;;  %v7162_v6 = vpop.f32.mrf.mxu0  ;;  %v9634_v26 = vld [vmem:[#allocation2 + $0x6b8] sm:$0xf0] }
 0x7e8   : > { %4672 = vst.msk [vmem:[#allocation2 + $0x258] sm:$0xff] %vm10609_vm2, %v4652_v12  ;;  %v9377_v19 = vor.u32 %v10026_v48, %v9376_v32  ;;  %7382 = vmatpush.bf16.msra.mxu0 %v9633_v1  ;;  %v9344_v39 = vld [vmem:[#allocation2 + $0x458] sm:$0xf]  ;;  %v7093_v24 = vadd.f32 %v14329_v27, %v7079_v44  ;;  %v10086_v27 = vld [vmem:[#allocation2 + $0x69c] sm:$0xf] }
 0x7e9   : > { %v4562_v21 = vpop.permute.xlu0 %4561  ;;  %v9345_v63 = vor.u32 %v10018_v9, %v9344_v39  ;;  %v7135_v25 = vadd.f32 %v7134_v17, %v7121_v18  ;;  %v9312_v45 = vld [vmem:[#allocation2 + $0x418] sm:$0xf]  ;;  %v9958_v12 = vld [vmem:[#allocation2 + $0x29c] sm:$0xf]  ;;  %v9637_v48 = vor.u32 %v10086_v27, %v9634_v26 }
 0x7ea   : > { %7343 = vmatmul.bf16.vlgmr.msra.gmra.mxu1 %v13287_v10  ;;  %7368 = vmatpush.bf16.msra.mxu3 %v9377_v19  ;;  %v4577_v16 = vrot.slane %v4562_v21, 4  ;;  %v9313_v33 = vor.u32 %v10010_v62, %v9312_v45  ;;  %v10062_v19 = vld [vmem:[#allocation2 + $0x5dc] sm:$0xf]  ;;  %v9600_v9 = vld [vmem:[#allocation2 + $0x658] sm:$0xf]  ;;  %v15234_v21 = vrot.slane %v14119_v5, 4 }
 0x7eb   : > { %7405 = vmatpush.bf16.msrb.mxu1 %v9285_v28  ;;  %v5560_v20 = vpop.permute.xlu1 %5559  ;;  %v9189_v28 = vor.u32 %v9974_v31, %v9186_v52  ;;  %v9946_v52 = vld [vmem:[#allocation2 + $0x234] sm:$0xf0]  ;;  %v10078_v39 = vld [vmem:[#allocation2 + $0x65c] sm:$0xf] }
 0x7ec   : > { %v5570_v42 = vrot.slane %v5560_v20, 4  ;;  %v4589_v43 = vsel %vm444_vm0, %v4576_v3, %v4577_v16 }
 0x7ed   : > { %v4590_v22 = vsel %vm15231_vm7, %v14149_v36, %v4589_v43  ;;  %v9954_v15 = vld [vmem:[#allocation2 + $0x274] sm:$0xf0]  ;;  %v14394_v36 = vadd.f32 %v14304_v46, %v7093_v24  ;;  %v9090_v31 = vld [vmem:[#allocation2 + $0x278] sm:$0xf0] }
 0x7ee   : > { %v5585_v13 = vsel %vm444_vm0, %v5569_v23, %v5570_v42  ;;  %7369 = vmatpush.bf16.msra.mxu3 %v9345_v63  ;;  %4610 = vst.msk [vmem:[#allocation2 + $0x218] sm:$0xff] %vm10609_vm2, %v4590_v22  ;;  %v7149_v23 = vadd.f32 %v7148_v49, %v7135_v25  ;;  %v10054_v25 = vld [vmem:[#allocation2 + $0x59c] sm:$0xf]  ;;  %v7122_v22 = vpop.f32.mrf.mxu1  ;;  %v7136_v62 = vpop.f32.mrf.mxu2 }
 0x7ef   : > { %7406 = vmatpush.bf16.msrb.mxu1 %v9253_v14  ;;  %v9966_v14 = vld [vmem:[#allocation2 + $0x2dc] sm:$0xf]  ;;  %v5586_v3 = vsel %vm15232_vm8, %v13976_v61, %v5585_v13  ;;  %v9088_v34 = vld [vmem:[#allocation2 + $0x258] sm:$0xf]  ;;  %v7150_v26 = vpop.f32.mrf.mxu3 }
 0x7f0   : > { %5602 = vst.msk [vmem:[#allocation2 + $0x678] sm:$0xff] %vm10609_vm2, %v5586_v3  ;;  %v9157_v7 = vor.u32 %v9966_v14, %v9154_v60  ;;  %v9089_v56 = vor.u32 %v9954_v15, %v9088_v34  ;;  %v9122_v61 = vld [vmem:[#allocation2 + $0x2b8] sm:$0xf0]  ;;  %v14398_v32 = vadd.f32 %v7162_v6, %v7149_v23 }
 0x7f1   : > { %v5498_v2 = vpop.permute.xlu0 %5497  ;;  %v9950_v44 = vld [vmem:[#allocation2 + $0x25c] sm:$0xf] }
 0x7f2   : > { %7355 = vmatpush.bf16.msra.mxu2 %v9089_v56  ;;  %7370 = vmatpush.bf16.msra.mxu3 %v9313_v33  ;;  %v5508_v46 = vrot.slane %v5498_v2, 4  ;;  %v9538_v60 = vld [vmem:[#allocation2 + $0x5f8] sm:$0xf0] }
 0x7f3   : > { %7407 = vmatpush.bf16.msrb.mxu1 %v9221_v8  ;;  %v5488_v1 = vpop.permute.xlu1 %5487  ;;  %v9125_v8 = vor.u32 %v9958_v12, %v9122_v61  ;;  %v9541_v47 = vor.u32 %v10062_v19, %v9538_v60  ;;  %v9506_v49 = vld [vmem:[#allocation2 + $0x5b8] sm:$0xf0] }
 0x7f4   : > { %v5503_v59 = vrot.slane %v5488_v1, 4  ;;  %v5523_v29 = vsel %vm444_vm0, %v5507_v51, %v5508_v46  ;;  %v9058_v13 = vld [vmem:[#allocation2 + $0x238] sm:$0xf0]  ;;  %v9509_v3 = vor.u32 %v10054_v25, %v9506_v49 }
 0x7f5   : > { %v5524_v18 = vsel %vm15233_vm9, %v14041_v57, %v5523_v29  ;;  %v9056_v20 = vld [vmem:[#allocation2 + $0x218] sm:$0xf]  ;;  %7371 = vmatmul.bf16.vlgmr.msra.gmra.mxu3 %v13396_v54  ;;  %v9093_v57 = vor.u32 %v9950_v44, %v9090_v31  ;;  %v9942_v24 = vld [vmem:[#allocation2 + $0x21c] sm:$0xf]  ;;  %v7164_v29 = vpop.f32.mrf.mxu0 }
 0x7f6   : > { %7438 = vmatpush.bf16.msrb.mxu3 %v9637_v48  ;;  %v5515_v16 = vsel %vm444_vm0, %v15234_v21, %v5503_v59  ;;  %5540 = vst.msk [vmem:[#allocation2 + $0x638] sm:$0xff] %vm10609_vm2, %v5524_v18  ;;  %v9057_v42 = vor.u32 %v9946_v52, %v9056_v20  ;;  %v9061_v15 = vor.u32 %v9942_v24, %v9058_v13  ;;  %v9026_v34 = vld [vmem:[#allocation2 + $0x1f8] sm:$0xf0]  ;;  %vm15236_vm0 = vcmask 392192  }
 0x7f7   : > { %7408 = vmatpush.bf16.msrb.mxu1 %v9189_v28  ;;  %v5516_v51 = vsel %vm15235_vm12, %v14119_v5, %v5515_v16  ;;  %v10082_v17 = vld [vmem:[#allocation2 + $0x674] sm:$0xf0]  ;;  %v9602_v28 = vld [vmem:[#allocation2 + $0x678] sm:$0xf0] }
 0x7f8   : > { %5536 = vst.msk [vmem:[#allocation2 + $0x618] sm:$0xff] %vm10609_vm2, %v5516_v51  ;;  %v9601_v63 = vor.u32 %v10082_v17, %v9600_v9  ;;  %v9605_v43 = vor.u32 %v10078_v39, %v9602_v28  ;;  %7356 = vmatpush.bf16.msra.mxu2 %v9057_v42  ;;  %v9934_v61 = vld [vmem:[#allocation2 + $0x1dc] sm:$0xf]  ;;  %vm15237_vm2 = vmmov %vm15236_vm0 }
 0x7f9   : > { %v10046_v2 = vld [vmem:[#allocation2 + $0x55c] sm:$0xf]  ;;  %v9029_v48 = vor.u32 %v9934_v61, %v9026_v34 }
 0x7fa   : > { %7383 = vmatpush.bf16.msra.mxu0 %v9601_v63  ;;  %7439 = vmatpush.bf16.msrb.mxu3 %v9605_v43  ;;  %v8994_v59 = vld [vmem:[#allocation2 + $0x1b8] sm:$0xf0] }
 0x7fb   : > { %7409 = vmatpush.bf16.msrb.mxu1 %v9157_v7  ;;  %v14415_v5 = vpop.permute.xlu1 %5894  ;;  %7357 = vmatmul.bf16.vlgmr.msra.gmra.mxu2 %v13558_v50  ;;  %v9474_v7 = vld [vmem:[#allocation2 + $0x578] sm:$0xf0] }
 0x7fc   : > { %7419 = vmatpush.bf16.msrb.mxu2 %v9541_v47  ;;  %v7067_v37 = vadd.f32 %v14347_v53, %v14415_v5  ;;  %v7123_v14 = vadd.f32 %v7122_v22, %v14415_v5  ;;  %v9477_v46 = vor.u32 %v10046_v2, %v9474_v7  ;;  %v9442_v19 = vld [vmem:[#allocation2 + $0x538] sm:$0xf0] }
 0x7fd   : > { %v10074_v23 = vld [vmem:[#allocation2 + $0x634] sm:$0xf0]  ;;  %v9570_v6 = vld [vmem:[#allocation2 + $0x638] sm:$0xf0]  ;;  %v7176_v7 = vpop.f32.mrf.mxu0 }
 0x7fe   : > { %v7081_v27 = vadd.f32 %v14349_v35, %v7067_v37  ;;  %v7137_v56 = vadd.f32 %v7136_v62, %v7123_v14  ;;  %v9926_v31 = vld [vmem:[#allocation2 + $0x19c] sm:$0xf] }
 0x7ff   : > { %7410 = vmatpush.bf16.msrb.mxu1 %v9125_v8  ;;  %v9568_v45 = vld [vmem:[#allocation2 + $0x618] sm:$0xf]  ;;  %v10070_v33 = vld [vmem:[#allocation2 + $0x61c] sm:$0xf] }
 0x800   : > { %7420 = vmatpush.bf16.msrb.mxu2 %v9509_v3  ;;  %v9569_v53 = vor.u32 %v10074_v23, %v9568_v45  ;;  %v9573_v12 = vor.u32 %v10070_v33, %v9570_v6  ;;  %v7095_v1 = vadd.f32 %v14357_v11, %v7081_v27  ;;  %v7151_v35 = vadd.f32 %v7150_v26, %v7137_v56  ;;  %v10038_v8 = vld [vmem:[#allocation2 + $0x51c] sm:$0xf]  ;;  %v7190_v6 = vpop.f32.mrf.mxu1  ;;  %v7204_v56 = vpop.f32.mrf.mxu2 }
 0x801   : > { %v9445_v11 = vor.u32 %v10038_v8, %v9442_v19  ;;  %v8962_v18 = vld [vmem:[#allocation2 + $0x178] sm:$0xf0]  ;;  %v7218_v45 = vpop.f32.mrf.mxu3 }
 0x802   : > { %7384 = vmatpush.bf16.msra.mxu0 %v9569_v53  ;;  %7440 = vmatpush.bf16.msrb.mxu3 %v9573_v12  ;;  %v14425_v44 = vadd.f32 %v14339_v0, %v7095_v1  ;;  %v14427_v9 = vadd.f32 %v7164_v29, %v7151_v35  ;;  %v10030_v21 = vld [vmem:[#allocation2 + $0x4dc] sm:$0xf] }
 0x803   : > { %7411 = vmatpush.bf16.msrb.mxu1 %v9093_v57  ;;  %v9918_v16 = vld [vmem:[#allocation2 + $0x15c] sm:$0xf] }
 0x804   : > { %7421 = vmatpush.bf16.msrb.mxu2 %v9477_v46  ;;  %v9410_v20 = vld [vmem:[#allocation2 + $0x4f8] sm:$0xf0]  ;;  %v8965_v52 = vor.u32 %v9918_v16, %v8962_v18  ;;  %v7177_v16 = vadd.f32 %v7176_v7, %v14355_v58 }
 0x805   : > { %9644 = vmatmul.msk.bf16.vlgmr.msra.gmra.mxu0 %vm15236_vm0, %v13275_v55  ;;  %9645 = vmatmul.msk.bf16.vlgmr.msrb.gmra.mxu3 %vm15237_vm2, %v13275_v55  ;;  %v9413_v0 = vor.u32 %v10030_v21, %v9410_v20  ;;  %v8930_v39 = vld [vmem:[#allocation2 + $0x138] sm:$0xf0]  ;;  %v7178_v26 = vpop.f32.mrf.mxu0  ;;  %v7011_v21 = vadd.f32 %v14290_v38, %v14415_v5 }
 0x806   : > { %7391 = vmatpush.bf16.msrb.mxu0 %v9029_v48  ;;  %v9378_v51 = vld [vmem:[#allocation2 + $0x4b8] sm:$0xf0] }
 0x807   : > { %7412 = vmatpush.bf16.msrb.mxu1 %v9061_v15  ;;  %v9910_v42 = vld [vmem:[#allocation2 + $0x11c] sm:$0xf] }
 0x808   : > { %7422 = vmatpush.bf16.msrb.mxu2 %v9445_v11  ;;  %v10022_v17 = vld [vmem:[#allocation2 + $0x49c] sm:$0xf]  ;;  %v8933_v28 = vor.u32 %v9910_v42, %v8930_v39  ;;  %v7192_v33 = vpop.f32.mrf.mxu1  ;;  %v7206_v53 = vpop.f32.mrf.mxu2  ;;  %v7191_v42 = vadd.f32 %v7190_v6, %v7177_v16 }
 0x809   : > { %v9381_v57 = vor.u32 %v10022_v17, %v9378_v51  ;;  %v8898_v63 = vld [vmem:[#allocation2 + $0xf8] sm:$0xf0]  ;;  %v14435_v12 = vpop.f32.mrf.mxu3  ;;  %v7025_v51 = vadd.f32 %v14299_v30, %v7011_v21 }
 0x80a   : > { %7413 = vmatmul.bf16.vlgmr.msrb.gmra.mxu1 %v13558_v50  ;;  %v8997_v50 = vor.u32 %v9926_v31, %v8994_v59  ;;  %v9346_v43 = vld [vmem:[#allocation2 + $0x478] sm:$0xf0] }
 0x80b   : > { %v9902_v60 = vld [vmem:[#allocation2 + $0xdc] sm:$0xf]  ;;  %v7039_v30 = vadd.f32 %v14272_v4, %v7025_v51 }
 0x80c   : > { %7392 = vmatpush.bf16.msrb.mxu0 %v8997_v50  ;;  %7423 = vmatpush.bf16.msrb.mxu2 %v9413_v0  ;;  %v10014_v55 = vld [vmem:[#allocation2 + $0x45c] sm:$0xf]  ;;  %v8901_v47 = vor.u32 %v9902_v60, %v8898_v63  ;;  %v15238_v63 = vld [vmem:[#allocation21_spill] sm:$0xff]  ;;  %v15239_v60 = vld [vmem:[#allocation22_spill] sm:$0xff] }
 0x80d   : > { %v9349_v24 = vor.u32 %v10014_v55, %v9346_v43  ;;  %v8866_v25 = vld [vmem:[#allocation2 + $0xb8] sm:$0xf0]  ;;  %v14451_v43 = vmul.f32 %v14391_v40, %v15238_v63  ;;  %v14455_v38 = vmul.f32 %v14394_v36, %v15239_v60 }
 0x80e   : > { %v9314_v49 = vld [vmem:[#allocation2 + $0x438] sm:$0xf0] }
 0x80f   : > { %v9894_v22 = vld [vmem:[#allocation2 + $0x9c] sm:$0xf]  ;;  %v7483_v40 = vmul.f32 %v14451_v43, %v14451_v43  ;;  %v7484_v36 = vmul.f32 %v14455_v38, %v14455_v38 }
 0x810   : > { %7393 = vmatpush.bf16.msrb.mxu0 %v8965_v52  ;;  %7424 = vmatpush.bf16.msrb.mxu2 %v9381_v57  ;;  %v10006_v13 = vld [vmem:[#allocation2 + $0x41c] sm:$0xf]  ;;  %v8869_v37 = vor.u32 %v9894_v22, %v8866_v25  ;;  %v15240_v22 = vld [vmem:[#allocation23_spill] sm:$0xff] }
 0x811   : > { %v9317_v14 = vor.u32 %v10006_v13, %v9314_v49  ;;  %v9886_v15 = vld [vmem:[#allocation2 + $0x5c] sm:$0xf]  ;;  %v14462_v13 = vmul.f32 %v14398_v32, %v15240_v22  ;;  %v7463_v32 = vadd.f32 %v14455_v38, %v14451_v43 }
 0x812   : > { %v8834_v62 = vld [vmem:[#allocation2 + $0x78] sm:$0xf0] }
 0x813   : > { %v8837_v3 = vor.u32 %v9886_v15, %v8834_v62  ;;  %v8802_v34 = vld [vmem:[#allocation2 + $0x38] sm:$0xf0] }
 0x814   : > { %7394 = vmatpush.bf16.msrb.mxu0 %v8933_v28  ;;  %7425 = vmatpush.bf16.msrb.mxu2 %v9349_v24  ;;  %v9878_v27 = vld [vmem:[#allocation2 + $0x1c] sm:$0xf]  ;;  %v7205_v24 = vadd.f32 %v7204_v56, %v7191_v42  ;;  %v7485_v56 = vmul.f32 %v14462_v13, %v14462_v13 }
 0x815   : > { %v8805_v23 = vor.u32 %v9878_v27, %v8802_v34  ;;  %v7053_v34 = vadd.f32 %v14282_v41, %v7039_v30 }
 0x817   : > { %v14479_v41 = vmul.f32 %v7053_v34, %v15238_v63 }
 0x818   : > { %7395 = vmatpush.bf16.msrb.mxu0 %v8901_v47  ;;  %7426 = vmatpush.bf16.msrb.mxu2 %v9317_v14  ;;  %v7179_v47 = vadd.f32 %v7178_v26, %v14415_v5  ;;  %v7499_v26 = vadd.f32 %v7484_v36, %v7483_v40 }
 0x81a   : > { %v7193_v62 = vadd.f32 %v7192_v33, %v7179_v47 }
 0x81b   : > { %7427 = vmatmul.bf16.vlgmr.msrb.gmra.mxu2 %v13396_v54  ;;  %v7232_v54 = vpop.f32.mrf.mxu3 }
 0x81c   : > { %7396 = vmatpush.bf16.msrb.mxu0 %v8869_v37  ;;  %v7233_v0 = vadd.f32 %v7232_v54, %v14355_v58  ;;  %v7207_v33 = vadd.f32 %v7206_v53, %v7193_v62  ;;  %v7464_v53 = vadd.f32 %v7463_v32, %v14462_v13 }
 0x81e   : > { %v7221_v42 = vadd.f32 %v14435_v12, %v7207_v33 }
 0x820   : > { %7397 = vmatpush.bf16.msrb.mxu0 %v8837_v3  ;;  %v7219_v3 = vadd.f32 %v7218_v45, %v7205_v24  ;;  %v15241_v45 = vld [vmem:[#allocation24_spill] sm:$0xff] }
 0x821   : > { %v14516_v36 = vmul.f32 %v7221_v42, %v15241_v45 }
 0x822   : > { %v14476_v54 = vmul.f32 %v7219_v3, %v15241_v45 }
 0x823   : > { %v7234_v59 = vpop.f32.mrf.mxu3 }
 0x824   : > { %7398 = vmatpush.bf16.msrb.mxu0 %v8805_v23  ;;  %v7235_v7 = vadd.f32 %v7234_v59, %v14415_v5  ;;  %v7465_v24 = vadd.f32 %v7464_v53, %v14476_v54 }
 0x827   : > { %7399 = vmatmul.bf16.vlgmr.msrb.gmra.mxu0 %v13287_v10 }
 0x82e   : > { %v7274_v48 = vpop.f32.mrf.mxu2 }
 0x832   : > { %v7246_v2 = vpop.f32.mrf.mxu0 }
 0x833   : > { %v7247_v57 = vadd.f32 %v7246_v2, %v7233_v0 }
 0x836   : > { %v14437_v35 = vpop.f32.mrf.mxu2 }
 0x838   : > { %v7302_v29 = vpop.f32.mrf.mxu3 }
 0x83a   : > { %v7260_v61 = vpop.f32.mrf.mxu1  ;;  %v7248_v1 = vpop.f32.mrf.mxu0 }
 0x83b   : > { %v7261_v49 = vadd.f32 %v7260_v61, %v7247_v57 }
 0x83d   : > { %v7275_v6 = vadd.f32 %v7274_v48, %v7261_v49  ;;  %v14483_v48 = vmul.f32 %v14425_v44, %v15239_v60  ;;  %v7486_v44 = vmul.f32 %v14476_v54, %v14476_v54 }
 0x840   : > { %v7304_v18 = vpop.f32.mrf.mxu3 }
 0x842   : > { %v7262_v46 = vpop.f32.mrf.mxu1 }
 0x84a   : > { %v7330_v8 = vpop.f32.mrf.mxu1 }
 0x850   : > { %v7288_v19 = vpop.f32.mrf.mxu2 }
 0x851   : > { %v7289_v17 = vadd.f32 %v7288_v19, %v14355_v58 }
 0x852   : > { %v14439_v31 = vpop.f32.mrf.mxu1 }
 0x853   : > { %v7316_v10 = vpop.f32.mrf.mxu0  ;;  %v7303_v25 = vadd.f32 %v7302_v29, %v7289_v17  ;;  %v7492_v17 = vmul.f32 %v14483_v48, %v14483_v48 }
 0x855   : > { %v7317_v4 = vadd.f32 %v7316_v10, %v7303_v25  ;;  %v7249_v10 = vadd.f32 %v7248_v1, %v7235_v7  ;;  %v7500_v1 = vadd.f32 %v7499_v26, %v7485_v56  ;;  %v15244_v25 = vld [vmem:[#allocation27_spill] sm:$0xff] }
 0x857   : > { %v7331_v19 = vadd.f32 %v7330_v8, %v7317_v4  ;;  %v7263_v16 = vadd.f32 %v7262_v46, %v7249_v10 }
 0x858   : > { %v7290_v11 = vpop.f32.mrf.mxu2 }
 0x859   : > { %v7291_v27 = vadd.f32 %v7290_v11, %v14415_v5  ;;  %v15242_v11 = vld [vmem:[#allocation25_spill] sm:$0xff]  ;;  %v7277_v30 = vadd.f32 %v14437_v35, %v7263_v16 }
 0x85a   : > { %v14487_v21 = vmul.f32 %v7275_v6, %v15242_v11 }
 0x85b   : > { %v14441_v50 = vpop.f32.mrf.mxu0  ;;  %v7305_v59 = vadd.f32 %v7304_v18, %v7291_v27  ;;  %v7491_v18 = vmul.f32 %v14479_v41, %v14479_v41  ;;  %v14526_v6 = vmul.f32 %v7277_v30, %v15242_v11 }
 0x85c   : > { %v7487_v12 = vmul.f32 %v14487_v21, %v14487_v21 }
 0x85d   : > { %v7509_v62 = vadd.f32 %v7492_v17, %v7491_v18 }
 0x867   : > { %v7344_v20 = vpop.f32.mrf.mxu1 }
 0x868   : > { %v7345_v55 = vadd.f32 %v7344_v20, %v14355_v58 }
 0x86f   : > { %v7346_v37 = vpop.f32.mrf.mxu1 }
 0x870   : > { %v7347_v29 = vadd.f32 %v7346_v37, %v14415_v5  ;;  %v7501_v37 = vadd.f32 %v7500_v1, %v7486_v44 }
 0x872   : > { %v7502_v4 = vadd.f32 %v7501_v37, %v7487_v12 }
 0x878   : > { %v7372_v28 = vpop.f32.mrf.mxu3 }
 0x87e   : > { %v7358_v39 = vpop.f32.mrf.mxu2 }
 0x87f   : > { %v7359_v14 = vadd.f32 %v7358_v39, %v7345_v55  ;;  %v14506_v55 = vmul.f32 %v14427_v9, %v15240_v22  ;;  %v7466_v9 = vadd.f32 %v7465_v24, %v14487_v21 }
 0x880   : > { %v7374_v2 = vpop.f32.mrf.mxu3 }
 0x881   : > { %v7373_v61 = vadd.f32 %v7372_v28, %v7359_v14  ;;  %v15243_v28 = vld [vmem:[#allocation26_spill] sm:$0xff]  ;;  %v7493_v27 = vmul.f32 %v14506_v55, %v14506_v55 }
 0x882   : > { %v7386_v52 = vpop.f32.mrf.mxu0  ;;  %v14499_v46 = vmul.f32 %v7331_v19, %v15243_v28 }
 0x883   : > { %v7387_v20 = vadd.f32 %v7386_v52, %v7373_v61  ;;  %v7319_v52 = vadd.f32 %v14441_v50, %v7305_v59  ;;  %v15245_v61 = vld [vmem:[#allocation28_spill] sm:$0xff]  ;;  %v7510_v10 = vadd.f32 %v7509_v62, %v7493_v27 }
 0x884   : > { %v7488_v3 = vmul.f32 %v14499_v46, %v14499_v46  ;;  %v7467_v26 = vadd.f32 %v7466_v9, %v14499_v46 }
 0x885   : > { %v14513_v49 = vmul.f32 %v7387_v20, %v15244_v25  ;;  %v7333_v34 = vadd.f32 %v14439_v31, %v7319_v52  ;;  %v7494_v31 = vmul.f32 %v14516_v36, %v14516_v36 }
 0x886   : > { %v7360_v23 = vpop.f32.mrf.mxu2  ;;  %v7503_v53 = vadd.f32 %v7502_v4, %v7488_v3 }
 0x887   : > { %v7361_v0 = vadd.f32 %v7360_v23, %v7347_v29  ;;  %v7414_v39 = vpop.f32.mrf.mxu1  ;;  %v7489_v32 = vmul.f32 %v14513_v49, %v14513_v49  ;;  %v14538_v19 = vmul.f32 %v7333_v34, %v15243_v28  ;;  %v7468_v29 = vadd.f32 %v7467_v26, %v14513_v49 }
 0x888   : > { %v7442_v40 = vpop.f32.mrf.mxu3  ;;  %v7511_v17 = vadd.f32 %v7510_v10, %v7494_v31 }
 0x889   : > { %v7375_v50 = vadd.f32 %v7374_v2, %v7361_v0  ;;  %v7504_v44 = vadd.f32 %v7503_v53, %v7489_v32  ;;  %v7496_v52 = vmul.f32 %v14538_v19, %v14538_v19 }
 0x88a   : > { %v7388_v15 = vpop.f32.mrf.mxu0 }
 0x88b   : > { %v7389_v7 = vadd.f32 %v7388_v15, %v7375_v50 }
 0x88f   : > { %v7416_v59 = vpop.f32.mrf.mxu1 }
 0x89e   : > { %v7428_v57 = vpop.f32.mrf.mxu2 }
 0x8a4   : > { %v7400_v51 = vpop.f32.mrf.mxu0 }
 0x8a5   : > { %v7401_v8 = vadd.f32 %v7400_v51, %v14355_v58  ;;  %v7473_v58 = vadd.f32 %v14483_v48, %v14479_v41 }
 0x8a6   : > { %v7430_v51 = vpop.f32.mrf.mxu2 }
 0x8a7   : > { %v7415_v47 = vadd.f32 %v7414_v39, %v7401_v8  ;;  %v7474_v35 = vadd.f32 %v7473_v58, %v14506_v55  ;;  %v14549_v39 = vmul.f32 %v7389_v7, %v15244_v25 }
 0x8a9   : > { %v7429_v14 = vadd.f32 %v7428_v57, %v7415_v47  ;;  %v7475_v15 = vadd.f32 %v7474_v35, %v14516_v36  ;;  %v7444_v57 = vpop.f32.mrf.mxu3  ;;  %v7497_v24 = vmul.f32 %v14549_v39, %v14549_v39 }
 0x8ab   : > { %v7443_v23 = vadd.f32 %v7442_v40, %v7429_v14  ;;  %v7476_v18 = vadd.f32 %v7475_v15, %v14526_v6 }
 0x8ac   : > { %v7402_v56 = vpop.f32.mrf.mxu0 }
 0x8ad   : > { %v14534_v2 = vmul.f32 %v7443_v23, %v15245_v61  ;;  %v7403_v33 = vadd.f32 %v7402_v56, %v14415_v5  ;;  %v7495_v5 = vmul.f32 %v14526_v6, %v14526_v6  ;;  %v7477_v30 = vadd.f32 %v7476_v18, %v14538_v19 }
 0x8af   : > { %v7417_v16 = vadd.f32 %v7416_v59, %v7403_v33  ;;  %v7469_v20 = vsel %vm3860_vm10, %v14534_v2, 0.0  ;;  %v7490_v0 = vmul.f32 %v14534_v2, %v14534_v2  ;;  %v7512_v47 = vadd.f32 %v7511_v17, %v7495_v5 }
 0x8b0   : > { %v7470_v42 = vadd.f32 %v7469_v20, %v7468_v29  ;;  %v7478_v40 = vadd.f32 %v7477_v30, %v14549_v39 }
 0x8b1   : > { %v7431_v1 = vadd.f32 %v7430_v51, %v7417_v16  ;;  %v7505_v8 = vsel %vm3860_vm10, %v7490_v0, 0.0  ;;  %v7513_v37 = vadd.f32 %v7512_v47, %v7496_v52 }
 0x8b2   : > { %7471 = vadd.xlane.f32.xlu0 %v7470_v42  ;;  %v7506_v12 = vadd.f32 %v7505_v8, %v7504_v44 }
 0x8b3   : > { %v7445_v58 = vadd.f32 %v7444_v57, %v7431_v1  ;;  %v7514_v3 = vadd.f32 %v7513_v37, %v7497_v24 }
 0x8b4   : > { %7507 = vadd.xlane.f32.xlu1 %v7506_v12 }
 0x8b5   : > { %v14559_v50 = vmul.f32 %v7445_v58, %v15245_v61 }
 0x8b7   : > { %v7479_v14 = vsel %vm3860_vm10, %v14559_v50, 0.0  ;;  %v7498_v9 = vmul.f32 %v14559_v50, %v14559_v50 }
 0x8b8   : > { %v7480_v62 = vadd.f32 %v7479_v14, %v7478_v40 }
 0x8b9   : > { %v7515_v34 = vsel %vm3860_vm10, %v7498_v9, 0.0 }
 0x8ba   : > { %7481 = vadd.xlane.f32.xlu2 %v7480_v62  ;;  %v7516_v4 = vadd.f32 %v7515_v34, %v7514_v3 }
 0x8bc   : > { %7517 = vadd.xlane.f32.xlu0 %v7516_v4 }
 0x925   : > { %v7472_v35 = vpop.xlane.xlu0 %7471 }
 0x926   : > { %v7519_v27 = vmul.f32 0.001953125, %v7472_v35 }
 0x927   : > { %v7508_v23 = vpop.xlane.xlu1 %7507 }
 0x928   : > { %v7521_v32 = vmul.f32 0.001953125, %v7508_v23  ;;  %v7523_v7 = vmul.f32 %v7519_v27, %v7519_v27  ;;  %v7527_v8 = vsub.f32 %v14451_v43, %v7519_v27  ;;  %v7528_v18 = vsub.f32 %v14455_v38, %v7519_v27 }
 0x929   : > { %v7529_v17 = vsub.f32 %v14462_v13, %v7519_v27  ;;  %v7530_v52 = vsub.f32 %v14476_v54, %v7519_v27  ;;  %v7531_v58 = vsub.f32 %v14487_v21, %v7519_v27  ;;  %v7532_v14 = vsub.f32 %v14499_v46, %v7519_v27 }
 0x92a   : > { %v7525_v56 = vsub.f32 %v7521_v32, %v7523_v7  ;;  %v7533_v9 = vsub.f32 %v14513_v49, %v7519_v27  ;;  %v7534_v43 = vsub.f32 %v14534_v2, %v7519_v27 }
 0x92c   : > { %v7543_v26 = vadd.f32 1e-05, %v7525_v56 }
 0x92d   : > { %v7482_v31 = vpop.xlane.xlu2 %7481 }
 0x92e   : > { %10180 = vrsqrt.f32 %v7543_v26  ;;  %v14567_v33 = vmul.f32 0.001953125, %v7482_v31  ;;  %vm7551_vm1 = vweird.f32 %v7543_v26 }
 0x92f   : > { %v7518_v10 = vpop.xlane.xlu0 %7517 }
 0x930   : > { %v7522_v59 = vmul.f32 0.001953125, %v7518_v10  ;;  %v7524_v29 = vmul.f32 %v14567_v33, %v14567_v33  ;;  %v7535_v46 = vsub.f32 %v14479_v41, %v14567_v33  ;;  %v7536_v2 = vsub.f32 %v14483_v48, %v14567_v33 }
 0x931   : > { %v7537_v27 = vsub.f32 %v14506_v55, %v14567_v33 }
 0x932   : > { %v7526_v53 = vsub.f32 %v7522_v59, %v7524_v29  ;;  %v7538_v59 = vsub.f32 %v14516_v36, %v14567_v33 }
 0x934   : > { %v10181_v15 = vpop.eup %10180  ;;  %v7544_v16 = vadd.f32 1e-05, %v7526_v53 }
 0x935   : > { %v7546_v20 = vmul.f32 %v10181_v15, %v7543_v26  ;;  %vm7552_vm15 = vweird.f32 %v10181_v15 }
 0x936   : > { %10182 = vrsqrt.f32 %v7544_v16  ;;  %vm7553_vm3 = vmor %vm7551_vm1, %vm7552_vm15  ;;  %vm7561_vm14 = vweird.f32 %v7544_v16 }
 0x937   : > { %v7547_v0 = vmul.f32 %v10181_v15, %v7546_v20 }
 0x939   : > { %v7548_v5 = vmul.f32 0.5, %v7547_v0 }
 0x93b   : > { %v7549_v51 = vsub.f32 1.5, %v7548_v5 }
 0x93c   : > { %v10183_v42 = vpop.eup %10182 }
 0x93d   : > { %v7550_v44 = vmul.f32 %v10181_v15, %v7549_v51  ;;  %v7556_v1 = vmul.f32 %v10183_v42, %v7544_v16  ;;  %vm7562_vm4 = vweird.f32 %v10183_v42  ;;  %v7540_v16 = vsub.f32 %v14538_v19, %v14567_v33 }
 0x93e   : > { %vm7563_vm11 = vmor %vm7561_vm14, %vm7562_vm4 }
 0x93f   : > { %v7554_v57 = vsel %vm7553_vm3, %v10181_v15, %v7550_v44  ;;  %v7557_v12 = vmul.f32 %v10183_v42, %v7556_v1  ;;  %v7539_v15 = vsub.f32 %v14526_v6, %v14567_v33  ;;  %v7541_v44 = vsub.f32 %v14549_v39, %v14567_v33 }
 0x940   : > { %v7565_v47 = vmul.f32 %v7554_v57, %v7527_v8  ;;  %v7566_v24 = vmul.f32 %v7554_v57, %v7528_v18  ;;  %v7567_v30 = vmul.f32 %v7554_v57, %v7529_v17  ;;  %v7568_v40 = vmul.f32 %v7554_v57, %v7530_v52 }
 0x941   : > { %v7558_v37 = vmul.f32 0.5, %v7557_v12  ;;  %v7569_v38 = vmul.f32 %v7554_v57, %v7531_v58  ;;  %v7570_v34 = vmul.f32 %v7554_v57, %v7532_v14  ;;  %v7572_v4 = vmul.f32 %v7554_v57, %v7534_v43 }
 0x942   : > { %v7581_v62 = vmax.f32 %v7565_v47, 0.0  ;;  %v7582_v13 = vmax.f32 %v7566_v24, 0.0  ;;  %v7583_v3 = vmax.f32 %v7567_v30, 0.0  ;;  %v7584_v21 = vmax.f32 %v7568_v40, 0.0 }
 0x943   : > { %v7559_v54 = vsub.f32 1.5, %v7558_v37  ;;  %v7571_v32 = vmul.f32 %v7554_v57, %v7533_v9  ;;  %v7585_v7 = vmax.f32 %v7569_v38, 0.0  ;;  %v7586_v10 = vmax.f32 %v7570_v34, 0.0 }
 0x944   : > { %v14580_v35 = vmul.f32 %v7581_v62, %v15238_v63  ;;  %v14583_v23 = vmul.f32 %v7582_v13, %v15239_v60  ;;  %v14592_v56 = vmul.f32 %v7583_v3, %v15240_v22  ;;  %v7588_v41 = vmax.f32 %v7572_v4, 0.0 }
 0x945   : > { %v7560_v49 = vmul.f32 %v10183_v42, %v7559_v54  ;;  %v14599_v48 = vmul.f32 %v7584_v21, %v15241_v45  ;;  %v7587_v5 = vmax.f32 %v7571_v32, 0.0  ;;  %v14607_v51 = vmul.f32 %v7585_v7, %v15242_v11 }
 0x946   : > { %v7613_v26 = vadd.f32 %v14583_v23, %v14580_v35  ;;  %v14613_v6 = vmul.f32 %v7586_v10, %v15243_v28  ;;  %v14616_v19 = vmul.f32 %v7588_v41, %v15245_v61  ;;  %v7542_v52 = vsub.f32 %v14559_v50, %v14567_v33 }
 0x947   : > { %v7564_v31 = vsel %vm7563_vm11, %v10183_v42, %v7560_v49  ;;  %v14628_v47 = vmul.f32 %v7587_v5, %v15244_v25 }
 0x948   : > { %v7614_v55 = vadd.f32 %v7613_v26, %v14592_v56  ;;  %v7573_v29 = vmul.f32 %v7564_v31, %v7535_v46  ;;  %v7574_v53 = vmul.f32 %v7564_v31, %v7536_v2  ;;  %v7575_v20 = vmul.f32 %v7564_v31, %v7537_v27  ;;  %v7635_v27 = vld [vmem:[%s14773_s5] sm:$0xff] }
 0x949   : > { %v7576_v0 = vmul.f32 %v7564_v31, %v7538_v59  ;;  %v7577_v1 = vmul.f32 %v7564_v31, %v7539_v15  ;;  %v7578_v57 = vmul.f32 %v7564_v31, %v7540_v16  ;;  %v7580_v30 = vmul.f32 %v7564_v31, %v7542_v52  ;;  %v7649_v16 = vld [vmem:[#allocation4] sm:$0x1] }
 0x94a   : > { %v7615_v36 = vadd.f32 %v7614_v55, %v14599_v48  ;;  %v7589_v42 = vmax.f32 %v7573_v29, 0.0  ;;  %v7590_v8 = vmax.f32 %v7574_v53, 0.0  ;;  %v7591_v18 = vmax.f32 %v7575_v20, 0.0 }
 0x94b   : > { %v7592_v12 = vmax.f32 %v7576_v0, 0.0  ;;  %v7579_v40 = vmul.f32 %v7564_v31, %v7541_v44  ;;  %v7593_v37 = vmax.f32 %v7577_v1, 0.0  ;;  %v7594_v33 = vmax.f32 %v7578_v57, 0.0  ;;  %v7659_v1 = vld [vmem:[%s14776_s8] sm:$0xff] }
 0x94c   : > { %v7616_v17 = vadd.f32 %v7615_v36, %v14607_v51  ;;  %v14622_v58 = vmul.f32 %v7589_v42, %v15238_v63  ;;  %v14625_v39 = vmul.f32 %v7590_v8, %v15239_v60  ;;  %v14632_v14 = vmul.f32 %v7591_v18, %v15240_v22  ;;  %v7652_v36 = vld [vmem:[%s14775_s7] sm:$0xff]  ;;  %v7653_v42 = vld [vmem:[%s14775_s7 + $0x8] sm:$0xff] }
 0x94d   : > { %v7619_v60 = vsel %vm3860_vm10, %v14616_v19, 0.0  ;;  %v14640_v9 = vmul.f32 %v7592_v12, %v15241_v45  ;;  %v7596_v62 = vmax.f32 %v7580_v30, 0.0  ;;  %v7595_v13 = vmax.f32 %v7579_v40, 0.0  ;;  %v7660_v8 = vld [vmem:[%s14776_s8 + $0x8] sm:$0xff] }
 0x94e   : > { %v7617_v24 = vadd.f32 %v7616_v17, %v14613_v6  ;;  %v7623_v50 = vadd.f32 %v14625_v39, %v14622_v58  ;;  %v14644_v22 = vmul.f32 %v7593_v37, %v15242_v11  ;;  %v14648_v54 = vmul.f32 %v7594_v33, %v15243_v28 }
 0x94f   : > { %v14652_v4 = vmul.f32 %v7596_v62, %v15245_v61  ;;  %v14655_v45 = vmul.f32 %v7595_v13, %v15244_v25  ;;  %v7636_v25 = vld [vmem:[%s14773_s5 + $0x8] sm:$0xff] }
 0x950   : > { %v7618_v63 = vadd.f32 %v7617_v24, %v14628_v47  ;;  %v7624_v43 = vadd.f32 %v7623_v50, %v14632_v14 }
 0x951   : > { %v7629_v11 = vsel %vm3860_vm10, %v14652_v4, 0.0 }
 0x952   : > { %v7620_v38 = vadd.f32 %v7619_v60, %v7618_v63  ;;  %v7625_v3 = vadd.f32 %v7624_v43, %v14640_v9 }
 0x954   : > { %7621 = vadd.xlane.f32.xlu2 %v7620_v38  ;;  %v7626_v34 = vadd.f32 %v7625_v3, %v14644_v22 }
 0x956   : > { %v7627_v21 = vadd.f32 %v7626_v34, %v14648_v54 }
 0x958   : > { %v7628_v46 = vadd.f32 %v7627_v21, %v14655_v45 }
 0x95a   : > { %v7630_v49 = vadd.f32 %v7629_v11, %v7628_v46 }
 0x95c   : > { %7631 = vadd.xlane.f32.xlu1 %v7630_v49 }
 0x9c7   : > { %v7622_v2 = vpop.xlane.xlu2 %7621 }
 0x9c8   : > { %v7633_v28 = vmul.f32 0.001953125, %v7622_v2 }
 0x9ca   : > { %v7637_v32 = vmul.f32 %v7635_v27, %v7633_v28 }
 0x9cc   : > { %v7640_v31 = vsel %vm15246_vm5, %v7637_v32, 0.0 }
 0x9cf   : > { %v7632_v61 = vpop.xlane.xlu1 %7631 }
 0x9d0   : > { %v7634_v7 = vmul.f32 0.001953125, %v7632_v61 }
 0x9d2   : > { %v7638_v26 = vmul.f32 %v7636_v25, %v7634_v7 }
 0x9d4   : > { %v7641_v10 = vsel %vm15247_vm13, %v7638_v26, 0.0 }
 0x9d5   : > { %v7642_v41 = vadd.f32 %v7641_v10, %v7640_v31 }
 0x9d7   : > { %v7643_v59 = vrot.slane %v7642_v41, 4 }
 0x9d9   : > { %v7644_v55 = vadd.f32 %v7643_v59, %v7642_v41 }
 0x9db   : > { %v7645_v29 = vrot.slane %v7644_v55, 2 }
 0x9dd   : > { %v7646_v53 = vadd.f32 %v7645_v29, %v7644_v55 }
 0x9df   : > { %v7647_v15 = vrot.slane %v7646_v53, 1 }
 0x9e1   : > { %v7648_v20 = vadd.f32 %v7647_v15, %v7646_v53 }
 0x9e3   : > { %v7650_v0 = vadd.f32 %v7649_v16, %v7648_v20 }
 0x9e5   : > { %v7651_v5 = vmax.f32 %v7650_v0, 0.0  ;;  %v10210_v0 = vld [vmem:[%s15248_s26 + $0x58] sm:$0xff] }
 0x9e7   : > { %v7654_v44 = vperm.slane %v7651_v5, 0 }
 0x9e9   : > { %v7655_v18 = vmul.f32 %v7654_v44, %v7652_v36  ;;  %v7656_v17 = vmul.f32 %v7654_v44, %v7653_v42 }
 0x9eb   : > { %v7661_v52 = vadd.f32 %v7659_v1, %v7655_v18  ;;  %v7662_v57 = vadd.f32 %v7660_v8, %v7656_v17  ;;  %v10214_v1 = vld [vmem:[%s15248_s26 + $0x78] sm:$0xff]  ;;  %v10215_v8 = vld [vmem:[%s15248_s26 + $0x80] sm:$0xff]  ;;  %v10216_v18 = vld [vmem:[%s15248_s26 + $0x88] sm:$0xff] }
 0x9ed   : > { %v7663_v12 = vsub.f32 0.0, %v7661_v52  ;;  %v7664_v24 = vsub.f32 0.0, %v7662_v57  ;;  %v10217_v57 = vld [vmem:[%s15248_s26 + $0x90] sm:$0xff] }
 0x9ef   : > { %v7665_v30 = vmul.f32 1.442695, %v7663_v12  ;;  %v7667_v40 = vmul.f32 1.442695, %v7664_v24 }
 0x9f1   : > { %10184 = vpow2.f32 %v7665_v30 }
 0x9f2   : > { %10186 = vpow2.f32 %v7667_v40 }
 0x9f7   : > { %v10185_v37 = vpop.eup %10184 }
 0x9f8   : > { %v10187_v50 = vpop.eup %10186  ;;  %v7669_v63 = vadd.f32 1.0, %v10185_v37 }
 0x9f9   : > { %v7670_v60 = vadd.f32 1.0, %v10187_v50 }
 0x9fa   : > { %10188 = vrcp.f32 %v7669_v63  ;;  %v7682_v34 = vand.u32 2147483648, %v7669_v63  ;;  %v7680_v11 = vand.u32 2147483647, %v7669_v63  ;;  %vm7676_vm8 = vweird.f32 %v7669_v63 }
 0x9fb   : > { %10190 = vrcp.f32 %v7670_v60  ;;  %v7697_v21 = vand.u32 2147483648, %v7670_v60  ;;  %v7695_v2 = vand.u32 2147483647, %v7670_v60  ;;  %vm7691_vm9 = vweird.f32 %v7670_v60 }
 0x9fc   : > { %v7683_v25 = vor.u32 1.1754944e-38, %v7682_v34  ;;  %vm7681_vm2 = vcmp.eq.f32.partialorder %v7680_v11, 8.507059e+37  ;;  %v10218_v34 = vld [vmem:[%s15248_s26 + $0x8] sm:$0xff]  ;;  %v10221_v11 = vld [vmem:[%s15248_s26 + $0x20] sm:$0xff] }
 0x9fd   : > { %v7698_v61 = vor.u32 1.1754944e-38, %v7697_v21  ;;  %vm7696_vm15 = vcmp.eq.f32.partialorder %v7695_v2, 8.507059e+37  ;;  %v10219_v21 = vld [vmem:[%s15248_s26 + $0x10] sm:$0xff] }
 0xa00   : > { %v10189_v33 = vpop.eup %10188 }
 0xa01   : > { %v10191_v43 = vpop.eup %10190  ;;  %v7672_v38 = vmul.f32 %v10189_v33, %v7669_v63  ;;  %vm7677_vm6 = vweird.f32 %v10189_v33 }
 0xa02   : > { %v7687_v62 = vmul.f32 %v10191_v43, %v7670_v60  ;;  %vm7692_vm7 = vweird.f32 %v10191_v43  ;;  %vm7678_vm12 = vmor %vm7676_vm8, %vm7677_vm6 }
 0xa03   : > { %v7673_v13 = vsub.f32 1.0, %v7672_v38  ;;  %vm7693_vm0 = vmor %vm7691_vm9, %vm7692_vm7 }
 0xa04   : > { %v7688_v3 = vsub.f32 1.0, %v7687_v62 }
 0xa05   : > { %v7674_v46 = vmul.f32 %v10189_v33, %v7673_v13 }
 0xa06   : > { %v7689_v49 = vmul.f32 %v10191_v43, %v7688_v3 }
 0xa07   : > { %v7675_v28 = vadd.f32 %v10189_v33, %v7674_v46  ;;  %v10220_v46 = vld [vmem:[%s15248_s26 + $0x18] sm:$0xff] }
 0xa08   : > { %v7690_v27 = vadd.f32 %v10191_v43, %v7689_v49  ;;  %v10222_v49 = vld [vmem:[%s15248_s26 + $0x28] sm:$0xff] }
 0xa09   : > { %v7679_v32 = vsel %vm7678_vm12, %v10189_v33, %v7675_v28 }
 0xa0a   : > { %v7694_v7 = vsel %vm7693_vm0, %v10191_v43, %v7690_v27  ;;  %v7684_v26 = vsel %vm7681_vm2, %v7683_v25, %v7679_v32 }
 0xa0b   : > { %v7699_v31 = vsel %vm7696_vm15, %v7698_v61, %v7694_v7  ;;  %7703 = vperm.xlu0 %10173, %v7684_v26   ;;  %v10225_v61 = vld [vmem:[%s15248_s26 + $0x40] sm:$0xff] }
 0xa0c   : > { %7708 = vperm.xlu2 %10175, %v7699_v31  }
 0xa66   : > { %v7709_v10 = vpop.permute.xlu2 %7708 }
 0xa67   : > { %v7719_v41 = vmul.f32 %v7709_v10, %v14622_v58  ;;  %v7720_v59 = vmul.f32 %v7709_v10, %v14625_v39  ;;  %v7721_v55 = vmul.f32 %v7709_v10, %v14632_v14  ;;  %v7722_v29 = vmul.f32 %v7709_v10, %v14640_v9  ;;  %v10211_v58 = vld [vmem:[%s15248_s26 + $0x60] sm:$0xff]  ;;  %v10212_v39 = vld [vmem:[%s15248_s26 + $0x68] sm:$0xff]  ;;  %v10213_v14 = vld [vmem:[%s15248_s26 + $0x70] sm:$0xff] }
 0xa68   : > { %v7723_v53 = vmul.f32 %v7709_v10, %v14644_v22  ;;  %v7724_v15 = vmul.f32 %v7709_v10, %v14648_v54  ;;  %v7725_v16 = vmul.f32 %v7709_v10, %v14655_v45  ;;  %v7726_v20 = vmul.f32 %v7709_v10, %v14652_v4 }
 0xa69   : > { %v7735_v5 = vadd.f32 %v10210_v0, %v7719_v41  ;;  %v7736_v36 = vadd.f32 %v10211_v58, %v7720_v59  ;;  %v7737_v42 = vadd.f32 %v10212_v39, %v7721_v55  ;;  %v7738_v44 = vadd.f32 %v10213_v14, %v7722_v29 }
 0xa6a   : > { %v7739_v9 = vadd.f32 %v10214_v1, %v7723_v53  ;;  %v7740_v22 = vadd.f32 %v10215_v8, %v7724_v15  ;;  %v7741_v17 = vadd.f32 %v10216_v18, %v7725_v16  ;;  %v7742_v4 = vadd.f32 %v10217_v57, %v7726_v20 }
 0xa6b   : > { %v7751_v54 = vmax.f32 %v7735_v5, 0.0  ;;  %v7752_v52 = vmax.f32 %v7736_v36, 0.0  ;;  %v7753_v45 = vmax.f32 %v7737_v42, 0.0  ;;  %v7754_v12 = vmax.f32 %v7738_v44, 0.0 }
 0xa6c   : > { %v7755_v24 = vmax.f32 %v7739_v9, 0.0  ;;  %v7756_v30 = vmax.f32 %v7740_v22, 0.0  ;;  %v7757_v40 = vmax.f32 %v7741_v17, 0.0  ;;  %v7758_v37 = vmax.f32 %v7742_v4, 0.0 }
 0xa6d   : > { %7767 = vst [vmem:[%s14698_s15 + $0x40] sm:$0xff] %v7751_v54 }
 0xa6e   : > { %7768 = vst [vmem:[%s14698_s15 + $0x48] sm:$0xff] %v7752_v52 }
 0xa6f   : > { %7769 = vst [vmem:[%s14698_s15 + $0x50] sm:$0xff] %v7753_v45 }
 0xa70   : > { %7770 = vst [vmem:[%s14698_s15 + $0x58] sm:$0xff] %v7754_v12 }
 0xa71   : > { %7771 = vst [vmem:[%s14698_s15 + $0x60] sm:$0xff] %v7755_v24 }
 0xa72   : > { %7772 = vst [vmem:[%s14698_s15 + $0x68] sm:$0xff] %v7756_v30 }
 0xa73   : > { %7773 = vst [vmem:[%s14698_s15 + $0x70] sm:$0xff] %v7757_v40 }
 0xa74   : > { %7774 = vst.msk [vmem:[%s14698_s15 + $0x78] sm:$0xff] %vm3860_vm10, %v7758_v37 }
 0xa7d   : > { %v7704_v50 = vpop.permute.xlu0 %7703 }
 0xa7e   : > { %v7711_v63 = vmul.f32 %v7704_v50, %v14580_v35  ;;  %v7712_v60 = vmul.f32 %v7704_v50, %v14583_v23  ;;  %v7713_v33 = vmul.f32 %v7704_v50, %v14592_v56  ;;  %v7714_v43 = vmul.f32 %v7704_v50, %v14599_v48 }
 0xa7f   : > { %v7715_v38 = vmul.f32 %v7704_v50, %v14607_v51  ;;  %v7716_v62 = vmul.f32 %v7704_v50, %v14613_v6  ;;  %v7717_v13 = vmul.f32 %v7704_v50, %v14628_v47  ;;  %v7718_v3 = vmul.f32 %v7704_v50, %v14616_v19  ;;  %v10223_v6 = vld [vmem:[%s15248_s26 + $0x30] sm:$0xff]  ;;  %v10224_v47 = vld [vmem:[%s15248_s26 + $0x38] sm:$0xff] }
 0xa80   : > { %v7727_v35 = vadd.f32 %v10218_v34, %v7711_v63  ;;  %v7728_v23 = vadd.f32 %v10219_v21, %v7712_v60  ;;  %v7729_v56 = vadd.f32 %v10220_v46, %v7713_v33  ;;  %v7730_v48 = vadd.f32 %v10221_v11, %v7714_v43 }
 0xa81   : > { %v7731_v51 = vadd.f32 %v10222_v49, %v7715_v38  ;;  %v7732_v2 = vadd.f32 %v10223_v6, %v7716_v62  ;;  %v7733_v19 = vadd.f32 %v10224_v47, %v7717_v13  ;;  %v7734_v32 = vadd.f32 %v10225_v61, %v7718_v3 }
 0xa82   : > { %v7743_v28 = vmax.f32 %v7727_v35, 0.0  ;;  %v7744_v27 = vmax.f32 %v7728_v23, 0.0  ;;  %v7745_v25 = vmax.f32 %v7729_v56, 0.0  ;;  %v7746_v7 = vmax.f32 %v7730_v48, 0.0 }
 0xa83   : > { %v7747_v26 = vmax.f32 %v7731_v51, 0.0  ;;  %v7748_v31 = vmax.f32 %v7732_v2, 0.0  ;;  %v7749_v10 = vmax.f32 %v7733_v19, 0.0  ;;  %v7750_v41 = vmax.f32 %v7734_v32, 0.0 }
 0xa84   : > { %7759 = vst [vmem:[%s14698_s15] sm:$0xff] %v7743_v28 }
 0xa85   : > { %7760 = vst [vmem:[%s14698_s15 + $0x8] sm:$0xff] %v7744_v27 }
 0xa86   : > { %7761 = vst [vmem:[%s14698_s15 + $0x10] sm:$0xff] %v7745_v25 }
 0xa87   : > { %7762 = vst [vmem:[%s14698_s15 + $0x18] sm:$0xff] %v7746_v7 }
 0xa88   : > { %7763 = vst [vmem:[%s14698_s15 + $0x20] sm:$0xff] %v7747_v26 }
 0xa89   : > { %7764 = vst [vmem:[%s14698_s15 + $0x28] sm:$0xff] %v7748_v31 }
 0xa8a   : > { %7765 = vst [vmem:[%s14698_s15 + $0x30] sm:$0xff] %v7749_v10 }
 0xa8b   : > { %7766 = vst.msk [vmem:[%s14698_s15 + $0x38] sm:$0xff] %vm3860_vm10, %v7750_v41 }
 0xa8c   : > { %10283 = shalt.err (!%p10280_p7)
}
 0xa8d   : > { %s10354_s12 = smov 1024   ;;  %s10355_s28 = smov 64  }
 0xa8e   : > { %10097 = dma.vmem_to_hbm [thread:$0]  (%p10460_p11), %s7789_s0, 2048, %s7791_s1, %s7776_s9, %s10354_s12, %s10354_s12, %s10355_s28  }
 0xa8f PF: > { %s15252_s29 = sld [smem:[#allocation11_spill]]  ;;  %p10104_p8 = pnand %p7866_p9, %p10464_p12 }
 0xa91   : > { %p10105_p10 = pneg %p10104_p8 }
 0xa95   : > { %s7805_s11 = sand.u32 1, %s15252_s29  }
 0xa96   : > { %s7806_s26 = scalar_lea.sflag [#allocation7], %s7805_s11 }
 0xa97   : > { %10305 = dma.done.wait (%p10105_p10), %s7806_s26, 2048  }
 0xa98   : > { %10307 = vsyncadd (%p10105_p10), %s7806_s26, 4294965248  ;;  %s15255_s18 = sld [smem:[#allocation16_spill]] }
 0xa99   : > { %s15256_s15 = sld [smem:[#allocation12_spill]] }
 0xa9a   : > { %s15257_s16 = sld [smem:[#allocation13_spill]] }
 0xa9b   : > { %s15258_s17 = sld [smem:[#allocation17_spill]] }
 0xa9e   : > { %p25_p0 = scmp.ge.s32.totalorder %s15255_s18, 4  }
 0xaa0   :  { %27 = sbr.rel (!%p25_p0) target bundleno = 11 (0xb), region = 105 }
 0xaa5   :  { %7812 = vsyncpa [#allocation6], 1 }
 0xaa6   :  { %7814 = vsyncpa [#allocation6 + $0x1], 1 }
 0xaa7   :  { %7815 = vsyncpa [#allocation7], 1 }
 0xaa8   :  { %7817 = vsyncpa [#allocation7 + $0x1], 1 }

</bundles_post_ra>
